<compile_context>
chip_gen: v7x
topology: tpu7x:2x2x1
jax: 0.10.0
libtpu: 0.0.40
codegen_flags: <defaults>
</compile_context>

<pallas_src>
import jax
import jax.numpy as jnp
import numpy as np
from jax.experimental import pallas as pl
from jax.experimental.pallas import tpu as pltpu

EPS = 1e-5            # PyTorch BatchNorm default eps
H = W = 28
HW = H * W            # 784
PAD = 32              # zero border in the shift buffer (needs >= 29)
EXT_W = HW + 2 * PAD  # 848


# ----------------------------- Pallas kernels -----------------------------

def _fused_kernel(x_ref, w1_ref, t1_ref, w2_ref, t2_ref, mask_ref, w1c_ref, t3_ref,
                  o_ref, ext_ref):
    f32 = jnp.float32
    # Only the padding borders need zeroing; the interior is always rewritten before use.
    ext_ref[:, 0:PAD] = jnp.zeros((6, PAD), f32)
    ext_ref[:, PAD + HW:] = jnp.zeros((6, PAD), f32)

    masks = mask_ref[...]                 # (3, 784) horizontal-boundary masks (per kw)
    w1 = w1_ref[...]                      # (3, 9)   conv1 weights (BN folded)
    w2 = w2_ref[...]                      # (6, 27)  conv2 weights (BN folded)

    # ---------------- conv1 (1 -> 3) + BN + ReLU (VPU broadcast FMAs) ----------------
    ext_ref[0:1, PAD:PAD + HW] = x_ref[...].reshape(1, HW)
    a1 = None
    for kh in range(3):
        for kw in range(3):
            d = (kh - 1) * 28 + (kw - 1)
            r = kh * 3 + kw
            tap = ext_ref[0:1, PAD + d:PAD + d + HW] * masks[kw:kw + 1, :]   # (1, 784)
            term = w1[:, r:r + 1] * tap                                      # (3, 784)
            a1 = term if a1 is None else a1 + term
    a1 = jnp.maximum(a1 + t1_ref[...], 0.0)                                  # (3, 784)

    # ---------------- conv2 (3 -> 6) + BN + ReLU (VPU broadcast FMAs) ----------------
    ext_ref[0:3, PAD:PAD + HW] = a1
    a2 = None
    for kh in range(3):
        for kw in range(3):
            d = (kh - 1) * 28 + (kw - 1)
            k = kh * 3 + kw
            tap = ext_ref[0:3, PAD + d:PAD + d + HW] * masks[kw:kw + 1, :]   # (3, 784)
            for ci in range(3):
                term = w2[:, 3 * k + ci:3 * k + ci + 1] * tap[ci:ci + 1, :]  # (6, 784)
                a2 = term if a2 is None else a2 + term
    a2 = jnp.maximum(a2 + t2_ref[...], 0.0)                                  # (6, 784)

    # ---------------- 2x2 / stride-2 max pool (fused) ----------------
    # m[c, 2i*28+2j] = pooled value; other lanes are garbage but are multiplied by
    # zero rows of the folded fc1 weight slab below.
    ext_ref[0:6, PAD:PAD + HW] = a2
    m = a2
    for d in (1, 28, 29):
        m = jnp.maximum(m, ext_ref[0:6, PAD + d:PAD + d + HW])               # (6, 784)

    # ------- fc1 + BN + ReLU (pool-select + flatten + BN scale folded into w1c) -------
    z = jnp.dot(m, w1c_ref[...], preferred_element_type=jnp.float32)         # (6, 768)
    acc = t3_ref[...]                                                        # (1, 128)
    for c in range(6):
        acc = acc + z[c:c + 1, c * 128:(c + 1) * 128]
    o_ref[...] = jnp.maximum(acc, 0.0).reshape(1, 1, 128)


def _fc2_softmax_kernel(h_ref, w_ref, b_ref, o_ref):
    logits = jnp.dot(h_ref[...], w_ref[...],
                     preferred_element_type=jnp.float32) + b_ref[...]
    # NOTE: the torch module does F.softmax(..., dim=0) -> softmax over the BATCH axis.
    mx = jnp.max(logits, axis=0, keepdims=True)
    e = jnp.exp(logits - mx)
    o_ref[...] = e / jnp.sum(e, axis=0, keepdims=True)


# ------------------------------- wrapper -----------------------------------

def net_forward(x, p):
    B = x.shape[0]
    f32 = jnp.float32

    # ---- fold BatchNorm into conv / fc weights & biases (host-side constants) ----
    s1 = p["bn1_g"] / jnp.sqrt(p["bn1_v"] + EPS)
    t1 = (p["conv1_b"] - p["bn1_m"]) * s1 + p["bn1_b"]
    w1f = p["conv1_w"].reshape(3, 9) * s1[:, None]                       # (3, 9)

    s2 = p["bn2_g"] / jnp.sqrt(p["bn2_v"] + EPS)
    t2 = (p["conv2_b"] - p["bn2_m"]) * s2 + p["bn2_b"]
    # tap index order is (kh, kw, c_in) -> weight must match
    w2f = p["conv2_w"].transpose(0, 2, 3, 1).reshape(6, 27) * s2[:, None]  # (6, 27)

    s3 = p["bn3_g"] / jnp.sqrt(p["bn3_v"] + EPS)
    t3 = (p["fc1_b"] - p["bn3_m"]) * s3 + p["bn3_b"]
    # Fold pool-selection + NCHW flatten + fc1 + BN scale into one (784, 6*128) slab,
    # fc1 channel padded 120 -> 128 for lane-dense output stores.
    w4 = p["fc1_w"].reshape(120, 6, 14, 14)                              # (n, c, i, j)
    w1eff = jnp.zeros((6, 28, 28, 128), f32)
    w1eff = w1eff.at[:, 0::2, 0::2, :120].set(
        w4.transpose(1, 2, 3, 0) * s3[None, None, None, :])
    w1cat = w1eff.reshape(6, HW, 128).transpose(1, 0, 2).reshape(HW, 6 * 128)
    t3p = jnp.zeros((1, 128), f32).at[0, :120].set(t3)

    # horizontal-boundary masks for the 3 kw taps (dw = kw - 1)
    wpos = jnp.arange(HW, dtype=jnp.int32) % 28
    masks = jnp.stack([(wpos >= 1).astype(f32),
                       jnp.ones((HW,), f32),
                       (wpos <= 26).astype(f32)], axis=0)                # (3, 784)

    x3 = x.reshape(B, 1, HW).astype(f32)

    # ---- fused conv1/conv2/pool/fc1 kernel, gridded over the batch ----
    h = pl.pallas_call(
        _fused_kernel,
        out_shape=jax.ShapeDtypeStruct((B, 1, 128), f32),
        grid=(B,),
        in_specs=[
            pl.BlockSpec((1, 1, HW), lambda i: (i, 0, 0)),   # image
            pl.BlockSpec((3, 9), lambda i: (0, 0)),          # conv1 w (BN folded)
            pl.BlockSpec((3, 1), lambda i: (0, 0)),          # conv1 bias (BN folded)
            pl.BlockSpec((6, 27), lambda i: (0, 0)),         # conv2 w (BN folded)
            pl.BlockSpec((6, 1), lambda i: (0, 0)),          # conv2 bias (BN folded)
            pl.BlockSpec((3, HW), lambda i: (0, 0)),         # boundary masks
            pl.BlockSpec((HW, 6 * 128), lambda i: (0, 0)),   # folded fc1 slab
            pl.BlockSpec((1, 128), lambda i: (0, 0)),        # fc1 bias (BN folded, padded)
        ],
        out_specs=pl.BlockSpec((1, 1, 128), lambda i: (i, 0, 0)),
        scratch_shapes=[
            pltpu.VMEM((6, EXT_W), f32),     # zero-padded shift buffer
        ],
        compiler_params=pltpu.CompilerParams(
            dimension_semantics=("parallel",),
            vmem_limit_bytes=32 * 1024 * 1024),
    )(x3, w1f, t1.reshape(3, 1), w2f, t2.reshape(6, 1), masks, w1cat, t3p)

    h = h.reshape(B, 128)

    # ---- fc2 + softmax over dim=0 (needs the whole batch -> tiny second call) ----
    w2p = jnp.zeros((128, 10), f32).at[:120, :].set(p["fc2_w"].T)
    out = pl.pallas_call(
        _fc2_softmax_kernel,
        out_shape=jax.ShapeDtypeStruct((B, 10), f32),
        grid=(1,),
        in_specs=[
            pl.BlockSpec((B, 128), lambda i: (0, 0)),
            pl.BlockSpec((128, 10), lambda i: (0, 0)),
            pl.BlockSpec((1, 10), lambda i: (0, 0)),
        ],
        out_specs=pl.BlockSpec((B, 10), lambda i: (0, 0)),
    )(h, w2p, p["fc2_b"].reshape(1, 10))
    return out


# --------------------------- pure-JAX reference ----------------------------

def reference_forward(x, p):
    def conv(x, w, b):
        y = jax.lax.conv_general_dilated(
            x, w, window_strides=(1, 1), padding=((1, 1), (1, 1)),
            dimension_numbers=("NCHW", "OIHW", "NCHW"))
        return y + b[None, :, None, None]

    def bn2d(y, g, b, m, v):
        return ((y - m[None, :, None, None])
                / jnp.sqrt(v[None, :, None, None] + EPS)
                * g[None, :, None, None] + b[None, :, None, None])

    o = jax.nn.relu(bn2d(conv(x, p["conv1_w"], p["conv1_b"]),
                         p["bn1_g"], p["bn1_b"], p["bn1_m"], p["bn1_v"]))
    o = jax.nn.relu(bn2d(conv(o, p["conv2_w"], p["conv2_b"]),
                         p["bn2_g"], p["bn2_b"], p["bn2_m"], p["bn2_v"]))
    B = o.shape[0]
    o = o.reshape(B, 6, 14, 2, 14, 2).max(axis=(3, 5))
    o = o.reshape(B, 6 * 14 * 14)
    h = o @ p["fc1_w"].T + p["fc1_b"]
    h = (h - p["bn3_m"]) / jnp.sqrt(p["bn3_v"] + EPS) * p["bn3_g"] + p["bn3_b"]
    h = jax.nn.relu(h)
    logits = h @ p["fc2_w"].T + p["fc2_b"]
    return jax.nn.softmax(logits, axis=0)


# ------------------------------- parameters --------------------------------

def init_params(key):
    ks = jax.random.split(key, 20)
    f32 = jnp.float32
    return {
        "conv1_w": 0.3 * jax.random.normal(ks[0], (3, 1, 3, 3), f32),
        "conv1_b": 0.1 * jax.random.normal(ks[1], (3,), f32),
        "bn1_g": jax.random.uniform(ks[2], (3,), f32, 0.5, 1.5),
        "bn1_b": 0.1 * jax.random.normal(ks[3], (3,), f32),
        "bn1_m": 0.1 * jax.random.normal(ks[4], (3,), f32),
        "bn1_v": jax.random.uniform(ks[5], (3,), f32, 0.5, 1.5),
        "conv2_w": 0.2 * jax.random.normal(ks[6], (6, 3, 3, 3), f32),
        "conv2_b": 0.1 * jax.random.normal(ks[7], (6,), f32),
        "bn2_g": jax.random.uniform(ks[8], (6,), f32, 0.5, 1.5),
        "bn2_b": 0.1 * jax.random.normal(ks[9], (6,), f32),
        "bn2_m": 0.1 * jax.random.normal(ks[10], (6,), f32),
        "bn2_v": jax.random.uniform(ks[11], (6,), f32, 0.5, 1.5),
        "fc1_w": 0.05 * jax.random.normal(ks[12], (120, 1176), f32),
        "fc1_b": 0.1 * jax.random.normal(ks[13], (120,), f32),
        "bn3_g": jax.random.uniform(ks[14], (120,), f32, 0.5, 1.5),
        "bn3_b": 0.1 * jax.random.normal(ks[15], (120,), f32),
        "bn3_m": 0.1 * jax.random.normal(ks[16], (120,), f32),
        "bn3_v": jax.random.uniform(ks[17], (120,), f32, 0.5, 1.5),
        "fc2_w": 0.1 * jax.random.normal(ks[18], (10, 120), f32),
        "fc2_b": 0.1 * jax.random.normal(ks[19], (10,), f32),
    }


if __name__ == "__main__":
    key = jax.random.PRNGKey(0)
    pkey, xkey = jax.random.split(key)
    params = init_params(pkey)

    # B=2 MNIST-style inputs (1 channel, 28x28 — fixed by nr_flat_features = 6*14*14)
    x = jax.random.normal(xkey, (2, 1, 28, 28), jnp.float32)

    out = jax.jit(net_forward)(x, params)
    out = jax.block_until_ready(out)
    assert out.shape == (2, 10)

    ref = reference_forward(x, params)
    np.testing.assert_allclose(np.asarray(out), np.asarray(ref), rtol=5e-3, atol=1e-3)

    print("KERNEL_OK")
</pallas_src>

<mosaic_0001>
module attributes {stable_mosaic.version = 11 : i64} {
  func.func @_fused_kernel(%arg0: i32, %arg1: memref<1x1x784xf32, #tpu.memory_space<vmem>>, %arg2: memref<3x9xf32, #tpu.memory_space<vmem>>, %arg3: memref<3x1xf32, #tpu.memory_space<vmem>>, %arg4: memref<6x27xf32, #tpu.memory_space<vmem>>, %arg5: memref<6x1xf32, #tpu.memory_space<vmem>>, %arg6: memref<3x784xf32, #tpu.memory_space<vmem>>, %arg7: memref<784x768xf32, #tpu.memory_space<vmem>>, %arg8: memref<1x128xf32, #tpu.memory_space<vmem>>, %arg9: memref<1x1x128xf32, #tpu.memory_space<vmem>>, %arg10: memref<6x848xf32, #tpu.memory_space<vmem>>) attributes {dimension_semantics = [#tpu.dimension_semantics<parallel>], iteration_bounds = array<i64: 2>, scalar_prefetch = 0 : i64, scratch_operands = 1 : i64, tpu.core_type = #tpu.core_type<tc>, window_params = [{transform_indices = @transform_0, window_bounds = array<i64: 1, 1, 784>}, {pipeline_mode = #tpu.pipeline_mode<synchronous>, transform_indices = @transform_1, window_bounds = array<i64: 3, 9>}, {pipeline_mode = #tpu.pipeline_mode<synchronous>, transform_indices = @transform_2, window_bounds = array<i64: 3, 1>}, {pipeline_mode = #tpu.pipeline_mode<synchronous>, transform_indices = @transform_3, window_bounds = array<i64: 6, 27>}, {pipeline_mode = #tpu.pipeline_mode<synchronous>, transform_indices = @transform_4, window_bounds = array<i64: 6, 1>}, {pipeline_mode = #tpu.pipeline_mode<synchronous>, transform_indices = @transform_5, window_bounds = array<i64: 3, 784>}, {pipeline_mode = #tpu.pipeline_mode<synchronous>, transform_indices = @transform_6, window_bounds = array<i64: 784, 768>}, {pipeline_mode = #tpu.pipeline_mode<synchronous>, transform_indices = @transform_7, window_bounds = array<i64: 1, 128>}, {transform_indices = @transform_8, window_bounds = array<i64: 1, 1, 128>}]} {
    %cst = arith.constant 0.000000e+00 : f32
    %0 = vector.broadcast %cst : f32 to vector<6x32xf32>
    %c0 = arith.constant 0 : index
    %c0_0 = arith.constant 0 : index
    %1 = vector.load %arg10[%c0, %c0_0] : memref<6x848xf32, #tpu.memory_space<vmem>>, vector<6x32xf32>
    tpu.vector_store %arg10[%c0, %c0_0], %0 {strides = array<i32>} : memref<6x848xf32, #tpu.memory_space<vmem>>, vector<6x32xf32>,
    %cst_1 = arith.constant 0.000000e+00 : f32
    %2 = vector.broadcast %cst_1 : f32 to vector<6x32xf32>
    %c0_2 = arith.constant 0 : index
    %c816 = arith.constant 816 : index
    %3 = vector.load %arg10[%c0_2, %c816] : memref<6x848xf32, #tpu.memory_space<vmem>>, vector<6x32xf32>
    tpu.vector_store %arg10[%c0_2, %c816], %2 {strides = array<i32>} : memref<6x848xf32, #tpu.memory_space<vmem>>, vector<6x32xf32>,
    %c0_3 = arith.constant 0 : index
    %c0_4 = arith.constant 0 : index
    %4 = vector.load %arg6[%c0_3, %c0_4] : memref<3x784xf32, #tpu.memory_space<vmem>>, vector<3x784xf32>
    %c0_5 = arith.constant 0 : index
    %c0_6 = arith.constant 0 : index
    %5 = vector.load %arg2[%c0_5, %c0_6] : memref<3x9xf32, #tpu.memory_space<vmem>>, vector<3x9xf32>
    %c0_7 = arith.constant 0 : index
    %c0_8 = arith.constant 0 : index
    %6 = vector.load %arg4[%c0_7, %c0_8] : memref<6x27xf32, #tpu.memory_space<vmem>>, vector<6x27xf32>
    %c0_9 = arith.constant 0 : index
    %c0_10 = arith.constant 0 : index
    %c0_11 = arith.constant 0 : index
    %7 = vector.load %arg1[%c0_9, %c0_10, %c0_11] : memref<1x1x784xf32, #tpu.memory_space<vmem>>, vector<1x1x784xf32>
    %8 = vector.shape_cast %7 : vector<1x1x784xf32> to vector<1x784xf32>
    %c0_12 = arith.constant 0 : index
    %c32 = arith.constant 32 : index
    %9 = vector.load %arg10[%c0_12, %c32] : memref<6x848xf32, #tpu.memory_space<vmem>>, vector<1x784xf32>
    tpu.vector_store %arg10[%c0_12, %c32], %8 {strides = array<i32>} : memref<6x848xf32, #tpu.memory_space<vmem>>, vector<1x784xf32>,
    %c0_13 = arith.constant 0 : index
    %c3 = arith.constant 3 : index
    %10 = vector.load %arg10[%c0_13, %c3] : memref<6x848xf32, #tpu.memory_space<vmem>>, vector<1x784xf32>
    %11 = vector.extract_strided_slice %4 {offsets = [0, 0], sizes = [1, 784], strides = [1, 1]} : vector<3x784xf32> to vector<1x784xf32>
    %12 = arith.mulf %10, %11 : vector<1x784xf32>
    %13 = vector.extract_strided_slice %5 {offsets = [0, 0], sizes = [3, 1], strides = [1, 1]} : vector<3x9xf32> to vector<3x1xf32>
    %14 = vector.broadcast %13 : vector<3x1xf32> to vector<3x784xf32>
    %15 = vector.broadcast %12 : vector<1x784xf32> to vector<3x784xf32>
    %16 = arith.mulf %14, %15 : vector<3x784xf32>
    %c0_14 = arith.constant 0 : index
    %c4 = arith.constant 4 : index
    %17 = vector.load %arg10[%c0_14, %c4] : memref<6x848xf32, #tpu.memory_space<vmem>>, vector<1x784xf32>
    %18 = vector.extract_strided_slice %4 {offsets = [1, 0], sizes = [1, 784], strides = [1, 1]} : vector<3x784xf32> to vector<1x784xf32>
    %19 = arith.mulf %17, %18 : vector<1x784xf32>
    %20 = vector.extract_strided_slice %5 {offsets = [0, 1], sizes = [3, 1], strides = [1, 1]} : vector<3x9xf32> to vector<3x1xf32>
    %21 = vector.broadcast %20 : vector<3x1xf32> to vector<3x784xf32>
    %22 = vector.broadcast %19 : vector<1x784xf32> to vector<3x784xf32>
    %23 = arith.mulf %21, %22 : vector<3x784xf32>
    %24 = arith.addf %16, %23 : vector<3x784xf32>
    %c0_15 = arith.constant 0 : index
    %c5 = arith.constant 5 : index
    %25 = vector.load %arg10[%c0_15, %c5] : memref<6x848xf32, #tpu.memory_space<vmem>>, vector<1x784xf32>
    %26 = vector.extract_strided_slice %4 {offsets = [2, 0], sizes = [1, 784], strides = [1, 1]} : vector<3x784xf32> to vector<1x784xf32>
    %27 = arith.mulf %25, %26 : vector<1x784xf32>
    %28 = vector.extract_strided_slice %5 {offsets = [0, 2], sizes = [3, 1], strides = [1, 1]} : vector<3x9xf32> to vector<3x1xf32>
    %29 = vector.broadcast %28 : vector<3x1xf32> to vector<3x784xf32>
    %30 = vector.broadcast %27 : vector<1x784xf32> to vector<3x784xf32>
    %31 = arith.mulf %29, %30 : vector<3x784xf32>
    %32 = arith.addf %24, %31 : vector<3x784xf32>
    %c0_16 = arith.constant 0 : index
    %c31 = arith.constant 31 : index
    %33 = vector.load %arg10[%c0_16, %c31] : memref<6x848xf32, #tpu.memory_space<vmem>>, vector<1x784xf32>
    %34 = vector.extract_strided_slice %4 {offsets = [0, 0], sizes = [1, 784], strides = [1, 1]} : vector<3x784xf32> to vector<1x784xf32>
    %35 = arith.mulf %33, %34 : vector<1x784xf32>
    %36 = vector.extract_strided_slice %5 {offsets = [0, 3], sizes = [3, 1], strides = [1, 1]} : vector<3x9xf32> to vector<3x1xf32>
    %37 = vector.broadcast %36 : vector<3x1xf32> to vector<3x784xf32>
    %38 = vector.broadcast %35 : vector<1x784xf32> to vector<3x784xf32>
    %39 = arith.mulf %37, %38 : vector<3x784xf32>
    %40 = arith.addf %32, %39 : vector<3x784xf32>
    %c0_17 = arith.constant 0 : index
    %c32_18 = arith.constant 32 : index
    %41 = vector.load %arg10[%c0_17, %c32_18] : memref<6x848xf32, #tpu.memory_space<vmem>>, vector<1x784xf32>
    %42 = vector.extract_strided_slice %4 {offsets = [1, 0], sizes = [1, 784], strides = [1, 1]} : vector<3x784xf32> to vector<1x784xf32>
    %43 = arith.mulf %41, %42 : vector<1x784xf32>
    %44 = vector.extract_strided_slice %5 {offsets = [0, 4], sizes = [3, 1], strides = [1, 1]} : vector<3x9xf32> to vector<3x1xf32>
    %45 = vector.broadcast %44 : vector<3x1xf32> to vector<3x784xf32>
    %46 = vector.broadcast %43 : vector<1x784xf32> to vector<3x784xf32>
    %47 = arith.mulf %45, %46 : vector<3x784xf32>
    %48 = arith.addf %40, %47 : vector<3x784xf32>
    %c0_19 = arith.constant 0 : index
    %c33 = arith.constant 33 : index
    %49 = vector.load %arg10[%c0_19, %c33] : memref<6x848xf32, #tpu.memory_space<vmem>>, vector<1x784xf32>
    %50 = vector.extract_strided_slice %4 {offsets = [2, 0], sizes = [1, 784], strides = [1, 1]} : vector<3x784xf32> to vector<1x784xf32>
    %51 = arith.mulf %49, %50 : vector<1x784xf32>
    %52 = vector.extract_strided_slice %5 {offsets = [0, 5], sizes = [3, 1], strides = [1, 1]} : vector<3x9xf32> to vector<3x1xf32>
    %53 = vector.broadcast %52 : vector<3x1xf32> to vector<3x784xf32>
    %54 = vector.broadcast %51 : vector<1x784xf32> to vector<3x784xf32>
    %55 = arith.mulf %53, %54 : vector<3x784xf32>
    %56 = arith.addf %48, %55 : vector<3x784xf32>
    %c0_20 = arith.constant 0 : index
    %c59 = arith.constant 59 : index
    %57 = vector.load %arg10[%c0_20, %c59] : memref<6x848xf32, #tpu.memory_space<vmem>>, vector<1x784xf32>
    %58 = vector.extract_strided_slice %4 {offsets = [0, 0], sizes = [1, 784], strides = [1, 1]} : vector<3x784xf32> to vector<1x784xf32>
    %59 = arith.mulf %57, %58 : vector<1x784xf32>
    %60 = vector.extract_strided_slice %5 {offsets = [0, 6], sizes = [3, 1], strides = [1, 1]} : vector<3x9xf32> to vector<3x1xf32>
    %61 = vector.broadcast %60 : vector<3x1xf32> to vector<3x784xf32>
    %62 = vector.broadcast %59 : vector<1x784xf32> to vector<3x784xf32>
    %63 = arith.mulf %61, %62 : vector<3x784xf32>
    %64 = arith.addf %56, %63 : vector<3x784xf32>
    %c0_21 = arith.constant 0 : index
    %c60 = arith.constant 60 : index
    %65 = vector.load %arg10[%c0_21, %c60] : memref<6x848xf32, #tpu.memory_space<vmem>>, vector<1x784xf32>
    %66 = vector.extract_strided_slice %4 {offsets = [1, 0], sizes = [1, 784], strides = [1, 1]} : vector<3x784xf32> to vector<1x784xf32>
    %67 = arith.mulf %65, %66 : vector<1x784xf32>
    %68 = vector.extract_strided_slice %5 {offsets = [0, 7], sizes = [3, 1], strides = [1, 1]} : vector<3x9xf32> to vector<3x1xf32>
    %69 = vector.broadcast %68 : vector<3x1xf32> to vector<3x784xf32>
    %70 = vector.broadcast %67 : vector<1x784xf32> to vector<3x784xf32>
    %71 = arith.mulf %69, %70 : vector<3x784xf32>
    %72 = arith.addf %64, %71 : vector<3x784xf32>
    %c0_22 = arith.constant 0 : index
    %c61 = arith.constant 61 : index
    %73 = vector.load %arg10[%c0_22, %c61] : memref<6x848xf32, #tpu.memory_space<vmem>>, vector<1x784xf32>
    %74 = vector.extract_strided_slice %4 {offsets = [2, 0], sizes = [1, 784], strides = [1, 1]} : vector<3x784xf32> to vector<1x784xf32>
    %75 = arith.mulf %73, %74 : vector<1x784xf32>
    %76 = vector.extract_strided_slice %5 {offsets = [0, 8], sizes = [3, 1], strides = [1, 1]} : vector<3x9xf32> to vector<3x1xf32>
    %77 = vector.broadcast %76 : vector<3x1xf32> to vector<3x784xf32>
    %78 = vector.broadcast %75 : vector<1x784xf32> to vector<3x784xf32>
    %79 = arith.mulf %77, %78 : vector<3x784xf32>
    %80 = arith.addf %72, %79 : vector<3x784xf32>
    %c0_23 = arith.constant 0 : index
    %c0_24 = arith.constant 0 : index
    %81 = vector.load %arg3[%c0_23, %c0_24] : memref<3x1xf32, #tpu.memory_space<vmem>>, vector<3x1xf32>
    %82 = vector.broadcast %81 : vector<3x1xf32> to vector<3x784xf32>
    %83 = arith.addf %80, %82 : vector<3x784xf32>
    %cst_25 = arith.constant 0.000000e+00 : f32
    %84 = vector.broadcast %cst_25 : f32 to vector<3x784xf32>
    %85 = arith.maximumf %83, %84 : vector<3x784xf32>
    %c0_26 = arith.constant 0 : index
    %c32_27 = arith.constant 32 : index
    %86 = vector.load %arg10[%c0_26, %c32_27] : memref<6x848xf32, #tpu.memory_space<vmem>>, vector<3x784xf32>
    tpu.vector_store %arg10[%c0_26, %c32_27], %85 {strides = array<i32>} : memref<6x848xf32, #tpu.memory_space<vmem>>, vector<3x784xf32>,
    %c0_28 = arith.constant 0 : index
    %c3_29 = arith.constant 3 : index
    %87 = vector.load %arg10[%c0_28, %c3_29] : memref<6x848xf32, #tpu.memory_space<vmem>>, vector<3x784xf32>
    %88 = vector.extract_strided_slice %4 {offsets = [0, 0], sizes = [1, 784], strides = [1, 1]} : vector<3x784xf32> to vector<1x784xf32>
    %89 = vector.broadcast %88 : vector<1x784xf32> to vector<3x784xf32>
    %90 = arith.mulf %87, %89 : vector<3x784xf32>
    %91 = vector.extract_strided_slice %6 {offsets = [0, 0], sizes = [6, 1], strides = [1, 1]} : vector<6x27xf32> to vector<6x1xf32>
    %92 = vector.extract_strided_slice %90 {offsets = [0, 0], sizes = [1, 784], strides = [1, 1]} : vector<3x784xf32> to vector<1x784xf32>
    %93 = vector.broadcast %91 : vector<6x1xf32> to vector<6x784xf32>
    %94 = vector.broadcast %92 : vector<1x784xf32> to vector<6x784xf32>
    %95 = arith.mulf %93, %94 : vector<6x784xf32>
    %96 = vector.extract_strided_slice %6 {offsets = [0, 1], sizes = [6, 1], strides = [1, 1]} : vector<6x27xf32> to vector<6x1xf32>
    %97 = vector.extract_strided_slice %90 {offsets = [1, 0], sizes = [1, 784], strides = [1, 1]} : vector<3x784xf32> to vector<1x784xf32>
    %98 = vector.broadcast %96 : vector<6x1xf32> to vector<6x784xf32>
    %99 = vector.broadcast %97 : vector<1x784xf32> to vector<6x784xf32>
    %100 = arith.mulf %98, %99 : vector<6x784xf32>
    %101 = arith.addf %95, %100 : vector<6x784xf32>
    %102 = vector.extract_strided_slice %6 {offsets = [0, 2], sizes = [6, 1], strides = [1, 1]} : vector<6x27xf32> to vector<6x1xf32>
    %103 = vector.extract_strided_slice %90 {offsets = [2, 0], sizes = [1, 784], strides = [1, 1]} : vector<3x784xf32> to vector<1x784xf32>
    %104 = vector.broadcast %102 : vector<6x1xf32> to vector<6x784xf32>
    %105 = vector.broadcast %103 : vector<1x784xf32> to vector<6x784xf32>
    %106 = arith.mulf %104, %105 : vector<6x784xf32>
    %107 = arith.addf %101, %106 : vector<6x784xf32>
    %c0_30 = arith.constant 0 : index
    %c4_31 = arith.constant 4 : index
    %108 = vector.load %arg10[%c0_30, %c4_31] : memref<6x848xf32, #tpu.memory_space<vmem>>, vector<3x784xf32>
    %109 = vector.extract_strided_slice %4 {offsets = [1, 0], sizes = [1, 784], strides = [1, 1]} : vector<3x784xf32> to vector<1x784xf32>
    %110 = vector.broadcast %109 : vector<1x784xf32> to vector<3x784xf32>
    %111 = arith.mulf %108, %110 : vector<3x784xf32>
    %112 = vector.extract_strided_slice %6 {offsets = [0, 3], sizes = [6, 1], strides = [1, 1]} : vector<6x27xf32> to vector<6x1xf32>
    %113 = vector.extract_strided_slice %111 {offsets = [0, 0], sizes = [1, 784], strides = [1, 1]} : vector<3x784xf32> to vector<1x784xf32>
    %114 = vector.broadcast %112 : vector<6x1xf32> to vector<6x784xf32>
    %115 = vector.broadcast %113 : vector<1x784xf32> to vector<6x784xf32>
    %116 = arith.mulf %114, %115 : vector<6x784xf32>
    %117 = arith.addf %107, %116 : vector<6x784xf32>
    %118 = vector.extract_strided_slice %6 {offsets = [0, 4], sizes = [6, 1], strides = [1, 1]} : vector<6x27xf32> to vector<6x1xf32>
    %119 = vector.extract_strided_slice %111 {offsets = [1, 0], sizes = [1, 784], strides = [1, 1]} : vector<3x784xf32> to vector<1x784xf32>
    %120 = vector.broadcast %118 : vector<6x1xf32> to vector<6x784xf32>
    %121 = vector.broadcast %119 : vector<1x784xf32> to vector<6x784xf32>
    %122 = arith.mulf %120, %121 : vector<6x784xf32>
    %123 = arith.addf %117, %122 : vector<6x784xf32>
    %124 = vector.extract_strided_slice %6 {offsets = [0, 5], sizes = [6, 1], strides = [1, 1]} : vector<6x27xf32> to vector<6x1xf32>
    %125 = vector.extract_strided_slice %111 {offsets = [2, 0], sizes = [1, 784], strides = [1, 1]} : vector<3x784xf32> to vector<1x784xf32>
    %126 = vector.broadcast %124 : vector<6x1xf32> to vector<6x784xf32>
    %127 = vector.broadcast %125 : vector<1x784xf32> to vector<6x784xf32>
    %128 = arith.mulf %126, %127 : vector<6x784xf32>
    %129 = arith.addf %123, %128 : vector<6x784xf32>
    %c0_32 = arith.constant 0 : index
    %c5_33 = arith.constant 5 : index
    %130 = vector.load %arg10[%c0_32, %c5_33] : memref<6x848xf32, #tpu.memory_space<vmem>>, vector<3x784xf32>
    %131 = vector.extract_strided_slice %4 {offsets = [2, 0], sizes = [1, 784], strides = [1, 1]} : vector<3x784xf32> to vector<1x784xf32>
    %132 = vector.broadcast %131 : vector<1x784xf32> to vector<3x784xf32>
    %133 = arith.mulf %130, %132 : vector<3x784xf32>
    %134 = vector.extract_strided_slice %6 {offsets = [0, 6], sizes = [6, 1], strides = [1, 1]} : vector<6x27xf32> to vector<6x1xf32>
    %135 = vector.extract_strided_slice %133 {offsets = [0, 0], sizes = [1, 784], strides = [1, 1]} : vector<3x784xf32> to vector<1x784xf32>
    %136 = vector.broadcast %134 : vector<6x1xf32> to vector<6x784xf32>
    %137 = vector.broadcast %135 : vector<1x784xf32> to vector<6x784xf32>
    %138 = arith.mulf %136, %137 : vector<6x784xf32>
    %139 = arith.addf %129, %138 : vector<6x784xf32>
    %140 = vector.extract_strided_slice %6 {offsets = [0, 7], sizes = [6, 1], strides = [1, 1]} : vector<6x27xf32> to vector<6x1xf32>
    %141 = vector.extract_strided_slice %133 {offsets = [1, 0], sizes = [1, 784], strides = [1, 1]} : vector<3x784xf32> to vector<1x784xf32>
    %142 = vector.broadcast %140 : vector<6x1xf32> to vector<6x784xf32>
    %143 = vector.broadcast %141 : vector<1x784xf32> to vector<6x784xf32>
    %144 = arith.mulf %142, %143 : vector<6x784xf32>
    %145 = arith.addf %139, %144 : vector<6x784xf32>
    %146 = vector.extract_strided_slice %6 {offsets = [0, 8], sizes = [6, 1], strides = [1, 1]} : vector<6x27xf32> to vector<6x1xf32>
    %147 = vector.extract_strided_slice %133 {offsets = [2, 0], sizes = [1, 784], strides = [1, 1]} : vector<3x784xf32> to vector<1x784xf32>
    %148 = vector.broadcast %146 : vector<6x1xf32> to vector<6x784xf32>
    %149 = vector.broadcast %147 : vector<1x784xf32> to vector<6x784xf32>
    %150 = arith.mulf %148, %149 : vector<6x784xf32>
    %151 = arith.addf %145, %150 : vector<6x784xf32>
    %c0_34 = arith.constant 0 : index
    %c31_35 = arith.constant 31 : index
    %152 = vector.load %arg10[%c0_34, %c31_35] : memref<6x848xf32, #tpu.memory_space<vmem>>, vector<3x784xf32>
    %153 = vector.extract_strided_slice %4 {offsets = [0, 0], sizes = [1, 784], strides = [1, 1]} : vector<3x784xf32> to vector<1x784xf32>
    %154 = vector.broadcast %153 : vector<1x784xf32> to vector<3x784xf32>
    %155 = arith.mulf %152, %154 : vector<3x784xf32>
    %156 = vector.extract_strided_slice %6 {offsets = [0, 9], sizes = [6, 1], strides = [1, 1]} : vector<6x27xf32> to vector<6x1xf32>
    %157 = vector.extract_strided_slice %155 {offsets = [0, 0], sizes = [1, 784], strides = [1, 1]} : vector<3x784xf32> to vector<1x784xf32>
    %158 = vector.broadcast %156 : vector<6x1xf32> to vector<6x784xf32>
    %159 = vector.broadcast %157 : vector<1x784xf32> to vector<6x784xf32>
    %160 = arith.mulf %158, %159 : vector<6x784xf32>
    %161 = arith.addf %151, %160 : vector<6x784xf32>
    %162 = vector.extract_strided_slice %6 {offsets = [0, 10], sizes = [6, 1], strides = [1, 1]} : vector<6x27xf32> to vector<6x1xf32>
    %163 = vector.extract_strided_slice %155 {offsets = [1, 0], sizes = [1, 784], strides = [1, 1]} : vector<3x784xf32> to vector<1x784xf32>
    %164 = vector.broadcast %162 : vector<6x1xf32> to vector<6x784xf32>
    %165 = vector.broadcast %163 : vector<1x784xf32> to vector<6x784xf32>
    %166 = arith.mulf %164, %165 : vector<6x784xf32>
    %167 = arith.addf %161, %166 : vector<6x784xf32>
    %168 = vector.extract_strided_slice %6 {offsets = [0, 11], sizes = [6, 1], strides = [1, 1]} : vector<6x27xf32> to vector<6x1xf32>
    %169 = vector.extract_strided_slice %155 {offsets = [2, 0], sizes = [1, 784], strides = [1, 1]} : vector<3x784xf32> to vector<1x784xf32>
    %170 = vector.broadcast %168 : vector<6x1xf32> to vector<6x784xf32>
    %171 = vector.broadcast %169 : vector<1x784xf32> to vector<6x784xf32>
    %172 = arith.mulf %170, %171 : vector<6x784xf32>
    %173 = arith.addf %167, %172 : vector<6x784xf32>
    %c0_36 = arith.constant 0 : index
    %c32_37 = arith.constant 32 : index
    %174 = vector.load %arg10[%c0_36, %c32_37] : memref<6x848xf32, #tpu.memory_space<vmem>>, vector<3x784xf32>
    %175 = vector.extract_strided_slice %4 {offsets = [1, 0], sizes = [1, 784], strides = [1, 1]} : vector<3x784xf32> to vector<1x784xf32>
    %176 = vector.broadcast %175 : vector<1x784xf32> to vector<3x784xf32>
    %177 = arith.mulf %174, %176 : vector<3x784xf32>
    %178 = vector.extract_strided_slice %6 {offsets = [0, 12], sizes = [6, 1], strides = [1, 1]} : vector<6x27xf32> to vector<6x1xf32>
    %179 = vector.extract_strided_slice %177 {offsets = [0, 0], sizes = [1, 784], strides = [1, 1]} : vector<3x784xf32> to vector<1x784xf32>
    %180 = vector.broadcast %178 : vector<6x1xf32> to vector<6x784xf32>
    %181 = vector.broadcast %179 : vector<1x784xf32> to vector<6x784xf32>
    %182 = arith.mulf %180, %181 : vector<6x784xf32>
    %183 = arith.addf %173, %182 : vector<6x784xf32>
    %184 = vector.extract_strided_slice %6 {offsets = [0, 13], sizes = [6, 1], strides = [1, 1]} : vector<6x27xf32> to vector<6x1xf32>
    %185 = vector.extract_strided_slice %177 {offsets = [1, 0], sizes = [1, 784], strides = [1, 1]} : vector<3x784xf32> to vector<1x784xf32>
    %186 = vector.broadcast %184 : vector<6x1xf32> to vector<6x784xf32>
    %187 = vector.broadcast %185 : vector<1x784xf32> to vector<6x784xf32>
    %188 = arith.mulf %186, %187 : vector<6x784xf32>
    %189 = arith.addf %183, %188 : vector<6x784xf32>
    %190 = vector.extract_strided_slice %6 {offsets = [0, 14], sizes = [6, 1], strides = [1, 1]} : vector<6x27xf32> to vector<6x1xf32>
    %191 = vector.extract_strided_slice %177 {offsets = [2, 0], sizes = [1, 784], strides = [1, 1]} : vector<3x784xf32> to vector<1x784xf32>
    %192 = vector.broadcast %190 : vector<6x1xf32> to vector<6x784xf32>
    %193 = vector.broadcast %191 : vector<1x784xf32> to vector<6x784xf32>
    %194 = arith.mulf %192, %193 : vector<6x784xf32>
    %195 = arith.addf %189, %194 : vector<6x784xf32>
    %c0_38 = arith.constant 0 : index
    %c33_39 = arith.constant 33 : index
    %196 = vector.load %arg10[%c0_38, %c33_39] : memref<6x848xf32, #tpu.memory_space<vmem>>, vector<3x784xf32>
    %197 = vector.extract_strided_slice %4 {offsets = [2, 0], sizes = [1, 784], strides = [1, 1]} : vector<3x784xf32> to vector<1x784xf32>
    %198 = vector.broadcast %197 : vector<1x784xf32> to vector<3x784xf32>
    %199 = arith.mulf %196, %198 : vector<3x784xf32>
    %200 = vector.extract_strided_slice %6 {offsets = [0, 15], sizes = [6, 1], strides = [1, 1]} : vector<6x27xf32> to vector<6x1xf32>
    %201 = vector.extract_strided_slice %199 {offsets = [0, 0], sizes = [1, 784], strides = [1, 1]} : vector<3x784xf32> to vector<1x784xf32>
    %202 = vector.broadcast %200 : vector<6x1xf32> to vector<6x784xf32>
    %203 = vector.broadcast %201 : vector<1x784xf32> to vector<6x784xf32>
    %204 = arith.mulf %202, %203 : vector<6x784xf32>
    %205 = arith.addf %195, %204 : vector<6x784xf32>
    %206 = vector.extract_strided_slice %6 {offsets = [0, 16], sizes = [6, 1], strides = [1, 1]} : vector<6x27xf32> to vector<6x1xf32>
    %207 = vector.extract_strided_slice %199 {offsets = [1, 0], sizes = [1, 784], strides = [1, 1]} : vector<3x784xf32> to vector<1x784xf32>
    %208 = vector.broadcast %206 : vector<6x1xf32> to vector<6x784xf32>
    %209 = vector.broadcast %207 : vector<1x784xf32> to vector<6x784xf32>
    %210 = arith.mulf %208, %209 : vector<6x784xf32>
    %211 = arith.addf %205, %210 : vector<6x784xf32>
    %212 = vector.extract_strided_slice %6 {offsets = [0, 17], sizes = [6, 1], strides = [1, 1]} : vector<6x27xf32> to vector<6x1xf32>
    %213 = vector.extract_strided_slice %199 {offsets = [2, 0], sizes = [1, 784], strides = [1, 1]} : vector<3x784xf32> to vector<1x784xf32>
    %214 = vector.broadcast %212 : vector<6x1xf32> to vector<6x784xf32>
    %215 = vector.broadcast %213 : vector<1x784xf32> to vector<6x784xf32>
    %216 = arith.mulf %214, %215 : vector<6x784xf32>
    %217 = arith.addf %211, %216 : vector<6x784xf32>
    %c0_40 = arith.constant 0 : index
    %c59_41 = arith.constant 59 : index
    %218 = vector.load %arg10[%c0_40, %c59_41] : memref<6x848xf32, #tpu.memory_space<vmem>>, vector<3x784xf32>
    %219 = vector.extract_strided_slice %4 {offsets = [0, 0], sizes = [1, 784], strides = [1, 1]} : vector<3x784xf32> to vector<1x784xf32>
    %220 = vector.broadcast %219 : vector<1x784xf32> to vector<3x784xf32>
    %221 = arith.mulf %218, %220 : vector<3x784xf32>
    %222 = vector.extract_strided_slice %6 {offsets = [0, 18], sizes = [6, 1], strides = [1, 1]} : vector<6x27xf32> to vector<6x1xf32>
    %223 = vector.extract_strided_slice %221 {offsets = [0, 0], sizes = [1, 784], strides = [1, 1]} : vector<3x784xf32> to vector<1x784xf32>
    %224 = vector.broadcast %222 : vector<6x1xf32> to vector<6x784xf32>
    %225 = vector.broadcast %223 : vector<1x784xf32> to vector<6x784xf32>
    %226 = arith.mulf %224, %225 : vector<6x784xf32>
    %227 = arith.addf %217, %226 : vector<6x784xf32>
    %228 = vector.extract_strided_slice %6 {offsets = [0, 19], sizes = [6, 1], strides = [1, 1]} : vector<6x27xf32> to vector<6x1xf32>
    %229 = vector.extract_strided_slice %221 {offsets = [1, 0], sizes = [1, 784], strides = [1, 1]} : vector<3x784xf32> to vector<1x784xf32>
    %230 = vector.broadcast %228 : vector<6x1xf32> to vector<6x784xf32>
    %231 = vector.broadcast %229 : vector<1x784xf32> to vector<6x784xf32>
    %232 = arith.mulf %230, %231 : vector<6x784xf32>
    %233 = arith.addf %227, %232 : vector<6x784xf32>
    %234 = vector.extract_strided_slice %6 {offsets = [0, 20], sizes = [6, 1], strides = [1, 1]} : vector<6x27xf32> to vector<6x1xf32>
    %235 = vector.extract_strided_slice %221 {offsets = [2, 0], sizes = [1, 784], strides = [1, 1]} : vector<3x784xf32> to vector<1x784xf32>
    %236 = vector.broadcast %234 : vector<6x1xf32> to vector<6x784xf32>
    %237 = vector.broadcast %235 : vector<1x784xf32> to vector<6x784xf32>
    %238 = arith.mulf %236, %237 : vector<6x784xf32>
    %239 = arith.addf %233, %238 : vector<6x784xf32>
    %c0_42 = arith.constant 0 : index
    %c60_43 = arith.constant 60 : index
    %240 = vector.load %arg10[%c0_42, %c60_43] : memref<6x848xf32, #tpu.memory_space<vmem>>, vector<3x784xf32>
    %241 = vector.extract_strided_slice %4 {offsets = [1, 0], sizes = [1, 784], strides = [1, 1]} : vector<3x784xf32> to vector<1x784xf32>
    %242 = vector.broadcast %241 : vector<1x784xf32> to vector<3x784xf32>
    %243 = arith.mulf %240, %242 : vector<3x784xf32>
    %244 = vector.extract_strided_slice %6 {offsets = [0, 21], sizes = [6, 1], strides = [1, 1]} : vector<6x27xf32> to vector<6x1xf32>
    %245 = vector.extract_strided_slice %243 {offsets = [0, 0], sizes = [1, 784], strides = [1, 1]} : vector<3x784xf32> to vector<1x784xf32>
    %246 = vector.broadcast %244 : vector<6x1xf32> to vector<6x784xf32>
    %247 = vector.broadcast %245 : vector<1x784xf32> to vector<6x784xf32>
    %248 = arith.mulf %246, %247 : vector<6x784xf32>
    %249 = arith.addf %239, %248 : vector<6x784xf32>
    %250 = vector.extract_strided_slice %6 {offsets = [0, 22], sizes = [6, 1], strides = [1, 1]} : vector<6x27xf32> to vector<6x1xf32>
    %251 = vector.extract_strided_slice %243 {offsets = [1, 0], sizes = [1, 784], strides = [1, 1]} : vector<3x784xf32> to vector<1x784xf32>
    %252 = vector.broadcast %250 : vector<6x1xf32> to vector<6x784xf32>
    %253 = vector.broadcast %251 : vector<1x784xf32> to vector<6x784xf32>
    %254 = arith.mulf %252, %253 : vector<6x784xf32>
    %255 = arith.addf %249, %254 : vector<6x784xf32>
    %256 = vector.extract_strided_slice %6 {offsets = [0, 23], sizes = [6, 1], strides = [1, 1]} : vector<6x27xf32> to vector<6x1xf32>
    %257 = vector.extract_strided_slice %243 {offsets = [2, 0], sizes = [1, 784], strides = [1, 1]} : vector<3x784xf32> to vector<1x784xf32>
    %258 = vector.broadcast %256 : vector<6x1xf32> to vector<6x784xf32>
    %259 = vector.broadcast %257 : vector<1x784xf32> to vector<6x784xf32>
    %260 = arith.mulf %258, %259 : vector<6x784xf32>
    %261 = arith.addf %255, %260 : vector<6x784xf32>
    %c0_44 = arith.constant 0 : index
    %c61_45 = arith.constant 61 : index
    %262 = vector.load %arg10[%c0_44, %c61_45] : memref<6x848xf32, #tpu.memory_space<vmem>>, vector<3x784xf32>
    %263 = vector.extract_strided_slice %4 {offsets = [2, 0], sizes = [1, 784], strides = [1, 1]} : vector<3x784xf32> to vector<1x784xf32>
    %264 = vector.broadcast %263 : vector<1x784xf32> to vector<3x784xf32>
    %265 = arith.mulf %262, %264 : vector<3x784xf32>
    %266 = vector.extract_strided_slice %6 {offsets = [0, 24], sizes = [6, 1], strides = [1, 1]} : vector<6x27xf32> to vector<6x1xf32>
    %267 = vector.extract_strided_slice %265 {offsets = [0, 0], sizes = [1, 784], strides = [1, 1]} : vector<3x784xf32> to vector<1x784xf32>
    %268 = vector.broadcast %266 : vector<6x1xf32> to vector<6x784xf32>
    %269 = vector.broadcast %267 : vector<1x784xf32> to vector<6x784xf32>
    %270 = arith.mulf %268, %269 : vector<6x784xf32>
    %271 = arith.addf %261, %270 : vector<6x784xf32>
    %272 = vector.extract_strided_slice %6 {offsets = [0, 25], sizes = [6, 1], strides = [1, 1]} : vector<6x27xf32> to vector<6x1xf32>
    %273 = vector.extract_strided_slice %265 {offsets = [1, 0], sizes = [1, 784], strides = [1, 1]} : vector<3x784xf32> to vector<1x784xf32>
    %274 = vector.broadcast %272 : vector<6x1xf32> to vector<6x784xf32>
    %275 = vector.broadcast %273 : vector<1x784xf32> to vector<6x784xf32>
    %276 = arith.mulf %274, %275 : vector<6x784xf32>
    %277 = arith.addf %271, %276 : vector<6x784xf32>
    %278 = vector.extract_strided_slice %6 {offsets = [0, 26], sizes = [6, 1], strides = [1, 1]} : vector<6x27xf32> to vector<6x1xf32>
    %279 = vector.extract_strided_slice %265 {offsets = [2, 0], sizes = [1, 784], strides = [1, 1]} : vector<3x784xf32> to vector<1x784xf32>
    %280 = vector.broadcast %278 : vector<6x1xf32> to vector<6x784xf32>
    %281 = vector.broadcast %279 : vector<1x784xf32> to vector<6x784xf32>
    %282 = arith.mulf %280, %281 : vector<6x784xf32>
    %283 = arith.addf %277, %282 : vector<6x784xf32>
    %c0_46 = arith.constant 0 : index
    %c0_47 = arith.constant 0 : index
    %284 = vector.load %arg5[%c0_46, %c0_47] : memref<6x1xf32, #tpu.memory_space<vmem>>, vector<6x1xf32>
    %285 = vector.broadcast %284 : vector<6x1xf32> to vector<6x784xf32>
    %286 = arith.addf %283, %285 : vector<6x784xf32>
    %cst_48 = arith.constant 0.000000e+00 : f32
    %287 = vector.broadcast %cst_48 : f32 to vector<6x784xf32>
    %288 = arith.maximumf %286, %287 : vector<6x784xf32>
    %c0_49 = arith.constant 0 : index
    %c32_50 = arith.constant 32 : index
    %289 = vector.load %arg10[%c0_49, %c32_50] : memref<6x848xf32, #tpu.memory_space<vmem>>, vector<6x784xf32>
    tpu.vector_store %arg10[%c0_49, %c32_50], %288 {strides = array<i32>} : memref<6x848xf32, #tpu.memory_space<vmem>>, vector<6x784xf32>,
    %c0_51 = arith.constant 0 : index
    %c33_52 = arith.constant 33 : index
    %290 = vector.load %arg10[%c0_51, %c33_52] : memref<6x848xf32, #tpu.memory_space<vmem>>, vector<6x784xf32>
    %291 = arith.maximumf %288, %290 : vector<6x784xf32>
    %c0_53 = arith.constant 0 : index
    %c60_54 = arith.constant 60 : index
    %292 = vector.load %arg10[%c0_53, %c60_54] : memref<6x848xf32, #tpu.memory_space<vmem>>, vector<6x784xf32>
    %293 = arith.maximumf %291, %292 : vector<6x784xf32>
    %c0_55 = arith.constant 0 : index
    %c61_56 = arith.constant 61 : index
    %294 = vector.load %arg10[%c0_55, %c61_56] : memref<6x848xf32, #tpu.memory_space<vmem>>, vector<6x784xf32>
    %295 = arith.maximumf %293, %294 : vector<6x784xf32>
    %c0_57 = arith.constant 0 : index
    %c0_58 = arith.constant 0 : index
    %296 = vector.load %arg7[%c0_57, %c0_58] : memref<784x768xf32, #tpu.memory_space<vmem>>, vector<784x768xf32>
    %cst_59 = arith.constant dense<0.000000e+00> : vector<6x768xf32>
    %297 = tpu.matmul %295, %296, %cst_59 {dimension_numbers = #tpu.dot_dimension_numbers<[1], [0], [0], [1], [0, 0, 1, 1], [], []>} : vector<6x784xf32>, vector<784x768xf32>, vector<6x768xf32> -> vector<6x768xf32>
    %c0_60 = arith.constant 0 : index
    %c0_61 = arith.constant 0 : index
    %298 = vector.load %arg8[%c0_60, %c0_61] : memref<1x128xf32, #tpu.memory_space<vmem>>, vector<1x128xf32>
    %299 = vector.extract_strided_slice %297 {offsets = [0, 0], sizes = [1, 128], strides = [1, 1]} : vector<6x768xf32> to vector<1x128xf32>
    %300 = arith.addf %298, %299 : vector<1x128xf32>
    %301 = vector.extract_strided_slice %297 {offsets = [1, 128], sizes = [1, 128], strides = [1, 1]} : vector<6x768xf32> to vector<1x128xf32>
    %302 = arith.addf %300, %301 : vector<1x128xf32>
    %303 = vector.extract_strided_slice %297 {offsets = [2, 256], sizes = [1, 128], strides = [1, 1]} : vector<6x768xf32> to vector<1x128xf32>
    %304 = arith.addf %302, %303 : vector<1x128xf32>
    %305 = vector.extract_strided_slice %297 {offsets = [3, 384], sizes = [1, 128], strides = [1, 1]} : vector<6x768xf32> to vector<1x128xf32>
    %306 = arith.addf %304, %305 : vector<1x128xf32>
    %307 = vector.extract_strided_slice %297 {offsets = [4, 512], sizes = [1, 128], strides = [1, 1]} : vector<6x768xf32> to vector<1x128xf32>
    %308 = arith.addf %306, %307 : vector<1x128xf32>
    %309 = vector.extract_strided_slice %297 {offsets = [5, 640], sizes = [1, 128], strides = [1, 1]} : vector<6x768xf32> to vector<1x128xf32>
    %310 = arith.addf %308, %309 : vector<1x128xf32>
    %cst_62 = arith.constant 0.000000e+00 : f32
    %311 = vector.broadcast %cst_62 : f32 to vector<1x128xf32>
    %312 = arith.maximumf %310, %311 : vector<1x128xf32>
    %313 = vector.shape_cast %312 : vector<1x128xf32> to vector<1x1x128xf32>
    %c0_63 = arith.constant 0 : index
    %c0_64 = arith.constant 0 : index
    %c0_65 = arith.constant 0 : index
    %314 = vector.load %arg9[%c0_63, %c0_64, %c0_65] : memref<1x1x128xf32, #tpu.memory_space<vmem>>, vector<1x1x128xf32>
    tpu.vector_store %arg9[%c0_63, %c0_64, %c0_65], %313 {strides = array<i32>} : memref<1x1x128xf32, #tpu.memory_space<vmem>>, vector<1x1x128xf32>,
    return
  }
  func.func @transform_0(%arg0: i32) -> (i32, i32, i32) {
    %c0_i32 = arith.constant 0 : i32
    %c0_i32_0 = arith.constant 0 : i32
    %c0_i32_1 = arith.constant 0 : i32
    return %arg0, %c0_i32, %c0_i32_0 : i32, i32, i32
  }
  func.func @transform_1(%arg0: i32) -> (i32, i32) {
    %c0_i32 = arith.constant 0 : i32
    %c0_i32_0 = arith.constant 0 : i32
    %c0_i32_1 = arith.constant 0 : i32
    return %c0_i32, %c0_i32_0 : i32, i32
  }
  func.func @transform_2(%arg0: i32) -> (i32, i32) {
    %c0_i32 = arith.constant 0 : i32
    %c0_i32_0 = arith.constant 0 : i32
    %c0_i32_1 = arith.constant 0 : i32
    return %c0_i32, %c0_i32_0 : i32, i32
  }
  func.func @transform_3(%arg0: i32) -> (i32, i32) {
    %c0_i32 = arith.constant 0 : i32
    %c0_i32_0 = arith.constant 0 : i32
    %c0_i32_1 = arith.constant 0 : i32
    return %c0_i32, %c0_i32_0 : i32, i32
  }
  func.func @transform_4(%arg0: i32) -> (i32, i32) {
    %c0_i32 = arith.constant 0 : i32
    %c0_i32_0 = arith.constant 0 : i32
    %c0_i32_1 = arith.constant 0 : i32
    return %c0_i32, %c0_i32_0 : i32, i32
  }
  func.func @transform_5(%arg0: i32) -> (i32, i32) {
    %c0_i32 = arith.constant 0 : i32
    %c0_i32_0 = arith.constant 0 : i32
    %c0_i32_1 = arith.constant 0 : i32
    return %c0_i32, %c0_i32_0 : i32, i32
  }
  func.func @transform_6(%arg0: i32) -> (i32, i32) {
    %c0_i32 = arith.constant 0 : i32
    %c0_i32_0 = arith.constant 0 : i32
    %c0_i32_1 = arith.constant 0 : i32
    return %c0_i32, %c0_i32_0 : i32, i32
  }
  func.func @transform_7(%arg0: i32) -> (i32, i32) {
    %c0_i32 = arith.constant 0 : i32
    %c0_i32_0 = arith.constant 0 : i32
    %c0_i32_1 = arith.constant 0 : i32
    return %c0_i32, %c0_i32_0 : i32, i32
  }
  func.func @transform_8(%arg0: i32) -> (i32, i32, i32) {
    %c0_i32 = arith.constant 0 : i32
    %c0_i32_0 = arith.constant 0 : i32
    %c0_i32_1 = arith.constant 0 : i32
    return %arg0, %c0_i32, %c0_i32_0 : i32, i32, i32
  }
}

module attributes {stable_mosaic.version = 11 : i64} {
  func.func @_fc2_softmax_kernel(%arg0: i32, %arg1: memref<2x128xf32, #tpu.memory_space<vmem>>, %arg2: memref<128x10xf32, #tpu.memory_space<vmem>>, %arg3: memref<1x10xf32, #tpu.memory_space<vmem>>, %arg4: memref<2x10xf32, #tpu.memory_space<vmem>>) attributes {dimension_semantics = [#tpu.dimension_semantics<arbitrary>], iteration_bounds = array<i64: 1>, scalar_prefetch = 0 : i64, scratch_operands = 0 : i64, tpu.core_type = #tpu.core_type<tc>, window_params = [{pipeline_mode = #tpu.pipeline_mode<synchronous>, transform_indices = @transform_0, window_bounds = array<i64: 2, 128>}, {pipeline_mode = #tpu.pipeline_mode<synchronous>, transform_indices = @transform_1, window_bounds = array<i64: 128, 10>}, {pipeline_mode = #tpu.pipeline_mode<synchronous>, transform_indices = @transform_2, window_bounds = array<i64: 1, 10>}, {pipeline_mode = #tpu.pipeline_mode<synchronous>, transform_indices = @transform_3, window_bounds = array<i64: 2, 10>}]} {
    %c0 = arith.constant 0 : index
    %c0_0 = arith.constant 0 : index
    %0 = vector.load %arg1[%c0, %c0_0] : memref<2x128xf32, #tpu.memory_space<vmem>>, vector<2x128xf32>
    %c0_1 = arith.constant 0 : index
    %c0_2 = arith.constant 0 : index
    %1 = vector.load %arg2[%c0_1, %c0_2] : memref<128x10xf32, #tpu.memory_space<vmem>>, vector<128x10xf32>
    %cst = arith.constant dense<0.000000e+00> : vector<2x10xf32>
    %2 = tpu.matmul %0, %1, %cst {dimension_numbers = #tpu.dot_dimension_numbers<[1], [0], [0], [1], [0, 0, 1, 1], [], []>} : vector<2x128xf32>, vector<128x10xf32>, vector<2x10xf32> -> vector<2x10xf32>
    %c0_3 = arith.constant 0 : index
    %c0_4 = arith.constant 0 : index
    %3 = vector.load %arg3[%c0_3, %c0_4] : memref<1x10xf32, #tpu.memory_space<vmem>>, vector<1x10xf32>
    %4 = vector.broadcast %3 : vector<1x10xf32> to vector<2x10xf32>
    %5 = arith.addf %2, %4 : vector<2x10xf32>
    %cst_5 = arith.constant dense<0xFF800000> : vector<10xf32>
    %6 = vector.multi_reduction <maximumf>, %5, %cst_5 [0] : vector<2x10xf32> to vector<10xf32>
    %7 = vector.shape_cast %6 : vector<10xf32> to vector<1x10xf32>
    %8 = vector.broadcast %7 : vector<1x10xf32> to vector<2x10xf32>
    %9 = arith.subf %5, %8 : vector<2x10xf32>
    %10 = math.exp %9 : vector<2x10xf32>
    %cst_6 = arith.constant dense<0.000000e+00> : vector<10xf32>
    %11 = vector.multi_reduction <add>, %10, %cst_6 [0] : vector<2x10xf32> to vector<10xf32>
    %12 = vector.shape_cast %11 : vector<10xf32> to vector<1x10xf32>
    %13 = vector.broadcast %12 : vector<1x10xf32> to vector<2x10xf32>
    %14 = arith.divf %10, %13 : vector<2x10xf32>
    %c0_7 = arith.constant 0 : index
    %c0_8 = arith.constant 0 : index
    %15 = vector.load %arg4[%c0_7, %c0_8] : memref<2x10xf32, #tpu.memory_space<vmem>>, vector<2x10xf32>
    tpu.vector_store %arg4[%c0_7, %c0_8], %14 {strides = array<i32>} : memref<2x10xf32, #tpu.memory_space<vmem>>, vector<2x10xf32>,
    return
  }
  func.func @transform_0(%arg0: i32) -> (i32, i32) {
    %c0_i32 = arith.constant 0 : i32
    %c0_i32_0 = arith.constant 0 : i32
    %c0_i32_1 = arith.constant 0 : i32
    return %c0_i32, %c0_i32_0 : i32, i32
  }
  func.func @transform_1(%arg0: i32) -> (i32, i32) {
    %c0_i32 = arith.constant 0 : i32
    %c0_i32_0 = arith.constant 0 : i32
    %c0_i32_1 = arith.constant 0 : i32
    return %c0_i32, %c0_i32_0 : i32, i32
  }
  func.func @transform_2(%arg0: i32) -> (i32, i32) {
    %c0_i32 = arith.constant 0 : i32
    %c0_i32_0 = arith.constant 0 : i32
    %c0_i32_1 = arith.constant 0 : i32
    return %c0_i32, %c0_i32_0 : i32, i32
  }
  func.func @transform_3(%arg0: i32) -> (i32, i32) {
    %c0_i32 = arith.constant 0 : i32
    %c0_i32_0 = arith.constant 0 : i32
    %c0_i32_1 = arith.constant 0 : i32
    return %c0_i32, %c0_i32_0 : i32, i32
  }
}

</mosaic_0001>

<bundles_post_ra>
// kernel: net_forward.3
= control target key start
LH: loop header
LB: loop body
LE: loop exit
PB: predicated region body
PF: predicated region fallthrough
CT: control target
= control target key end

     0   :  { %v253_v3 = vmov 0.0|0.0   ;;  %vm254_vm0 = vmmov 0   ;;  %v255_v6 = vmov 0.0   ;;  %s346_s0 = inlined_call_operand.vmem [shape: f32[2,128], index: 0, kind: input, shape index: {}]   ;;  %s347_s1 = inlined_call_operand.vmem [shape: f32[128,10], index: 1, kind: input, shape index: {}]   ;;  %s348_s2 = inlined_call_operand.vmem [shape: f32[1,10], index: 2, kind: input, shape index: {}]   ;;  %s349_s3 = inlined_call_operand.hbm [shape: f32[2,10], index: 3, kind: output, shape index: {}]  }
   0x1   :  { %v16_v0 = vld [vmem:[%s347_s1] sm:$0xff]  ;;  %v17_v1 = vld [vmem:[%s347_s1 + $0x8] sm:$0xff]  ;;  %v18_v2 = vld [vmem:[%s347_s1 + $0x10] sm:$0xff]  ;;  %197 = vmatprep.subr.bf16.mxu0 %v253_v3  ;;  %194 = vmatprep.mubr.msk.f32.mxu0 %vm254_vm0, %v255_v6 }
   0x2   :  { %v198_v4 = vpack.c.bf16 %v17_v1, %v16_v0  ;;  %v19_v5 = vld [vmem:[%s347_s1 + $0x18] sm:$0xff]  ;;  %v20_v8 = vld [vmem:[%s347_s1 + $0x20] sm:$0xff]  ;;  %v21_v9 = vld [vmem:[%s347_s1 + $0x28] sm:$0xff] }
   0x3   :  { %v201_v7 = vpack.c.bf16 %v19_v5, %v18_v2 }
   0x4   :  { %199 = vmatpush3.bf16.msra.mxu0 %v198_v4 }
   0x5   :  { %200 = vmatprep.subr.bf16.mxu0 %v253_v3 }
   0x6   :  { %8 = vsyncpa [#allocation3], 0  ;;  %v204_v10 = vpack.c.bf16 %v21_v9, %v20_v8  ;;  %v22_v11 = vld [vmem:[%s347_s1 + $0x30] sm:$0xff]  ;;  %v23_v12 = vld [vmem:[%s347_s1 + $0x38] sm:$0xff]  ;;  %vm109_vm1 = vcmask 74752  }
   0x7   :  { %v207_v13 = vpack.c.bf16 %v23_v12, %v22_v11  ;;  %v24_v14 = vld [vmem:[%s347_s1 + $0x40] sm:$0xff]  ;;  %v25_v15 = vld [vmem:[%s347_s1 + $0x48] sm:$0xff]  ;;  %v26_v17 = vld [vmem:[%s347_s1 + $0x50] sm:$0xff] }
   0x8   :  { %202 = vmatpush3.bf16.msra.mxu0 %v201_v7  ;;  %v210_v16 = vpack.c.bf16 %v25_v15, %v24_v14  ;;  %v27_v18 = vld [vmem:[%s347_s1 + $0x58] sm:$0xff]  ;;  %v28_v20 = vld [vmem:[%s347_s1 + $0x60] sm:$0xff]  ;;  %v29_v21 = vld [vmem:[%s347_s1 + $0x68] sm:$0xff] }
   0x9   :  { %203 = vmatprep.subr.bf16.mxu0 %v253_v3  ;;  %v213_v19 = vpack.c.bf16 %v27_v18, %v26_v17  ;;  %v216_v22 = vpack.c.bf16 %v29_v21, %v28_v20  ;;  %v30_v23 = vld [vmem:[%s347_s1 + $0x70] sm:$0xff]  ;;  %v31_v24 = vld [vmem:[%s347_s1 + $0x78] sm:$0xff]  ;;  %v15_v26 = vld [vmem:[%s346_s0] sm:$0x3]  ;;  %s256_s0 = smov [#allocation2]  }
   0xa   :  { %v219_v25 = vpack.c.bf16 %v31_v24, %v30_v23  ;;  %v144_v27 = vld [vmem:[%s348_s2] ss:$0 sm:$0xff]  ;;  %s136_s1 = sshll.u32 %s256_s0, 4  ;;  %s137_s1 = int_to_ptr.vmem [resolvable:$true] %s136_s1 }
   0xb   :  { %s229_s2 = scalar_lea.vmem %s137_s1, 32  ;;  %p234_p1 = scmp.lt.s32.totalorder %s137_s1, %s137_s1 }
   0xc   :  { %205 = vmatpush3.bf16.msra.mxu0 %v204_v10  ;;  %p230_p0 = scmp.ne.s32.totalorder %s137_s1, %s229_s2  ;;  %p235_p2 = scmp.lt.s32.totalorder %s229_s2, %s229_s2 }
   0xd   :  { %206 = vmatprep.subr.bf16.mxu0 %v253_v3 }
   0xe   :  { %p236_p3 = por %p235_p2, %p234_p1 }
  0x10   :  { %208 = vmatpush3.bf16.msra.mxu0 %v207_v13  ;;  %p237_p4 = pnand %p236_p3, %p230_p0 }
  0x11   :  { %209 = vmatprep.subr.bf16.mxu0 %v253_v3 }
  0x14   :  { %211 = vmatpush3.bf16.msra.mxu0 %v210_v16 }
  0x15   :  { %212 = vmatprep.subr.bf16.mxu0 %v253_v3 }
  0x18   :  { %214 = vmatpush3.bf16.msra.mxu0 %v213_v19 }
  0x19   :  { %215 = vmatprep.subr.bf16.mxu0 %v253_v3 }
  0x1c   :  { %217 = vmatpush3.bf16.msra.mxu0 %v216_v22 }
  0x1d   :  { %218 = vmatprep.subr.bf16.mxu0 %v253_v3 }
  0x20   :  { %220 = vmatpush3.bf16.msra.mxu0 %v219_v25 }
  0x23   :  { %195 = vmatmul.mubr.f32.vlgmr.msra.gmra.mrb[0].mxu0 %v15_v26 }
  0xf6   :  { %v105_v28 = vpop.f32.mrb[0].mxu0 }
  0xf7   :  { %v106_v29 = vadd.f32 %v144_v27, %v105_v28  ;;  %v196_v30 = vpop.f32.mrb[1].mxu0 }
  0xf9   :  { %v110_v31 = vsel %vm109_vm1, %v106_v29, -inf }
  0xfa   :  { %v111_v32 = vrot.slane %v110_v31, 4 }
  0xfc   :  { %v112_v33 = vmax.f32 %v110_v31, %v111_v32 }
  0xfe   :  { %v113_v34 = vrot.slane %v112_v33, 2 }
 0x100   :  { %v114_v35 = vmax.f32 %v112_v33, %v113_v34 }
 0x102   :  { %v115_v36 = vrot.slane %v114_v35, 1 }
 0x104   :  { %v116_v37 = vmax.f32 %v114_v35, %v115_v36 }
 0x106   :  { %v117_v38 = vsub.f32 %v106_v29, %v116_v37 }
 0x108   :  { %v118_v39 = vmul.f32 1.442695, %v117_v38 }
 0x10a   :  { %225 = vpow2.f32 %v118_v39 }
 0x114   :  { %v226_v40 = vpop.eup %225 }
 0x115   :  { %v120_v41 = vsel %vm109_vm1, %v226_v40, 0.0 }
 0x116   :  { %v121_v42 = vrot.slane %v120_v41, 4 }
 0x118   :  { %v122_v43 = vadd.f32 %v121_v42, %v120_v41 }
 0x11a   :  { %v123_v44 = vrot.slane %v122_v43, 2 }
 0x11c   :  { %v124_v45 = vadd.f32 %v123_v44, %v122_v43 }
 0x11e   :  { %v125_v46 = vrot.slane %v124_v45, 1 }
 0x120   :  { %v126_v47 = vadd.f32 %v125_v46, %v124_v45 }
 0x122   :  { %227 = vrcp.f32 %v126_v47 }
 0x12c   :  { %v228_v48 = vpop.eup %227 }
 0x12d   :  { %v128_v49 = vmul.f32 %v228_v48, %v226_v40 }
 0x12f   :  { %129 = vst.msk [vmem:[#allocation2] sm:$0x3] %vm109_vm1, %v128_v49 }
 0x130   :  { %240 = shalt.err (!%p237_p4)
}
 0x131   :  { %s241_s23 = scalar_lea.hbm %s349_s3, 32 }
 0x132   :  { %p242_p5 = scmp.ne.s32.totalorder %s349_s3, %s241_s23  ;;  %p245_p6 = scmp.lt.u32.totalorder %s241_s23, %s349_s3 }
 0x134   :  { %p247_p7 = pnand %p245_p6, %p242_p5 }
 0x136   :  { %250 = shalt.err (!%p247_p7)
}
 0x137   :  { %139 = dma.vmem_to_hbm [thread:$0]  %s137_s1, 32, %s349_s3, [#allocation3]  }
 0x138   :  { %251 = dma.done.wait [#allocation3], 32  }
 0x139   :  { %252 = vsyncadd [#allocation3], 4294967264 }
 0x13a   :  { %143 = vsyncpa [#allocation3], 1 }

// kernel: net_forward.2
= control target key start
LH: loop header
LB: loop body
LE: loop exit
PB: predicated region body
PF: predicated region fallthrough
CT: control target
= control target key end

     0   :  { %s6554_s27 = smov 0   ;;  %s11231_s0 = inlined_call_operand.vmem [shape: f32[2,1,784], index: 0, kind: input, shape index: {}]   ;;  %s11232_s1 = inlined_call_operand.vmem [shape: f32[3,9], index: 1, kind: input, shape index: {}]   ;;  %s11233_s2 = inlined_call_operand.vmem [shape: f32[3,1], index: 2, kind: input, shape index: {}]   ;;  %s11234_s3 = inlined_call_operand.vmem [shape: f32[6,27], index: 3, kind: input, shape index: {}]   ;;  %s11235_s4 = inlined_call_operand.vmem [shape: f32[6,1], index: 4, kind: input, shape index: {}]   ;;  %s11236_s5 = inlined_call_operand.vmem [shape: f32[3,784], index: 5, kind: input, shape index: {}]   ;;  %s11237_s6 = inlined_call_operand.vmem [shape: f32[784,768], index: 6, kind: input, shape index: {}]   ;;  %s11238_s7 = inlined_call_operand.vmem [shape: f32[1,128], index: 7, kind: input, shape index: {}]   ;;  %s11239_s8 = inlined_call_operand.vmem [shape: f32[2,1,128], index: 8, kind: output, shape index: {}]  }
   0x1 LB: > { %s5677_s28 = sadd.s32 4294967295, %s6459_s27   ;;  %p5681_p0 = scmp.ge.s32.totalorder %s6459_s27, 1  ;;  %s6459_s27 = sphi %s6554_s27, %s18_s27  }
   0x2   : > { %p261_p1 = scmp.lt.s32.totalorder %s6459_s27, 3 }
   0x4   : > { %p262_p2 = pnand %p5681_p0, %p261_p1 }
   0x6   : > { %265 = sbr.rel (%p262_p2) target bundleno = 1836 (0x72c), region = 52 }
   0xd   : > { %v6565_v0 = vld [vmem:[%s11232_s1] sm:$0x7]  ;;  %v317_v1 = vlaneseq  ;;  %v11244_v2 = vmov 2   ;;  %v11245_v3 = vmov 1   ;;  %v6463_v4 = vmov 1966171168  }
   0xe   : > { %6351 = vset.pattern.permute.xlu0 %v11244_v2  ;;  %6350 = vset.pattern.permute.xlu1 %v11245_v3  ;;  %v331_v5 = vunpack.c.l.s4 %v6463_v4  ;;  %p292_p3 = scmp.lt.s32.totalorder %s5677_s28, 1  ;;  %v6577_v7 = vld [vmem:[%s11236_s5] sm:$0x77]  ;;  %v6582_v8 = vld [vmem:[%s11236_s5 + $0x8] sm:$0x77]  ;;  %vm299_vm0 = vcmask 259072  }
   0xf   : > { %558 = vperm.xlu0 %6351, %v6565_v0   ;;  %458 = vperm.xlu1 %6350, %v6565_v0   ;;  %v6572_v6 = vshrl.u32 %v317_v1, 7  ;;  %v6464_v10 = vmov 3   ;;  %v6590_v11 = vld [vmem:[%s11236_s5 + $0x10] sm:$0x77]  ;;  %vm301_vm1 = vcmask 652672   ;;  %v11242_v13 = vmov 0  }
  0x10   : > { %v332_v9 = vunpack.c.0.s8 %v331_v5  ;;  %s11731_s28 = smov (!%p292_p3, %s5677_s28), 1  ;;  %v6452_v12 = vld.sshfl [vmem:[%s11236_s5 + $0x18] sm:$0x13 pattern:$0x75316420]  ;;  %v11240_v15 = vmov 0.0  }
  0x11   : > { %s6293_s17 = smul.u32 7, %s11731_s28  ;;  %300 = vst.msk [vmem:[#allocation2] sm:$0x3f] %vm299_vm0, %v11240_v15  ;;  %s6467_s21 = smov 32   ;;  %v6468_v22 = vmov 4   ;;  %v6473_v32 = vmov 5  }
  0x12   : > { %v6598_v14 = vsub.s32 %v332_v9, %v6572_v6  ;;  %302 = vst.msk [vmem:[#allocation2 + $0x30] sm:$0x3f] %vm301_vm1, %v11240_v15  ;;  %s6469_s22 = smov 5   ;;  %s6470_s23 = smov 4   ;;  %v6475_v33 = vmov 6   ;;  %v6478_v34 = vmov 7  }
  0x13   : > { %6352 = vset.pattern.permute.xlu1 %v6464_v10  ;;  %6359 = vset.pattern.permute.xlu0 %v11242_v13  ;;  %s295_s20 = scalar_lea.vmem %s11231_s0, %s6293_s17  ;;  %s6471_s24 = smov 31   ;;  %v1239_v35 = vld [vmem:[%s11233_s2] sm:$0x7]  ;;  %v6480_v36 = vmov 8   ;;  %vm318_vm2 = vcmp.ge.s32.totalorder %v317_v1, 32  ;;  %vm319_vm3 = vcmp.lt.s32.totalorder %v317_v1, 816 }
  0x14   : > { %657 = vperm.xlu1 %6352, %v6565_v0   ;;  %11387 = vst [vmem:[#allocation3_spill] sm:$0xff] %v6598_v14  ;;  %v336_v16 = vrot.slane %v6577_v7, %v6598_v14  ;;  %v343_v17 = vrot.slane %v6582_v8, %v6598_v14  ;;  %v350_v18 = vrot.slane %v6590_v11, %v6598_v14  ;;  %v309_v19 = vld [vmem:[%s295_s20] sm:$0x7f]  ;;  %s6472_s25 = smov 33   ;;  %s6474_s26 = smov 59   ;;  %vm314_vm4 = vcmask 261120   ;;  %vm320_vm5 = vmand %vm318_vm2, %vm319_vm3 }
  0x15   : > { %311 = vrot.lane.b32.xlu0 %v309_v19, %s6467_s21  ;;  %s6476_s29 = smov 60   ;;  %s6477_s30 = smov 61   ;;  %vm453_vm6 = vcmask 31744   ;;  %v6651_v48 = vsub.s32 0, %v6572_v6  ;;  %v6654_v49 = vsub.s32 1, %v6572_v6  ;;  %v6657_v50 = vsub.s32 2, %v6572_v6 }
  0x16   : > { %v358_v20 = vcombine.low %v336_v16, %v343_v17  ;;  %v359_v21 = vcombine.low %v350_v18, %v6452_v12  ;;  %v433_v23 = vcombine.high %v336_v16, %v343_v17  ;;  %v434_v24 = vcombine.high %v350_v18, %v6452_v12  ;;  %s6479_s9 = smov 3   ;;  %s6481_s12 = smov 127  }
  0x17   : > { %11388 = vst [vmem:[#allocation4_spill] sm:$0xff] %v6651_v48  ;;  %11389 = vst [vmem:[#allocation5_spill] sm:$0xff] %v6657_v50  ;;  %vm553_vm7 = vcmask 39936   ;;  %v6663_v55 = vsub.s32 3, %v6572_v6  ;;  %v6671_v62 = vsub.s32 5, %v6572_v6  ;;  %v6674_v63 = vsub.s32 4, %v6572_v6 }
  0x18   : > { %6353 = vset.pattern.permute.xlu1 %v6468_v22  ;;  %v366_v25 = vrot.slane %v358_v20, %v6598_v14  ;;  %v373_v26 = vrot.slane %v359_v21, %v6598_v14  ;;  %v441_v27 = vrot.slane %v433_v23, %v6598_v14  ;;  %v448_v28 = vrot.slane %v434_v24, %v6598_v14  ;;  %s6482_s13 = smov 126   ;;  %s6483_s14 = smov 100  }
  0x19   : > { %11390 = vst [vmem:[#allocation6_spill] sm:$0xff] %v6674_v63  ;;  %vm652_vm8 = vcmask 252928   ;;  %vm849_vm9 = vcmask 269312   ;;  %s6484_s15 = smov 99   ;;  %vm948_vm10 = vcmask 482304   ;;  %s6485_s16 = smov 98  }
  0x1a   : > { %v549_v29 = vcombine.high %v366_v25, %v373_v26  ;;  %v449_v30 = vcombine.low %v441_v27, %v448_v28  ;;  %v374_v31 = vcombine.low %v366_v25, %v373_v26  ;;  %vm1047_vm11 = vcmask 490496   ;;  %s6486_s17 = smov 72   ;;  %s6487_s18 = smov 71  }
  0x1b   : > { %vm1146_vm12 = vcmask 498688   ;;  %s6488_s19 = smov 70   ;;  %vm11267_vm13 = vcmask 23552   ;;  %vm525_vm14 = vcmask 1039360   ;;  %vm625_vm15 = vcmask 1031168   ;;  %s6501_s11 = smov 29  }
  0x1c   : > { %550 = vrot.lane.b32.xlu1 %v549_v29, %s6469_s22  ;;  %450 = vrot.lane.b32.xlu0 %v449_v30, %s6470_s23  ;;  %vm724_vm0 = vcmask 818176   ;;  %vm822_vm1 = vcmask 809984   ;;  %vm921_vm2 = vcmask 801792   ;;  %vm1020_vm3 = vcmask 588800  }
  0x20   : > { %649 = vrot.lane.b32.xlu1 %v374_v31, %s6471_s24  ;;  %748 = vrot.lane.b32.xlu0 %v449_v30, %s6467_s21 }
  0x24   : > { %755 = vperm.xlu1 %6353, %v6565_v0   ;;  %846 = vrot.lane.b32.xlu0 %v549_v29, %s6472_s25 }
  0x28   : > { %6354 = vset.pattern.permute.xlu1 %v6473_v32  ;;  %945 = vrot.lane.b32.xlu0 %v374_v31, %s6474_s26 }
  0x29   : > { %854 = vperm.xlu1 %6354, %v6565_v0  }
  0x2c   : > { %1044 = vrot.lane.b32.xlu0 %v449_v30, %s6476_s29 }
  0x2d   : > { %6355 = vset.pattern.permute.xlu1 %v6475_v33 }
  0x2e   : > { %953 = vperm.xlu1 %6355, %v6565_v0  }
  0x30   : > { %1143 = vrot.lane.b32.xlu0 %v549_v29, %s6477_s30 }
  0x32   : > { %6356 = vset.pattern.permute.xlu1 %v6478_v34 }
  0x33   : > { %1052 = vperm.xlu1 %6356, %v6565_v0  }
  0x34   : > { %375 = vrot.lane.b32.xlu0 %v374_v31, %s6479_s9 }
  0x37   : > { %6357 = vset.pattern.permute.xlu1 %v6480_v36 }
  0x38   : > { %1151 = vperm.xlu1 %6357, %v6565_v0   ;;  %1242 = vperm.xlu0 %6359, %v1239_v35  }
  0x3c   : > { %6358 = vset.pattern.permute.xlu1 %v11242_v13  ;;  %6362 = vset.pattern.permute.xlu0 %v6473_v32 }
  0x3d   : > { %384 = vperm.xlu1 %6358, %v6565_v0  }
  0x41   : > { %6360 = vset.pattern.permute.xlu1 %v6464_v10 }
  0x8e   : > { %v6641_v37 = vpop.permute.xlu0 %558  ;;  %v6645_v40 = vpop.permute.xlu1 %458 }
  0x92   : > { %v312_v38 = vpop.permute.xlu0 %311 }
  0x93   : > { %v313_v39 = vrot.slane %v312_v38, 7  ;;  %v6648_v42 = vpop.permute.xlu1 %657 }
  0x95   : > { %v315_v41 = vsel %vm314_vm4, %v313_v39, %v312_v38 }
  0x96   : > { %321 = vst.msk [vmem:[#allocation2] ss:$8 sm:$0xf] %vm320_vm5, %v315_v41  ;;  %322 = vst.msk [vmem:[#allocation2] ss:$8 sm:$0x70] %vm320_vm5, %v315_v41  ;;  %v451_v43 = vpop.permute.xlu0 %450 }
  0x97   : > { %v452_v44 = vrot.slane %v451_v43, 7  ;;  %v551_v52 = vpop.permute.xlu1 %550  ;;  %vm11287_vm5 = vcmask 580608  }
  0x98   : > { %v552_v54 = vrot.slane %v551_v52, 7 }
  0x99   : > { %v454_v51 = vsel %vm453_vm6, %v452_v44, %v451_v43 }
  0x9a   : > { %v554_v61 = vsel %vm553_vm7, %v552_v54, %v551_v52  ;;  %v749_v44 = vpop.permute.xlu0 %748 }
  0x9b   : > { %v650_v10 = vpop.permute.xlu1 %649 }
  0x9c   : > { %v651_v19 = vrot.slane %v650_v10, 7 }
  0x9d   : > { %v430_v45 = vld [vmem:[#allocation2] ss:$8 sm:$0xf] }
  0x9e   : > { %v431_v46 = vld [vmem:[#allocation2] ss:$8 sm:$0x70]  ;;  %v653_v28 = vsel %vm652_vm8, %v651_v19, %v650_v10 }
  0x9f   : > { %v432_v47 = vor.u32 %v431_v46, %v430_v45  ;;  %v546_v56 = vld [vmem:[#allocation2] ss:$8 sm:$0xf]  ;;  %v750_v45 = vrot.slane %v749_v44, 7 }
  0xa0   : > { %v547_v57 = vld [vmem:[#allocation2] ss:$8 sm:$0x70] }
  0xa1   : > { %v6660_v53 = vmul.f32 %v454_v51, %v432_v47  ;;  %v548_v60 = vor.u32 %v547_v57, %v546_v56  ;;  %v646_v20 = vld [vmem:[#allocation2] ss:$8 sm:$0xf] }
  0xa2   : > { %v647_v21 = vld [vmem:[#allocation2] ss:$8 sm:$0x70] }
  0xa3   : > { %v469_v58 = vrot.slane %v6660_v53, %v6654_v49  ;;  %v465_v59 = vrot.slane %v6660_v53, %v6651_v48  ;;  %v477_v4 = vrot.slane %v6660_v53, %v6663_v55  ;;  %v473_v5 = vrot.slane %v6660_v53, %v6657_v50  ;;  %v745_v46 = vld [vmem:[#allocation2] ss:$8 sm:$0xf] }
  0xa4   : > { %v6684_v9 = vmul.f32 %v554_v61, %v548_v60  ;;  %v485_v17 = vrot.slane %v6660_v53, %v6671_v62  ;;  %v481_v18 = vrot.slane %v6660_v53, %v6674_v63  ;;  %v648_v27 = vor.u32 %v647_v21, %v646_v20  ;;  %v746_v47 = vld [vmem:[#allocation2] ss:$8 sm:$0x70]  ;;  %v6754_v21 = vpop.permute.xlu1 %755 }
  0xa5   : > { %v498_v0 = vmul.f32 %v469_v58, %v6645_v40  ;;  %v497_v1 = vmul.f32 %v465_v59, %v6645_v40  ;;  %v500_v12 = vmul.f32 %v477_v4, %v6645_v40  ;;  %v499_v16 = vmul.f32 %v473_v5, %v6645_v40  ;;  %v323_v13 = vld [vmem:[#allocation2] ss:$8 sm:$0xf] }
  0xa6   : > { %v502_v23 = vmul.f32 %v485_v17, %v6645_v40  ;;  %v501_v24 = vmul.f32 %v481_v18, %v6645_v40  ;;  %v569_v25 = vrot.slane %v6684_v9, %v6654_v49  ;;  %v565_v26 = vrot.slane %v6684_v9, %v6651_v48  ;;  %v324_v2 = vld [vmem:[#allocation2] ss:$8 sm:$0x70] }
  0xa7   : > { %513 = vrot.lane.b32.xlu1 %v498_v0, %s6481_s12  ;;  %511 = vrot.lane.b32.xlu0 %v497_v1, %s6481_s12  ;;  %v577_v31 = vrot.slane %v6684_v9, %v6663_v55  ;;  %v573_v32 = vrot.slane %v6684_v9, %v6657_v50  ;;  %v6711_v35 = vmul.f32 %v653_v28, %v648_v27 }
  0xa8   : > { %v598_v29 = vmul.f32 %v569_v25, %v6641_v37  ;;  %v597_v30 = vmul.f32 %v565_v26, %v6641_v37  ;;  %v585_v41 = vrot.slane %v6684_v9, %v6671_v62  ;;  %v581_v43 = vrot.slane %v6684_v9, %v6674_v63  ;;  %v844_v25 = vld [vmem:[#allocation2] ss:$8 sm:$0x70] }
  0xa9   : > { %v600_v38 = vmul.f32 %v577_v31, %v6641_v37  ;;  %v599_v39 = vmul.f32 %v573_v32, %v6641_v37  ;;  %v668_v54 = vrot.slane %v6711_v35, %v6654_v49  ;;  %v664_v56 = vrot.slane %v6711_v35, %v6651_v48 }
  0xaa   : > { %v602_v51 = vmul.f32 %v585_v41, %v6641_v37  ;;  %v601_v52 = vmul.f32 %v581_v43, %v6641_v37  ;;  %v747_v57 = vor.u32 %v746_v47, %v745_v46  ;;  %v751_v58 = vsel %vm314_vm4, %v750_v45, %v749_v44  ;;  %v6779_v47 = vpop.permute.xlu1 %854 }
  0xab   : > { %517 = vrot.lane.b32.xlu1 %v500_v12, %s6481_s12  ;;  %515 = vrot.lane.b32.xlu0 %v499_v16, %s6481_s12  ;;  %v697_v59 = vmul.f32 %v668_v54, %v6648_v42  ;;  %v696_v60 = vmul.f32 %v664_v56, %v6648_v42  ;;  %v676_v61 = vrot.slane %v6711_v35, %v6663_v55  ;;  %v847_v16 = vpop.permute.xlu0 %846 }
  0xac   : > { %v672_v0 = vrot.slane %v6711_v35, %v6657_v50  ;;  %v6738_v1 = vmul.f32 %v751_v58, %v747_v57  ;;  %v684_v10 = vrot.slane %v6711_v35, %v6671_v62  ;;  %v680_v12 = vrot.slane %v6711_v35, %v6674_v63  ;;  %v942_v58 = vld [vmem:[#allocation2] ss:$8 sm:$0xf] }
  0xad   : > { %v699_v4 = vmul.f32 %v676_v61, %v6648_v42 }
  0xae   : > { %v698_v5 = vmul.f32 %v672_v0, %v6648_v42  ;;  %v701_v17 = vmul.f32 %v684_v10, %v6648_v42  ;;  %v700_v18 = vmul.f32 %v680_v12, %v6648_v42  ;;  %v766_v19 = vrot.slane %v6738_v1, %v6654_v49 }
  0xaf   : > { %521 = vrot.lane.b32.xlu1 %v502_v23, %s6481_s12  ;;  %519 = vrot.lane.b32.xlu0 %v501_v24, %s6481_s12  ;;  %v762_v20 = vrot.slane %v6738_v1, %v6651_v48  ;;  %v848_v23 = vrot.slane %v847_v16, 7  ;;  %v843_v24 = vld [vmem:[#allocation2] ss:$8 sm:$0xf]  ;;  %v774_v28 = vrot.slane %v6738_v1, %v6663_v55  ;;  %v778_v41 = vrot.slane %v6738_v1, %v6674_v63  ;;  %v946_v44 = vpop.permute.xlu0 %945 }
  0xb0   : > { %v795_v26 = vmul.f32 %v766_v19, %v6754_v21  ;;  %v947_v54 = vrot.slane %v946_v44, 7 }
  0xb1   : > { %v794_v27 = vmul.f32 %v762_v20, %v6754_v21  ;;  %v850_v31 = vsel %vm849_vm9, %v848_v23, %v847_v16  ;;  %v797_v32 = vmul.f32 %v774_v28, %v6754_v21  ;;  %v798_v46 = vmul.f32 %v778_v41, %v6754_v21  ;;  %v6808_v23 = vpop.permute.xlu1 %953 }
  0xb2   : > { %v949_v0 = vsel %vm948_vm10, %v947_v54, %v946_v44 }
  0xb3   : > { %613 = vrot.lane.b32.xlu1 %v598_v29, %s6482_s13  ;;  %611 = vrot.lane.b32.xlu0 %v597_v30, %s6482_s13  ;;  %v770_v29 = vrot.slane %v6738_v1, %v6657_v50  ;;  %v845_v30 = vor.u32 %v844_v25, %v843_v24 }
  0xb5   : > { %v6773_v43 = vmul.f32 %v850_v31, %v845_v30  ;;  %v1042_v30 = vld [vmem:[#allocation2] ss:$8 sm:$0x70] }
  0xb7   : > { %617 = vrot.lane.b32.xlu1 %v600_v38, %s6482_s13  ;;  %615 = vrot.lane.b32.xlu0 %v599_v39, %s6482_s13  ;;  %v796_v38 = vmul.f32 %v770_v29, %v6754_v21  ;;  %v782_v39 = vrot.slane %v6738_v1, %v6671_v62  ;;  %v869_v61 = vrot.slane %v6773_v43, %v6657_v50  ;;  %v1041_v29 = vld [vmem:[#allocation2] ss:$8 sm:$0xf] }
  0xb8   : > { %v881_v16 = vrot.slane %v6773_v43, %v6671_v62 }
  0xb9   : > { %v799_v45 = vmul.f32 %v782_v39, %v6754_v21  ;;  %v895_v10 = vmul.f32 %v869_v61, %v6779_v47  ;;  %v1043_v39 = vor.u32 %v1042_v30, %v1041_v29 }
  0xba   : > { %v898_v19 = vmul.f32 %v881_v16, %v6779_v47 }
  0xbb   : > { %621 = vrot.lane.b32.xlu1 %v602_v51, %s6482_s13  ;;  %619 = vrot.lane.b32.xlu0 %v601_v52, %s6482_s13  ;;  %v865_v51 = vrot.slane %v6773_v43, %v6654_v49  ;;  %v861_v52 = vrot.slane %v6773_v43, %v6651_v48 }
  0xbd   : > { %v894_v56 = vmul.f32 %v865_v51, %v6779_v47  ;;  %v893_v57 = vmul.f32 %v861_v52, %v6779_v47 }
  0xbf   : > { %712 = vrot.lane.b32.xlu1 %v697_v59, %s6483_s14  ;;  %710 = vrot.lane.b32.xlu0 %v696_v60, %s6483_s14  ;;  %v943_v59 = vld [vmem:[#allocation2] ss:$8 sm:$0x70]  ;;  %v873_v60 = vrot.slane %v6773_v43, %v6663_v55 }
  0xc3   : > { %716 = vrot.lane.b32.xlu1 %v699_v4, %s6483_s14  ;;  %714 = vrot.lane.b32.xlu0 %v698_v5, %s6483_s14  ;;  %v944_v4 = vor.u32 %v943_v59, %v942_v58  ;;  %v896_v5 = vmul.f32 %v873_v60, %v6779_v47  ;;  %v1140_v58 = vld [vmem:[#allocation2] ss:$8 sm:$0xf]  ;;  %v1053_v60 = vpop.permute.xlu1 %1052 }
  0xc4   : > { %v1141_v59 = vld [vmem:[#allocation2] ss:$8 sm:$0x70] }
  0xc5   : > { %v6798_v12 = vmul.f32 %v949_v0, %v944_v4 }
  0xc7   : > { %720 = vrot.lane.b32.xlu1 %v701_v17, %s6483_s14  ;;  %718 = vrot.lane.b32.xlu0 %v700_v18, %s6483_s14  ;;  %v877_v17 = vrot.slane %v6773_v43, %v6674_v63  ;;  %v1045_v18 = vpop.permute.xlu0 %1044  ;;  %v964_v24 = vrot.slane %v6798_v12, %v6654_v49  ;;  %v960_v25 = vrot.slane %v6798_v12, %v6651_v48 }
  0xc8   : > { %v972_v31 = vrot.slane %v6798_v12, %v6663_v55  ;;  %v980_v51 = vrot.slane %v6798_v12, %v6671_v62  ;;  %v976_v52 = vrot.slane %v6798_v12, %v6674_v63 }
  0xc9   : > { %v897_v20 = vmul.f32 %v877_v17, %v6779_v47  ;;  %v992_v28 = vmul.f32 %v960_v25, %v6808_v23  ;;  %v1152_v25 = vpop.permute.xlu1 %1151 }
  0xca   : > { %v995_v44 = vmul.f32 %v972_v31, %v6808_v23 }
  0xcb   : > { %810 = vrot.lane.b32.xlu1 %v795_v26, %s6484_s15  ;;  %808 = vrot.lane.b32.xlu0 %v794_v27, %s6484_s15  ;;  %v1046_v26 = vrot.slane %v1045_v18, 7  ;;  %v993_v27 = vmul.f32 %v964_v24, %v6808_v23  ;;  %v1144_v41 = vpop.permute.xlu0 %1143 }
  0xcc   : > { %v1145_v54 = vrot.slane %v1144_v41, 7 }
  0xce   : > { %v1147_v4 = vsel %vm1146_vm12, %v1145_v54, %v1144_v41 }
  0xcf   : > { %814 = vrot.lane.b32.xlu1 %v797_v32, %s6484_s15  ;;  %812 = vrot.lane.b32.xlu0 %v796_v38, %s6484_s15  ;;  %v968_v32 = vrot.slane %v6798_v12, %v6657_v50  ;;  %v1048_v38 = vsel %vm1047_vm11, %v1046_v26, %v1045_v18 }
  0xd3   : > { %818 = vrot.lane.b32.xlu1 %v799_v45, %s6484_s15  ;;  %816 = vrot.lane.b32.xlu0 %v798_v46, %s6484_s15  ;;  %v994_v45 = vmul.f32 %v968_v32, %v6808_v23  ;;  %v6827_v46 = vmul.f32 %v1048_v38, %v1043_v39  ;;  %v6865_v39 = vsub.s32 6, %v6572_v6 }
  0xd5   : > { %v1067_v61 = vrot.slane %v6827_v46, %v6657_v50  ;;  %v1059_v0 = vrot.slane %v6827_v46, %v6651_v48  ;;  %v1075_v18 = vrot.slane %v6827_v46, %v6674_v63  ;;  %v1071_v26 = vrot.slane %v6827_v46, %v6663_v55 }
  0xd6   : > { %v1079_v30 = vrot.slane %v6827_v46, %v6671_v62 }
  0xd7   : > { %909 = vrot.lane.b32.xlu1 %v894_v56, %s6485_s16  ;;  %907 = vrot.lane.b32.xlu0 %v893_v57, %s6485_s16  ;;  %v997_v56 = vmul.f32 %v980_v51, %v6808_v23  ;;  %v996_v57 = vmul.f32 %v976_v52, %v6808_v23  ;;  %v1091_v16 = vmul.f32 %v1059_v0, %v1053_v60 }
  0xd8   : > { %v1096_v32 = vmul.f32 %v1079_v30, %v1053_v60  ;;  %v489_v52 = vrot.slane %v6660_v53, %v6865_v39 }
  0xdb   : > { %913 = vrot.lane.b32.xlu1 %v896_v5, %s6485_s16  ;;  %911 = vrot.lane.b32.xlu0 %v895_v10, %s6485_s16  ;;  %v1142_v5 = vor.u32 %v1141_v59, %v1140_v58  ;;  %v1093_v10 = vmul.f32 %v1067_v61, %v1053_v60  ;;  %v589_v61 = vrot.slane %v6684_v9, %v6865_v39 }
  0xdc   : > { %v1549_v9 = vrot.slane %v6577_v7, %v6654_v49 }
  0xdd   : > { %v6844_v17 = vmul.f32 %v1147_v4, %v1142_v5  ;;  %v786_v4 = vrot.slane %v6738_v1, %v6865_v39 }
  0xde   : > { %v6911_v1 = vrot.slane %v1549_v9, %v6654_v49 }
  0xdf   : > { %917 = vrot.lane.b32.xlu1 %v898_v19, %s6485_s16  ;;  %915 = vrot.lane.b32.xlu0 %v897_v20, %s6485_s16  ;;  %v1063_v19 = vrot.slane %v6827_v46, %v6654_v49  ;;  %v1095_v20 = vmul.f32 %v1075_v18, %v1053_v60  ;;  %v1166_v31 = vrot.slane %v6844_v17, %v6657_v50  ;;  %v6928_v18 = vpop.permute.xlu1 %384 }
  0xe0   : > { %v1162_v41 = vrot.slane %v6844_v17, %v6654_v49  ;;  %v1170_v6 = vrot.slane %v6844_v17, %v6663_v55  ;;  %v1178_v53 = vrot.slane %v6844_v17, %v6671_v62  ;;  %v800_v5 = vmul.f32 %v786_v4, %v6754_v21 }
  0xe1   : > { %v1092_v24 = vmul.f32 %v1063_v19, %v1053_v60  ;;  %v1192_v38 = vmul.f32 %v1166_v31, %v1152_v25  ;;  %v6489_v4 = vmov 11  }
  0xe2   : > { %v1193_v54 = vmul.f32 %v1170_v6, %v1152_v25  ;;  %v1195_v58 = vmul.f32 %v1178_v53, %v1152_v25  ;;  %v1893_v6 = vrot.slane %v6577_v7, %v6657_v50 }
  0xe3   : > { %1008 = vrot.lane.b32.xlu1 %v993_v27, %s6486_s17  ;;  %1006 = vrot.lane.b32.xlu0 %v992_v28, %s6486_s17  ;;  %v1158_v27 = vrot.slane %v6844_v17, %v6651_v48  ;;  %v1094_v28 = vmul.f32 %v1071_v26, %v1053_v60 }
  0xe4   : > { %v7009_v53 = vrot.slane %v1893_v6, %v6657_v50 }
  0xe5   : > { %v1190_v29 = vmul.f32 %v1158_v27, %v1152_v25  ;;  %v1561_v27 = vrot.slane %v6582_v8, %v6671_v62 }
  0xe6   : > { %11396 = vst [vmem:[#allocation12_spill] sm:$0xff] %v7009_v53 }
  0xe7   : > { %1012 = vrot.lane.b32.xlu1 %v995_v44, %s6486_s17  ;;  %1010 = vrot.lane.b32.xlu0 %v994_v45, %s6486_s17  ;;  %v1174_v44 = vrot.slane %v6844_v17, %v6674_v63  ;;  %v1191_v45 = vmul.f32 %v1162_v41, %v1152_v25  ;;  %v6965_v31 = vrot.slane %v1561_v27, %v6654_v49 }
  0xe9   : > { %v1194_v51 = vmul.f32 %v1174_v44, %v1152_v25  ;;  %11394 = vst [vmem:[#allocation10_spill] sm:$0xff] %v6965_v31 }
  0xeb   : > { %1016 = vrot.lane.b32.xlu1 %v997_v56, %s6486_s17  ;;  %1014 = vrot.lane.b32.xlu0 %v996_v57, %s6486_s17  ;;  %v503_v56 = vmul.f32 %v489_v52, %v6645_v40  ;;  %v688_v57 = vrot.slane %v6711_v35, %v6865_v39  ;;  %v885_v40 = vrot.slane %v6773_v43, %v6865_v39 }
  0xec   : > { %v603_v35 = vmul.f32 %v589_v61, %v6641_v37  ;;  %v984_v37 = vrot.slane %v6798_v12, %v6865_v39 }
  0xed   : > { %v702_v59 = vmul.f32 %v688_v57, %v6648_v42  ;;  %v899_v0 = vmul.f32 %v885_v40, %v6779_v47  ;;  %v1083_v42 = vrot.slane %v6827_v46, %v6865_v39  ;;  %v1557_v47 = vrot.slane %v6582_v8, %v6654_v49 }
  0xee   : > { %v998_v46 = vmul.f32 %v984_v37, %v6808_v23  ;;  %v1321_v57 = vrot.slane %v6582_v8, %v6651_v48  ;;  %v1329_v40 = vrot.slane %v6590_v11, %v6651_v48 }
  0xef   : > { %1109 = vrot.lane.b32.xlu0 %v1093_v10, %s6487_s18  ;;  %1105 = vrot.lane.b32.xlu1 %v1091_v16, %s6487_s18  ;;  %v1097_v43 = vmul.f32 %v1083_v42, %v1053_v60  ;;  %v6904_v10 = vpop.permute.xlu0 %375  ;;  %v1182_v60 = vrot.slane %v6844_v17, %v6865_v39  ;;  %v6924_v12 = vrot.slane %v1557_v47, %v6654_v49 }
  0xf0   : > { %v1565_v16 = vrot.slane %v6590_v11, %v6654_v49  ;;  %v1553_v17 = vrot.slane %v6577_v7, %v6671_v62  ;;  %v377_v15 = vrot.slane %v6904_v10, 7 }
  0xf1   : > { %11391 = vst [vmem:[#allocation7_spill] sm:$0xff] %v6924_v12  ;;  %v1196_v19 = vmul.f32 %v1182_v60, %v1152_v25 }
  0xf2   : > { %v6934_v23 = vrot.slane %v1565_v16, %v6654_v49  ;;  %v6951_v25 = vrot.slane %v1553_v17, %v6654_v49  ;;  %v1317_v16 = vrot.slane %v6577_v7, %v6674_v63  ;;  %v6491_v17 = vmov 13  }
  0xf3   : > { %1113 = vrot.lane.b32.xlu0 %v1095_v20, %s6487_s18  ;;  %1107 = vrot.lane.b32.xlu1 %v1092_v24, %s6487_s18  ;;  %v6919_v21 = vpop.permute.xlu0 %1242  ;;  %v6941_v20 = vld [vmem:[%s11234_s3] sm:$0x3f] }
  0xf4   : > { %11392 = vst [vmem:[#allocation8_spill] sm:$0xff] %v6934_v23  ;;  %11393 = vst [vmem:[#allocation9_spill] sm:$0xff] %v6951_v25 }
  0xf7   : > { %1111 = vrot.lane.b32.xlu1 %v1094_v28, %s6487_s18  ;;  %1204 = vrot.lane.b32.xlu0 %v1190_v29, %s6488_s19  ;;  %v1897_v28 = vrot.slane %v6577_v7, %v6865_v39 }
  0xfb   : > { %1115 = vrot.lane.b32.xlu1 %v1096_v32, %s6487_s18  ;;  %1208 = vrot.lane.b32.xlu0 %v1192_v38, %s6488_s19  ;;  %v6968_v32 = vrot.slane %v1897_v28, %v6657_v50  ;;  %v1905_v38 = vrot.slane %v6582_v8, %v6865_v39 }
  0xfd   : > { %11395 = vst [vmem:[#allocation11_spill] sm:$0xff] %v6968_v32 }
  0xff   : > { %1206 = vrot.lane.b32.xlu1 %v1191_v45, %s6488_s19  ;;  %1212 = vrot.lane.b32.xlu0 %v1194_v51, %s6488_s19  ;;  %v6982_v45 = vrot.slane %v1905_v38, %v6657_v50  ;;  %v7074_v38 = vrot.slane %v1317_v16, %v6651_v48 }
 0x101   : > { %11402 = vst [vmem:[#allocation18_spill] sm:$0xff] %v7074_v38 }
 0x103   : > { %1210 = vrot.lane.b32.xlu1 %v1193_v54, %s6488_s19  ;;  %523 = vrot.lane.b32.xlu0 %v503_v56, %s6481_s12 }
 0x107   : > { %1214 = vrot.lane.b32.xlu1 %v1195_v58, %s6488_s19  ;;  %722 = vrot.lane.b32.xlu0 %v702_v59, %s6483_s14  ;;  %v1901_v58 = vrot.slane %v6582_v8, %v6657_v50 }
 0x10b   : > { %623 = vrot.lane.b32.xlu1 %v603_v35, %s6482_s13  ;;  %919 = vrot.lane.b32.xlu0 %v899_v0, %s6485_s16  ;;  %v7027_v35 = vrot.slane %v1901_v58, %v6657_v50  ;;  %v1909_v0 = vrot.slane %v6590_v11, %v6657_v50  ;;  %v6492_v58 = vmov 10  }
 0x10d   : > { %11398 = vst [vmem:[#allocation14_spill] sm:$0xff] %v7027_v35 }
 0x10f   : > { %820 = vrot.lane.b32.xlu1 %v800_v5, %s6484_s15  ;;  %1117 = vrot.lane.b32.xlu0 %v1097_v43, %s6487_s18  ;;  %v7039_v5 = vrot.slane %v1329_v40, %v6651_v48  ;;  %v7044_v43 = vrot.slane %v1909_v0, %v6657_v50  ;;  %v6493_v0 = vmov 17  }
 0x111   : > { %11399 = vst [vmem:[#allocation15_spill] sm:$0xff] %v7039_v5  ;;  %11400 = vst [vmem:[#allocation16_spill] sm:$0xff] %v7044_v43 }
 0x113   : > { %1018 = vrot.lane.b32.xlu1 %v998_v46, %s6486_s17  ;;  %1616 = vrot.lane.b32.xlu0 %v6911_v1, %s6470_s23 }
 0x117   : > { %1216 = vrot.lane.b32.xlu1 %v1196_v19, %s6488_s19  ;;  %1620 = vrot.lane.b32.xlu0 %v6924_v12, %s6470_s23  ;;  %v6490_v19 = vmov 9  }
 0x119   : > { %v6943_v24 = vpop.permute.xlu1 %513  ;;  %v6945_v26 = vpop.permute.xlu0 %511 }
 0x11b   : > { %1651 = vperm.xlu1 %6360, %v6941_v20   ;;  %1624 = vrot.lane.b32.xlu0 %v6934_v23, %s6470_s23 }
 0x11d   : > { %v6957_v29 = vpop.permute.xlu1 %517  ;;  %v6959_v30 = vpop.permute.xlu0 %515 }
 0x11f   : > { %1618 = vrot.lane.b32.xlu1 %v6951_v25, %s6470_s23  ;;  %1811 = vperm.xlu0 %6362, %v6941_v20  }
 0x120   : > { %6361 = vset.pattern.permute.xlu1 %v6468_v22  ;;  %v1313_v22 = vrot.slane %v6577_v7, %v6651_v48 }
 0x121   : > { %v6973_v41 = vpop.permute.xlu1 %521  ;;  %v6975_v44 = vpop.permute.xlu0 %519 }
 0x123   : > { %1622 = vrot.lane.b32.xlu1 %v6965_v31, %s6470_s23  ;;  %1962 = vrot.lane.b32.xlu0 %v6968_v32, %s6469_s22 }
 0x124   : > { %6364 = vset.pattern.permute.xlu0 %v6478_v34  ;;  %v7003_v34 = vrot.slane %v1313_v22, %v6651_v48  ;;  %v1325_v22 = vrot.slane %v6582_v8, %v6674_v63 }
 0x125   : > { %v6985_v51 = vpop.permute.xlu1 %613  ;;  %v6987_v52 = vpop.permute.xlu0 %611 }
 0x127   : > { %1731 = vperm.xlu1 %6361, %v6941_v20   ;;  %1966 = vrot.lane.b32.xlu0 %v6982_v45, %s6469_s22 }
 0x129   : > { %v6996_v54 = vpop.permute.xlu1 %617  ;;  %v6998_v56 = vpop.permute.xlu0 %615 }
 0x12b   : > { %6363 = vset.pattern.permute.xlu1 %v6475_v33  ;;  %2075 = vperm.xlu0 %6364, %v6941_v20   ;;  %v7020_v33 = vrot.slane %v1321_v57, %v6651_v48  ;;  %v7087_v57 = vrot.slane %v1325_v22, %v6651_v48 }
 0x12c   : > { %1995 = vperm.xlu1 %6363, %v6941_v20  }
 0x12d   : > { %v7013_v59 = vpop.permute.xlu1 %621  ;;  %v7015_v61 = vpop.permute.xlu0 %619  ;;  %11403 = vst [vmem:[#allocation19_spill] sm:$0xff] %v7087_v57 }
 0x12e   : > { %11397 = vst [vmem:[#allocation13_spill] sm:$0xff] %v7013_v59 }
 0x12f   : > { %2234 = vrot.lane.b32.xlu0 %v7003_v34, %s6471_s24 }
 0x130   : > { %1960 = vrot.lane.b32.xlu1 %v7009_v53, %s6469_s22  ;;  %6368 = vset.pattern.permute.xlu0 %v6489_v4 }
 0x131   : > { %v7031_v42 = vpop.permute.xlu1 %712  ;;  %v7033_v9 = vpop.permute.xlu0 %710  ;;  %6365 = vset.pattern.permute.xlu1 %v6480_v36 }
 0x133   : > { %2238 = vrot.lane.b32.xlu0 %v7020_v33, %s6471_s24 }
 0x134   : > { %1964 = vrot.lane.b32.xlu1 %v7027_v35, %s6469_s22 }
 0x135   : > { %v7046_v11 = vpop.permute.xlu1 %716  ;;  %v7048_v37 = vpop.permute.xlu0 %714 }
 0x137   : > { %2242 = vrot.lane.b32.xlu0 %v7039_v5, %s6471_s24  ;;  %v6499_v5 = vmov 16  }
 0x138   : > { %1968 = vrot.lane.b32.xlu1 %v7044_v43, %s6469_s22 }
 0x139   : > { %v7054_v36 = vpop.permute.xlu1 %720  ;;  %v7056_v47 = vpop.permute.xlu0 %718 }
 0x13a   : > { %11401 = vst [vmem:[#allocation17_spill] sm:$0xff] %v7054_v36 }
 0x13b   : > { %2429 = vperm.xlu0 %6368, %v6941_v20  }
 0x13c   : > { %2155 = vperm.xlu1 %6365, %v6941_v20  }
 0x13d   : > { %v7060_v46 = vpop.permute.xlu1 %810  ;;  %v7062_v60 = vpop.permute.xlu0 %808 }
 0x13f   : > { %2510 = vrot.lane.b32.xlu0 %v6951_v25, %s6467_s21 }
 0x140   : > { %6366 = vset.pattern.permute.xlu1 %v6490_v19  ;;  %6370 = vset.pattern.permute.xlu0 %v6491_v17  ;;  %v6494_v17 = vmov 12  }
 0x141   : > { %v7068_v27 = vpop.permute.xlu1 %814  ;;  %2269 = vperm.xlu1 %6366, %v6941_v20   ;;  %v7071_v28 = vpop.permute.xlu0 %812 }
 0x143   : > { %2514 = vrot.lane.b32.xlu0 %v6965_v31, %s6467_s21 }
 0x145   : > { %v7080_v7 = vpop.permute.xlu1 %818  ;;  %2236 = vrot.lane.b32.xlu1 %v7074_v38, %s6471_s24  ;;  %v7084_v6 = vpop.permute.xlu0 %816 }
 0x146   : > { %6367 = vset.pattern.permute.xlu1 %v6492_v58 }
 0x147   : > { %2623 = vperm.xlu0 %6370, %v6941_v20  }
 0x149   : > { %v7090_v40 = vpop.permute.xlu1 %909  ;;  %2240 = vrot.lane.b32.xlu1 %v7087_v57, %s6471_s24  ;;  %v7094_v8 = vpop.permute.xlu0 %907 }
 0x14b   : > { %2782 = vrot.lane.b32.xlu0 %v7009_v53, %s6472_s25  ;;  %v6496_v53 = vmov 19  }
 0x14c   : > { %6374 = vset.pattern.permute.xlu0 %v6493_v0 }
 0x14d   : > { %v7098_v4 = vpop.permute.xlu1 %913  ;;  %2349 = vperm.xlu1 %6367, %v6941_v20   ;;  %v7101_v16 = vpop.permute.xlu0 %911 }
 0x14f   : > { %2786 = vrot.lane.b32.xlu0 %v7027_v35, %s6472_s25  ;;  %v325_v35 = vor.u32 %v324_v2, %v323_v13 }
 0x151   : > { %v7105_v19 = vpop.permute.xlu1 %917  ;;  %6369 = vset.pattern.permute.xlu1 %v6494_v17  ;;  %v7107_v22 = vpop.permute.xlu0 %915  ;;  %v6495_v17 = vmov 14  }
 0x152   : > { %2543 = vperm.xlu1 %6369, %v6941_v20  }
 0x153   : > { %2790 = vrot.lane.b32.xlu0 %v7044_v43, %s6472_s25  ;;  %v379_v43 = vsel %vm11267_vm13, %v377_v15, %v6904_v10  ;;  %v526_v10 = vsel %vm525_vm14, %v6945_v26, %v6943_v24  ;;  %v528_v26 = vsel %vm525_vm14, %v6959_v30, %v6957_v29  ;;  %vm11269_vm13 = vcmask 572416  }
 0x154   : > { %v7130_v31 = vmul.f32 %v379_v43, %v325_v35  ;;  %v626_v35 = vsel %vm625_vm15, %v6987_v52, %v6985_v51 }
 0x155   : > { %v7112_v58 = vpop.permute.xlu1 %1008  ;;  %v7114_v0 = vpop.permute.xlu0 %1006 }
 0x156   : > { %11404 = vst [vmem:[#allocation20_spill] sm:$0xff] %v7112_v58  ;;  %2508 = vrot.lane.b32.xlu1 %v6911_v1, %s6467_s21  ;;  %v391_v2 = vrot.slane %v7130_v31, %v6651_v48 }
 0x157   : > { %2977 = vperm.xlu0 %6374, %v6941_v20   ;;  %6371 = vset.pattern.permute.xlu1 %v6495_v17 }
 0x159   : > { %v7120_v3 = vpop.permute.xlu1 %1012  ;;  %v7122_v14 = vpop.permute.xlu0 %1010 }
 0x15a   : > { %2512 = vrot.lane.b32.xlu1 %v6924_v12, %s6467_s21 }
 0x15b   : > { %3058 = vrot.lane.b32.xlu0 %v7074_v38, %s6474_s26 }
 0x15c   : > { %6376 = vset.pattern.permute.xlu0 %v6496_v53  ;;  %v423_v53 = vmul.f32 %v391_v2, %v6928_v18  ;;  %v725_v2 = vsel %vm724_vm0, %v7033_v9, %v7031_v42  ;;  %v6498_v9 = vmov 23  }
 0x15d   : > { %v7132_v17 = vpop.permute.xlu1 %1016  ;;  %v7134_v25 = vpop.permute.xlu0 %1014 }
 0x15e   : > { %2516 = vrot.lane.b32.xlu1 %v6934_v23, %s6467_s21  ;;  %v539_v43 = vadd.f32 %v526_v10, %v423_v53  ;;  %v6497_v23 = vmov 15   ;;  %v407_v53 = vrot.slane %v7130_v31, %v6674_v63  ;;  %v727_v63 = vsel %vm724_vm0, %v7048_v37, %v7046_v11 }
 0x15f   : > { %3062 = vrot.lane.b32.xlu0 %v7087_v57, %s6474_s26  ;;  %v399_v57 = vrot.slane %v7130_v31, %v6657_v50  ;;  %v628_v50 = vsel %vm625_vm15, %v6998_v56, %v6996_v54 }
 0x160   : > { %v639_v10 = vadd.f32 %v626_v35, %v539_v43 }
 0x161   : > { %v1106_v13 = vpop.permute.xlu1 %1105  ;;  %v7142_v15 = vpop.permute.xlu0 %1109  ;;  %v425_v52 = vmul.f32 %v399_v57, %v6928_v18 }
 0x162   : > { %2703 = vperm.xlu1 %6371, %v6941_v20   ;;  %v738_v35 = vadd.f32 %v725_v2, %v639_v10  ;;  %v825_v10 = vsel %vm822_vm1, %v7071_v28, %v7068_v27 }
 0x163   : > { %3171 = vperm.xlu0 %6376, %v6941_v20   ;;  %v541_v57 = vadd.f32 %v528_v26, %v425_v52  ;;  %v630_v52 = vsel %vm625_vm15, %v7015_v61, %v7013_v59  ;;  %v924_v59 = vsel %vm921_vm2, %v7101_v16, %v7098_v4 }
 0x165   : > { %v7155_v38 = vpop.permute.xlu1 %1107  ;;  %v7157_v48 = vpop.permute.xlu0 %1113  ;;  %v641_v26 = vadd.f32 %v628_v50, %v541_v57 }
 0x166   : > { %6372 = vset.pattern.permute.xlu1 %v6497_v23  ;;  %v823_v23 = vsel %vm822_vm1, %v7062_v60, %v7060_v46  ;;  %v922_v60 = vsel %vm921_vm2, %v7094_v8, %v7090_v40  ;;  %v1021_v8 = vsel %vm1020_vm3, %v7114_v0, %v7112_v58  ;;  %v1120_v0 = vsel %vm11287_vm5, %v1106_v13, %v7155_v38 }
 0x167   : > { %2817 = vperm.xlu1 %6372, %v6941_v20   ;;  %3330 = vrot.lane.b32.xlu0 %v6911_v1, %s6476_s29  ;;  %v530_v1 = vsel %vm525_vm14, %v6975_v44, %v6973_v41  ;;  %v836_v2 = vadd.f32 %v823_v23, %v738_v35 }
 0x168   : > { %6380 = vset.pattern.permute.xlu0 %v6498_v9  ;;  %v427_v9 = vmul.f32 %v407_v53, %v6928_v18  ;;  %v740_v53 = vadd.f32 %v727_v63, %v641_v26  ;;  %v827_v63 = vsel %vm822_vm1, %v7084_v6, %v7080_v7 }
 0x169   : > { %v7177_v43 = vpop.permute.xlu1 %1111  ;;  %v1205_v12 = vpop.permute.xlu0 %1204  ;;  %v935_v23 = vadd.f32 %v922_v60, %v836_v2  ;;  %v1023_v60 = vsel %vm1020_vm3, %v7122_v14, %v7120_v3 }
 0x16a   : > { %v543_v50 = vadd.f32 %v530_v1, %v427_v9 }
 0x16b   : > { %2784 = vrot.lane.b32.xlu1 %v6968_v32, %s6472_s25  ;;  %v729_v32 = vsel %vm724_vm0, %v7056_v47, %v7054_v36  ;;  %v1034_v1 = vadd.f32 %v1021_v8, %v935_v23 }
 0x16c   : > { %6373 = vset.pattern.permute.xlu1 %v6499_v5  ;;  %v643_v58 = vadd.f32 %v630_v52, %v543_v50  ;;  %v838_v5 = vadd.f32 %v825_v10, %v740_v53  ;;  %v926_v52 = vsel %vm921_vm2, %v7107_v22, %v7105_v19  ;;  %v1122_v10 = vsel %vm11287_vm5, %v7142_v15, %v7177_v43 }
 0x16d   : > { %v7200_v57 = vpop.permute.xlu1 %1115  ;;  %v7202_v35 = vpop.permute.xlu0 %1208  ;;  %v1133_v2 = vadd.f32 %v1120_v0, %v1034_v1 }
 0x16e   : > { %v742_v9 = vadd.f32 %v729_v32, %v643_v58  ;;  %v937_v26 = vadd.f32 %v924_v59, %v838_v5  ;;  %v1025_v59 = vsel %vm1020_vm3, %v7134_v25, %v7132_v17 }
 0x16f   : > { %2788 = vrot.lane.b32.xlu1 %v6982_v45, %s6472_s25 }
 0x170   : > { %v840_v50 = vadd.f32 %v827_v63, %v742_v9  ;;  %v1036_v53 = vadd.f32 %v1023_v60, %v937_v26 }
 0x171   : > { %v7220_v36 = vpop.permute.xlu1 %1206  ;;  %v7222_v13 = vpop.permute.xlu0 %1212 }
 0x172   : > { %v1219_v8 = vsel %vm11269_vm13, %v1205_v12, %v7220_v36  ;;  %v939_v58 = vadd.f32 %v926_v52, %v840_v50  ;;  %v1135_v23 = vadd.f32 %v1122_v10, %v1036_v53  ;;  %v1124_v12 = vsel %vm11287_vm5, %v7157_v48, %v7200_v57 }
 0x173   : > { %v1232_v32 = vadd.f32 %v1219_v8, %v1133_v2  ;;  %2897 = vperm.xlu1 %6373, %v6941_v20   ;;  %v6500_v2 = vmov 18   ;;  %v415_v52 = vrot.slane %v7130_v31, %v6865_v39  ;;  %v395_v10 = vrot.slane %v7130_v31, %v6654_v49 }
 0x174   : > { %v1038_v60 = vadd.f32 %v1025_v59, %v939_v58 }
 0x175   : > { %v1245_v0 = vadd.f32 %v6919_v21, %v1232_v32  ;;  %v7237_v5 = vpop.permute.xlu1 %1210  ;;  %v524_v1 = vpop.permute.xlu0 %523  ;;  %v527_v32 = vsel %vm525_vm14, %v6943_v24, %v6959_v30  ;;  %v429_v59 = vmul.f32 %v415_v52, %v6928_v18  ;;  %v403_v30 = vrot.slane %v7130_v31, %v6663_v55 }
 0x176   : > { %v1221_v63 = vsel %vm11269_vm13, %v7202_v35, %v7237_v5  ;;  %v1137_v8 = vadd.f32 %v1124_v12, %v1038_v60  ;;  %v627_v60 = vsel %vm625_vm15, %v6985_v51, %v6998_v56  ;;  %v6502_v52 = vmov 20  }
 0x177   : > { %v1252_v9 = vmax.f32 %v1245_v0, 0.0  ;;  %v1234_v26 = vadd.f32 %v1221_v63, %v1135_v23  ;;  %6375 = vset.pattern.permute.xlu1 %v6500_v2  ;;  %v424_v23 = vmul.f32 %v395_v10, %v6928_v18  ;;  %v529_v10 = vsel %vm525_vm14, %v6957_v29, %v6975_v44 }
 0x178   : > { %3091 = vperm.xlu1 %6375, %v6941_v20   ;;  %v726_v51 = vsel %vm724_vm0, %v7031_v42, %v7048_v37 }
 0x179   : > { %v1247_v50 = vadd.f32 %v6919_v21, %v1234_v26  ;;  %v7251_v53 = vpop.permute.xlu1 %1214  ;;  %1266 = vrot.lane.b32.xlu0 %v1252_v9, %s6501_s11  ;;  %v7262_v63 = vpop.permute.xlu0 %722  ;;  %v545_v9 = vadd.f32 %v524_v1, %v429_v59  ;;  %v540_v24 = vadd.f32 %v527_v32, %v424_v23  ;;  %v629_v32 = vsel %vm625_vm15, %v6996_v54, %v7015_v61 }
 0x17a   : > { %v1223_v58 = vsel %vm11269_vm13, %v7222_v13, %v7251_v53  ;;  %v824_v59 = vsel %vm822_vm1, %v7060_v46, %v7071_v28  ;;  %v728_v54 = vsel %vm724_vm0, %v7046_v11, %v7056_v47  ;;  %v923_v61 = vsel %vm921_vm2, %v7090_v40, %v7101_v16  ;;  %v11406_v40 = vld [vmem:[#allocation15_spill] sm:$0xff] }
 0x17b   : > { %v1254_v0 = vmax.f32 %v1247_v50, 0.0  ;;  %v1236_v12 = vadd.f32 %v1223_v58, %v1137_v8  ;;  %v426_v8 = vmul.f32 %v403_v30, %v6928_v18  ;;  %v640_v50 = vadd.f32 %v627_v60, %v540_v24  ;;  %v11407_v30 = vld [vmem:[#allocation13_spill] sm:$0xff] }
 0x17c   : > { %3056 = vrot.lane.b32.xlu1 %v7003_v34, %s6474_s26  ;;  %v411_v46 = vrot.slane %v7130_v31, %v6671_v62  ;;  %v826_v60 = vsel %vm822_vm1, %v7068_v27, %v7084_v6 }
 0x17d   : > { %v1249_v26 = vadd.f32 %v6919_v21, %v1236_v12  ;;  %v624_v2 = vpop.permute.xlu1 %623  ;;  %1270 = vrot.lane.b32.xlu0 %v1254_v0, %s6501_s11  ;;  %6377 = vset.pattern.permute.xlu1 %v6502_v52  ;;  %v542_v44 = vadd.f32 %v529_v10, %v426_v8  ;;  %v739_v42 = vadd.f32 %v726_v51, %v640_v50  ;;  %v7289_v37 = vpop.permute.xlu0 %919 }
 0x17e   : > { %v645_v56 = vadd.f32 %v624_v2, %v545_v9  ;;  %v531_v12 = vsel %vm525_vm14, %v6973_v41, %v524_v1  ;;  %v11405_v9 = vld [vmem:[#allocation20_spill] sm:$0xff]  ;;  %v428_v47 = vmul.f32 %v411_v46, %v6928_v18  ;;  %v631_v41 = vsel %vm625_vm15, %v11407_v30, %v624_v2 }
 0x17f   : > { %v1256_v55 = vmax.f32 %v1249_v26, 0.0  ;;  %v642_v23 = vadd.f32 %v629_v32, %v542_v44  ;;  %v837_v0 = vadd.f32 %v824_v59, %v739_v42  ;;  %v1022_v11 = vsel %vm1020_vm3, %v11405_v9, %v7122_v14  ;;  %v11408_v26 = vld [vmem:[#allocation7_spill] sm:$0xff]  ;;  %v11410_v59 = vld [vmem:[#allocation17_spill] sm:$0xff] }
 0x180   : > { %3060 = vrot.lane.b32.xlu1 %v7020_v33, %s6474_s26  ;;  %v744_v29 = vadd.f32 %v7262_v63, %v645_v56  ;;  %v925_v14 = vsel %vm921_vm2, %v7098_v4, %v7107_v22  ;;  %v1121_v18 = vsel %vm11287_vm5, %v7155_v38, %v7142_v15  ;;  %v544_v27 = vadd.f32 %v531_v12, %v428_v47  ;;  %v11409_v15 = vld [vmem:[#allocation8_spill] sm:$0xff] }
 0x181   : > { %v821_v58 = vpop.permute.xlu1 %820  ;;  %1274 = vrot.lane.b32.xlu0 %v1256_v55, %s6501_s11  ;;  %v741_v16 = vadd.f32 %v728_v54, %v642_v23  ;;  %v936_v24 = vadd.f32 %v923_v61, %v837_v0  ;;  %v1118_v51 = vpop.permute.xlu0 %1117  ;;  %v1024_v2 = vsel %vm1020_vm3, %v7120_v3, %v7134_v25  ;;  %v1220_v56 = vsel %vm11269_vm13, %v7220_v36, %v7202_v35 }
 0x182   : > { %v842_v28 = vadd.f32 %v821_v58, %v744_v29  ;;  %v644_v8 = vadd.f32 %v631_v41, %v544_v27  ;;  %v1123_v55 = vsel %vm11287_vm5, %v7177_v43, %v7157_v48  ;;  %v730_v36 = vsel %vm724_vm0, %v11410_v59, %v7262_v63  ;;  %v11421_v59 = vld [vmem:[#allocation14_spill] sm:$0xff] }
 0x183   : > { %v839_v52 = vadd.f32 %v826_v60, %v741_v16  ;;  %v1035_v10 = vadd.f32 %v1022_v11, %v936_v24  ;;  %v1222_v35 = vsel %vm11269_vm13, %v7237_v5, %v7222_v13  ;;  %v6503_v42 = vmov 21   ;;  %v11411_v5 = vld [vmem:[#allocation9_spill] sm:$0xff]  ;;  %v11412_v11 = vld [vmem:[#allocation11_spill] sm:$0xff] }
 0x184   : > { %3064 = vrot.lane.b32.xlu1 %v11406_v40, %s6474_s26  ;;  %v941_v31 = vadd.f32 %v7289_v37, %v842_v28  ;;  %v743_v29 = vadd.f32 %v730_v36, %v644_v8  ;;  %v828_v48 = vsel %vm822_vm1, %v7080_v7, %v821_v58  ;;  %v6504_v23 = vmov 25   ;;  %v11417_v8 = vld [vmem:[#allocation6_spill] sm:$0xff] }
 0x185   : > { %v1019_v1 = vpop.permute.xlu1 %1018  ;;  %3334 = vrot.lane.b32.xlu0 %v11408_v26, %s6476_s29  ;;  %v938_v22 = vadd.f32 %v925_v14, %v839_v52  ;;  %v1134_v50 = vadd.f32 %v1121_v18, %v1035_v10  ;;  %v7341_v54 = vpop.permute.xlu0 %1616  ;;  %v6505_v0 = vmov 22   ;;  %v927_v12 = vsel %vm921_vm2, %v7105_v19, %v7289_v37  ;;  %v7370_v19 = vld [vmem:[%s11236_s5 + $0x18] sm:$0x7] }
 0x186   : > { %v1040_v6 = vadd.f32 %v1019_v1, %v941_v31  ;;  %v841_v13 = vadd.f32 %v828_v48, %v743_v29  ;;  %v1026_v9 = vsel %vm1020_vm3, %v7132_v17, %v1019_v1  ;;  %v1573_v17 = vrot.slane %v7370_v19, %v6654_v49  ;;  %v11415_v1 = vld [vmem:[#allocation10_spill] sm:$0xff] }
 0x187   : > { %v1037_v3 = vadd.f32 %v1024_v2, %v938_v22  ;;  %v1233_v25 = vadd.f32 %v1220_v56, %v1134_v50  ;;  %v1125_v24 = vsel %vm11287_vm5, %v7200_v57, %v1118_v51  ;;  %v11416_v27 = vmov 1   ;;  %v6444_v56 = vld [vmem:[%s11236_s5 + $0x10] sm:$0x77] }
 0x188   : > { %3251 = vperm.xlu1 %6377, %v6941_v20   ;;  %v1139_v4 = vadd.f32 %v1118_v51, %v1040_v6  ;;  %v940_v60 = vadd.f32 %v927_v12, %v841_v13  ;;  %v6506_v52 = vmov 24   ;;  %v11418_v22 = vmov 2  }
 0x189   : > { %v1217_v38 = vpop.permute.xlu1 %1216  ;;  %3338 = vrot.lane.b32.xlu0 %v11409_v15, %s6476_s29  ;;  %v1136_v61 = vadd.f32 %v1123_v55, %v1037_v3  ;;  %v1246_v63 = vadd.f32 %v6919_v21, %v1233_v25  ;;  %v7351_v28 = vpop.permute.xlu0 %1620  ;;  %v11419_v15 = vld [vmem:[#allocation4_spill] sm:$0xff]  ;;  %v1569_v25 = vrot.slane %v6444_v56, %v6671_v62  ;;  %vm1301_vm5 = vcmask 387072  }
 0x18a   : > { %v1238_v32 = vadd.f32 %v1217_v38, %v1139_v4  ;;  %v1039_v31 = vadd.f32 %v1026_v9, %v940_v60  ;;  %v1224_v41 = vsel %vm11269_vm13, %v7251_v53, %v1217_v38  ;;  %v6507_v38 = vmov 26   ;;  %v11420_v55 = vld [vmem:[#allocation12_spill] sm:$0xff]  ;;  %v11426_v9 = vld [vmem:[#allocation18_spill] sm:$0xff] }
 0x18b   : > { %v1235_v46 = vadd.f32 %v1222_v35, %v1136_v61  ;;  %v1253_v7 = vmax.f32 %v1246_v63, 0.0  ;;  %v11422_v35 = vmov 0   ;;  %v11424_v62 = vld [vmem:[#allocation16_spill] sm:$0xff]  ;;  %vm1294_vm13 = vcmask 1042688  }
 0x18c   : > { %v1251_v44 = vadd.f32 %v6919_v21, %v1238_v32  ;;  %6378 = vset.pattern.permute.xlu1 %v6503_v42  ;;  %v1138_v30 = vadd.f32 %v1125_v24, %v1039_v31  ;;  %v11423_v42 = vld [vmem:[#allocation5_spill] sm:$0xff]  ;;  %v11427_v31 = vld [vmem:[#allocation19_spill] sm:$0xff] }
 0x18d   : > { %3365 = vperm.xlu1 %6378, %v6941_v20   ;;  %3525 = vperm.xlu0 %6380, %v6941_v20   ;;  %v1248_v58 = vadd.f32 %v6919_v21, %v1235_v46  ;;  %v7362_v16 = vpop.permute.xlu0 %1624  ;;  %v1917_v61 = vrot.slane %v7370_v19, %v11423_v42 }
 0x18e   : > { %v1258_v43 = vmax.f32 %v1251_v44, 0.0  ;;  %11413 = vst [vmem:[#allocation20_spill] sm:$0xff] %v7362_v16  ;;  %v1237_v18 = vadd.f32 %v1224_v41, %v1138_v30  ;;  %v7438_v44 = vrot.slane %v1569_v25, %v6654_v49 }
 0x18f   : > { %v1255_v47 = vmax.f32 %v1248_v58, 0.0  ;;  %v7451_v63 = vrot.slane %v1917_v61, %v11423_v42 }
 0x190   : > { %v1250_v6 = vadd.f32 %v6919_v21, %v1237_v18  ;;  %v1333_v21 = vrot.slane %v6444_v56, %v11417_v8 }
 0x191   : > { %3332 = vrot.lane.b32.xlu1 %v11411_v5, %s6476_s29  ;;  %1278 = vrot.lane.b32.xlu0 %v1258_v43, %s6501_s11 }
 0x192   : > { %6382 = vset.pattern.permute.xlu0 %v6504_v23  ;;  %6379 = vset.pattern.permute.xlu1 %v6505_v0  ;;  %v1257_v2 = vmax.f32 %v1250_v6, 0.0 }
 0x195   : > { %1268 = vrot.lane.b32.xlu1 %v1253_v7, %s6501_s11  ;;  %3606 = vrot.lane.b32.xlu0 %v11412_v11, %s6477_s30  ;;  %v1913_v11 = vrot.slane %v6444_v56, %v6865_v39  ;;  %v1337_v39 = vrot.slane %v7370_v19, %v11419_v15 }
 0x199   : > { %1272 = vrot.lane.b32.xlu1 %v1255_v47, %s6501_s11  ;;  %3610 = vrot.lane.b32.xlu0 %v6982_v45, %s6477_s30  ;;  %v7384_v45 = vrot.slane %v1573_v17, %v6654_v49  ;;  %v7490_v17 = vrot.slane %v1913_v11, %v11423_v42 }
 0x19a   : > { %v7374_v37 = vpop.permute.xlu1 %1651 }
 0x19b   : > { %11414 = vst [vmem:[#allocation13_spill] sm:$0xff] %v7374_v37 }
 0x19d   : > { %3336 = vrot.lane.b32.xlu1 %v11415_v1, %s6476_s29  ;;  %3719 = vperm.xlu0 %6382, %v6941_v20   ;;  %v7507_v1 = vrot.slane %v1337_v39, %v11419_v15 }
 0x19e   : > { %v7386_v26 = vpop.permute.xlu1 %1618  ;;  %v7388_v14 = vpop.permute.xlu0 %1811 }
 0x1a1   : > { %3445 = vperm.xlu1 %6379, %v6941_v20   ;;  %1628 = vrot.lane.b32.xlu0 %v7384_v45, %s6470_s23 }
 0x1a2   : > { %v7393_v57 = vpop.permute.xlu1 %1622  ;;  %v7395_v53 = vpop.permute.xlu0 %1962  ;;  %6385 = vset.pattern.permute.xlu0 %v11416_v27 }
 0x1a5   : > { %6381 = vset.pattern.permute.xlu1 %v6506_v52  ;;  %1455 = vperm.xlu0 %6385, %v6941_v20  }
 0x1a6   : > { %v7400_v10 = vpop.permute.xlu1 %1731  ;;  %3639 = vperm.xlu1 %6381, %v6941_v20   ;;  %v7403_v51 = vpop.permute.xlu0 %1966 }
 0x1a9   : > { %1384 = vrot.lane.b32.xlu0 %v7020_v33, %s6479_s9  ;;  %v7419_v33 = vrot.slane %v1333_v21, %v11419_v15 }
 0x1aa   : > { %1276 = vrot.lane.b32.xlu1 %v1257_v2, %s6501_s11  ;;  %v7412_v4 = vpop.permute.xlu0 %2075  ;;  %6386 = vset.pattern.permute.xlu0 %v11418_v22 }
 0x1ab   : > { %v7415_v50 = vpop.permute.xlu1 %1995  ;;  %6383 = vset.pattern.permute.xlu1 %v6507_v38 }
 0x1ad   : > { %1501 = vperm.xlu0 %6386, %v6941_v20  }
 0x1ae   : > { %3604 = vrot.lane.b32.xlu1 %v11420_v55, %s6477_s30  ;;  %v7423_v32 = vpop.permute.xlu0 %2234 }
 0x1af   : > { %v7425_v3 = vpop.permute.xlu1 %1960 }
 0x1b1   : > { %2244 = vrot.lane.b32.xlu0 %v7419_v33, %s6471_s24 }
 0x1b2   : > { %3608 = vrot.lane.b32.xlu1 %v11421_v59, %s6477_s30  ;;  %v7432_v36 = vpop.permute.xlu0 %2238  ;;  %6442 = vset.pattern.permute.xlu0 %v11422_v35 }
 0x1b3   : > { %v7435_v29 = vpop.permute.xlu1 %1964 }
 0x1b5   : > { %2518 = vrot.lane.b32.xlu0 %v7438_v44, %s6467_s21 }
 0x1b6   : > { %3612 = vrot.lane.b32.xlu1 %v11424_v62, %s6477_s30  ;;  %v7446_v48 = vpop.permute.xlu0 %2242 }
 0x1b7   : > { %v7448_v43 = vpop.permute.xlu1 %1968 }
 0x1b9   : > { %2794 = vrot.lane.b32.xlu0 %v7451_v63, %s6472_s25 }
 0x1ba   : > { %3799 = vperm.xlu1 %6383, %v6941_v20   ;;  %v7456_v46 = vpop.permute.xlu0 %2429 }
 0x1bb   : > { %11425 = vst [vmem:[#allocation7_spill] sm:$0xff] %v7456_v46  ;;  %v7458_v13 = vpop.permute.xlu1 %2155 }
 0x1be   : > { %1626 = vrot.lane.b32.xlu1 %v7438_v44, %s6470_s23  ;;  %v7462_v5 = vpop.permute.xlu0 %2510 }
 0x1bf   : > { %6384 = vset.pattern.permute.xlu1 %v11422_v35 }
 0x1c0   : > { %v7465_v23 = vpop.permute.xlu1 %2269 }
 0x1c2   : > { %1416 = vperm.xlu1 %6384, %v6941_v20   ;;  %v7468_v0 = vpop.permute.xlu0 %2514 }
 0x1c4   : > { %v7470_v7 = vpop.permute.xlu1 %2236 }
 0x1c6   : > { %v7472_v58 = vpop.permute.xlu0 %2623  ;;  %1380 = vrot.lane.b32.xlu1 %v7003_v34, %s6479_s9 }
 0x1c8   : > { %v7476_v12 = vpop.permute.xlu1 %2240 }
 0x1ca   : > { %v7478_v60 = vpop.permute.xlu0 %2782  ;;  %1382 = vrot.lane.b32.xlu1 %v11426_v9, %s6479_s9 }
 0x1cc   : > { %v7483_v47 = vpop.permute.xlu1 %2349 }
 0x1ce   : > { %v7485_v20 = vpop.permute.xlu0 %2786  ;;  %1386 = vrot.lane.b32.xlu1 %v11427_v31, %s6479_s9 }
 0x1d1   : > { %v7492_v34 = vpop.permute.xlu1 %2543 }
 0x1d2   : > { %11428 = vst [vmem:[#allocation8_spill] sm:$0xff] %v7492_v34  ;;  %v7494_v24 = vpop.permute.xlu0 %2790  ;;  %1970 = vrot.lane.b32.xlu1 %v7490_v17, %s6469_s22 }
 0x1d5   : > { %v7500_v30 = vpop.permute.xlu1 %2508 }
 0x1d6   : > { %v7502_v41 = vpop.permute.xlu0 %2977  ;;  %1972 = vrot.lane.b32.xlu1 %v7451_v63, %s6469_s22 }
 0x1d7   : > { %11429 = vst [vmem:[#allocation17_spill] sm:$0xff] %v7502_v41 }
 0x1d9   : > { %v7509_v18 = vpop.permute.xlu1 %2512 }
 0x1da   : > { %v7511_v27 = vpop.permute.xlu0 %3058  ;;  %2246 = vrot.lane.b32.xlu1 %v7507_v1, %s6471_s24 }
 0x1db   : > { %11430 = vst [vmem:[#allocation9_spill] sm:$0xff] %v7511_v27 }
 0x1dd   : > { %v7515_v6 = vpop.permute.xlu1 %2516 }
 0x1de   : > { %v7517_v19 = vpop.permute.xlu0 %3062  ;;  %2520 = vrot.lane.b32.xlu1 %v7384_v45, %s6467_s21 }
 0x1df   : > { %11431 = vst [vmem:[#allocation11_spill] sm:$0xff] %v7517_v19 }
 0x1e1   : > { %v7521_v52 = vpop.permute.xlu1 %2703 }
 0x1e2   : > { %v7523_v2 = vpop.permute.xlu0 %3171  ;;  %2792 = vrot.lane.b32.xlu1 %v7490_v17, %s6472_s25  ;;  %s298_s25 = scalar_lea.vmem %s11239_s8, %s11731_s28 }
 0x1e3   : > { %11432 = vst [vmem:[#allocation10_spill] sm:$0xff] %v7523_v2 }
 0x1e6   : > { %v7527_v56 = vpop.permute.xlu1 %2817  ;;  %v7529_v8 = vpop.permute.xlu0 %3330 }
 0x1e7   : > { %11433 = vst [vmem:[#allocation6_spill] sm:$0xff] %v7529_v8 }
 0x1ea   : > { %v7531_v21 = vpop.permute.xlu1 %2784 }
 0x1eb   : > { %v1267_v22 = vpop.permute.xlu0 %1266 }
 0x1ec   : > { %1295 = vst.msk [vmem:[#allocation2] sm:$0x7] %vm1294_vm13, %v1267_v22  ;;  %vm1280_vm13 = vcmask 236544  }
 0x1ee   : > { %v7533_v38 = vpop.permute.xlu1 %2788 }
 0x1f2   : > { %v7535_v55 = vpop.permute.xlu1 %2897 }
 0x1f3   : > { %v7537_v25 = vld [vmem:[#allocation2] sm:$0x7] }
 0x1f4   : > { %v1643_v59 = vmul.f32 %v7341_v54, %v7537_v25  ;;  %v1987_v35 = vmul.f32 %v7425_v3, %v7537_v25 }
 0x1f6   : > { %v1737_v61 = vrot.slane %v1643_v59, %v6654_v49  ;;  %v1657_v62 = vrot.slane %v1643_v59, %v11419_v15  ;;  %v2001_v39 = vrot.slane %v1987_v35, %v11419_v15  ;;  %v1817_v40 = vrot.slane %v1643_v59, %v11423_v42 }
 0x1f7   : > { %v7545_v9 = vpop.permute.xlu1 %3091 }
 0x1f8   : > { %11434 = vst [vmem:[#allocation4_spill] sm:$0xff] %v7545_v9  ;;  %v1762_v11 = vmul.f32 %v1737_v61, %v7400_v10  ;;  %v1682_v31 = vmul.f32 %v1657_v62, %v7374_v37  ;;  %v2026_v2 = vmul.f32 %v2001_v39, %v7415_v50  ;;  %v1842_v19 = vmul.f32 %v1817_v40, %v7388_v14 }
 0x1f9   : > { %v2161_v9 = vrot.slane %v1987_v35, %v11423_v42  ;;  %v2081_v61 = vrot.slane %v1987_v35, %v6654_v49  ;;  %v1271_v35 = vpop.permute.xlu0 %1270 }
 0x1fa   : > { %1776 = vrot.lane.b32.xlu1 %v1762_v11, %s6481_s12  ;;  %1696 = vrot.lane.b32.xlu0 %v1682_v31, %s6481_s12 }
 0x1fb   : > { %v7553_v8 = vpop.permute.xlu1 %3056  ;;  %v2186_v59 = vmul.f32 %v2161_v9, %v7458_v13  ;;  %v2106_v11 = vmul.f32 %v2081_v61, %v7412_v4 }
 0x1fc   : > { %11435 = vst [vmem:[#allocation12_spill] sm:$0xff] %v7553_v8 }
 0x1fe   : > { %2040 = vrot.lane.b32.xlu1 %v2026_v2, %s6482_s13  ;;  %1856 = vrot.lane.b32.xlu0 %v1842_v19, %s6481_s12  ;;  %v1275_v19 = vpop.permute.xlu0 %1274 }
 0x1ff   : > { %v7561_v62 = vpop.permute.xlu1 %3060 }
 0x200   : > { %11436 = vst [vmem:[#allocation14_spill] sm:$0xff] %v7561_v62 }
 0x202   : > { %2200 = vrot.lane.b32.xlu1 %v2186_v59, %s6482_s13  ;;  %2120 = vrot.lane.b32.xlu0 %v2106_v11, %s6482_s13  ;;  %v7577_v59 = vpop.permute.xlu0 %3334 }
 0x203   : > { %v7567_v31 = vpop.permute.xlu1 %3064  ;;  %11441 = vst [vmem:[#allocation21_spill] sm:$0xff] %v7577_v59 }
 0x204   : > { %11437 = vst [vmem:[#allocation5_spill] sm:$0xff] %v7567_v31 }
 0x207   : > { %v7569_v40 = vpop.permute.xlu1 %3251 }
 0x208   : > { %11438 = vst [vmem:[#allocation16_spill] sm:$0xff] %v7569_v40 }
 0x20c   : > { %v7571_v39 = vpop.permute.xlu1 %3365 }
 0x20d   : > { %11439 = vst [vmem:[#allocation18_spill] sm:$0xff] %v7571_v39 }
 0x210   : > { %v7573_v2 = vpop.permute.xlu1 %3332 }
 0x211   : > { %11440 = vst [vmem:[#allocation19_spill] sm:$0xff] %v7573_v2  ;;  %v1630_v2 = vsel %vm453_vm6, %v7341_v54, %v7386_v26 }
 0x214   : > { %v1269_v27 = vpop.permute.xlu1 %1268 }
 0x215   : > { %v1281_v9 = vsel %vm1280_vm13, %v1267_v22, %v1269_v27  ;;  %v1282_v61 = vsel %vm1280_vm13, %v1269_v27, %v1271_v35  ;;  %v1631_v27 = vsel %vm453_vm6, %v7386_v26, %v7351_v28  ;;  %v7589_v22 = vpop.permute.xlu0 %3338  ;;  %v1632_v26 = vsel %vm453_vm6, %v7351_v28, %v7393_v57 }
 0x216   : > { %1296 = vst [vmem:[#allocation2 + $0x8] sm:$0x7] %v1281_v9  ;;  %1297 = vst [vmem:[#allocation2 + $0x10] sm:$0x7] %v1282_v61 }
 0x217   : > { %11443 = vst [vmem:[#allocation23_spill] sm:$0xff] %v7589_v22 }
 0x218   : > { %v1273_v11 = vpop.permute.xlu1 %1272 }
 0x219   : > { %v1283_v31 = vsel %vm1280_vm13, %v1271_v35, %v1273_v11  ;;  %v1284_v40 = vsel %vm1280_vm13, %v1273_v11, %v1275_v19  ;;  %v7613_v22 = vpop.permute.xlu0 %3525 }
 0x21a   : > { %1298 = vst [vmem:[#allocation2 + $0x18] sm:$0x7] %v1283_v31  ;;  %1299 = vst [vmem:[#allocation2 + $0x20] sm:$0x7] %v1284_v40 }
 0x21b   : > { %11445 = vst [vmem:[#allocation25_spill] sm:$0xff] %v7613_v22 }
 0x21c   : > { %v7581_v39 = vpop.permute.xlu1 %3336 }
 0x21d   : > { %11442 = vst [vmem:[#allocation22_spill] sm:$0xff] %v7581_v39  ;;  %v7591_v9 = vld [vmem:[#allocation2 + $0x8] sm:$0x7]  ;;  %v7593_v61 = vld [vmem:[#allocation2 + $0x10] sm:$0x7] }
 0x21e   : > { %v1644_v35 = vmul.f32 %v1630_v2, %v7591_v9  ;;  %v1645_v31 = vmul.f32 %v1631_v27, %v7593_v61  ;;  %v1633_v2 = vsel %vm453_vm6, %v7393_v57, %v7362_v16 }
 0x220   : > { %v7597_v40 = vpop.permute.xlu1 %3445  ;;  %v1661_v11 = vrot.slane %v1644_v35, %v11419_v15  ;;  %v1665_v54 = vrot.slane %v1645_v31, %v11419_v15  ;;  %v1745_v16 = vrot.slane %v1645_v31, %v6654_v49 }
 0x221   : > { %11444 = vst [vmem:[#allocation24_spill] sm:$0xff] %v7597_v40  ;;  %v7601_v59 = vld [vmem:[#allocation2 + $0x18] sm:$0x7]  ;;  %v7603_v39 = vld [vmem:[#allocation2 + $0x20] sm:$0x7] }
 0x222   : > { %v1683_v27 = vmul.f32 %v1661_v11, %v7374_v37  ;;  %v1684_v40 = vmul.f32 %v1665_v54, %v7374_v37  ;;  %v1646_v62 = vmul.f32 %v1632_v26, %v7601_v59  ;;  %v1647_v41 = vmul.f32 %v1633_v2, %v7603_v39  ;;  %v1279_v2 = vpop.permute.xlu0 %1278 }
 0x223   : > { %v1741_v26 = vrot.slane %v1644_v35, %v6654_v49 }
 0x224   : > { %1698 = vrot.lane.b32.xlu1 %v1683_v27, %s6481_s12  ;;  %1700 = vrot.lane.b32.xlu0 %v1684_v40, %s6481_s12  ;;  %v1669_v28 = vrot.slane %v1646_v62, %v11419_v15  ;;  %v1673_v57 = vrot.slane %v1647_v41, %v11419_v15  ;;  %v1749_v22 = vrot.slane %v1646_v62, %v6654_v49 }
 0x225   : > { %v7619_v8 = vpop.permute.xlu1 %3639 }
 0x226   : > { %11446 = vst [vmem:[#allocation26_spill] sm:$0xff] %v7619_v8  ;;  %v1685_v11 = vmul.f32 %v1669_v28, %v7374_v37  ;;  %v1686_v54 = vmul.f32 %v1673_v57, %v7374_v37  ;;  %v1764_v28 = vmul.f32 %v1745_v16, %v7400_v10  ;;  %v1763_v57 = vmul.f32 %v1741_v26, %v7400_v10 }
 0x227   : > { %v1753_v37 = vrot.slane %v1647_v41, %v6654_v49  ;;  %v1975_v16 = vsel %vm553_vm7, %v7395_v53, %v7435_v29  ;;  %v1974_v26 = vsel %vm553_vm7, %v7425_v3, %v7395_v53  ;;  %v1977_v53 = vsel %vm553_vm7, %v7403_v51, %v7448_v43 }
 0x228   : > { %1702 = vrot.lane.b32.xlu1 %v1685_v11, %s6481_s12  ;;  %1704 = vrot.lane.b32.xlu0 %v1686_v54, %s6481_s12  ;;  %v1821_v54 = vrot.slane %v1644_v35, %v11423_v42  ;;  %v1989_v35 = vmul.f32 %v1975_v16, %v7593_v61  ;;  %v1976_v3 = vsel %vm553_vm7, %v7435_v29, %v7403_v51 }
 0x229   : > { %v1277_v40 = vpop.permute.xlu1 %1276  ;;  %v1766_v11 = vmul.f32 %v1753_v37, %v7400_v10 }
 0x22a   : > { %v1285_v27 = vsel %vm1280_vm13, %v1275_v19, %v1277_v40  ;;  %v1286_v8 = vsel %vm1280_vm13, %v1277_v40, %v1279_v2  ;;  %v1765_v19 = vmul.f32 %v1749_v22, %v7400_v10  ;;  %v1843_v37 = vmul.f32 %v1821_v54, %v7388_v14 }
 0x22b   : > { %1300 = vst [vmem:[#allocation2 + $0x28] sm:$0x7] %v1285_v27  ;;  %1302 = vst.msk [vmem:[#allocation2 + $0x30] sm:$0x7] %vm1301_vm5, %v1286_v8  ;;  %v1825_v8 = vrot.slane %v1645_v31, %v11423_v42  ;;  %v1829_v22 = vrot.slane %v1646_v62, %v11423_v42  ;;  %v1833_v40 = vrot.slane %v1647_v41, %v11423_v42 }
 0x22c   : > { %1780 = vrot.lane.b32.xlu1 %v1764_v28, %s6481_s12  ;;  %1778 = vrot.lane.b32.xlu0 %v1763_v57, %s6481_s12  ;;  %v1988_v27 = vmul.f32 %v1974_v26, %v7591_v9  ;;  %v2009_v28 = vrot.slane %v1989_v35, %v11419_v15  ;;  %v1991_v41 = vmul.f32 %v1977_v53, %v7603_v39 }
 0x22d   : > { %v7652_v2 = vpop.permute.xlu1 %3604  ;;  %v1844_v31 = vmul.f32 %v1825_v8, %v7388_v14  ;;  %v1845_v62 = vmul.f32 %v1829_v22, %v7388_v14  ;;  %v1846_v57 = vmul.f32 %v1833_v40, %v7388_v14  ;;  %v2089_v40 = vrot.slane %v1989_v35, %v6654_v49 }
 0x22e   : > { %v2028_v51 = vmul.f32 %v2009_v28, %v7415_v50  ;;  %v2017_v29 = vrot.slane %v1991_v41, %v11419_v15  ;;  %v2097_v28 = vrot.slane %v1991_v41, %v6654_v49 }
 0x230   : > { %1784 = vrot.lane.b32.xlu1 %v1766_v11, %s6481_s12  ;;  %1782 = vrot.lane.b32.xlu0 %v1765_v19, %s6481_s12  ;;  %v2005_v11 = vrot.slane %v1988_v27, %v11419_v15  ;;  %v1990_v19 = vmul.f32 %v1976_v3, %v7601_v59  ;;  %v2030_v26 = vmul.f32 %v2017_v29, %v7415_v50 }
 0x231   : > { %v7672_v54 = vpop.permute.xlu1 %3608  ;;  %v2110_v29 = vmul.f32 %v2097_v28, %v7412_v4 }
 0x232   : > { %v2027_v8 = vmul.f32 %v2005_v11, %v7415_v50  ;;  %v2013_v16 = vrot.slane %v1990_v19, %v11419_v15  ;;  %v2093_v3 = vrot.slane %v1990_v19, %v6654_v49 }
 0x234   : > { %1858 = vrot.lane.b32.xlu1 %v1843_v37, %s6481_s12  ;;  %1860 = vrot.lane.b32.xlu0 %v1844_v31, %s6481_s12  ;;  %v2085_v37 = vrot.slane %v1988_v27, %v6654_v49  ;;  %v2029_v31 = vmul.f32 %v2013_v16, %v7415_v50  ;;  %v2109_v11 = vmul.f32 %v2093_v3, %v7412_v4 }
 0x235   : > { %v7683_v22 = vpop.permute.xlu1 %3612  ;;  %v2248_v16 = vsel %vm652_vm8, %v7423_v32, %v7470_v7  ;;  %v2250_v3 = vsel %vm652_vm8, %v7432_v36, %v7476_v12 }
 0x236   : > { %v2107_v53 = vmul.f32 %v2085_v37, %v7412_v4  ;;  %v2177_v37 = vrot.slane %v1991_v41, %v11423_v42  ;;  %v2249_v41 = vsel %vm652_vm8, %v7470_v7, %v7432_v36  ;;  %v2251_v36 = vsel %vm652_vm8, %v7476_v12, %v7446_v48 }
 0x238   : > { %1862 = vrot.lane.b32.xlu1 %v1845_v62, %s6481_s12  ;;  %1864 = vrot.lane.b32.xlu0 %v1846_v57, %s6481_s12  ;;  %v2108_v62 = vmul.f32 %v2089_v40, %v7412_v4  ;;  %v2190_v28 = vmul.f32 %v2177_v37, %v7458_v13 }
 0x239   : > { %v7694_v57 = vpop.permute.xlu1 %3799 }
 0x23c   : > { %2044 = vrot.lane.b32.xlu1 %v2028_v51, %s6482_s13  ;;  %2042 = vrot.lane.b32.xlu0 %v2027_v8, %s6482_s13  ;;  %v2169_v51 = vrot.slane %v1989_v35, %v11423_v42  ;;  %v2165_v8 = vrot.slane %v1988_v27, %v11423_v42  ;;  %v2173_v27 = vrot.slane %v1990_v19, %v11423_v42 }
 0x23d   : > { %v7709_v40 = vpop.permute.xlu1 %1626 }
 0x23e   : > { %v2187_v35 = vmul.f32 %v2165_v8, %v7458_v13 }
 0x240   : > { %2048 = vrot.lane.b32.xlu1 %v2030_v26, %s6482_s13  ;;  %2046 = vrot.lane.b32.xlu0 %v2029_v31, %s6482_s13  ;;  %v2188_v26 = vmul.f32 %v2169_v51, %v7458_v13  ;;  %v2262_v31 = vmul.f32 %v2248_v16, %v7591_v9 }
 0x241   : > { %v7732_v8 = vpop.permute.xlu1 %1416 }
 0x242   : > { %v2279_v19 = vrot.slane %v2262_v31, %v11419_v15  ;;  %11447 = vst [vmem:[#allocation27_spill] sm:$0xff] %v7732_v8 }
 0x244   : > { %2122 = vrot.lane.b32.xlu1 %v2107_v53, %s6482_s13  ;;  %2124 = vrot.lane.b32.xlu0 %v2108_v62, %s6482_s13  ;;  %v2261_v53 = vmul.f32 %v7423_v32, %v7537_v25  ;;  %v7723_v62 = vpop.permute.xlu0 %3606  ;;  %v2264_v32 = vmul.f32 %v2250_v3, %v7601_v59  ;;  %v2301_v7 = vmul.f32 %v2279_v19, %v7465_v23 }
 0x246   : > { %v2275_v51 = vrot.slane %v2261_v53, %v11419_v15  ;;  %v2287_v16 = vrot.slane %v2264_v32, %v11419_v15  ;;  %v2355_v12 = vrot.slane %v2261_v53, %v6654_v49 }
 0x248   : > { %2126 = vrot.lane.b32.xlu1 %v2109_v11, %s6482_s13  ;;  %2128 = vrot.lane.b32.xlu0 %v2110_v29, %s6482_s13  ;;  %v2189_v11 = vmul.f32 %v2173_v27, %v7458_v13  ;;  %v2263_v29 = vmul.f32 %v2249_v41, %v7593_v61  ;;  %v7745_v27 = vpop.permute.xlu0 %3610  ;;  %v2303_v3 = vmul.f32 %v2287_v16, %v7465_v23  ;;  %v7751_v41 = vpop.permute.xlu1 %1380 }
 0x249   : > { %11448 = vst [vmem:[#allocation28_spill] sm:$0xff] %v7751_v41  ;;  %v2359_v16 = vrot.slane %v2262_v31, %v6654_v49 }
 0x24a   : > { %v2283_v37 = vrot.slane %v2263_v29, %v11419_v15 }
 0x24c   : > { %2204 = vrot.lane.b32.xlu1 %v2188_v26, %s6482_s13  ;;  %2202 = vrot.lane.b32.xlu0 %v2187_v35, %s6482_s13  ;;  %v2300_v26 = vmul.f32 %v2275_v51, %v7465_v23  ;;  %v7743_v35 = vmul.f32 %v2251_v36, %v7603_v39  ;;  %v2380_v51 = vmul.f32 %v2355_v12, %v7483_v47 }
 0x24d   : > { %v2363_v36 = vrot.slane %v2263_v29, %v6654_v49  ;;  %v2367_v12 = vrot.slane %v2264_v32, %v6654_v49 }
 0x24e   : > { %v2291_v19 = vrot.slane %v7743_v35, %v11419_v15 }
 0x250   : > { %2208 = vrot.lane.b32.xlu1 %v2190_v28, %s6482_s13  ;;  %2206 = vrot.lane.b32.xlu0 %v2189_v11, %s6482_s13  ;;  %v2302_v28 = vmul.f32 %v2283_v37, %v7465_v23  ;;  %v7758_v11 = vpop.permute.xlu0 %3719  ;;  %v2382_v37 = vmul.f32 %v2363_v36, %v7483_v47 }
 0x254   : > { %2316 = vrot.lane.b32.xlu1 %v2301_v7, %s6483_s14  ;;  %2314 = vrot.lane.b32.xlu0 %v2300_v26, %s6483_s14  ;;  %v2304_v7 = vmul.f32 %v2291_v19, %v7465_v23  ;;  %v7765_v26 = vpop.permute.xlu1 %1382  ;;  %v7773_v8 = vpop.permute.xlu0 %1628 }
 0x255   : > { %11449 = vst [vmem:[#allocation29_spill] sm:$0xff] %v7765_v26  ;;  %v2435_v26 = vrot.slane %v2261_v53, %v11423_v42  ;;  %v2443_v53 = vrot.slane %v2263_v29, %v11423_v42 }
 0x258   : > { %2320 = vrot.lane.b32.xlu1 %v2303_v3, %s6483_s14  ;;  %2318 = vrot.lane.b32.xlu0 %v2302_v28, %s6483_s14  ;;  %v2371_v3 = vrot.slane %v7743_v35, %v6654_v49  ;;  %v2381_v28 = vmul.f32 %v2359_v16, %v7483_v47  ;;  %v7783_v36 = vpop.permute.xlu0 %1455  ;;  %v2439_v16 = vrot.slane %v2262_v31, %v11423_v42 }
 0x259   : > { %11451 = vst [vmem:[#allocation31_spill] sm:$0xff] %v7783_v36  ;;  %v2460_v31 = vmul.f32 %v2435_v26, %v7456_v46 }
 0x25a   : > { %v2384_v19 = vmul.f32 %v2371_v3, %v7483_v47  ;;  %v2461_v3 = vmul.f32 %v2439_v16, %v7456_v46 }
 0x25c   : > { %2394 = vrot.lane.b32.xlu1 %v2380_v51, %s6483_s14  ;;  %2322 = vrot.lane.b32.xlu0 %v2304_v7, %s6483_s14  ;;  %v7778_v51 = vpop.permute.xlu1 %1386  ;;  %v2383_v7 = vmul.f32 %v2367_v12, %v7483_v47  ;;  %v7797_v12 = vmul.f32 %v7500_v30, %v7537_v25 }
 0x25d   : > { %11450 = vst [vmem:[#allocation30_spill] sm:$0xff] %v7778_v51  ;;  %v2451_v51 = vrot.slane %v7743_v35, %v11423_v42 }
 0x25e   : > { %v2549_v26 = vrot.slane %v7797_v12, %v11419_v15 }
 0x260   : > { %2398 = vrot.lane.b32.xlu1 %v2382_v37, %s6483_s14  ;;  %2396 = vrot.lane.b32.xlu0 %v2381_v28, %s6483_s14  ;;  %v7789_v37 = vpop.permute.xlu1 %1970  ;;  %v2447_v28 = vrot.slane %v2264_v32, %v11423_v42  ;;  %v2522_v32 = vsel %vm314_vm4, %v7500_v30, %v7462_v5  ;;  %v2524_v30 = vsel %vm314_vm4, %v7509_v18, %v7468_v0 }
 0x262   : > { %v2463_v16 = vmul.f32 %v2447_v28, %v7456_v46 }
 0x264   : > { %2402 = vrot.lane.b32.xlu1 %v2384_v19, %s6483_s14  ;;  %2400 = vrot.lane.b32.xlu0 %v2383_v7, %s6483_s14  ;;  %v7801_v19 = vpop.permute.xlu0 %1384  ;;  %v2523_v7 = vsel %vm314_vm4, %v7462_v5, %v7509_v18  ;;  %v7815_v36 = vpop.permute.xlu1 %1972  ;;  %v2525_v5 = vsel %vm314_vm4, %v7468_v0, %v7515_v6 }
 0x265   : > { %11452 = vst [vmem:[#allocation32_spill] sm:$0xff] %v7801_v19  ;;  %v2537_v29 = vmul.f32 %v2523_v7, %v7593_v61  ;;  %v2539_v7 = vmul.f32 %v2525_v5, %v7603_v39  ;;  %v2538_v19 = vmul.f32 %v2524_v30, %v7601_v59 }
 0x267   : > { %v2557_v35 = vrot.slane %v2537_v29, %v11419_v15  ;;  %v2565_v18 = vrot.slane %v2539_v7, %v11419_v15  ;;  %v2561_v5 = vrot.slane %v2538_v19, %v11419_v15  ;;  %v2637_v41 = vrot.slane %v2537_v29, %v6654_v49 }
 0x268   : > { %3068 = vrot.lane.b32.xlu1 %v7507_v1, %s6474_s26  ;;  %3066 = vrot.lane.b32.xlu0 %v7419_v33, %s6474_s26  ;;  %v7829_v28 = vpop.permute.xlu0 %1501 }
 0x269   : > { %11453 = vst [vmem:[#allocation33_spill] sm:$0xff] %v7829_v28  ;;  %v2576_v0 = vmul.f32 %v2557_v35, %v7492_v34  ;;  %v2577_v35 = vmul.f32 %v2561_v5, %v7492_v34 }
 0x26c   : > { %2476 = vrot.lane.b32.xlu1 %v2461_v3, %s6483_s14  ;;  %2474 = vrot.lane.b32.xlu0 %v2460_v31, %s6483_s14  ;;  %v2462_v3 = vmul.f32 %v2443_v53, %v7456_v46  ;;  %v2536_v31 = vmul.f32 %v2522_v32, %v7591_v9  ;;  %v2574_v53 = vmul.f32 %v2549_v26, %v7492_v34  ;;  %v7845_v28 = vpop.permute.xlu0 %2244 }
 0x26d   : > { %v2464_v32 = vmul.f32 %v2451_v51, %v7456_v46  ;;  %v2578_v51 = vmul.f32 %v2565_v18, %v7492_v34 }
 0x26e   : > { %v2633_v30 = vrot.slane %v2536_v31, %v6654_v49 }
 0x270   : > { %2480 = vrot.lane.b32.xlu1 %v2463_v16, %s6483_s14  ;;  %2478 = vrot.lane.b32.xlu0 %v2462_v3, %s6483_s14  ;;  %v2553_v16 = vrot.slane %v2536_v31, %v11419_v15  ;;  %v7838_v3 = vpop.permute.xlu1 %2246 }
 0x272   : > { %v2575_v26 = vmul.f32 %v2553_v16, %v7492_v34  ;;  %v7858_v16 = vpop.permute.xlu0 %2518 }
 0x274   : > { %2588 = vrot.lane.b32.xlu1 %v2574_v53, %s6484_s15  ;;  %2482 = vrot.lane.b32.xlu0 %v2464_v32, %s6483_s14  ;;  %v7851_v53 = vpop.permute.xlu1 %2520  ;;  %v2629_v32 = vrot.slane %v7797_v12, %v6654_v49 }
 0x276   : > { %v2654_v18 = vmul.f32 %v2629_v32, %v7472_v58  ;;  %v7868_v34 = vpop.permute.xlu0 %2794 }
 0x278   : > { %2592 = vrot.lane.b32.xlu1 %v2576_v0, %s6484_s15  ;;  %2590 = vrot.lane.b32.xlu0 %v2575_v26, %s6484_s15  ;;  %v2655_v0 = vmul.f32 %v2633_v30, %v7472_v58  ;;  %v2641_v26 = vrot.slane %v2538_v19, %v6654_v49  ;;  %v7865_v5 = vpop.permute.xlu1 %2792  ;;  %v2645_v30 = vrot.slane %v2539_v7, %v6654_v49 }
 0x27a   : > { %v7877_v32 = vpop.permute.xlu0 %1696 }
 0x27b   : > { %11455 = vst [vmem:[#allocation35_spill] sm:$0xff] %v7877_v32 }
 0x27c   : > { %2596 = vrot.lane.b32.xlu1 %v2578_v51, %s6484_s15  ;;  %2594 = vrot.lane.b32.xlu0 %v2577_v35, %s6484_s15  ;;  %v2657_v51 = vmul.f32 %v2641_v26, %v7472_v58  ;;  %v2656_v35 = vmul.f32 %v2637_v41, %v7472_v58  ;;  %v7874_v46 = vpop.permute.xlu1 %1776  ;;  %v2717_v26 = vrot.slane %v2537_v29, %v11423_v42 }
 0x27d   : > { %11454 = vst [vmem:[#allocation34_spill] sm:$0xff] %v7874_v46 }
 0x27e   : > { %v7890_v46 = vpop.permute.xlu0 %1856 }
 0x27f   : > { %11457 = vst [vmem:[#allocation37_spill] sm:$0xff] %v7890_v46 }
 0x280   : > { %2670 = vrot.lane.b32.xlu1 %v2655_v0, %s6484_s15  ;;  %2668 = vrot.lane.b32.xlu0 %v2654_v18, %s6484_s15  ;;  %v2709_v0 = vrot.slane %v7797_v12, %v11423_v42  ;;  %v2658_v18 = vmul.f32 %v2645_v30, %v7472_v58  ;;  %v2796_v12 = vsel %vm849_vm9, %v7478_v60, %v7531_v21 }
 0x281   : > { %v2725_v30 = vrot.slane %v2539_v7, %v11423_v42  ;;  %v7901_v29 = vmul.f32 %v2796_v12, %v7591_v9  ;;  %v2797_v7 = vsel %vm849_vm9, %v7531_v21, %v7485_v20  ;;  %v2799_v21 = vsel %vm849_vm9, %v7533_v38, %v7494_v24 }
 0x282   : > { %v2734_v41 = vmul.f32 %v2709_v0, %v7521_v52  ;;  %v2721_v0 = vrot.slane %v2538_v19, %v11423_v42 }
 0x283   : > { %v2738_v19 = vmul.f32 %v2725_v30, %v7521_v52 }
 0x284   : > { %2674 = vrot.lane.b32.xlu1 %v2657_v51, %s6484_s15  ;;  %2672 = vrot.lane.b32.xlu0 %v2656_v35, %s6484_s15  ;;  %v7887_v51 = vpop.permute.xlu1 %2040  ;;  %v2713_v35 = vrot.slane %v2536_v31, %v11423_v42  ;;  %v2737_v12 = vmul.f32 %v2721_v0, %v7521_v52 }
 0x285   : > { %11456 = vst [vmem:[#allocation36_spill] sm:$0xff] %v7887_v51 }
 0x286   : > { %v2735_v31 = vmul.f32 %v2713_v35, %v7521_v52 }
 0x288   : > { %3340 = vrot.lane.b32.xlu1 %v7438_v44, %s6476_s29  ;;  %2676 = vrot.lane.b32.xlu0 %v2658_v18, %s6484_s15  ;;  %v2736_v44 = vmul.f32 %v2717_v26, %v7521_v52  ;;  %v7907_v18 = vmul.f32 %v7478_v60, %v7537_v25  ;;  %v7919_v26 = vpop.permute.xlu0 %2120  ;;  %v2827_v60 = vrot.slane %v7901_v29, %v11419_v15 }
 0x289   : > { %11459 = vst [vmem:[#allocation39_spill] sm:$0xff] %v7919_v26 }
 0x28a   : > { %v2849_v0 = vmul.f32 %v2827_v60, %v7527_v56  ;;  %v2903_v26 = vrot.slane %v7907_v18, %v6654_v49 }
 0x28c   : > { %2748 = vrot.lane.b32.xlu1 %v2734_v41, %s6484_s15  ;;  %3342 = vrot.lane.b32.xlu0 %v7384_v45, %s6476_s29  ;;  %v2798_v45 = vsel %vm849_vm9, %v7485_v20, %v7533_v38  ;;  %v7913_v41 = vpop.permute.xlu1 %2200 }
 0x28d   : > { %11458 = vst [vmem:[#allocation38_spill] sm:$0xff] %v7913_v41  ;;  %v7925_v35 = vmul.f32 %v2798_v45, %v7601_v59 }
 0x28f   : > { %v2835_v45 = vrot.slane %v7925_v35, %v11419_v15 }
 0x290   : > { %2752 = vrot.lane.b32.xlu1 %v2736_v44, %s6484_s15  ;;  %2750 = vrot.lane.b32.xlu0 %v2735_v31, %s6484_s15  ;;  %v2823_v44 = vrot.slane %v7907_v18, %v11419_v15  ;;  %v7931_v31 = vmul.f32 %v2797_v7, %v7593_v61 }
 0x291   : > { %v2851_v60 = vmul.f32 %v2835_v45, %v7527_v56 }
 0x292   : > { %v2848_v7 = vmul.f32 %v2823_v44, %v7527_v56  ;;  %v2911_v45 = vrot.slane %v7931_v31, %v6654_v49 }
 0x294   : > { %2756 = vrot.lane.b32.xlu1 %v2738_v19, %s6484_s15  ;;  %2754 = vrot.lane.b32.xlu0 %v2737_v12, %s6484_s15  ;;  %v2831_v19 = vrot.slane %v7931_v31, %v11419_v15  ;;  %v7949_v12 = vmul.f32 %v2799_v21, %v7603_v39 }
 0x296   : > { %v7935_v20 = vpop.permute.xlu1 %1698  ;;  %v7940_v30 = vpop.permute.xlu0 %1700  ;;  %v2850_v44 = vmul.f32 %v2831_v19, %v7527_v56  ;;  %v2839_v51 = vrot.slane %v7949_v12, %v11419_v15  ;;  %v2907_v19 = vrot.slane %v7901_v29, %v6654_v49 }
 0x297   : > { %11460 = vst [vmem:[#allocation40_spill] sm:$0xff] %v7935_v20  ;;  %11461 = vst [vmem:[#allocation41_spill] sm:$0xff] %v7940_v30 }
 0x298   : > { %2864 = vrot.lane.b32.xlu1 %v2849_v0, %s6485_s16  ;;  %2862 = vrot.lane.b32.xlu0 %v2848_v7, %s6485_s16  ;;  %v2928_v7 = vmul.f32 %v2903_v26, %v7535_v55  ;;  %v2852_v46 = vmul.f32 %v2839_v51, %v7527_v56  ;;  %v2919_v26 = vrot.slane %v7949_v12, %v6654_v49 }
 0x299   : > { %v2915_v51 = vrot.slane %v7925_v35, %v6654_v49 }
 0x29a   : > { %v7953_v38 = vpop.permute.xlu1 %1702  ;;  %v7955_v41 = vpop.permute.xlu0 %1704 }
 0x29b   : > { %11462 = vst [vmem:[#allocation42_spill] sm:$0xff] %v7953_v38  ;;  %11463 = vst [vmem:[#allocation43_spill] sm:$0xff] %v7955_v41 }
 0x29c   : > { %2868 = vrot.lane.b32.xlu1 %v2851_v60, %s6485_s16  ;;  %2866 = vrot.lane.b32.xlu0 %v2850_v44, %s6485_s16 }
 0x29e   : > { %v7965_v21 = vpop.permute.xlu1 %1780  ;;  %v7967_v0 = vpop.permute.xlu0 %1778 }
 0x29f   : > { %11464 = vst [vmem:[#allocation44_spill] sm:$0xff] %v7965_v21  ;;  %11465 = vst [vmem:[#allocation45_spill] sm:$0xff] %v7967_v0  ;;  %v2930_v21 = vmul.f32 %v2911_v45, %v7535_v55  ;;  %v2929_v0 = vmul.f32 %v2907_v19, %v7535_v55  ;;  %v2931_v45 = vmul.f32 %v2915_v51, %v7535_v55 }
 0x2a0   : > { %2942 = vrot.lane.b32.xlu1 %v2928_v7, %s6485_s16  ;;  %2870 = vrot.lane.b32.xlu0 %v2852_v46, %s6485_s16  ;;  %v2932_v46 = vmul.f32 %v2919_v26, %v7535_v55  ;;  %v11472_v26 = vld [vmem:[#allocation12_spill] sm:$0xff] }
 0x2a1   : > { %v8011_v51 = vmul.f32 %v11472_v26, %v7537_v25 }
 0x2a2   : > { %v7977_v60 = vpop.permute.xlu1 %1784  ;;  %v7979_v44 = vpop.permute.xlu0 %1782 }
 0x2a3   : > { %11466 = vst [vmem:[#allocation46_spill] sm:$0xff] %v7977_v60  ;;  %11467 = vst [vmem:[#allocation47_spill] sm:$0xff] %v7979_v44  ;;  %v2987_v44 = vrot.slane %v7901_v29, %v11423_v42  ;;  %v2995_v29 = vrot.slane %v7925_v35, %v11423_v42  ;;  %v3097_v35 = vrot.slane %v8011_v51, %v11419_v15 }
 0x2a4   : > { %2946 = vrot.lane.b32.xlu1 %v2930_v21, %s6485_s16  ;;  %2944 = vrot.lane.b32.xlu0 %v2929_v0, %s6485_s16  ;;  %v2983_v0 = vrot.slane %v7907_v18, %v11423_v42 }
 0x2a6   : > { %v7989_v7 = vpop.permute.xlu1 %1858  ;;  %v7992_v60 = vpop.permute.xlu0 %1860 }
 0x2a7   : > { %11468 = vst [vmem:[#allocation48_spill] sm:$0xff] %v7989_v7  ;;  %11469 = vst [vmem:[#allocation49_spill] sm:$0xff] %v7992_v60  ;;  %v11477_v60 = vld [vmem:[#allocation9_spill] sm:$0xff] }
 0x2a8   : > { %2950 = vrot.lane.b32.xlu1 %v2932_v46, %s6485_s16  ;;  %2948 = vrot.lane.b32.xlu0 %v2931_v45, %s6485_s16  ;;  %v11474_v45 = vld [vmem:[#allocation17_spill] sm:$0xff] }
 0x2a9   : > { %v3008_v18 = vmul.f32 %v2983_v0, %v11474_v45  ;;  %v3011_v0 = vmul.f32 %v2995_v29, %v11474_v45 }
 0x2aa   : > { %v7997_v19 = vpop.permute.xlu1 %1862  ;;  %v8001_v21 = vpop.permute.xlu0 %1864 }
 0x2ab   : > { %11470 = vst [vmem:[#allocation50_spill] sm:$0xff] %v7997_v19  ;;  %11471 = vst [vmem:[#allocation51_spill] sm:$0xff] %v8001_v21  ;;  %v3009_v19 = vmul.f32 %v2987_v44, %v11474_v45  ;;  %v3070_v44 = vsel %vm948_vm10, %v11472_v26, %v11477_v60  ;;  %v11481_v26 = vld [vmem:[#allocation11_spill] sm:$0xff] }
 0x2ac   : > { %3616 = vrot.lane.b32.xlu1 %v7451_v63, %s6477_s30  ;;  %3614 = vrot.lane.b32.xlu0 %v7490_v17, %s6477_s30  ;;  %v2991_v63 = vrot.slane %v7931_v31, %v11423_v42  ;;  %v11476_v17 = vld [vmem:[#allocation14_spill] sm:$0xff]  ;;  %v8043_v41 = vmul.f32 %v3070_v44, %v7591_v9 }
 0x2ad   : > { %v3071_v7 = vsel %vm948_vm10, %v11477_v60, %v11476_v17  ;;  %v11480_v60 = vld [vmem:[#allocation5_spill] sm:$0xff] }
 0x2ae   : > { %v8013_v46 = vpop.permute.xlu1 %2044  ;;  %v8018_v21 = vpop.permute.xlu0 %2042  ;;  %v3085_v31 = vmul.f32 %v3071_v7, %v7593_v61  ;;  %v3072_v7 = vsel %vm948_vm10, %v11476_v17, %v11481_v26 }
 0x2af   : > { %11473 = vst [vmem:[#allocation12_spill] sm:$0xff] %v8013_v46  ;;  %11475 = vst [vmem:[#allocation17_spill] sm:$0xff] %v8018_v21  ;;  %v3010_v21 = vmul.f32 %v2991_v63, %v11474_v45  ;;  %v11483_v63 = vld [vmem:[#allocation4_spill] sm:$0xff]  ;;  %v3086_v30 = vmul.f32 %v3072_v7, %v7601_v59  ;;  %v3181_v7 = vrot.slane %v8043_v41, %v6654_v49 }
 0x2b0   : > { %3024 = vrot.lane.b32.xlu1 %v3009_v19, %s6485_s16  ;;  %3022 = vrot.lane.b32.xlu0 %v3008_v18, %s6485_s16  ;;  %v2999_v18 = vrot.slane %v7949_v12, %v11423_v42  ;;  %v3105_v12 = vrot.slane %v3085_v31, %v11419_v15  ;;  %v3185_v32 = vrot.slane %v3085_v31, %v6654_v49 }
 0x2b2   : > { %v8033_v46 = vpop.permute.xlu1 %2048  ;;  %v8037_v19 = vpop.permute.xlu0 %2046  ;;  %v3012_v38 = vmul.f32 %v2999_v18, %v11474_v45 }
 0x2b3   : > { %11478 = vst [vmem:[#allocation14_spill] sm:$0xff] %v8033_v46  ;;  %11479 = vst [vmem:[#allocation9_spill] sm:$0xff] %v8037_v19  ;;  %v3073_v46 = vsel %vm948_vm10, %v11481_v26, %v11480_v60  ;;  %v3122_v19 = vmul.f32 %v3097_v35, %v11483_v63  ;;  %v3124_v35 = vmul.f32 %v3105_v12, %v11483_v63 }
 0x2b4   : > { %3028 = vrot.lane.b32.xlu1 %v3011_v0, %s6485_s16  ;;  %3026 = vrot.lane.b32.xlu0 %v3010_v21, %s6485_s16  ;;  %v8058_v44 = vmul.f32 %v3073_v46, %v7603_v39  ;;  %v3101_v21 = vrot.slane %v8043_v41, %v11419_v15  ;;  %v3177_v12 = vrot.slane %v8011_v51, %v6654_v49 }
 0x2b6   : > { %v8053_v29 = vpop.permute.xlu1 %2122  ;;  %v8060_v0 = vpop.permute.xlu0 %2124  ;;  %v3113_v46 = vrot.slane %v8058_v44, %v11419_v15  ;;  %v3123_v18 = vmul.f32 %v3101_v21, %v11483_v63 }
 0x2b7   : > { %11482 = vst [vmem:[#allocation5_spill] sm:$0xff] %v8053_v29  ;;  %11484 = vst [vmem:[#allocation11_spill] sm:$0xff] %v8060_v0  ;;  %v3109_v0 = vrot.slane %v3086_v30, %v11419_v15 }
 0x2b8   : > { %3136 = vrot.lane.b32.xlu1 %v3122_v19, %s6486_s17  ;;  %3030 = vrot.lane.b32.xlu0 %v3012_v38, %s6485_s16  ;;  %v3126_v38 = vmul.f32 %v3113_v46, %v11483_v63  ;;  %v3189_v46 = vrot.slane %v3086_v30, %v6654_v49 }
 0x2b9   : > { %v3125_v21 = vmul.f32 %v3109_v0, %v11483_v63 }
 0x2ba   : > { %v8068_v17 = vpop.permute.xlu1 %2126  ;;  %v8073_v26 = vpop.permute.xlu0 %2128 }
 0x2bb   : > { %11485 = vst [vmem:[#allocation52_spill] sm:$0xff] %v8068_v17  ;;  %11486 = vst [vmem:[#allocation53_spill] sm:$0xff] %v8073_v26 }
 0x2bc   : > { %3140 = vrot.lane.b32.xlu1 %v3124_v35, %s6486_s17  ;;  %3138 = vrot.lane.b32.xlu0 %v3123_v18, %s6486_s17  ;;  %v11490_v18 = vld [vmem:[#allocation10_spill] sm:$0xff] }
 0x2bd   : > { %v3202_v29 = vmul.f32 %v3177_v12, %v11490_v18  ;;  %v3257_v12 = vrot.slane %v8011_v51, %v11423_v42  ;;  %v11497_v51 = vld [vmem:[#allocation19_spill] sm:$0xff] }
 0x2be   : > { %v8079_v19 = vpop.permute.xlu1 %2204  ;;  %v8086_v17 = vpop.permute.xlu0 %2202 }
 0x2bf   : > { %11487 = vst [vmem:[#allocation54_spill] sm:$0xff] %v8079_v19  ;;  %11488 = vst [vmem:[#allocation55_spill] sm:$0xff] %v8086_v17  ;;  %v3203_v19 = vmul.f32 %v3181_v7, %v11490_v18  ;;  %v3204_v7 = vmul.f32 %v3185_v32, %v11490_v18  ;;  %v11498_v17 = vld [vmem:[#allocation6_spill] sm:$0xff] }
 0x2c0   : > { %3144 = vrot.lane.b32.xlu1 %v3126_v38, %s6486_s17  ;;  %3142 = vrot.lane.b32.xlu0 %v3125_v21, %s6486_s17  ;;  %v3205_v38 = vmul.f32 %v3189_v46, %v11490_v18  ;;  %v3265_v46 = vrot.slane %v3085_v31, %v11423_v42  ;;  %v3273_v31 = vrot.slane %v8058_v44, %v11423_v42 }
 0x2c2   : > { %v8091_v35 = vpop.permute.xlu1 %2208  ;;  %v8095_v26 = vpop.permute.xlu0 %2206 }
 0x2c3   : > { %11489 = vst [vmem:[#allocation56_spill] sm:$0xff] %v8091_v35  ;;  %11491 = vst [vmem:[#allocation57_spill] sm:$0xff] %v8095_v26  ;;  %v3193_v35 = vrot.slane %v8058_v44, %v6654_v49  ;;  %v3357_v44 = vmul.f32 %v11498_v17, %v7537_v25 }
 0x2c4   : > { %3218 = vrot.lane.b32.xlu1 %v3203_v19, %s6486_s17  ;;  %3216 = vrot.lane.b32.xlu0 %v3202_v29, %s6486_s17  ;;  %v11495_v29 = vld [vmem:[#allocation16_spill] sm:$0xff] }
 0x2c5   : > { %v3282_v26 = vmul.f32 %v3257_v12, %v11495_v29  ;;  %v3206_v32 = vmul.f32 %v3193_v35, %v11490_v18  ;;  %v3284_v12 = vmul.f32 %v3265_v46, %v11495_v29 }
 0x2c6   : > { %v8101_v0 = vpop.permute.xlu1 %2316  ;;  %v8104_v21 = vpop.permute.xlu0 %2314 }
 0x2c7   : > { %11492 = vst [vmem:[#allocation58_spill] sm:$0xff] %v8101_v0  ;;  %11493 = vst [vmem:[#allocation59_spill] sm:$0xff] %v8104_v21  ;;  %v3261_v21 = vrot.slane %v8043_v41, %v11423_v42  ;;  %v11501_v41 = vld [vmem:[#allocation21_spill] sm:$0xff] }
 0x2c8   : > { %3222 = vrot.lane.b32.xlu1 %v3205_v38, %s6486_s17  ;;  %3220 = vrot.lane.b32.xlu0 %v3204_v7, %s6486_s17  ;;  %v3344_v38 = vsel %vm1047_vm11, %v11498_v17, %v11497_v51  ;;  %v3345_v46 = vsel %vm1047_vm11, %v11497_v51, %v11501_v41 }
 0x2c9   : > { %v8133_v35 = vmul.f32 %v3344_v38, %v7591_v9  ;;  %v3283_v18 = vmul.f32 %v3261_v21, %v11495_v29  ;;  %v3286_v21 = vmul.f32 %v3273_v31, %v11495_v29  ;;  %v3359_v17 = vmul.f32 %v3345_v46, %v7593_v61 }
 0x2ca   : > { %v8113_v19 = vpop.permute.xlu1 %2320  ;;  %v8117_v0 = vpop.permute.xlu0 %2318 }
 0x2cb   : > { %11494 = vst [vmem:[#allocation60_spill] sm:$0xff] %v8113_v19  ;;  %11496 = vst [vmem:[#allocation61_spill] sm:$0xff] %v8117_v0  ;;  %v11500_v19 = vld [vmem:[#allocation22_spill] sm:$0xff]  ;;  %v3459_v20 = vrot.slane %v3359_v17, %v6654_v49  ;;  %v3455_v63 = vrot.slane %v8133_v35, %v6654_v49 }
 0x2cc   : > { %3296 = vrot.lane.b32.xlu1 %v3282_v26, %s6486_s17  ;;  %3224 = vrot.lane.b32.xlu0 %v3206_v32, %s6486_s17  ;;  %v3346_v26 = vsel %vm1047_vm11, %v11501_v41, %v11500_v19  ;;  %v3269_v32 = vrot.slane %v3086_v30, %v11423_v42  ;;  %v3375_v30 = vrot.slane %v8133_v35, %v11419_v15 }
 0x2cd   : > { %v8150_v38 = vmul.f32 %v3346_v26, %v7601_v59  ;;  %v3371_v41 = vrot.slane %v3357_v44, %v11419_v15 }
 0x2ce   : > { %v8127_v7 = vpop.permute.xlu1 %2394  ;;  %v8138_v0 = vpop.permute.xlu0 %2322 }
 0x2cf   : > { %11499 = vst [vmem:[#allocation19_spill] sm:$0xff] %v8127_v7  ;;  %11502 = vst [vmem:[#allocation6_spill] sm:$0xff] %v8138_v0  ;;  %v11505_v0 = vld [vmem:[#allocation23_spill] sm:$0xff]  ;;  %v3383_v31 = vrot.slane %v8150_v38, %v11419_v15 }
 0x2d0   : > { %3300 = vrot.lane.b32.xlu1 %v3284_v12, %s6486_s17  ;;  %3298 = vrot.lane.b32.xlu0 %v3283_v18, %s6486_s17  ;;  %v3285_v18 = vmul.f32 %v3269_v32, %v11495_v29  ;;  %v3347_v51 = vsel %vm1047_vm11, %v11500_v19, %v11505_v0 }
 0x2d1   : > { %v8173_v32 = vmul.f32 %v3347_v51, %v7603_v39 }
 0x2d2   : > { %v8152_v7 = vpop.permute.xlu1 %2398  ;;  %v8157_v12 = vpop.permute.xlu0 %2396 }
 0x2d3   : > { %11503 = vst [vmem:[#allocation22_spill] sm:$0xff] %v8152_v7  ;;  %11504 = vst [vmem:[#allocation21_spill] sm:$0xff] %v8157_v12  ;;  %v11507_v7 = vld [vmem:[#allocation18_spill] sm:$0xff] }
 0x2d4   : > { %3304 = vrot.lane.b32.xlu1 %v3286_v21, %s6486_s17  ;;  %3302 = vrot.lane.b32.xlu0 %v3285_v18, %s6486_s17  ;;  %v3397_v12 = vmul.f32 %v3375_v30, %v11507_v7  ;;  %v3396_v19 = vmul.f32 %v3371_v41, %v11507_v7  ;;  %v3379_v21 = vrot.slane %v3359_v17, %v11419_v15 }
 0x2d5   : > { %v3399_v29 = vmul.f32 %v3383_v31, %v11507_v7  ;;  %v3387_v30 = vrot.slane %v8173_v32, %v11419_v15  ;;  %v3451_v41 = vrot.slane %v3357_v44, %v6654_v49 }
 0x2d6   : > { %v8169_v26 = vpop.permute.xlu1 %2402  ;;  %v8175_v46 = vpop.permute.xlu0 %2400  ;;  %v3398_v51 = vmul.f32 %v3379_v21, %v11507_v7 }
 0x2d7   : > { %11506 = vst [vmem:[#allocation62_spill] sm:$0xff] %v8169_v26  ;;  %11508 = vst [vmem:[#allocation18_spill] sm:$0xff] %v8175_v46  ;;  %v3400_v0 = vmul.f32 %v3387_v30, %v11507_v7 }
 0x2d8   : > { %3412 = vrot.lane.b32.xlu1 %v3397_v12, %s6487_s18  ;;  %3410 = vrot.lane.b32.xlu0 %v3396_v19, %s6487_s18  ;;  %v11510_v19 = vld [vmem:[#allocation24_spill] sm:$0xff] }
 0x2d9   : > { %v3476_v46 = vmul.f32 %v3451_v41, %v11510_v19  ;;  %v3463_v41 = vrot.slane %v8150_v38, %v6654_v49  ;;  %v3477_v30 = vmul.f32 %v3455_v63, %v11510_v19  ;;  %v3531_v63 = vrot.slane %v3357_v44, %v11423_v42 }
 0x2da   : > { %v8181_v18 = vpop.permute.xlu1 %3068  ;;  %v8186_v26 = vpop.permute.xlu0 %3066  ;;  %v3547_v44 = vrot.slane %v8173_v32, %v11423_v42 }
 0x2dc   : > { %3416 = vrot.lane.b32.xlu1 %v3399_v29, %s6487_s18  ;;  %3414 = vrot.lane.b32.xlu0 %v3398_v51, %s6487_s18  ;;  %v3467_v29 = vrot.slane %v8173_v32, %v6654_v49  ;;  %v3478_v51 = vmul.f32 %v3459_v20, %v11510_v19 }
 0x2de   : > { %v8192_v12 = vpop.permute.xlu1 %2476  ;;  %v8196_v31 = vpop.permute.xlu0 %2474 }
 0x2df   : > { %11509 = vst [vmem:[#allocation63_spill] sm:$0xff] %v8192_v12  ;;  %11511 = vst [vmem:[#allocation24_spill] sm:$0xff] %v8196_v31 }
 0x2e0   : > { %3490 = vrot.lane.b32.xlu1 %v3476_v46, %s6487_s18  ;;  %3418 = vrot.lane.b32.xlu0 %v3400_v0, %s6487_s18  ;;  %v3480_v0 = vmul.f32 %v3467_v29, %v11510_v19 }
 0x2e2   : > { %v8205_v21 = vpop.permute.xlu1 %2480  ;;  %v8210_v31 = vpop.permute.xlu0 %2478 }
 0x2e3   : > { %11512 = vst [vmem:[#allocation64_spill] sm:$0xff] %v8205_v21  ;;  %11513 = vst [vmem:[#allocation65_spill] sm:$0xff] %v8210_v31  ;;  %v3479_v21 = vmul.f32 %v3463_v41, %v11510_v19 }
 0x2e4   : > { %3494 = vrot.lane.b32.xlu1 %v3478_v51, %s6487_s18  ;;  %3492 = vrot.lane.b32.xlu0 %v3477_v30, %s6487_s18  ;;  %v11515_v51 = vld [vmem:[#allocation15_spill] sm:$0xff]  ;;  %v11517_v30 = vld [vmem:[#allocation25_spill] sm:$0xff] }
 0x2e5   : > { %v3556_v41 = vmul.f32 %v3531_v63, %v11517_v30 }
 0x2e6   : > { %v8215_v46 = vpop.permute.xlu1 %2588  ;;  %v8218_v12 = vpop.permute.xlu0 %2482 }
 0x2e7   : > { %11514 = vst [vmem:[#allocation66_spill] sm:$0xff] %v8218_v12 }
 0x2e8   : > { %3498 = vrot.lane.b32.xlu1 %v3480_v0, %s6487_s18  ;;  %3496 = vrot.lane.b32.xlu0 %v3479_v21, %s6487_s18  ;;  %v3539_v0 = vrot.slane %v3359_v17, %v11423_v42  ;;  %v3618_v21 = vsel %vm1146_vm12, %v7652_v2, %v7723_v62 }
 0x2e9   : > { %v8249_v63 = vmul.f32 %v3618_v21, %v7591_v9  ;;  %v3619_v9 = vsel %vm1146_vm12, %v7723_v62, %v7672_v54  ;;  %v3621_v62 = vsel %vm1146_vm12, %v7745_v27, %v7683_v22 }
 0x2ea   : > { %v8223_v20 = vpop.permute.xlu1 %2592  ;;  %v8225_v31 = vpop.permute.xlu0 %2590 }
 0x2ec   : > { %1390 = vrot.lane.b32.xlu1 %v7419_v33, %s6479_s9  ;;  %1388 = vrot.lane.b32.xlu0 %v11515_v51, %s6479_s9  ;;  %v3535_v33 = vrot.slane %v8133_v35, %v11423_v42  ;;  %v3558_v51 = vmul.f32 %v3539_v0, %v11517_v30  ;;  %v3631_v35 = vmul.f32 %v7652_v2, %v7537_v25 }
 0x2ed   : > { %v3560_v0 = vmul.f32 %v3547_v44, %v11517_v30 }
 0x2ee   : > { %v8232_v29 = vpop.permute.xlu1 %2596  ;;  %v8239_v12 = vpop.permute.xlu0 %2594  ;;  %v3557_v32 = vmul.f32 %v3535_v33, %v11517_v30  ;;  %v3645_v21 = vrot.slane %v3631_v35, %v11419_v15  ;;  %v3633_v33 = vmul.f32 %v3619_v9, %v7593_v61 }
 0x2ef   : > { %11516 = vst [vmem:[#allocation15_spill] sm:$0xff] %v8232_v29  ;;  %11518 = vst [vmem:[#allocation25_spill] sm:$0xff] %v8239_v12  ;;  %v3543_v29 = vrot.slane %v8150_v38, %v11423_v42  ;;  %v3649_v38 = vrot.slane %v8249_v63, %v11419_v15 }
 0x2f0   : > { %3570 = vrot.lane.b32.xlu1 %v3556_v41, %s6487_s18  ;;  %1392 = vrot.lane.b32.xlu0 %v7507_v1, %s6479_s9  ;;  %v3620_v1 = vsel %vm1146_vm12, %v7672_v54, %v7745_v27  ;;  %v3653_v61 = vrot.slane %v3633_v33, %v11419_v15 }
 0x2f1   : > { %v8272_v25 = vmul.f32 %v3620_v1, %v7601_v59  ;;  %v3559_v54 = vmul.f32 %v3543_v29, %v11517_v30 }
 0x2f2   : > { %v8251_v17 = vpop.permute.xlu1 %2670  ;;  %v8261_v41 = vpop.permute.xlu0 %2668 }
 0x2f3   : > { %v3657_v59 = vrot.slane %v8272_v25, %v11419_v15 }
 0x2f4   : > { %3574 = vrot.lane.b32.xlu1 %v3558_v51, %s6487_s18  ;;  %3572 = vrot.lane.b32.xlu0 %v3557_v32, %s6487_s18  ;;  %v11521_v51 = vld [vmem:[#allocation26_spill] sm:$0xff]  ;;  %v3635_v32 = vmul.f32 %v3621_v62, %v7603_v39  ;;  %v3878_v39 = vld [vmem:[%s11235_s4] sm:$0x3f] }
 0x2f5   : > { %v3671_v1 = vmul.f32 %v3649_v38, %v11521_v51  ;;  %v3670_v9 = vmul.f32 %v3645_v21, %v11521_v51  ;;  %v3672_v38 = vmul.f32 %v3653_v61, %v11521_v51  ;;  %v3729_v21 = vrot.slane %v8249_v63, %v6654_v49 }
 0x2f6   : > { %v8274_v2 = vpop.permute.xlu1 %2674  ;;  %v8279_v12 = vpop.permute.xlu0 %2672  ;;  %v3737_v61 = vrot.slane %v8272_v25, %v6654_v49 }
 0x2f7   : > { %11519 = vst [vmem:[#allocation67_spill] sm:$0xff] %v8274_v2  ;;  %11520 = vst [vmem:[#allocation68_spill] sm:$0xff] %v8279_v12 }
 0x2f8   : > { %3578 = vrot.lane.b32.xlu1 %v3560_v0, %s6487_s18  ;;  %3576 = vrot.lane.b32.xlu0 %v3559_v54, %s6487_s18  ;;  %v3673_v0 = vmul.f32 %v3657_v59, %v11521_v51  ;;  %v3661_v54 = vrot.slane %v3635_v32, %v11419_v15  ;;  %v3725_v59 = vrot.slane %v3631_v35, %v6654_v49 }
 0x2fa   : > { %v8289_v44 = vpop.permute.xlu1 %3340  ;;  %v8294_v29 = vpop.permute.xlu0 %2676 }
 0x2fb   : > { %11522 = vst [vmem:[#allocation26_spill] sm:$0xff] %v8294_v29  ;;  %v3733_v29 = vrot.slane %v3633_v33, %v6654_v49 }
 0x2fc   : > { %3686 = vrot.lane.b32.xlu1 %v3671_v1, %s6488_s19  ;;  %3684 = vrot.lane.b32.xlu0 %v3670_v9, %s6488_s19  ;;  %v3674_v9 = vmul.f32 %v3661_v54, %v11521_v51 }
 0x2fe   : > { %v8299_v27 = vpop.permute.xlu1 %2748  ;;  %v8303_v2 = vpop.permute.xlu0 %3342 }
 0x2ff   : > { %11523 = vst [vmem:[#allocation69_spill] sm:$0xff] %v8299_v27 }
 0x300   : > { %3690 = vrot.lane.b32.xlu1 %v3673_v0, %s6488_s19  ;;  %3688 = vrot.lane.b32.xlu0 %v3672_v38, %s6488_s19  ;;  %v3751_v38 = vmul.f32 %v3729_v21, %v7758_v11  ;;  %v3752_v21 = vmul.f32 %v3733_v29, %v7758_v11  ;;  %v3813_v29 = vrot.slane %v3633_v33, %v11423_v42 }
 0x302   : > { %v8313_v62 = vpop.permute.xlu1 %2752  ;;  %v8316_v1 = vpop.permute.xlu0 %2750 }
 0x303   : > { %11524 = vst [vmem:[#allocation70_spill] sm:$0xff] %v8313_v62  ;;  %v3750_v62 = vmul.f32 %v3725_v59, %v7758_v11 }
 0x304   : > { %3881 = vperm.xlu1 %6384, %v3878_v39   ;;  %3692 = vrot.lane.b32.xlu0 %v3674_v9, %s6488_s19  ;;  %v3753_v39 = vmul.f32 %v3737_v61, %v7758_v11  ;;  %v3741_v9 = vrot.slane %v3635_v32, %v6654_v49  ;;  %v1635_v61 = vsel %vm453_vm6, %v7709_v40, %v7773_v8  ;;  %v8360_v8 = vld [vmem:[#allocation2 + $0x28] sm:$0x7] }
 0x306   : > { %v8322_v0 = vpop.permute.xlu1 %2756  ;;  %v8326_v12 = vpop.permute.xlu0 %2754 }
 0x307   : > { %11525 = vst [vmem:[#allocation71_spill] sm:$0xff] %v8322_v0  ;;  %11526 = vst [vmem:[#allocation72_spill] sm:$0xff] %v8326_v12  ;;  %v3805_v0 = vrot.slane %v3631_v35, %v11423_v42  ;;  %v3754_v12 = vmul.f32 %v3741_v9, %v7758_v11  ;;  %v11529_v35 = vld [vmem:[#allocation20_spill] sm:$0xff] }
 0x308   : > { %3766 = vrot.lane.b32.xlu1 %v3751_v38, %s6488_s19  ;;  %3764 = vrot.lane.b32.xlu0 %v3750_v62, %s6488_s19 }
 0x309   : > { %v3830_v62 = vmul.f32 %v3805_v0, %v7694_v57  ;;  %v8357_v0 = vld [vmem:[#allocation2 + $0x30] sm:$0x7] }
 0x30a   : > { %v8331_v54 = vpop.permute.xlu1 %2864  ;;  %v8335_v27 = vpop.permute.xlu0 %2862  ;;  %v1649_v9 = vmul.f32 %v1635_v61, %v8357_v0 }
 0x30c   : > { %3770 = vrot.lane.b32.xlu1 %v3753_v39, %s6488_s19  ;;  %3768 = vrot.lane.b32.xlu0 %v3752_v21, %s6488_s19  ;;  %v1634_v39 = vsel %vm453_vm6, %v11529_v35, %v7709_v40  ;;  %v3809_v21 = vrot.slane %v8249_v63, %v11423_v42 }
 0x30d   : > { %v1648_v40 = vmul.f32 %v1634_v39, %v8360_v8 }
 0x30e   : > { %v8341_v59 = vpop.permute.xlu1 %2868  ;;  %v8347_v38 = vpop.permute.xlu0 %2866  ;;  %v3831_v63 = vmul.f32 %v3809_v21, %v7694_v57  ;;  %v11534_v21 = vld [vmem:[#allocation13_spill] sm:$0xff] }
 0x30f   : > { %11527 = vst [vmem:[#allocation73_spill] sm:$0xff] %v8341_v59  ;;  %11528 = vst [vmem:[#allocation74_spill] sm:$0xff] %v8347_v38  ;;  %v3821_v59 = vrot.slane %v3635_v32, %v11423_v42  ;;  %v3832_v38 = vmul.f32 %v3813_v29, %v7694_v57  ;;  %v1681_v32 = vrot.slane %v1649_v9, %v11419_v15 }
 0x310   : > { %3844 = vrot.lane.b32.xlu1 %v3830_v62, %s6488_s19  ;;  %3772 = vrot.lane.b32.xlu0 %v3754_v12, %s6488_s19  ;;  %v3817_v12 = vrot.slane %v8272_v25, %v11423_v42  ;;  %v1677_v29 = vrot.slane %v1648_v40, %v11419_v15  ;;  %v1761_v25 = vrot.slane %v1649_v9, %v6654_v49 }
 0x311   : > { %v3834_v35 = vmul.f32 %v3821_v59, %v7694_v57  ;;  %v1979_v59 = vsel %vm553_vm7, %v7789_v37, %v7815_v36 }
 0x312   : > { %v8364_v33 = vpop.permute.xlu1 %2942  ;;  %v8368_v62 = vpop.permute.xlu0 %2870  ;;  %v1768_v36 = vmul.f32 %v1761_v25, %v7400_v10 }
 0x313   : > { %11530 = vst [vmem:[#allocation20_spill] sm:$0xff] %v8364_v33  ;;  %11531 = vst [vmem:[#allocation75_spill] sm:$0xff] %v8368_v62  ;;  %v3833_v62 = vmul.f32 %v3817_v12, %v7694_v57  ;;  %v1687_v12 = vmul.f32 %v1677_v29, %v11534_v21 }
 0x314   : > { %3848 = vrot.lane.b32.xlu1 %v3832_v38, %s6488_s19  ;;  %3846 = vrot.lane.b32.xlu0 %v3831_v63, %s6488_s19  ;;  %v1688_v63 = vmul.f32 %v1681_v32, %v11534_v21  ;;  %v1841_v32 = vrot.slane %v1649_v9, %v11423_v42 }
 0x316   : > { %v8376_v61 = vpop.permute.xlu1 %2946  ;;  %v8380_v39 = vpop.permute.xlu0 %2944 }
 0x317   : > { %11532 = vst [vmem:[#allocation76_spill] sm:$0xff] %v8376_v61  ;;  %v1757_v61 = vrot.slane %v1648_v40, %v6654_v49 }
 0x318   : > { %3852 = vrot.lane.b32.xlu1 %v3834_v35, %s6488_s19  ;;  %3850 = vrot.lane.b32.xlu0 %v3833_v62, %s6488_s19  ;;  %v1978_v62 = vsel %vm553_vm7, %v7448_v43, %v7789_v37  ;;  %v1993_v35 = vmul.f32 %v1979_v59, %v8357_v0 }
 0x319   : > { %v1992_v29 = vmul.f32 %v1978_v62, %v8360_v8  ;;  %v1767_v43 = vmul.f32 %v1757_v61, %v7400_v10 }
 0x31a   : > { %v8386_v38 = vpop.permute.xlu1 %2950  ;;  %v8393_v33 = vpop.permute.xlu0 %2948  ;;  %v2025_v37 = vrot.slane %v1993_v35, %v11419_v15  ;;  %v2105_v10 = vrot.slane %v1993_v35, %v6654_v49 }
 0x31b   : > { %11533 = vst [vmem:[#allocation77_spill] sm:$0xff] %v8386_v38  ;;  %11535 = vst [vmem:[#allocation13_spill] sm:$0xff] %v8393_v33  ;;  %v1837_v33 = vrot.slane %v1648_v40, %v11423_v42  ;;  %v2021_v25 = vrot.slane %v1992_v29, %v11419_v15  ;;  %v2101_v62 = vrot.slane %v1992_v29, %v6654_v49 }
 0x31c   : > { %1708 = vrot.lane.b32.xlu1 %v1688_v63, %s6481_s12  ;;  %1706 = vrot.lane.b32.xlu0 %v1687_v12, %s6481_s12  ;;  %v1848_v63 = vmul.f32 %v1841_v32, %v7388_v14  ;;  %v2032_v12 = vmul.f32 %v2025_v37, %v7415_v50  ;;  %v2253_v32 = vsel %vm652_vm8, %v7845_v28, %v7838_v3 }
 0x31d   : > { %v1847_v40 = vmul.f32 %v1837_v33, %v7388_v14  ;;  %v2031_v14 = vmul.f32 %v2021_v25, %v7415_v50  ;;  %v2252_v33 = vsel %vm652_vm8, %v7446_v48, %v7845_v28  ;;  %v2267_v37 = vmul.f32 %v2253_v32, %v8357_v0 }
 0x31e   : > { %v8403_v38 = vpop.permute.xlu1 %3616  ;;  %v8408_v21 = vpop.permute.xlu0 %3614  ;;  %v2112_v3 = vmul.f32 %v2105_v10, %v7412_v4  ;;  %v2181_v50 = vrot.slane %v1992_v29, %v11423_v42  ;;  %v2111_v48 = vmul.f32 %v2101_v62, %v7412_v4 }
 0x31f   : > { %v2299_v28 = vrot.slane %v2267_v37, %v11419_v15  ;;  %v2379_v4 = vrot.slane %v2267_v37, %v6654_v49 }
 0x320   : > { %1788 = vrot.lane.b32.xlu1 %v1768_v36, %s6481_s12  ;;  %1786 = vrot.lane.b32.xlu0 %v1767_v43, %s6481_s12  ;;  %v2185_v43 = vrot.slane %v1993_v35, %v11423_v42  ;;  %v2191_v29 = vmul.f32 %v2181_v50, %v7458_v13  ;;  %v2526_v50 = vsel %vm314_vm4, %v7515_v6, %v7858_v16 }
 0x322   : > { %v8414_v9 = vpop.permute.xlu1 %3024  ;;  %v8418_v59 = vpop.permute.xlu0 %3022 }
 0x324   : > { %1868 = vrot.lane.b32.xlu1 %v1848_v63, %s6481_s12  ;;  %1866 = vrot.lane.b32.xlu0 %v1847_v40, %s6481_s12  ;;  %v2266_v40 = vmul.f32 %v2252_v33, %v8360_v8 }
 0x326   : > { %v8424_v61 = vpop.permute.xlu1 %3028  ;;  %v8431_v36 = vpop.permute.xlu0 %3026  ;;  %v2295_v10 = vrot.slane %v2266_v40, %v11419_v15  ;;  %v2375_v33 = vrot.slane %v2266_v40, %v6654_v49 }
 0x328   : > { %2052 = vrot.lane.b32.xlu1 %v2032_v12, %s6482_s13  ;;  %2050 = vrot.lane.b32.xlu0 %v2031_v14, %s6482_s13  ;;  %v2192_v12 = vmul.f32 %v2185_v43, %v7458_v13  ;;  %v2306_v14 = vmul.f32 %v2299_v28, %v7465_v23  ;;  %v2527_v43 = vsel %vm314_vm4, %v7858_v16, %v7851_v53  ;;  %vm11551_vm4 = vcmask 23552  }
 0x329   : > { %v2305_v13 = vmul.f32 %v2295_v10, %v7465_v23  ;;  %v2541_v28 = vmul.f32 %v2527_v43, %v8357_v0  ;;  %v2386_v53 = vmul.f32 %v2379_v4, %v7483_v47  ;;  %v2540_v23 = vmul.f32 %v2526_v50, %v8360_v8  ;;  %v11543_v50 = vld [vmem:[#allocation8_spill] sm:$0xff]  ;;  %vm11553_vm6 = vmmov %vm11551_vm4 }
 0x32a   : > { %v8441_v63 = vpop.permute.xlu1 %3136  ;;  %v8446_v25 = vpop.permute.xlu0 %3030  ;;  %v2385_v6 = vmul.f32 %v2375_v33, %v7483_v47  ;;  %vm11555_vm7 = vmmov %vm11551_vm4 }
 0x32b   : > { %11536 = vst [vmem:[#allocation78_spill] sm:$0xff] %v8446_v25  ;;  %v2573_v16 = vrot.slane %v2541_v28, %v11419_v15  ;;  %v2569_v4 = vrot.slane %v2540_v23, %v11419_v15  ;;  %v2653_v47 = vrot.slane %v2541_v28, %v6654_v49  ;;  %vm11581_vm8 = vmmov %vm11551_vm4 }
 0x32c   : > { %2132 = vrot.lane.b32.xlu1 %v2112_v3, %s6482_s13  ;;  %2130 = vrot.lane.b32.xlu0 %v2111_v48, %s6482_s13  ;;  %v2459_v48 = vrot.slane %v2267_v37, %v11423_v42 }
 0x32e   : > { %v8452_v35 = vpop.permute.xlu1 %3140  ;;  %v8456_v32 = vpop.permute.xlu0 %3138 }
 0x330   : > { %2212 = vrot.lane.b32.xlu1 %v2192_v12, %s6482_s13  ;;  %2210 = vrot.lane.b32.xlu0 %v2191_v29, %s6482_s13  ;;  %v2455_v29 = vrot.slane %v2266_v40, %v11423_v42  ;;  %s6508_s13 = smov 125  }
 0x332   : > { %v8462_v62 = vpop.permute.xlu1 %3144  ;;  %v8469_v3 = vpop.permute.xlu0 %3142 }
 0x333   : > { %11537 = vst [vmem:[#allocation79_spill] sm:$0xff] %v8462_v62  ;;  %11538 = vst [vmem:[#allocation80_spill] sm:$0xff] %v8469_v3 }
 0x334   : > { %2326 = vrot.lane.b32.xlu1 %v2306_v14, %s6483_s14  ;;  %2324 = vrot.lane.b32.xlu0 %v2305_v13, %s6483_s14  ;;  %v11540_v14 = vld [vmem:[#allocation7_spill] sm:$0xff] }
 0x335   : > { %v2466_v43 = vmul.f32 %v2459_v48, %v11540_v14  ;;  %v2465_v40 = vmul.f32 %v2455_v29, %v11540_v14  ;;  %v2801_v48 = vsel %vm849_vm9, %v7865_v5, %v7868_v34  ;;  %v2579_v29 = vmul.f32 %v2569_v4, %v11543_v50 }
 0x336   : > { %v8479_v12 = vpop.permute.xlu1 %3218  ;;  %v8484_v10 = vpop.permute.xlu0 %3216  ;;  %v2800_v14 = vsel %vm849_vm9, %v7494_v24, %v7865_v5  ;;  %v2660_v34 = vmul.f32 %v2653_v47, %v7472_v58  ;;  %v6445_v5 = vld [vmem:[#allocation2] sm:$0x7]  ;;  %vm11586_vm9 = vmmov %vm11551_vm4 }
 0x337   : > { %v2814_v4 = vmul.f32 %v2800_v14, %v8360_v8 }
 0x338   : > { %2406 = vrot.lane.b32.xlu1 %v2386_v53, %s6483_s14  ;;  %2404 = vrot.lane.b32.xlu0 %v2385_v6, %s6483_s14  ;;  %v2580_v53 = vmul.f32 %v2573_v16, %v11543_v50  ;;  %v2649_v6 = vrot.slane %v2540_v23, %v6654_v49  ;;  %v2733_v16 = vrot.slane %v2541_v28, %v11423_v42  ;;  %v11547_v28 = vld [vmem:[#allocation28_spill] sm:$0xff] }
 0x339   : > { %v2843_v47 = vrot.slane %v2814_v4, %v11419_v15 }
 0x33a   : > { %v8490_v37 = vpop.permute.xlu1 %3222  ;;  %v8494_v13 = vpop.permute.xlu0 %3220  ;;  %v2659_v24 = vmul.f32 %v2649_v6, %v7472_v58  ;;  %v11550_v6 = vld [vmem:[#allocation29_spill] sm:$0xff] }
 0x33b   : > { %11539 = vst [vmem:[#allocation81_spill] sm:$0xff] %v8490_v37  ;;  %11541 = vst [vmem:[#allocation7_spill] sm:$0xff] %v8494_v13  ;;  %v2853_v37 = vmul.f32 %v2843_v47, %v7527_v56  ;;  %v6447_v13 = vld [vmem:[#allocation2 + $0x10] sm:$0x7] }
 0x33c   : > { %2486 = vrot.lane.b32.xlu1 %v2466_v43, %s6483_s14  ;;  %2484 = vrot.lane.b32.xlu0 %v2465_v40, %s6483_s14  ;;  %v2815_v43 = vmul.f32 %v2801_v48, %v8357_v0 }
 0x33e   : > { %v8500_v33 = vpop.permute.xlu1 %3296  ;;  %v8507_v62 = vpop.permute.xlu0 %3224  ;;  %v2847_v48 = vrot.slane %v2815_v43, %v11419_v15 }
 0x33f   : > { %11542 = vst [vmem:[#allocation82_spill] sm:$0xff] %v8500_v33  ;;  %11544 = vst [vmem:[#allocation8_spill] sm:$0xff] %v8507_v62  ;;  %v2729_v62 = vrot.slane %v2540_v23, %v11423_v42  ;;  %v2740_v23 = vmul.f32 %v2733_v16, %v7521_v52 }
 0x340   : > { %2600 = vrot.lane.b32.xlu1 %v2580_v53, %s6484_s15  ;;  %2598 = vrot.lane.b32.xlu0 %v2579_v29, %s6484_s15  ;;  %v8528_v53 = vmul.f32 %v6445_v5, %v11547_v28 }
 0x341   : > { %v2739_v58 = vmul.f32 %v2729_v62, %v7521_v52  ;;  %v2927_v52 = vrot.slane %v2815_v43, %v6654_v49 }
 0x342   : > { %v8517_v40 = vpop.permute.xlu1 %3300  ;;  %v8522_v50 = vpop.permute.xlu0 %3298  ;;  %v1422_v16 = vrot.slane %v8528_v53, %v11419_v15 }
 0x343   : > { %11545 = vst [vmem:[#allocation83_spill] sm:$0xff] %v8517_v40  ;;  %11546 = vst [vmem:[#allocation84_spill] sm:$0xff] %v8522_v50  ;;  %v11558_v50 = vld [vmem:[#allocation27_spill] sm:$0xff] }
 0x344   : > { %2680 = vrot.lane.b32.xlu1 %v2660_v34, %s6484_s15  ;;  %2678 = vrot.lane.b32.xlu0 %v2659_v24, %s6484_s15  ;;  %v1394_v34 = vsel %vm11551_vm4, %v11547_v28, %v11550_v6  ;;  %v11552_v24 = vld [vmem:[#allocation32_spill] sm:$0xff]  ;;  %v1461_v28 = vrot.slane %v8528_v53, %v6654_v49 }
 0x345   : > { %v1395_v5 = vsel %vm11553_vm6, %v11550_v6, %v11552_v24  ;;  %v2923_v6 = vrot.slane %v2814_v4, %v6654_v49 }
 0x346   : > { %v8531_v29 = vpop.permute.xlu1 %3304  ;;  %v8535_v14 = vpop.permute.xlu0 %3302  ;;  %v1409_v25 = vmul.f32 %v6447_v13, %v1395_v5  ;;  %v2934_v13 = vmul.f32 %v2927_v52, %v7535_v55 }
 0x347   : > { %11548 = vst [vmem:[#allocation28_spill] sm:$0xff] %v8531_v29  ;;  %11549 = vst [vmem:[#allocation85_spill] sm:$0xff] %v8535_v14  ;;  %v11554_v29 = vld [vmem:[#allocation30_spill] sm:$0xff] }
 0x348   : > { %2760 = vrot.lane.b32.xlu1 %v2740_v23, %s6484_s15  ;;  %2758 = vrot.lane.b32.xlu0 %v2739_v58, %s6484_s15  ;;  %v1396_v14 = vsel %vm11555_vm7, %v11552_v24, %v11554_v29  ;;  %v2854_v23 = vmul.f32 %v2847_v48, %v7527_v56  ;;  %v3075_v58 = vsel %vm948_vm10, %v8186_v26, %v8181_v18  ;;  %v6446_v24 = vld [vmem:[#allocation2 + $0x8] sm:$0x7] }
 0x349   : > { %v1408_v29 = vmul.f32 %v6446_v24, %v1394_v34  ;;  %v3074_v48 = vsel %vm948_vm10, %v11480_v60, %v8186_v26  ;;  %v1447_v18 = vmul.f32 %v1422_v16, %v11558_v50  ;;  %v8572_v56 = vmul.f32 %v3075_v58, %v8357_v0  ;;  %v11560_v34 = vld [vmem:[#allocation31_spill] sm:$0xff] }
 0x34a   : > { %v8552_v62 = vpop.permute.xlu1 %3412  ;;  %v8561_v40 = vpop.permute.xlu0 %3410  ;;  %v1486_v5 = vmul.f32 %v1461_v28, %v11560_v34  ;;  %v3003_v60 = vrot.slane %v2814_v4, %v11423_v42  ;;  %v8580_v26 = vmul.f32 %v3074_v48, %v8360_v8  ;;  %v1430_v16 = vrot.slane %v1409_v25, %v11419_v15 }
 0x34b   : > { %11556 = vst [vmem:[#allocation29_spill] sm:$0xff] %v8552_v62  ;;  %11557 = vst [vmem:[#allocation32_spill] sm:$0xff] %v8561_v40  ;;  %v6448_v62 = vld [vmem:[#allocation2 + $0x18] sm:$0x7]  ;;  %v3007_v40 = vrot.slane %v2815_v43, %v11423_v42  ;;  %v1426_v43 = vrot.slane %v1408_v29, %v11419_v15  ;;  %v1507_v28 = vrot.slane %v8528_v53, %v11423_v42  ;;  %vm11644_vm10 = vcmask 580608  }
 0x34c   : > { %2874 = vrot.lane.b32.xlu1 %v2854_v23, %s6485_s16  ;;  %v1410_v33 = vmul.f32 %v6448_v62, %v1396_v14  ;;  %2872 = vrot.lane.b32.xlu0 %v2853_v37, %s6485_s16  ;;  %v2933_v37 = vmul.f32 %v2923_v6, %v7535_v55  ;;  %v1465_v62 = vrot.slane %v1408_v29, %v6654_v49  ;;  %vm11655_vm5 = vmmov %vm11644_vm10 }
 0x34d   : > { %v1469_v23 = vrot.slane %v1409_v25, %v6654_v49  ;;  %v3121_v55 = vrot.slane %v8572_v56, %v11419_v15  ;;  %v3014_v58 = vmul.f32 %v3007_v40, %v11474_v45  ;;  %v1493_v24 = vadd.f32 %v1486_v5, %v1447_v18  ;;  %vm11656_vm4 = vmmov %vm11655_vm5 }
 0x34e   : > { %v8574_v47 = vpop.permute.xlu1 %3416  ;;  %v8582_v14 = vpop.permute.xlu0 %3414  ;;  %v1434_v52 = vrot.slane %v1410_v33, %v11419_v15  ;;  %v1473_v4 = vrot.slane %v1410_v33, %v6654_v49  ;;  %v3117_v48 = vrot.slane %v8580_v26, %v11419_v15  ;;  %v1449_v53 = vmul.f32 %v1430_v16, %v11558_v50  ;;  %vm11659_vm6 = vmmov %vm11656_vm4 }
 0x34f   : > { %11559 = vst [vmem:[#allocation86_spill] sm:$0xff] %v8574_v47  ;;  %11561 = vst [vmem:[#allocation87_spill] sm:$0xff] %v8582_v14  ;;  %v3013_v47 = vmul.f32 %v3003_v60, %v11474_v45  ;;  %v1487_v14 = vmul.f32 %v1465_v62, %v11560_v34  ;;  %v1488_v3 = vmul.f32 %v1469_v23, %v11560_v34  ;;  %v11564_v45 = vld [vmem:[#allocation33_spill] sm:$0xff]  ;;  %v11566_v62 = vld [vmem:[#allocation4_spill] sm:$0xff] }
 0x350   : > { %2954 = vrot.lane.b32.xlu1 %v2934_v13, %s6485_s16  ;;  %2952 = vrot.lane.b32.xlu0 %v2933_v37, %s6485_s16  ;;  %v1448_v37 = vmul.f32 %v1426_v43, %v11558_v50  ;;  %v1511_v40 = vrot.slane %v1408_v29, %v11423_v42  ;;  %v1515_v18 = vrot.slane %v1409_v25, %v11423_v42  ;;  %vm11660_vm7 = vmmov %vm11656_vm4 }
 0x351   : > { %v1450_v5 = vmul.f32 %v1434_v52, %v11558_v50  ;;  %v1532_v60 = vmul.f32 %v1507_v28, %v11564_v45  ;;  %v3201_v43 = vrot.slane %v8572_v56, %v6654_v49  ;;  %v3128_v23 = vmul.f32 %v3121_v55, %v11566_v62 }
 0x352   : > { %v8597_v6 = vpop.permute.xlu1 %3490  ;;  %v8602_v13 = vpop.permute.xlu0 %3418  ;;  %v3197_v25 = vrot.slane %v8580_v26, %v6654_v49  ;;  %v3349_v29 = vsel %vm1047_vm11, %v8289_v44, %v8303_v2  ;;  %v1495_v28 = vadd.f32 %v1488_v3, %v1449_v53  ;;  %v1533_v55 = vmul.f32 %v1511_v40, %v11564_v45  ;;  %v11569_v2 = vld [vmem:[#allocation40_spill] sm:$0xff] }
 0x353   : > { %11562 = vst [vmem:[#allocation88_spill] sm:$0xff] %v8597_v6  ;;  %11563 = vst [vmem:[#allocation89_spill] sm:$0xff] %v8602_v13  ;;  %v1489_v13 = vmul.f32 %v1473_v4, %v11560_v34  ;;  %v1494_v4 = vadd.f32 %v1487_v14, %v1448_v37  ;;  %v11568_v34 = vld [vmem:[#allocation23_spill] sm:$0xff]  ;;  %v3281_v3 = vrot.slane %v8572_v56, %v11423_v42 }
 0x354   : > { %3034 = vrot.lane.b32.xlu1 %v3014_v58, %s6485_s16  ;;  %3032 = vrot.lane.b32.xlu0 %v3013_v47, %s6485_s16  ;;  %v1519_v58 = vrot.slane %v1410_v33, %v11423_v42  ;;  %v3127_v47 = vmul.f32 %v3117_v48, %v11566_v62  ;;  %v3348_v50 = vsel %vm1047_vm11, %v11568_v34, %v8289_v44  ;;  %v11571_v34 = vld [vmem:[#allocation10_spill] sm:$0xff]  ;;  %vm11650_vm11 = vmmov %vm11644_vm10 }
 0x355   : > { %v1539_v33 = vadd.f32 %v1532_v60, %v1493_v24  ;;  %v1496_v6 = vadd.f32 %v1489_v13, %v1450_v5  ;;  %v8643_v14 = vmul.f32 %v3349_v29, %v8357_v0  ;;  %v3208_v24 = vmul.f32 %v3201_v43, %v11571_v34  ;;  %v11572_v5 = vld [vmem:[#allocation41_spill] sm:$0xff] }
 0x356   : > { %v8618_v16 = vpop.permute.xlu1 %3494  ;;  %v8627_v52 = vpop.permute.xlu0 %3492  ;;  %v1535_v37 = vmul.f32 %v1519_v58, %v11564_v45  ;;  %v3277_v13 = vrot.slane %v8580_v26, %v11423_v42  ;;  %v8652_v53 = vmul.f32 %v3348_v50, %v8360_v8  ;;  %v1540_v56 = vadd.f32 %v1533_v55, %v1494_v4  ;;  %v11574_v50 = vld [vmem:[#allocation43_spill] sm:$0xff]  ;;  %v11577_v4 = vld [vmem:[#allocation44_spill] sm:$0xff] }
 0x357   : > { %11565 = vst [vmem:[#allocation90_spill] sm:$0xff] %v8618_v16  ;;  %11567 = vst [vmem:[#allocation4_spill] sm:$0xff] %v8627_v52  ;;  %v1534_v16 = vmul.f32 %v1515_v18, %v11564_v45  ;;  %v11570_v52 = vld [vmem:[#allocation35_spill] sm:$0xff]  ;;  %v3207_v18 = vmul.f32 %v3197_v25, %v11571_v34  ;;  %v1711_v60 = vsel %vm525_vm14, %v11569_v2, %v11572_v5  ;;  %v11575_v25 = vld [vmem:[#allocation45_spill] sm:$0xff] }
 0x358   : > { %3148 = vrot.lane.b32.xlu1 %v3128_v23, %s6486_s17  ;;  %3146 = vrot.lane.b32.xlu0 %v3127_v47, %s6486_s17  ;;  %v1710_v48 = vsel %vm525_vm14, %v11570_v52, %v11569_v2  ;;  %v11573_v23 = vld [vmem:[#allocation42_spill] sm:$0xff]  ;;  %v1542_v58 = vadd.f32 %v1535_v37, %v1496_v6  ;;  %v11578_v55 = vld [vmem:[#allocation16_spill] sm:$0xff]  ;;  %v1724_v2 = vadd.f32 %v1711_v60, %v1540_v56 }
 0x359   : > { %v1541_v62 = vadd.f32 %v1534_v16, %v1495_v28  ;;  %v1723_v43 = vadd.f32 %v1710_v48, %v1539_v33  ;;  %v1712_v26 = vsel %vm525_vm14, %v11572_v5, %v11573_v23  ;;  %v1713_v29 = vsel %vm525_vm14, %v11573_v23, %v11574_v50  ;;  %v11576_v52 = vld [vmem:[#allocation34_spill] sm:$0xff]  ;;  %v11579_v48 = vld [vmem:[#allocation47_spill] sm:$0xff]  ;;  %v11583_v50 = vld [vmem:[#allocation37_spill] sm:$0xff] }
 0x35a   : > { %v8645_v44 = vpop.permute.xlu1 %3498  ;;  %v8654_v40 = vpop.permute.xlu0 %3496  ;;  %v1790_v47 = vsel %vm525_vm14, %v11576_v52, %v11575_v25  ;;  %v1791_v16 = vsel %vm525_vm14, %v11575_v25, %v11577_v4  ;;  %v3395_v28 = vrot.slane %v8643_v14, %v11419_v15  ;;  %v3288_v6 = vmul.f32 %v3281_v3, %v11578_v55  ;;  %v11580_v23 = vld [vmem:[#allocation46_spill] sm:$0xff] }
 0x35b   : > { %v1792_v34 = vsel %vm525_vm14, %v11577_v4, %v11579_v48  ;;  %v1725_v5 = vadd.f32 %v1712_v26, %v1541_v62  ;;  %v1793_v25 = vsel %vm525_vm14, %v11579_v48, %v11580_v23  ;;  %v1726_v56 = vadd.f32 %v1713_v29, %v1542_v58  ;;  %v11582_v4 = vld [vmem:[#allocation48_spill] sm:$0xff]  ;;  %v11584_v62 = vld [vmem:[#allocation49_spill] sm:$0xff] }
 0x35c   : > { %3228 = vrot.lane.b32.xlu1 %v3208_v24, %s6486_s17  ;;  %3226 = vrot.lane.b32.xlu0 %v3207_v18, %s6486_s17  ;;  %v3391_v24 = vrot.slane %v8652_v53, %v11419_v15  ;;  %v3287_v18 = vmul.f32 %v3277_v13, %v11578_v55  ;;  %v1803_v60 = vadd.f32 %v1790_v47, %v1723_v43 }
 0x35d   : > { %v1804_v52 = vadd.f32 %v1791_v16, %v1724_v2  ;;  %v1870_v45 = vsel %vm525_vm14, %v11583_v50, %v11582_v4  ;;  %v1805_v13 = vadd.f32 %v1792_v34, %v1725_v5  ;;  %v1871_v26 = vsel %vm525_vm14, %v11582_v4, %v11584_v62  ;;  %v11585_v16 = vld [vmem:[#allocation50_spill] sm:$0xff]  ;;  %v11587_v5 = vld [vmem:[#allocation51_spill] sm:$0xff] }
 0x35e   : > { %v1391_v33 = vpop.permute.xlu1 %1390  ;;  %v8682_v37 = vpop.permute.xlu0 %1388  ;;  %v3475_v55 = vrot.slane %v8643_v14, %v6654_v49  ;;  %v3402_v48 = vmul.f32 %v3395_v28, %v11507_v7  ;;  %v3471_v43 = vrot.slane %v8652_v53, %v6654_v49  ;;  %v3623_v58 = vsel %vm1146_vm12, %v8408_v21, %v8403_v38 }
 0x35f   : > { %v8690_v3 = vsel %vm11581_vm8, %v8682_v37, %v1391_v33  ;;  %v3401_v29 = vmul.f32 %v3391_v24, %v11507_v7  ;;  %v1883_v47 = vadd.f32 %v1870_v45, %v1803_v60  ;;  %v1872_v2 = vsel %vm525_vm14, %v11584_v62, %v11585_v16  ;;  %v11588_v7 = vld [vmem:[#allocation17_spill] sm:$0xff]  ;;  %v11589_v45 = vld [vmem:[#allocation36_spill] sm:$0xff] }
 0x360   : > { %3308 = vrot.lane.b32.xlu1 %v3288_v6, %s6486_s17  ;;  %3306 = vrot.lane.b32.xlu0 %v3287_v18, %s6486_s17  ;;  %v1806_v6 = vadd.f32 %v1793_v25, %v1726_v56  ;;  %v3622_v28 = vsel %vm1146_vm12, %v7683_v22, %v8408_v21  ;;  %v1884_v18 = vadd.f32 %v1871_v26, %v1804_v52  ;;  %v11590_v25 = vld [vmem:[#allocation12_spill] sm:$0xff]  ;;  %v11591_v22 = vld [vmem:[#allocation9_spill] sm:$0xff]  ;;  %vm11653_vm12 = vmmov %vm11644_vm10  ;;  %vm11661_vm8 = vcmask 572416  }
 0x361   : > { %v1873_v38 = vsel %vm525_vm14, %v11585_v16, %v11587_v5  ;;  %v2054_v24 = vsel %vm625_vm15, %v11589_v45, %v11588_v7  ;;  %v2055_v56 = vsel %vm625_vm15, %v11588_v7, %v11590_v25  ;;  %v2056_v21 = vsel %vm625_vm15, %v11590_v25, %v11591_v22  ;;  %v11592_v7 = vld [vmem:[#allocation14_spill] sm:$0xff]  ;;  %v11596_v45 = vld [vmem:[#allocation52_spill] sm:$0xff] }
 0x362   : > { %v1393_v50 = vpop.permute.xlu0 %1392  ;;  %v8735_v60 = vmul.f32 %v3623_v58, %v8357_v0  ;;  %v3482_v52 = vmul.f32 %v3475_v55, %v11510_v19  ;;  %v1885_v4 = vadd.f32 %v1872_v2, %v1805_v13  ;;  %v3551_v62 = vrot.slane %v8652_v53, %v11423_v42  ;;  %v11593_v55 = vld [vmem:[#allocation5_spill] sm:$0xff]  ;;  %v11594_v13 = vld [vmem:[#allocation39_spill] sm:$0xff] }
 0x363   : > { %v8716_v34 = vsel %vm11586_vm9, %v1391_v33, %v1393_v50  ;;  %v3555_v33 = vrot.slane %v8643_v14, %v11423_v42  ;;  %v8741_v26 = vmul.f32 %v3622_v28, %v8360_v8  ;;  %v1886_v16 = vadd.f32 %v1873_v38, %v1806_v6  ;;  %v11595_v2 = vld [vmem:[#allocation11_spill] sm:$0xff]  ;;  %v11597_v6 = vld [vmem:[#allocation53_spill] sm:$0xff]  ;;  %v11599_v38 = vld [vmem:[#allocation38_spill] sm:$0xff] }
 0x364   : > { %3422 = vrot.lane.b32.xlu1 %v3402_v48, %s6487_s18  ;;  %3420 = vrot.lane.b32.xlu0 %v3401_v29, %s6487_s18  ;;  %v8743_v48 = vpop.permute.xlu1 %3570  ;;  %v3481_v29 = vmul.f32 %v3471_v43, %v11510_v19  ;;  %v2067_v14 = vadd.f32 %v2054_v24, %v1883_v47  ;;  %v2057_v0 = vsel %vm625_vm15, %v11591_v22, %v11592_v7  ;;  %v11598_v47 = vld [vmem:[#allocation55_spill] sm:$0xff]  ;;  %v11610_v7 = vld [vmem:[#allocation24_spill] sm:$0xff]  ;;  %vm11663_vm9 = vmmov %vm11656_vm4 }
 0x365   : > { %v2134_v58 = vsel %vm625_vm15, %v11594_v13, %v11593_v55  ;;  %v2068_v8 = vadd.f32 %v2055_v56, %v1884_v18  ;;  %v2069_v53 = vadd.f32 %v2056_v21, %v1885_v4  ;;  %v2135_v28 = vsel %vm625_vm15, %v11593_v55, %v11595_v2  ;;  %v11600_v13 = vld [vmem:[#allocation54_spill] sm:$0xff] }
 0x366   : > { %v8745_v50 = vpop.permute.xlu0 %3572  ;;  %v2136_v19 = vsel %vm625_vm15, %v11595_v2, %v11596_v45  ;;  %v2137_v43 = vsel %vm625_vm15, %v11596_v45, %v11597_v6  ;;  %v2214_v24 = vsel %vm625_vm15, %v11599_v38, %v11598_v47  ;;  %v3669_v18 = vrot.slane %v8735_v60, %v11419_v15  ;;  %v11601_v45 = vld [vmem:[#allocation58_spill] sm:$0xff]  ;;  %v11602_v38 = vld [vmem:[#allocation59_spill] sm:$0xff] }
 0x367   : > { %v3562_v25 = vmul.f32 %v3555_v33, %v11517_v30  ;;  %v2070_v56 = vadd.f32 %v2057_v0, %v1886_v16  ;;  %v2147_v22 = vadd.f32 %v2134_v58, %v2067_v14  ;;  %v3665_v21 = vrot.slane %v8741_v26, %v11419_v15  ;;  %v11603_v14 = vld [vmem:[#allocation57_spill] sm:$0xff]  ;;  %v11604_v58 = vld [vmem:[#allocation56_spill] sm:$0xff] }
 0x368   : > { %3502 = vrot.lane.b32.xlu1 %v3482_v52, %s6487_s18  ;;  %3500 = vrot.lane.b32.xlu0 %v3481_v29, %s6487_s18  ;;  %v3561_v4 = vmul.f32 %v3551_v62, %v11517_v30  ;;  %v2148_v29 = vadd.f32 %v2135_v28, %v2068_v8  ;;  %v2149_v55 = vadd.f32 %v2136_v19, %v2069_v53  ;;  %v8789_v62 = vpop.permute.xlu1 %3574  ;;  %v11605_v8 = vld [vmem:[#allocation61_spill] sm:$0xff]  ;;  %v11607_v19 = vld [vmem:[#allocation19_spill] sm:$0xff] }
 0x369   : > { %v2215_v2 = vsel %vm625_vm15, %v11598_v47, %v11600_v13  ;;  %v2328_v6 = vsel %vm724_vm0, %v11602_v38, %v11601_v45  ;;  %v2150_v33 = vadd.f32 %v2137_v43, %v2070_v56  ;;  %v2227_v16 = vadd.f32 %v2214_v24, %v2147_v22  ;;  %v11606_v28 = vld [vmem:[#allocation21_spill] sm:$0xff] }
 0x36a   : > { %v8773_v52 = vpop.permute.xlu0 %3576  ;;  %v2216_v0 = vsel %vm625_vm15, %v11600_v13, %v11603_v14  ;;  %v2217_v30 = vsel %vm625_vm15, %v11603_v14, %v11604_v58  ;;  %v2329_v53 = vsel %vm724_vm0, %v11601_v45, %v11605_v8  ;;  %v2408_v43 = vsel %vm724_vm0, %v11607_v19, %v11606_v28  ;;  %v11608_v14 = vld [vmem:[#allocation60_spill] sm:$0xff]  ;;  %v11609_v58 = vld [vmem:[#allocation63_spill] sm:$0xff] }
 0x36b   : > { %v3749_v47 = vrot.slane %v8735_v60, %v6654_v49  ;;  %v3676_v24 = vmul.f32 %v3669_v18, %v11521_v51  ;;  %v2341_v56 = vadd.f32 %v2328_v6, %v2227_v16  ;;  %v3745_v22 = vrot.slane %v8741_v26, %v6654_v49  ;;  %v11611_v18 = vld [vmem:[#allocation6_spill] sm:$0xff] }
 0x36c   : > { %3582 = vrot.lane.b32.xlu1 %v3562_v25, %s6487_s18  ;;  %3580 = vrot.lane.b32.xlu0 %v3561_v4, %s6487_s18  ;;  %v2228_v25 = vadd.f32 %v2215_v2, %v2148_v29  ;;  %v3675_v4 = vmul.f32 %v3665_v21, %v11521_v51  ;;  %v2229_v38 = vadd.f32 %v2216_v0, %v2149_v55  ;;  %v11612_v2 = vld [vmem:[#allocation22_spill] sm:$0xff] }
 0x36d   : > { %v2230_v45 = vadd.f32 %v2217_v30, %v2150_v33  ;;  %v2330_v19 = vsel %vm724_vm0, %v11605_v8, %v11608_v14  ;;  %v2488_v5 = vsel %vm724_vm0, %v11610_v7, %v11609_v58  ;;  %v2331_v29 = vsel %vm724_vm0, %v11608_v14, %v11611_v18  ;;  %v11613_v55 = vld [vmem:[#allocation18_spill] sm:$0xff] }
 0x36e   : > { %v8803_v13 = vpop.permute.xlu0 %3684  ;;  %v2342_v6 = vadd.f32 %v2329_v53, %v2228_v25  ;;  %v2409_v51 = vsel %vm724_vm0, %v11606_v28, %v11612_v2  ;;  %v2421_v21 = vadd.f32 %v2408_v43, %v2341_v56  ;;  %v2410_v33 = vsel %vm724_vm0, %v11612_v2, %v11613_v55  ;;  %v8831_v28 = vpop.permute.xlu1 %3578  ;;  %v11614_v56 = vld [vmem:[#allocation65_spill] sm:$0xff] }
 0x36f   : > { %v2602_v7 = vsel %vm822_vm1, %v8215_v46, %v8225_v31  ;;  %v3829_v16 = vrot.slane %v8735_v60, %v11423_v42  ;;  %v3756_v0 = vmul.f32 %v3749_v47, %v7758_v11  ;;  %v2343_v30 = vadd.f32 %v2330_v19, %v2229_v38  ;;  %v11616_v47 = vld [vmem:[#allocation62_spill] sm:$0xff] }
 0x370   : > { %3696 = vrot.lane.b32.xlu1 %v3676_v24, %s6488_s19  ;;  %3694 = vrot.lane.b32.xlu0 %v3675_v4, %s6488_s19  ;;  %v2501_v8 = vadd.f32 %v2488_v5, %v2421_v21  ;;  %v3825_v53 = vrot.slane %v8741_v26, %v11423_v42  ;;  %v3755_v24 = vmul.f32 %v3745_v22, %v7758_v11  ;;  %v11615_v4 = vld [vmem:[#allocation64_spill] sm:$0xff] }
 0x371   : > { %v2344_v25 = vadd.f32 %v2331_v29, %v2230_v45  ;;  %v2489_v46 = vsel %vm724_vm0, %v11609_v58, %v11614_v56  ;;  %v2490_v60 = vsel %vm724_vm0, %v11614_v56, %v11615_v4  ;;  %v2682_v5 = vsel %vm822_vm1, %v8261_v41, %v8251_v17  ;;  %v11617_v45 = vld [vmem:[#allocation25_spill] sm:$0xff] }
 0x372   : > { %v8833_v43 = vpop.permute.xlu0 %3688  ;;  %v2422_v26 = vadd.f32 %v2409_v51, %v2342_v6  ;;  %v2411_v11 = vsel %vm724_vm0, %v11613_v55, %v11616_v47  ;;  %v2423_v22 = vadd.f32 %v2410_v33, %v2343_v30  ;;  %v2615_v38 = vadd.f32 %v2602_v7, %v2501_v8  ;;  %v11618_v41 = vld [vmem:[#allocation69_spill] sm:$0xff]  ;;  %v11619_v33 = vld [vmem:[#allocation66_spill] sm:$0xff]  ;;  %v11620_v7 = vld [vmem:[#allocation68_spill] sm:$0xff]  ;;  %v8876_v56 = vpop.permute.xlu1 %3686 }
 0x373   : > { %v2603_v58 = vsel %vm822_vm1, %v8225_v31, %v8223_v20  ;;  %v2604_v14 = vsel %vm822_vm1, %v8223_v20, %v11617_v45  ;;  %v2762_v19 = vsel %vm822_vm1, %v11618_v41, %v8316_v1  ;;  %v3836_v6 = vmul.f32 %v3829_v16, %v7694_v57  ;;  %v11626_v41 = vld [vmem:[#allocation26_spill] sm:$0xff] }
 0x374   : > { %3776 = vrot.lane.b32.xlu1 %v3756_v0, %s6488_s19  ;;  %3774 = vrot.lane.b32.xlu0 %v3755_v24, %s6488_s19  ;;  %v2502_v29 = vadd.f32 %v2489_v46, %v2422_v26  ;;  %v2503_v2 = vadd.f32 %v2490_v60, %v2423_v22  ;;  %v2695_v51 = vadd.f32 %v2682_v5, %v2615_v38  ;;  %v11621_v0 = vld [vmem:[#allocation67_spill] sm:$0xff]  ;;  %v11624_v5 = vld [vmem:[#allocation72_spill] sm:$0xff] }
 0x375   : > { %v3835_v55 = vmul.f32 %v3825_v53, %v7694_v57  ;;  %v2491_v31 = vsel %vm724_vm0, %v11615_v4, %v11619_v33  ;;  %v2683_v20 = vsel %vm822_vm1, %v8251_v17, %v11620_v7  ;;  %v2684_v30 = vsel %vm822_vm1, %v11620_v7, %v11621_v0  ;;  %v11622_v46 = vld [vmem:[#allocation15_spill] sm:$0xff]  ;;  %v11623_v4 = vld [vmem:[#allocation70_spill] sm:$0xff] }
 0x376   : > { %v8860_v21 = vpop.permute.xlu0 %3692  ;;  %v2876_v16 = vsel %vm921_vm2, %v8335_v27, %v8331_v54  ;;  %v2424_v8 = vadd.f32 %v2411_v11, %v2344_v25  ;;  %v2616_v57 = vadd.f32 %v2603_v58, %v2502_v29  ;;  %v2617_v53 = vadd.f32 %v2604_v14, %v2503_v2  ;;  %v11625_v25 = vld [vmem:[#allocation20_spill] sm:$0xff] }
 0x377   : > { %v2775_v24 = vadd.f32 %v2762_v19, %v2695_v51  ;;  %v2605_v17 = vsel %vm822_vm1, %v11617_v45, %v11622_v46  ;;  %v2763_v60 = vsel %vm822_vm1, %v8316_v1, %v11623_v4  ;;  %v2764_v27 = vsel %vm822_vm1, %v11623_v4, %v11624_v5  ;;  %v11627_v19 = vld [vmem:[#allocation74_spill] sm:$0xff]  ;;  %v8917_v4 = vpop.permute.xlu1 %3690 }
 0x378   : > { %3856 = vrot.lane.b32.xlu1 %v3836_v6, %s6488_s19  ;;  %3854 = vrot.lane.b32.xlu0 %v3835_v55, %s6488_s19  ;;  %v2956_v26 = vsel %vm921_vm2, %v11625_v25, %v8380_v39  ;;  %v2504_v11 = vadd.f32 %v2491_v31, %v2424_v8  ;;  %v2696_v22 = vadd.f32 %v2683_v20, %v2616_v57  ;;  %v11628_v6 = vld [vmem:[#allocation73_spill] sm:$0xff]  ;;  %v11629_v20 = vld [vmem:[#allocation71_spill] sm:$0xff] }
 0x379   : > { %v2697_v38 = vadd.f32 %v2684_v30, %v2617_v53  ;;  %v2889_v58 = vadd.f32 %v2876_v16, %v2775_v24  ;;  %v2685_v45 = vsel %vm822_vm1, %v11621_v0, %v11626_v41  ;;  %v2877_v1 = vsel %vm921_vm2, %v8331_v54, %v11627_v19  ;;  %v11630_v30 = vld [vmem:[#allocation76_spill] sm:$0xff]  ;;  %v11631_v16 = vld [vmem:[#allocation13_spill] sm:$0xff] }
 0x37a   : > { %v8891_v14 = vpop.permute.xlu0 %3764  ;;  %v2878_v29 = vsel %vm921_vm2, %v11627_v19, %v11628_v6  ;;  %v3036_v2 = vsel %vm921_vm2, %v8418_v59, %v8414_v9  ;;  %v2618_v51 = vadd.f32 %v2605_v17, %v2504_v11  ;;  %v2776_v55 = vadd.f32 %v2763_v60, %v2696_v22  ;;  %v11634_v19 = vld [vmem:[#allocation80_spill] sm:$0xff] }
 0x37b   : > { %v2777_v31 = vadd.f32 %v2764_v27, %v2697_v38  ;;  %v2969_v7 = vadd.f32 %v2956_v26, %v2889_v58  ;;  %v2765_v0 = vsel %vm822_vm1, %v11624_v5, %v11629_v20  ;;  %v2957_v54 = vsel %vm921_vm2, %v8380_v39, %v11630_v30  ;;  %v11632_v5 = vld [vmem:[#allocation75_spill] sm:$0xff]  ;;  %v11633_v58 = vld [vmem:[#allocation77_spill] sm:$0xff] }
 0x37c   : > { %v2958_v8 = vsel %vm921_vm2, %v11630_v30, %v11631_v16  ;;  %v3150_v59 = vsel %vm1020_vm3, %v8441_v63, %v8456_v32  ;;  %v2698_v57 = vadd.f32 %v2685_v45, %v2618_v51  ;;  %v2890_v53 = vadd.f32 %v2877_v1, %v2776_v55  ;;  %v11635_v1 = vld [vmem:[#allocation84_spill] sm:$0xff]  ;;  %v11640_v30 = vld [vmem:[#allocation7_spill] sm:$0xff] }
 0x37d   : > { %v2891_v24 = vadd.f32 %v2878_v29, %v2777_v31  ;;  %v3049_v17 = vadd.f32 %v3036_v2, %v2969_v7  ;;  %v2879_v39 = vsel %vm921_vm2, %v11628_v6, %v11632_v5  ;;  %v3037_v27 = vsel %vm921_vm2, %v8414_v9, %v8431_v36  ;;  %v11636_v6 = vld [vmem:[#allocation82_spill] sm:$0xff] }
 0x37e   : > { %v8919_v60 = vpop.permute.xlu0 %3768  ;;  %v3038_v63 = vsel %vm921_vm2, %v8431_v36, %v8424_v61  ;;  %v3230_v25 = vsel %vm1020_vm3, %v8484_v10, %v8479_v12  ;;  %v2778_v26 = vadd.f32 %v2765_v0, %v2698_v57  ;;  %v2970_v11 = vadd.f32 %v2957_v54, %v2890_v53  ;;  %v11639_v0 = vld [vmem:[#allocation78_spill] sm:$0xff]  ;;  %v11641_v54 = vld [vmem:[#allocation81_spill] sm:$0xff] }
 0x37f   : > { %v2971_v22 = vadd.f32 %v2958_v8, %v2891_v24  ;;  %v3163_v38 = vadd.f32 %v3150_v59, %v3049_v17  ;;  %v2959_v45 = vsel %vm921_vm2, %v11631_v16, %v11633_v58  ;;  %v3151_v9 = vsel %vm1020_vm3, %v8456_v32, %v8452_v35  ;;  %v11642_v8 = vld [vmem:[#allocation29_spill] sm:$0xff]  ;;  %v11643_v59 = vld [vmem:[#allocation32_spill] sm:$0xff] }
 0x380   : > { %v3152_v36 = vsel %vm1020_vm3, %v8452_v35, %v11634_v19  ;;  %v3310_v10 = vsel %vm1020_vm3, %v11636_v6, %v11635_v1  ;;  %v2892_v29 = vadd.f32 %v2879_v39, %v2778_v26  ;;  %v3050_v2 = vadd.f32 %v3037_v27, %v2970_v11  ;;  %v11645_v27 = vld [vmem:[#allocation79_spill] sm:$0xff]  ;;  %v11648_v11 = vld [vmem:[#allocation4_spill] sm:$0xff] }
 0x381   : > { %v3051_v51 = vadd.f32 %v3038_v63, %v2971_v22  ;;  %v3243_v55 = vadd.f32 %v3230_v25, %v3163_v38  ;;  %v3039_v32 = vsel %vm921_vm2, %v8424_v61, %v11639_v0  ;;  %v3231_v35 = vsel %vm1020_vm3, %v8479_v12, %v11640_v30  ;;  %v11646_v63 = vld [vmem:[#allocation83_spill] sm:$0xff]  ;;  %v11647_v25 = vld [vmem:[#allocation85_spill] sm:$0xff]  ;;  %v11649_v22 = vld [vmem:[#allocation88_spill] sm:$0xff] }
 0x382   : > { %v8945_v31 = vpop.permute.xlu0 %3772  ;;  %v3232_v16 = vsel %vm1020_vm3, %v11640_v30, %v11641_v54  ;;  %v3424_v57 = vsel %vm11644_vm10, %v11643_v59, %v11642_v8  ;;  %v2972_v53 = vadd.f32 %v2959_v45, %v2892_v29  ;;  %v3164_v24 = vadd.f32 %v3151_v9, %v3050_v2  ;;  %v11651_v2 = vld [vmem:[#allocation8_spill] sm:$0xff]  ;;  %vm11664_vm10 = vmmov %vm11656_vm4 }
 0x383   : > { %11637 = vst [vmem:[#allocation23_spill] sm:$0xff] %v8945_v31  ;;  %v8947_v7 = vpop.permute.xlu1 %3881  ;;  %v3165_v17 = vadd.f32 %v3152_v36, %v3051_v51  ;;  %v3323_v39 = vadd.f32 %v3310_v10, %v3243_v55  ;;  %v3153_v61 = vsel %vm1020_vm3, %v11634_v19, %v11645_v27  ;;  %v3311_v12 = vsel %vm1020_vm3, %v11635_v1, %v11646_v63  ;;  %v11652_v51 = vld [vmem:[#allocation87_spill] sm:$0xff]  ;;  %v11654_v55 = vld [vmem:[#allocation86_spill] sm:$0xff] }
 0x384   : > { %11638 = vst [vmem:[#allocation40_spill] sm:$0xff] %v8947_v7  ;;  %v3312_v26 = vsel %vm1020_vm3, %v11646_v63, %v11647_v25  ;;  %v3504_v38 = vsel %vm11650_vm11, %v11649_v22, %v11648_v11  ;;  %v3052_v45 = vadd.f32 %v3039_v32, %v2972_v53  ;;  %v3244_v9 = vadd.f32 %v3231_v35, %v3164_v24  ;;  %v11657_v53 = vld [vmem:[#allocation28_spill] sm:$0xff]  ;;  %v11658_v24 = vld [vmem:[#allocation90_spill] sm:$0xff]  ;;  %vm11665_vm11 = vmmov %vm11656_vm4 }
 0x385   : > { %v3245_v36 = vadd.f32 %v3232_v16, %v3165_v17  ;;  %v3437_v6 = vadd.f32 %v3424_v57, %v3323_v39  ;;  %v3233_v19 = vsel %vm1020_vm3, %v11641_v54, %v11651_v2  ;;  %v3425_v1 = vsel %vm11653_vm12, %v11642_v8, %v11652_v51  ;;  %vm11666_vm12 = vmmov %vm11661_vm8 }
 0x386   : > { %v3847_v10 = vpop.permute.xlu0 %3846  ;;  %v3426_v30 = vsel %vm11655_vm5, %v11652_v51, %v11654_v55  ;;  %v3584_v32 = vsel %vm11656_vm4, %v8743_v48, %v8745_v50  ;;  %v3166_v35 = vadd.f32 %v3153_v61, %v3052_v45  ;;  %v3324_v16 = vadd.f32 %v3311_v12, %v3244_v9  ;;  %vm11667_vm5 = vmmov %vm11656_vm4 }
 0x387   : > { %v3767_v29 = vpop.permute.xlu1 %3766  ;;  %v3325_v59 = vadd.f32 %v3312_v26, %v3245_v36  ;;  %v3517_v57 = vadd.f32 %v3504_v38, %v3437_v6  ;;  %v3313_v54 = vsel %vm1020_vm3, %v11647_v25, %v11657_v53  ;;  %v3505_v8 = vsel %vm11659_vm6, %v11648_v11, %v11658_v24  ;;  %v11662_v38 = vld [vmem:[#allocation89_spill] sm:$0xff]  ;;  %vm11668_vm4 = vmmov %vm11661_vm8 }
 0x388   : > { %v3506_v17 = vsel %vm11660_vm7, %v11658_v24, %v8654_v40  ;;  %v3698_v48 = vsel %vm11661_vm8, %v8803_v13, %v8876_v56  ;;  %v3246_v39 = vadd.f32 %v3233_v19, %v3166_v35  ;;  %v3438_v61 = vadd.f32 %v3425_v1, %v3324_v16  ;;  %vm11669_vm6 = vmmov %vm11668_vm4 }
 0x389   : > { %v3439_v63 = vadd.f32 %v3426_v30, %v3325_v59  ;;  %v3597_v12 = vadd.f32 %v3584_v32, %v3517_v57  ;;  %v3427_v25 = vsel %vm11663_vm9, %v11654_v55, %v11662_v38  ;;  %v3585_v11 = vsel %vm11664_vm10, %v8745_v50, %v8789_v62  ;;  %vm11670_vm7 = vmmov %vm11667_vm5 }
 0x38a   : > { %v3851_v26 = vpop.permute.xlu0 %3850  ;;  %v3586_v45 = vsel %vm11665_vm11, %v8789_v62, %v8773_v52  ;;  %v3778_v13 = vsel %vm11666_vm12, %v8891_v14, %v3767_v29  ;;  %v3326_v9 = vadd.f32 %v3313_v54, %v3246_v39  ;;  %v3518_v36 = vadd.f32 %v3505_v8, %v3438_v61  ;;  %vm11671_vm8 = vmmov %vm11668_vm4 }
 0x38b   : > { %v3771_v22 = vpop.permute.xlu1 %3770  ;;  %v3519_v6 = vadd.f32 %v3506_v17, %v3439_v63  ;;  %v3711_v19 = vadd.f32 %v3698_v48, %v3597_v12  ;;  %v3507_v51 = vsel %vm11667_vm5, %v8654_v40, %v8645_v44  ;;  %v3699_v1 = vsel %vm11668_vm4, %v8876_v56, %v8833_v43  ;;  %vm11672_vm9 = vmmov %vm11668_vm4 }
 0x38c   : > { %v3700_v50 = vsel %vm11669_vm6, %v8833_v43, %v8917_v4  ;;  %v3440_v62 = vadd.f32 %v3427_v25, %v3326_v9  ;;  %v3598_v55 = vadd.f32 %v3585_v11, %v3518_v36  ;;  %v3587_v16 = vsel %vm11670_vm7, %v8773_v52, %v8831_v28  ;;  %vm11673_vm10 = vmmov %vm11668_vm4 }
 0x38d   : > { %v3599_v30 = vadd.f32 %v3586_v45, %v3519_v6  ;;  %v3791_v14 = vadd.f32 %v3778_v13, %v3711_v19  ;;  %v3779_v40 = vsel %vm11671_vm8, %v3767_v29, %v8919_v60  ;;  %v3780_v56 = vsel %vm11672_vm9, %v8919_v60, %v3771_v22  ;;  %vm11674_vm11 = vmmov %vm11668_vm4 }
 0x38e   : > { %v9017_v32 = vpop.permute.xlu0 %1706  ;;  %v3520_v43 = vadd.f32 %v3507_v51, %v3440_v62  ;;  %v3712_v57 = vadd.f32 %v3699_v1, %v3598_v55  ;;  %v3701_v8 = vsel %vm11674_vm11, %v8917_v4, %v8860_v21  ;;  %vm11676_vm12 = vmmov %vm11668_vm4  ;;  %vm11684_vm7 = vcmask 23552  }
 0x38f   : > { %v3845_v35 = vpop.permute.xlu1 %3844  ;;  %v3713_v54 = vadd.f32 %v3700_v50, %v3599_v30  ;;  %v3781_v60 = vsel %vm11676_vm12, %v3771_v22, %v8945_v31  ;;  %vm11677_vm5 = vmmov %vm11668_vm4 }
 0x390   : > { %v3858_v59 = vsel %vm11673_vm10, %v3845_v35, %v3847_v10  ;;  %v3600_v17 = vadd.f32 %v3587_v16, %v3520_v43  ;;  %v3792_v48 = vadd.f32 %v3779_v40, %v3712_v57  ;;  %vm11681_vm6 = vmmov %vm11668_vm4 }
 0x391   : > { %v3871_v24 = vadd.f32 %v3858_v59, %v3791_v14  ;;  %v3793_v39 = vadd.f32 %v3780_v56, %v3713_v54  ;;  %v11683_v59 = vld [vmem:[#allocation30_spill] sm:$0xff] }
 0x392   : > { %v9033_v29 = vpop.permute.xlu0 %1786  ;;  %v3714_v25 = vadd.f32 %v3701_v8, %v3600_v17  ;;  %v1397_v43 = vsel %vm11684_vm7, %v11683_v59, %v8682_v37  ;;  %vm3939_vm7 = vcmask 390144  }
 0x393   : > { %v9031_v52 = vadd.f32 %v8947_v7, %v3871_v24  ;;  %v3849_v61 = vpop.permute.xlu1 %3848  ;;  %v6449_v24 = vld [vmem:[#allocation2 + $0x20] sm:$0x7] }
 0x394   : > { %v3859_v63 = vsel %vm11677_vm5, %v3847_v10, %v3849_v61  ;;  %v3860_v12 = vsel %vm11668_vm4, %v3849_v61, %v3851_v26  ;;  %v3794_v13 = vadd.f32 %v3781_v60, %v3714_v25  ;;  %v1411_v8 = vmul.f32 %v6449_v24, %v1397_v43  ;;  %v11686_v25 = vld [vmem:[#allocation31_spill] sm:$0xff]  ;;  %v6451_v43 = vld [vmem:[#allocation2 + $0x28] sm:$0x7] }
 0x395   : > { %11675 = vst [vmem:[#allocation35_spill] sm:$0xff] %v9031_v52  ;;  %v11377_v11 = vmax.f32 %v9031_v52, 0.0  ;;  %v3872_v4 = vadd.f32 %v3859_v63, %v3792_v48  ;;  %v3873_v45 = vadd.f32 %v3860_v12, %v3793_v39  ;;  %v11685_v12 = vld [vmem:[#allocation27_spill] sm:$0xff]  ;;  %v1412_v24 = vmul.f32 %v6451_v43, %v8690_v3 }
 0x396   : > { %v9046_v6 = vpop.permute.xlu0 %1866  ;;  %v1438_v39 = vrot.slane %v1411_v8, %v11419_v15  ;;  %v1477_v61 = vrot.slane %v1411_v8, %v6654_v49  ;;  %v11689_v52 = vld [vmem:[#allocation51_spill] sm:$0xff] }
 0x397   : > { %v9041_v9 = vadd.f32 %v8947_v7, %v3872_v4  ;;  %v9044_v36 = vadd.f32 %v8947_v7, %v3873_v45  ;;  %v9048_v19 = vpop.permute.xlu1 %3852  ;;  %3905 = vrot.lane.b32.xlu0 %v11377_v11, %s6501_s11  ;;  %v1523_v45 = vrot.slane %v1411_v8, %v11423_v42 }
 0x398   : > { %11680 = vst [vmem:[#allocation42_spill] sm:$0xff] %v9048_v19  ;;  %v3861_v10 = vsel %vm11681_vm6, %v3851_v26, %v9048_v19  ;;  %v1451_v37 = vmul.f32 %v1438_v39, %v11685_v12  ;;  %v1490_v4 = vmul.f32 %v1477_v61, %v11686_v25  ;;  %vm3932_vm6 = vcmask 1045760  }
 0x399   : > { %11678 = vst [vmem:[#allocation10_spill] sm:$0xff] %v9041_v9  ;;  %11679 = vst [vmem:[#allocation41_spill] sm:$0xff] %v9044_v36  ;;  %v11378_v22 = vmax.f32 %v9041_v9, 0.0  ;;  %v11376_v51 = vmax.f32 %v9044_v36, 0.0  ;;  %v3874_v1 = vadd.f32 %v3861_v10, %v3794_v13  ;;  %v1874_v9 = vsel %vm525_vm14, %v11689_v52, %v9046_v6 }
 0x39a   : > { %v9060_v62 = vpop.permute.xlu0 %2050 }
 0x39b   : > { %v9058_v50 = vadd.f32 %v8947_v7, %v3874_v1  ;;  %v9062_v55 = vpop.permute.xlu1 %1708  ;;  %3907 = vrot.lane.b32.xlu1 %v11378_v22, %s6501_s11  ;;  %3909 = vrot.lane.b32.xlu0 %v11376_v51, %s6501_s11  ;;  %v6450_v1 = vld [vmem:[#allocation2 + $0x30] sm:$0x7]  ;;  %v11687_v51 = vld [vmem:[#allocation33_spill] sm:$0xff] }
 0x39c   : > { %v1413_v59 = vmul.f32 %v6450_v1, %v8716_v34  ;;  %v1536_v11 = vmul.f32 %v1523_v45, %v11687_v51  ;;  %v1442_v34 = vrot.slane %v1412_v24, %v11419_v15  ;;  %v1481_v1 = vrot.slane %v1412_v24, %v6654_v49 }
 0x39d   : > { %11682 = vst [vmem:[#allocation45_spill] sm:$0xff] %v9058_v50  ;;  %v11375_v26 = vmax.f32 %v9058_v50, 0.0  ;;  %v11688_v50 = vld [vmem:[#allocation43_spill] sm:$0xff] }
 0x39e   : > { %v9071_v30 = vpop.permute.xlu0 %2130  ;;  %v1446_v61 = vrot.slane %v1413_v59, %v11419_v15  ;;  %v1485_v8 = vrot.slane %v1413_v59, %v6654_v49  ;;  %v1714_v36 = vsel %vm525_vm14, %v11688_v50, %v9017_v32  ;;  %v1452_v49 = vmul.f32 %v1442_v34, %v11685_v12 }
 0x39f   : > { %v9073_v14 = vpop.permute.xlu1 %1788  ;;  %3911 = vrot.lane.b32.xlu1 %v11375_v26, %s6501_s11  ;;  %v1497_v26 = vadd.f32 %v1490_v4, %v1451_v37  ;;  %v1794_v37 = vsel %vm525_vm14, %v11580_v23, %v9033_v29  ;;  %v1531_v23 = vrot.slane %v1413_v59, %v11423_v42 }
 0x3a0   : > { %v1453_v50 = vmul.f32 %v1446_v61, %v11685_v12  ;;  %v1492_v15 = vmul.f32 %v1485_v8, %v11686_v25  ;;  %v11691_v8 = vld [vmem:[#allocation53_spill] sm:$0xff] }
 0x3a1   : > { %v1543_v3 = vadd.f32 %v1536_v11, %v1497_v26  ;;  %v1491_v11 = vmul.f32 %v1481_v1, %v11686_v25  ;;  %v2138_v12 = vsel %vm625_vm15, %v11691_v8, %v9071_v30  ;;  %v1538_v59 = vmul.f32 %v1531_v23, %v11687_v51  ;;  %v11692_v1 = vld [vmem:[#allocation56_spill] sm:$0xff] }
 0x3a2   : > { %v9078_v35 = vpop.permute.xlu0 %2210  ;;  %v1499_v61 = vadd.f32 %v1492_v15, %v1453_v50  ;;  %v1715_v50 = vsel %vm525_vm14, %v9017_v32, %v9062_v55 }
 0x3a3   : > { %v9080_v16 = vpop.permute.xlu1 %1868  ;;  %v1727_v4 = vadd.f32 %v1714_v36, %v1543_v3  ;;  %v11690_v36 = vld [vmem:[#allocation14_spill] sm:$0xff]  ;;  %v1527_v3 = vrot.slane %v1412_v24, %v11423_v42  ;;  %v1498_v25 = vadd.f32 %v1491_v11, %v1452_v49 }
 0x3a4   : > { %v2058_v26 = vsel %vm625_vm15, %v11690_v36, %v9060_v62 }
 0x3a5   : > { %v1807_v7 = vadd.f32 %v1794_v37, %v1727_v4  ;;  %v2218_v37 = vsel %vm625_vm15, %v11692_v1, %v9078_v35  ;;  %v1537_v42 = vmul.f32 %v1527_v3, %v11687_v51  ;;  %v1545_v4 = vadd.f32 %v1538_v59, %v1499_v61 }
 0x3a6   : > { %v9082_v40 = vpop.permute.xlu0 %2324  ;;  %v1795_v51 = vsel %vm525_vm14, %v9033_v29, %v9073_v14 }
 0x3a7   : > { %v9084_v56 = vpop.permute.xlu1 %2052  ;;  %v1887_v19 = vadd.f32 %v1874_v9, %v1807_v7  ;;  %v1544_v15 = vadd.f32 %v1537_v42, %v1498_v25  ;;  %v1729_v11 = vadd.f32 %v9062_v55, %v1545_v4  ;;  %v1875_v55 = vsel %vm525_vm14, %v9046_v6, %v9080_v16 }
 0x3a8   : > { %vm11693_vm14 = vcmask 580608  }
 0x3a9   : > { %v2071_v34 = vadd.f32 %v2058_v26, %v1887_v19  ;;  %v2332_v19 = vsel %vm724_vm0, %v11611_v18, %v9082_v40  ;;  %v1728_v36 = vadd.f32 %v1715_v50, %v1544_v15  ;;  %v1809_v18 = vadd.f32 %v9073_v14, %v1729_v11 }
 0x3aa   : > { %v9089_v57 = vpop.permute.xlu0 %2404 }
 0x3ab   : > { %v9091_v54 = vpop.permute.xlu1 %2132  ;;  %v2151_v7 = vadd.f32 %v2138_v12, %v2071_v34  ;;  %v2412_v23 = vsel %vm724_vm0, %v11616_v47, %v9089_v57  ;;  %v1808_v61 = vadd.f32 %v1795_v51, %v1728_v36  ;;  %v1889_v47 = vadd.f32 %v9080_v16, %v1809_v18 }
 0x3ac   : > { %v2059_v12 = vsel %vm625_vm15, %v9060_v62, %v9084_v56 }
 0x3ad   : > { %v2231_v49 = vadd.f32 %v2218_v37, %v2151_v7  ;;  %v1888_v34 = vadd.f32 %v1875_v55, %v1808_v61  ;;  %v2073_v1 = vadd.f32 %v9084_v56, %v1889_v47 }
 0x3ae   : > { %v9093_v17 = vpop.permute.xlu0 %2484 }
 0x3af   : > { %v9095_v48 = vpop.permute.xlu1 %2212  ;;  %v2345_v26 = vadd.f32 %v2332_v19, %v2231_v49  ;;  %v2492_v29 = vsel %vm724_vm0, %v11619_v33, %v9093_v17  ;;  %v2139_v33 = vsel %vm625_vm15, %v9071_v30, %v9091_v54  ;;  %v2072_v62 = vadd.f32 %v2059_v12, %v1888_v34 }
 0x3b0   : > { %v2153_v42 = vadd.f32 %v9091_v54, %v2073_v1 }
 0x3b1   : > { %v2425_v8 = vadd.f32 %v2412_v23, %v2345_v26  ;;  %v2152_v7 = vadd.f32 %v2139_v33, %v2072_v62 }
 0x3b2   : > { %v9099_v60 = vpop.permute.xlu0 %2598  ;;  %v2233_v19 = vadd.f32 %v9095_v48, %v2153_v42 }
 0x3b3   : > { %v9101_v63 = vpop.permute.xlu1 %2326  ;;  %v2606_v14 = vsel %vm822_vm1, %v11622_v46, %v9099_v60  ;;  %v2505_v25 = vadd.f32 %v2492_v29, %v2425_v8  ;;  %v2219_v46 = vsel %vm625_vm15, %v9078_v35, %v9095_v48  ;;  %vm11694_vm15 = vmmov %vm11693_vm14 }
 0x3b4   : > { %v2232_v35 = vadd.f32 %v2219_v46, %v2152_v7  ;;  %v2347_v49 = vadd.f32 %v9101_v63, %v2233_v19 }
 0x3b5   : > { %v2619_v37 = vadd.f32 %v2606_v14, %v2505_v25 }
 0x3b6   : > { %v9106_v13 = vpop.permute.xlu0 %2678 }
 0x3b7   : > { %v9108_v10 = vpop.permute.xlu1 %2406  ;;  %v2686_v16 = vsel %vm822_vm1, %v11626_v41, %v9106_v13  ;;  %v2333_v41 = vsel %vm724_vm0, %v9082_v40, %v9101_v63 }
 0x3b8   : > { %v2699_v4 = vadd.f32 %v2686_v16, %v2619_v37  ;;  %v2346_v11 = vadd.f32 %v2333_v41, %v2232_v35  ;;  %v2427_v36 = vadd.f32 %v9108_v10, %v2347_v49 }
 0x3ba   : > { %v9113_v22 = vpop.permute.xlu0 %2758 }
 0x3bb   : > { %v9115_v39 = vpop.permute.xlu1 %2486  ;;  %v2766_v56 = vsel %vm822_vm1, %v11629_v20, %v9113_v22  ;;  %v2413_v20 = vsel %vm724_vm0, %v9089_v57, %v9108_v10 }
 0x3bc   : > { %v2779_v15 = vadd.f32 %v2766_v56, %v2699_v4  ;;  %v2426_v57 = vadd.f32 %v2413_v20, %v2346_v11  ;;  %v2507_v18 = vadd.f32 %v9115_v39, %v2427_v36 }
 0x3be   : > { %v9127_v45 = vpop.permute.xlu0 %2872 }
 0x3bf   : > { %v9129_v43 = vpop.permute.xlu1 %2600  ;;  %v2880_v54 = vsel %vm921_vm2, %v11632_v5, %v9127_v45  ;;  %v2493_v5 = vsel %vm724_vm0, %v9093_v17, %v9115_v39  ;;  %vm11695_vm0 = vmmov %vm11693_vm14 }
 0x3c0   : > { %v2893_v51 = vadd.f32 %v2880_v54, %v2779_v15  ;;  %v2506_v55 = vadd.f32 %v2493_v5, %v2426_v57  ;;  %v2621_v8 = vadd.f32 %v9129_v43, %v2507_v18  ;;  %v11697_v15 = vld [vmem:[#allocation23_spill] sm:$0xff]  ;;  %vm11699_vm9 = vmmov %vm11695_vm0  ;;  %v11700_v5 = vld [vmem:[#allocation42_spill] sm:$0xff] }
 0x3c1   : > { %vm11702_vm11 = vmmov %vm11695_vm0 }
 0x3c2   : > { %v9143_v31 = vpop.permute.xlu0 %2952 }
 0x3c3   : > { %v9145_v52 = vpop.permute.xlu1 %2680  ;;  %v2960_v48 = vsel %vm921_vm2, %v11633_v58, %v9143_v31  ;;  %v2607_v58 = vsel %vm822_vm1, %v9099_v60, %v9129_v43 }
 0x3c4   : > { %v2973_v26 = vadd.f32 %v2960_v48, %v2893_v51  ;;  %v2620_v47 = vadd.f32 %v2607_v58, %v2506_v55  ;;  %v2701_v12 = vadd.f32 %v9145_v52, %v2621_v8 }
 0x3c6   : > { %v9155_v9 = vpop.permute.xlu0 %3032 }
 0x3c7   : > { %v9157_v24 = vpop.permute.xlu1 %2760  ;;  %v3040_v63 = vsel %vm921_vm2, %v11639_v0, %v9155_v9  ;;  %v2687_v0 = vsel %vm822_vm1, %v9106_v13, %v9145_v52 }
 0x3c8   : > { %v3053_v29 = vadd.f32 %v3040_v63, %v2973_v26  ;;  %v2700_v14 = vadd.f32 %v2687_v0, %v2620_v47  ;;  %v2781_v1 = vadd.f32 %v9157_v24, %v2701_v12 }
 0x3ca   : > { %v9172_v3 = vpop.permute.xlu0 %3146 }
 0x3cb   : > { %v9174_v32 = vpop.permute.xlu1 %2874  ;;  %v3154_v10 = vsel %vm1020_vm3, %v11645_v27, %v9172_v3  ;;  %v2767_v27 = vsel %vm822_vm1, %v9113_v22, %v9157_v24  ;;  %vm11696_vm1 = vmmov %vm11668_vm4 }
 0x3cc   : > { %v3167_v60 = vadd.f32 %v3154_v10, %v3053_v29  ;;  %v2780_v33 = vadd.f32 %v2767_v27, %v2700_v14  ;;  %v2895_v16 = vadd.f32 %v9174_v32, %v2781_v1  ;;  %vm11698_vm8 = vmmov %vm11696_vm1  ;;  %v11703_v10 = vld [vmem:[#allocation40_spill] sm:$0xff] }
 0x3cd   : > { %vm11701_vm10 = vmmov %vm11696_vm1 }
 0x3ce   : > { %v9190_v59 = vpop.permute.xlu0 %3226  ;;  %vm11705_vm12 = vmmov %vm11696_vm1 }
 0x3cf   : > { %v2955_v6 = vpop.permute.xlu1 %2954  ;;  %v3234_v39 = vsel %vm1020_vm3, %v11651_v2, %v9190_v59  ;;  %v2881_v2 = vsel %vm921_vm2, %v9127_v45, %v9174_v32  ;;  %vm11706_vm5 = vmmov %vm11696_vm1 }
 0x3d0   : > { %v3247_v34 = vadd.f32 %v3234_v39, %v3167_v60  ;;  %v2894_v37 = vadd.f32 %v2881_v2, %v2780_v33  ;;  %v2975_v56 = vadd.f32 %v2955_v6, %v2895_v16  ;;  %vm11707_vm4 = vmmov %vm11696_vm1 }
 0x3d2   : > { %v9206_v50 = vpop.permute.xlu0 %3306 }
 0x3d3   : > { %v3035_v30 = vpop.permute.xlu1 %3034  ;;  %v3314_v43 = vsel %vm1020_vm3, %v11657_v53, %v9206_v50  ;;  %v2961_v53 = vsel %vm921_vm2, %v9143_v31, %v2955_v6 }
 0x3d4   : > { %v3327_v22 = vadd.f32 %v3314_v43, %v3247_v34  ;;  %v3041_v45 = vsel %vm921_vm2, %v9155_v9, %v3035_v30  ;;  %v2974_v7 = vadd.f32 %v2961_v53, %v2894_v37  ;;  %v3055_v32 = vadd.f32 %v3035_v30, %v2975_v56 }
 0x3d6   : > { %v9222_v23 = vpop.permute.xlu0 %3420  ;;  %v3054_v19 = vadd.f32 %v3041_v45, %v2974_v7 }
 0x3d7   : > { %v3149_v40 = vpop.permute.xlu1 %3148  ;;  %v3428_v52 = vsel %vm11693_vm14, %v11662_v38, %v9222_v23  ;;  %vm11711_vm14 = vmmov %vm11695_vm0 }
 0x3d8   : > { %v3441_v24 = vadd.f32 %v3428_v52, %v3327_v22  ;;  %v3155_v31 = vsel %vm1020_vm3, %v9172_v3, %v3149_v40  ;;  %v3169_v6 = vadd.f32 %v3149_v40, %v3055_v32 }
 0x3d9   : > { %v3168_v49 = vadd.f32 %v3155_v31, %v3054_v19  ;;  %v4058_v31 = vld [vmem:[%s11237_s6 + $0x8] sm:$0xff]  ;;  %v4057_v19 = vld [vmem:[%s11237_s6] sm:$0xff] }
 0x3da   : > { %v3501_v61 = vpop.permute.xlu0 %3500 }
 0x3db   : > { %v3229_v17 = vpop.permute.xlu1 %3228  ;;  %v3508_v62 = vsel %vm11694_vm15, %v8645_v44, %v3501_v61  ;;  %vm11712_vm15 = vmmov %vm11695_vm0 }
 0x3dc   : > { %v3521_v4 = vadd.f32 %v3508_v62, %v3441_v24  ;;  %v3235_v9 = vsel %vm1020_vm3, %v9190_v59, %v3229_v17  ;;  %v3249_v30 = vadd.f32 %v3229_v17, %v3169_v6  ;;  %v4076_v6 = vld [vmem:[%s11237_s6 + $0x98] sm:$0xff] }
 0x3dd   : > { %v3248_v48 = vadd.f32 %v3235_v9, %v3168_v49  ;;  %v4075_v49 = vld [vmem:[%s11237_s6 + $0x90] sm:$0xff] }
 0x3de   : > { %v3581_v25 = vpop.permute.xlu0 %3580 }
 0x3df   : > { %v3309_v13 = vpop.permute.xlu1 %3308  ;;  %v3588_v38 = vsel %vm11695_vm0, %v8831_v28, %v3581_v25 }
 0x3e0   : > { %v3601_v41 = vadd.f32 %v3588_v38, %v3521_v4  ;;  %v3315_v3 = vsel %vm1020_vm3, %v9206_v50, %v3309_v13  ;;  %v3329_v36 = vadd.f32 %v3309_v13, %v3249_v30  ;;  %vm11704_vm3 = vmmov %vm11695_vm0  ;;  %v4088_v30 = vld [vmem:[%s11237_s6 + $0xf8] sm:$0xff] }
 0x3e1   : > { %v3328_v63 = vadd.f32 %v3315_v3, %v3248_v48 }
 0x3e2   : > { %v3695_v42 = vpop.permute.xlu0 %3694 }
 0x3e3   : > { %v3423_v46 = vpop.permute.xlu1 %3422  ;;  %v3702_v44 = vsel %vm11696_vm1, %v8860_v21, %v3695_v42 }
 0x3e4   : > { %v3715_v20 = vadd.f32 %v3702_v44, %v3601_v41  ;;  %v3429_v40 = vsel %vm11699_vm9, %v9222_v23, %v3423_v46  ;;  %v3443_v26 = vadd.f32 %v3423_v46, %v3329_v36  ;;  %v4064_v44 = vld [vmem:[%s11237_s6 + $0x38] sm:$0xff]  ;;  %vm11720_vm9 = vmmov %vm11704_vm3 }
 0x3e5   : > { %v3442_v58 = vadd.f32 %v3429_v40, %v3328_v63  ;;  %v5687_v41 = vpack.c.bf16 %v4064_v44, %v4058_v31  ;;  %v4100_v36 = vld [vmem:[%s11237_s6 + $0x158] sm:$0xff]  ;;  %v4099_v63 = vld [vmem:[%s11237_s6 + $0x150] sm:$0xff] }
 0x3e6   : > { %v3775_v54 = vpop.permute.xlu0 %3774  ;;  %v4159_v31 = vld [vmem:[%s11237_s6 + $0x330] sm:$0xff] }
 0x3e7   : > { %v3503_v35 = vpop.permute.xlu1 %3502  ;;  %v3782_v28 = vsel %vm11698_vm8, %v11697_v15, %v3775_v54  ;;  %5688 = vmatprep.subr.bf16.mxu1 %v5687_v41 }
 0x3e8   : > { %v3795_v11 = vadd.f32 %v3782_v28, %v3715_v20  ;;  %v3509_v18 = vsel %vm11702_vm11, %v3501_v61, %v3503_v35  ;;  %v3523_v29 = vadd.f32 %v3503_v35, %v3443_v26  ;;  %v4070_v35 = vld [vmem:[%s11237_s6 + $0x68] sm:$0xff]  ;;  %v4069_v28 = vld [vmem:[%s11237_s6 + $0x60] sm:$0xff]  ;;  %v4112_v26 = vld [vmem:[%s11237_s6 + $0x1b8] sm:$0xff] }
 0x3e9   : > { %v3522_v8 = vadd.f32 %v3509_v18, %v3442_v58  ;;  %v5691_v15 = vpack.c.bf16 %v4076_v6, %v4070_v35  ;;  %v4082_v20 = vld [vmem:[%s11237_s6 + $0xc8] sm:$0xff]  ;;  %v5693_v3 = vpack.c.bf16 %v4075_v49, %v4069_v28  ;;  %v4171_v49 = vld [vmem:[%s11237_s6 + $0x390] sm:$0xff] }
 0x3ea   : > { %v3855_v21 = vpop.permute.xlu0 %3854  ;;  %v5695_v48 = vpack.c.bf16 %v4088_v30, %v4082_v20  ;;  %v4166_v6 = vld [vmem:[%s11237_s6 + $0x368] sm:$0xff]  ;;  %v4184_v30 = vld [vmem:[%s11237_s6 + $0x3f8] sm:$0xff] }
 0x3eb   : > { %v3583_v51 = vpop.permute.xlu1 %3582  ;;  %v3862_v59 = vsel %vm11701_vm10, %v11700_v5, %v3855_v21  ;;  %v4178_v20 = vld [vmem:[%s11237_s6 + $0x3c8] sm:$0xff]  ;;  %vm11721_vm10 = vmmov %vm11704_vm3 }
 0x3ec   : > { %v3875_v57 = vadd.f32 %v3862_v59, %v3795_v11  ;;  %v3589_v17 = vsel %vm11704_vm3, %v3581_v25, %v3583_v51  ;;  %v3603_v23 = vadd.f32 %v3583_v51, %v3523_v29  ;;  %v4081_v11 = vld [vmem:[%s11237_s6 + $0xc0] sm:$0xff]  ;;  %v4094_v51 = vld [vmem:[%s11237_s6 + $0x128] sm:$0xff] }
 0x3ed   : > { %v3602_v47 = vadd.f32 %v3589_v17, %v3522_v8  ;;  %v5699_v5 = vpack.c.bf16 %v4100_v36, %v4094_v51  ;;  %v4093_v59 = vld [vmem:[%s11237_s6 + $0x120] sm:$0xff]  ;;  %v4118_v29 = vld [vmem:[%s11237_s6 + $0x1e8] sm:$0xff]  ;;  %v4124_v17 = vld [vmem:[%s11237_s6 + $0x218] sm:$0xff] }
 0x3ee   : > { %v9284_v55 = vadd.f32 %v11703_v10, %v3875_v57  ;;  %v4106_v57 = vld [vmem:[%s11237_s6 + $0x188] sm:$0xff]  ;;  %v5701_v18 = vpack.c.bf16 %v4099_v63, %v4093_v59  ;;  %v4189_v59 = vld [vmem:[%s11237_s6 + $0x420] sm:$0xff]  ;;  %v4195_v63 = vld [vmem:[%s11237_s6 + $0x450] sm:$0xff] }
 0x3ef   : > { %v3697_v50 = vpop.permute.xlu1 %3696  ;;  %v5703_v58 = vpack.c.bf16 %v4112_v26, %v4106_v57  ;;  %v4190_v36 = vld [vmem:[%s11237_s6 + $0x428] sm:$0xff]  ;;  %v5733_v57 = vpack.c.bf16 %v4195_v63, %v4189_v59 }
 0x3f0   : > { %v3895_v0 = vmax.f32 %v9284_v55, 0.0  ;;  %v3703_v39 = vsel %vm11705_vm12, %v3695_v42, %v3697_v50  ;;  %v3717_v60 = vadd.f32 %v3697_v50, %v3603_v23  ;;  %v4111_v50 = vld [vmem:[%s11237_s6 + $0x1b0] sm:$0xff]  ;;  %v5707_v23 = vpack.c.bf16 %v4124_v17, %v4118_v29  ;;  %v4202_v26 = vld [vmem:[%s11237_s6 + $0x488] sm:$0xff]  ;;  %v4220_v17 = vld [vmem:[%s11237_s6 + $0x518] sm:$0xff] }
 0x3f1   : > { %v3716_v27 = vadd.f32 %v3703_v39, %v3602_v47  ;;  %v4117_v39 = vld [vmem:[%s11237_s6 + $0x1e0] sm:$0xff]  ;;  %v4123_v47 = vld [vmem:[%s11237_s6 + $0x210] sm:$0xff]  ;;  %v4214_v29 = vld [vmem:[%s11237_s6 + $0x4e8] sm:$0xff] }
 0x3f2   : > { %3913 = vrot.lane.b32.xlu0 %v3895_v0, %s6501_s11  ;;  %vm11724_vm12 = vmmov %vm11720_vm9 }
 0x3f3   : > { %v3777_v61 = vpop.permute.xlu1 %3776 }
 0x3f4   : > { %v3783_v12 = vsel %vm11706_vm5, %v3775_v54, %v3777_v61  ;;  %v3797_v43 = vadd.f32 %v3777_v61, %v3717_v60  ;;  %v4063_v54 = vld [vmem:[%s11237_s6 + $0x30] sm:$0xff]  ;;  %v5709_v61 = vpack.c.bf16 %v4123_v47, %v4117_v39  ;;  %v4213_v39 = vld [vmem:[%s11237_s6 + $0x4e0] sm:$0xff] }
 0x3f5   : > { %v3796_v14 = vadd.f32 %v3783_v12, %v3716_v27  ;;  %v5689_v9 = vpack.c.bf16 %v4063_v54, %v4057_v19  ;;  %v4130_v27 = vld [vmem:[%s11237_s6 + $0x248] sm:$0xff]  ;;  %v4219_v47 = vld [vmem:[%s11237_s6 + $0x510] sm:$0xff] }
 0x3f7   : > { %v3857_v34 = vpop.permute.xlu1 %3856  ;;  %5690 = vmatpush1.bf16.msra.mxu1 %v5689_v9  ;;  %v4172_v9 = vld [vmem:[%s11237_s6 + $0x398] sm:$0xff] }
 0x3f8   : > { %v3863_v25 = vsel %vm11707_vm4, %v3855_v21, %v3857_v34  ;;  %v3877_v13 = vadd.f32 %v3857_v34, %v3797_v43  ;;  %5692 = vmatprep.subr.bf16.mxu1 %v5691_v15  ;;  %v4087_v21 = vld [vmem:[%s11237_s6 + $0xf0] sm:$0xff]  ;;  %v4136_v43 = vld [vmem:[%s11237_s6 + $0x278] sm:$0xff]  ;;  %v4129_v34 = vld [vmem:[%s11237_s6 + $0x240] sm:$0xff]  ;;  %v5723_v28 = vpack.c.bf16 %v4172_v9, %v4166_v6  ;;  %vm4679_vm4 = vcmask 130048  }
 0x3f9   : > { %v3876_v1 = vadd.f32 %v3863_v25, %v3796_v14  ;;  %v5697_v40 = vpack.c.bf16 %v4087_v21, %v4081_v11  ;;  %v5711_v14 = vpack.c.bf16 %v4136_v43, %v4130_v27  ;;  %v4135_v25 = vld [vmem:[%s11237_s6 + $0x270] sm:$0xff]  ;;  %v4165_v15 = vld [vmem:[%s11237_s6 + $0x360] sm:$0xff]  ;;  %v5741_v27 = vpack.c.bf16 %v4219_v47, %v4213_v39  ;;  %v4454_v39 = vld [vmem:[%s11237_s6 + $0xc68] sm:$0xff] }
 0x3fa   : > { %v9295_v2 = vadd.f32 %v11703_v10, %v3877_v13  ;;  %v4177_v11 = vld [vmem:[%s11237_s6 + $0x3c0] sm:$0xff]  ;;  %v4183_v21 = vld [vmem:[%s11237_s6 + $0x3f0] sm:$0xff] }
 0x3fb   : > { %v9298_v52 = vadd.f32 %v11703_v10, %v3876_v1  ;;  %5694 = vmatpush1.bf16.msra.mxu1 %v5693_v3  ;;  %v4105_v10 = vld [vmem:[%s11237_s6 + $0x180] sm:$0xff]  ;;  %v5713_v1 = vpack.c.bf16 %v4135_v25, %v4129_v34  ;;  %v5725_v3 = vpack.c.bf16 %v4171_v49, %v4165_v15  ;;  %v5729_v51 = vpack.c.bf16 %v4183_v21, %v4177_v11  ;;  %v4231_v34 = vld [vmem:[%s11237_s6 + $0x570] sm:$0xff]  ;;  %v4448_v11 = vld [vmem:[%s11237_s6 + $0xc38] sm:$0xff] }
 0x3fc   : > { %v3897_v33 = vmax.f32 %v9295_v2, 0.0  ;;  %5696 = vmatprep.subr.bf16.mxu1 %v5695_v48  ;;  %v5705_v8 = vpack.c.bf16 %v4111_v50, %v4105_v10  ;;  %v5727_v48 = vpack.c.bf16 %v4184_v30, %v4178_v20  ;;  %v4201_v10 = vld [vmem:[%s11237_s6 + $0x480] sm:$0xff]  ;;  %v4207_v50 = vld [vmem:[%s11237_s6 + $0x4b0] sm:$0xff]  ;;  %v4250_v21 = vld [vmem:[%s11237_s6 + $0x608] sm:$0xff] }
 0x3fd   : > { %v3896_v22 = vmax.f32 %v9298_v52, 0.0  ;;  %v11708_v15 = vld [vmem:[#allocation10_spill] sm:$0xff]  ;;  %v4621_v2 = vld [vmem:[%s11237_s6 + $0x11a0] sm:$0xff] }
 0x3fe   : > { %3917 = vrot.lane.b32.xlu0 %v3897_v33, %s6501_s11 }
 0x3ff   : > { %3915 = vrot.lane.b32.xlu1 %v3896_v22, %s6501_s11  ;;  %5698 = vmatpush1.bf16.msra.mxu1 %v5697_v40  ;;  %v4196_v40 = vld [vmem:[%s11237_s6 + $0x458] sm:$0xff] }
 0x400   : > { %5700 = vmatprep.subr.bf16.mxu1 %v5699_v5  ;;  %v5731_v5 = vpack.c.bf16 %v4196_v40, %v4190_v36 }
 0x403   : > { %5702 = vmatpush1.bf16.msra.mxu1 %v5701_v18  ;;  %v4208_v18 = vld [vmem:[%s11237_s6 + $0x4b8] sm:$0xff] }
 0x404   : > { %5704 = vmatprep.subr.bf16.mxu1 %v5703_v58  ;;  %v5735_v58 = vpack.c.bf16 %v4208_v18, %v4202_v26 }
 0x407   : > { %5706 = vmatpush1.bf16.msra.mxu1 %v5705_v8  ;;  %v5737_v8 = vpack.c.bf16 %v4207_v50, %v4201_v10  ;;  %v4441_v10 = vld [vmem:[%s11237_s6 + $0xc00] sm:$0xff]  ;;  %v4447_v50 = vld [vmem:[%s11237_s6 + $0xc30] sm:$0xff] }
 0x408   : > { %5708 = vmatprep.subr.bf16.mxu1 %v5707_v23  ;;  %v5739_v23 = vpack.c.bf16 %v4220_v17, %v4214_v29 }
 0x409   : > { %v3906_v16 = vpop.permute.xlu0 %3905 }
 0x40a   : > { %3933 = vst.msk [vmem:[#allocation2] sm:$0x3f] %vm3932_vm6, %v3906_v16 }
 0x40b   : > { %5710 = vmatpush1.bf16.msra.mxu1 %v5709_v61  ;;  %v4226_v61 = vld [vmem:[%s11237_s6 + $0x548] sm:$0xff] }
 0x40c   : > { %5712 = vmatprep.subr.bf16.mxu1 %v5711_v14  ;;  %v4225_v14 = vld [vmem:[%s11237_s6 + $0x540] sm:$0xff] }
 0x40d   : > { %v3908_v53 = vpop.permute.xlu1 %3907  ;;  %v3910_v62 = vpop.permute.xlu0 %3909 }
 0x40e   : > { %v3919_v37 = vsel %vm1280_vm13, %v3906_v16, %v3908_v53  ;;  %v3920_v24 = vsel %vm1280_vm13, %v3908_v53, %v3910_v62 }
 0x40f   : > { %3934 = vst [vmem:[#allocation2 + $0x8] sm:$0x3f] %v3919_v37  ;;  %3935 = vst [vmem:[#allocation2 + $0x10] sm:$0x3f] %v3920_v24  ;;  %5714 = vmatpush1.bf16.msra.mxu1 %v5713_v1  ;;  %v4142_v37 = vld [vmem:[%s11237_s6 + $0x2a8] sm:$0xff]  ;;  %v4148_v24 = vld [vmem:[%s11237_s6 + $0x2d8] sm:$0xff] }
 0x411   : > { %v9310_v42 = vpop.permute.xlu1 %3911  ;;  %v3941_v7 = vld [vmem:[#allocation2] sm:$0x3f] }
 0x412   : > { %v3921_v46 = vsel %vm1280_vm13, %v3910_v62, %v9310_v42 }
 0x413   : > { %3936 = vst [vmem:[#allocation2 + $0x18] sm:$0x3f] %v3921_v46  ;;  %v5715_v46 = vpack.c.bf16 %v4148_v24, %v4142_v37 }
 0x415   : > { %5716 = vmatprep.subr.bf16.mxu1 %v5715_v46  ;;  %v4238_v46 = vld [vmem:[%s11237_s6 + $0x5a8] sm:$0xff] }
 0x416   : > { %v3942_v56 = vld [vmem:[#allocation2 + $0x8] sm:$0x3f]  ;;  %v3943_v45 = vld [vmem:[#allocation2 + $0x10] sm:$0x3f] }
 0x417   : > { %v6387_v38 = vpack.i.bf16 %v3943_v45, %v3942_v56  ;;  %v4147_v56 = vld [vmem:[%s11237_s6 + $0x2d0] sm:$0xff] }
 0x419   : > { %6388 = vrot.lane.b32.xlu1 %v6387_v38, %s6485_s16 }
 0x41a   : > { %v3944_v4 = vld [vmem:[#allocation2 + $0x18] sm:$0x3f] }
 0x41b   : > { %v6392_v32 = vpack.i.bf16 %v3941_v7, %v3944_v4  ;;  %v4160_v7 = vld [vmem:[%s11237_s6 + $0x338] sm:$0xff]  ;;  %v4153_v4 = vld [vmem:[%s11237_s6 + $0x300] sm:$0xff] }
 0x41c   : > { %v5721_v44 = vpack.c.bf16 %v4159_v31, %v4153_v4 }
 0x41d   : > { %6393 = vrot.lane.b32.xlu0 %v6392_v32, %s6485_s16  ;;  %6398 = vrot.lane.b32.xlu1 %v6387_v38, %s6487_s18 }
 0x421   : > { %6403 = vrot.lane.b32.xlu0 %v6392_v32, %s6487_s18  ;;  %6408 = vrot.lane.b32.xlu1 %v6387_v38, %s6488_s19  ;;  %v4154_v38 = vld [vmem:[%s11237_s6 + $0x308] sm:$0xff] }
 0x425   : > { %6413 = vrot.lane.b32.xlu0 %v6392_v32, %s6488_s19  ;;  %v5719_v32 = vpack.c.bf16 %v4160_v7, %v4154_v38 }
 0x464   : > { %v3914_v60 = vpop.permute.xlu0 %3913 }
 0x465   : > { %v3922_v12 = vsel %vm1280_vm13, %v9310_v42, %v3914_v60  ;;  %v4141_v42 = vld [vmem:[%s11237_s6 + $0x2a0] sm:$0xff] }
 0x466   : > { %3937 = vst [vmem:[#allocation2 + $0x20] sm:$0x3f] %v3922_v12  ;;  %v5717_v45 = vpack.c.bf16 %v4147_v56, %v4141_v42  ;;  %v4244_v56 = vld [vmem:[%s11237_s6 + $0x5d8] sm:$0xff] }
 0x468   : > { %5718 = vmatpush1.bf16.msra.mxu1 %v5717_v45  ;;  %v4237_v45 = vld [vmem:[%s11237_s6 + $0x5a0] sm:$0xff] }
 0x469   : > { %5720 = vmatprep.subr.bf16.mxu1 %v5719_v32 }
 0x46c   : > { %5722 = vmatpush1.bf16.msra.mxu1 %v5721_v44  ;;  %v5747_v44 = vpack.c.bf16 %v4244_v56, %v4238_v46  ;;  %v4465_v56 = vld [vmem:[%s11237_s6 + $0xcc0] sm:$0xff] }
 0x46d   : > { %v3945_v41 = vld [vmem:[#allocation2 + $0x20] sm:$0x3f]  ;;  %5724 = vmatprep.subr.bf16.mxu1 %v5723_v28  ;;  %v11709_v28 = vmax.f32 %v11708_v15, 0.0 }
 0x470   : > { %v3918_v13 = vpop.permute.xlu0 %3917  ;;  %5726 = vmatpush1.bf16.msra.mxu1 %v5725_v3 }
 0x471   : > { %v3916_v16 = vpop.permute.xlu1 %3915  ;;  %5728 = vmatprep.subr.bf16.mxu1 %v5727_v48  ;;  %v4442_v48 = vld [vmem:[%s11237_s6 + $0xc08] sm:$0xff] }
 0x472   : > { %v3923_v53 = vsel %vm1280_vm13, %v3914_v60, %v3916_v16  ;;  %v3924_v62 = vsel %vm1280_vm13, %v3916_v16, %v3918_v13  ;;  %v4232_v60 = vld [vmem:[%s11237_s6 + $0x578] sm:$0xff]  ;;  %vm11710_vm13 = vmmov %vm11695_vm0  ;;  %v5815_v18 = vpack.c.bf16 %v4448_v11, %v4442_v48  ;;  %v4501_v11 = vld [vmem:[%s11237_s6 + $0xde0] sm:$0xff] }
 0x473   : > { %3938 = vst [vmem:[#allocation2 + $0x28] sm:$0x3f] %v3923_v53  ;;  %3940 = vst.msk [vmem:[#allocation2 + $0x30] sm:$0x3f] %vm3939_vm7, %v3924_v62  ;;  %v5743_v43 = vpack.c.bf16 %v4232_v60, %v4226_v61  ;;  %v5745_v53 = vpack.c.bf16 %v4231_v34, %v4225_v14  ;;  %v4453_v34 = vld [vmem:[%s11237_s6 + $0xc60] sm:$0xff] }
 0x474   : > { %5730 = vmatpush1.bf16.msra.mxu1 %v5729_v51  ;;  %v11713_v51 = vld [vmem:[#allocation35_spill] sm:$0xff]  ;;  %vm11717_vm0 = vmmov %vm11696_vm1  ;;  %5816 = vmatprep.subr.bf16.mxu0 %v5815_v18  ;;  %v4526_v18 = vld [vmem:[%s11237_s6 + $0xea8] sm:$0xff] }
 0x475   : > { %5732 = vmatprep.subr.bf16.mxu1 %v5731_v5  ;;  %v11714_v36 = vmax.f32 %v11713_v51, 0.0  ;;  %v11715_v5 = vld [vmem:[#allocation41_spill] sm:$0xff]  ;;  %vm11718_vm1 = vmmov %vm11717_vm0 }
 0x476   : > { %v11716_v59 = vmax.f32 %v11715_v5, 0.0  ;;  %vm11719_vm8 = vmmov %vm11717_vm0 }
 0x477   : > { %vm11722_vm11 = vmmov %vm11717_vm0 }
 0x478   : > { %5734 = vmatpush1.bf16.msra.mxu1 %v5733_v57  ;;  %vm11723_vm3 = vmmov %vm11717_vm0 }
 0x479   : > { %5736 = vmatprep.subr.bf16.mxu1 %v5735_v58  ;;  %v4256_v58 = vld [vmem:[%s11237_s6 + $0x638] sm:$0xff]  ;;  %vm11727_vm5 = vmmov %vm11717_vm0 }
 0x47a   : > { %v3947_v19 = vld [vmem:[#allocation2 + $0x30] sm:$0x3f]  ;;  %v3946_v54 = vld [vmem:[#allocation2 + $0x28] sm:$0x3f] }
 0x47b   : > { %3967 = vrot.lane.b32.xlu0 %v3947_v19, %s6485_s16  ;;  %v6417_v35 = vpack.i.bf16 %v3945_v41, %v3946_v54 }
 0x47c   : > { %5738 = vmatpush1.bf16.msra.mxu1 %v5737_v8  ;;  %v5751_v8 = vpack.c.bf16 %v4256_v58, %v4250_v21  ;;  %v4507_v21 = vld [vmem:[%s11237_s6 + $0xe10] sm:$0xff]  ;;  %v4532_v58 = vld [vmem:[%s11237_s6 + $0xed8] sm:$0xff] }
 0x47d   : > { %6418 = vrot.lane.b32.xlu1 %v6417_v35, %s6485_s16  ;;  %5740 = vmatprep.subr.bf16.mxu1 %v5739_v23  ;;  %v5817_v23 = vpack.c.bf16 %v4447_v50, %v4441_v10  ;;  %v5837_v51 = vpack.c.bf16 %v4507_v21, %v4501_v11  ;;  %v5843_v10 = vpack.c.bf16 %v4532_v58, %v4526_v18  ;;  %v4525_v50 = vld [vmem:[%s11237_s6 + $0xea0] sm:$0xff]  ;;  %v4616_v11 = vld [vmem:[%s11237_s6 + $0x1178] sm:$0xff] }
 0x47f   : > { %4001 = vrot.lane.b32.xlu0 %v3947_v19, %s6487_s18  ;;  %5818 = vmatpush1.bf16.msra.mxu0 %v5817_v23  ;;  %v4538_v23 = vld [vmem:[%s11237_s6 + $0xf08] sm:$0xff] }
 0x480   : > { %5742 = vmatpush1.bf16.msra.mxu1 %v5741_v27 }
 0x481   : > { %6423 = vrot.lane.b32.xlu1 %v6417_v35, %s6487_s18  ;;  %5744 = vmatprep.subr.bf16.mxu1 %v5743_v43 }
 0x483   : > { %4035 = vrot.lane.b32.xlu0 %v3947_v19, %s6488_s19  ;;  %v4243_v19 = vld [vmem:[%s11237_s6 + $0x5d0] sm:$0xff] }
 0x484   : > { %5746 = vmatpush1.bf16.msra.mxu1 %v5745_v53  ;;  %v5749_v9 = vpack.c.bf16 %v4243_v19, %v4237_v45  ;;  %v4477_v19 = vld [vmem:[%s11237_s6 + $0xd20] sm:$0xff] }
 0x485   : > { %6428 = vrot.lane.b32.xlu1 %v6417_v35, %s6488_s19  ;;  %5748 = vmatprep.subr.bf16.mxu1 %v5747_v44 }
 0x488   : > { %5750 = vmatpush1.bf16.msra.mxu1 %v5749_v9  ;;  %v4496_v9 = vld [vmem:[%s11237_s6 + $0xdb8] sm:$0xff] }
 0x489   : > { %5752 = vmatprep.subr.bf16.mxu1 %v5751_v8 }
 0x48b   : > { %v6389_v12 = vpop.permute.xlu1 %6388 }
 0x48c   : > { %v6391_v25 = vunpack.i.h.bf16 %v6389_v12  ;;  %v6390_v13 = vunpack.i.l.bf16 %v6389_v12  ;;  %v4460_v12 = vld [vmem:[%s11237_s6 + $0xc98] sm:$0xff] }
 0x48d   : > { %v5819_v14 = vpack.c.bf16 %v4460_v12, %v4454_v39  ;;  %v4544_v39 = vld [vmem:[%s11237_s6 + $0xf38] sm:$0xff] }
 0x48e   : > { %v3970_v38 = vsel %vm921_vm2, %v6390_v13, %v6391_v25 }
 0x48f   : > { %v6399_v1 = vpop.permute.xlu1 %6398  ;;  %v9510_v16 = vpop.permute.xlu0 %6393  ;;  %v3983_v49 = vmax.f32 %v11709_v28, %v3970_v38  ;;  %5820 = vmatprep.subr.bf16.mxu0 %v5819_v14  ;;  %v4471_v38 = vld [vmem:[%s11237_s6 + $0xcf0] sm:$0xff]  ;;  %v4489_v28 = vld [vmem:[%s11237_s6 + $0xd80] sm:$0xff] }
 0x490   : > { %v6396_v62 = vunpack.i.h.bf16 %v9510_v16  ;;  %v6395_v37 = vunpack.i.l.bf16 %v9510_v16  ;;  %v6401_v24 = vunpack.i.h.bf16 %v6399_v1  ;;  %v6400_v42 = vunpack.i.l.bf16 %v6399_v1 }
 0x492   : > { %v3969_v7 = vsel %vm921_vm2, %v6396_v62, %v6390_v13  ;;  %v3971_v4 = vsel %vm921_vm2, %v6391_v25, %v6395_v37  ;;  %v4004_v20 = vsel %vm11710_vm13, %v6400_v42, %v6401_v24  ;;  %v4459_v25 = vld [vmem:[%s11237_s6 + $0xc90] sm:$0xff] }
 0x493   : > { %v6409_v32 = vpop.permute.xlu1 %6408  ;;  %v9528_v31 = vpop.permute.xlu0 %6403  ;;  %v3982_v40 = vmax.f32 %v11714_v36, %v3969_v7  ;;  %v3984_v63 = vmax.f32 %v11716_v59, %v3971_v4  ;;  %v4017_v47 = vmax.f32 %v3983_v49, %v4004_v20  ;;  %v5821_v62 = vpack.c.bf16 %v4459_v25, %v4453_v34  ;;  %v4478_v4 = vld [vmem:[%s11237_s6 + $0xd28] sm:$0xff]  ;;  %v4495_v49 = vld [vmem:[%s11237_s6 + $0xdb0] sm:$0xff]  ;;  %v4513_v59 = vld [vmem:[%s11237_s6 + $0xe40] sm:$0xff] }
 0x494   : > { %v6411_v41 = vunpack.i.h.bf16 %v6409_v32  ;;  %v6410_v54 = vunpack.i.l.bf16 %v6409_v32  ;;  %v6406_v35 = vunpack.i.h.bf16 %v9528_v31  ;;  %v6405_v6 = vunpack.i.l.bf16 %v9528_v31  ;;  %v4484_v32 = vld [vmem:[%s11237_s6 + $0xd58] sm:$0xff]  ;;  %v4514_v36 = vld [vmem:[%s11237_s6 + $0xe48] sm:$0xff]  ;;  %v4549_v34 = vld [vmem:[%s11237_s6 + $0xf60] sm:$0xff] }
 0x495   : > { %5822 = vmatpush1.bf16.msra.mxu0 %v5821_v62  ;;  %v5825_v7 = vpack.c.bf16 %v4471_v38, %v4465_v56  ;;  %v5827_v44 = vpack.c.bf16 %v4484_v32, %v4478_v4  ;;  %v5833_v20 = vpack.c.bf16 %v4495_v49, %v4489_v28  ;;  %v4555_v25 = vld [vmem:[%s11237_s6 + $0xf90] sm:$0xff]  ;;  %v4574_v56 = vld [vmem:[%s11237_s6 + $0x1028] sm:$0xff]  ;;  %v4604_v28 = vld [vmem:[%s11237_s6 + $0x1118] sm:$0xff] }
 0x496   : > { %v4003_v30 = vsel %vm11711_vm14, %v6406_v35, %v6400_v42  ;;  %v4005_v3 = vsel %vm11712_vm15, %v6401_v24, %v6405_v6  ;;  %v4038_v57 = vsel %vm11717_vm0, %v6410_v54, %v6411_v41  ;;  %v4466_v24 = vld [vmem:[%s11237_s6 + $0xcc8] sm:$0xff]  ;;  %v4472_v42 = vld [vmem:[%s11237_s6 + $0xcf8] sm:$0xff]  ;;  %v4579_v4 = vld [vmem:[%s11237_s6 + $0x1050] sm:$0xff] }
 0x497   : > { %v9556_v26 = vpop.permute.xlu0 %6413  ;;  %v4016_v61 = vmax.f32 %v3982_v40, %v4003_v30  ;;  %v4018_v60 = vmax.f32 %v3984_v63, %v4005_v3  ;;  %v4051_v13 = vmax.f32 %v4017_v47, %v4038_v57  ;;  %v5823_v46 = vpack.c.bf16 %v4472_v42, %v4466_v24  ;;  %v4490_v35 = vld [vmem:[%s11237_s6 + $0xd88] sm:$0xff]  ;;  %v4508_v3 = vld [vmem:[%s11237_s6 + $0xe18] sm:$0xff]  ;;  %v4519_v63 = vld [vmem:[%s11237_s6 + $0xe70] sm:$0xff] }
 0x498   : > { %v6416_v29 = vunpack.i.h.bf16 %v9556_v26  ;;  %v6415_v17 = vunpack.i.l.bf16 %v9556_v26  ;;  %v5831_v15 = vpack.c.bf16 %v4496_v9, %v4490_v35  ;;  %v4502_v30 = vld [vmem:[%s11237_s6 + $0xde8] sm:$0xff]  ;;  %v4520_v40 = vld [vmem:[%s11237_s6 + $0xe78] sm:$0xff]  ;;  %v5841_v57 = vpack.c.bf16 %v4519_v63, %v4513_v59  ;;  %v4561_v24 = vld [vmem:[%s11237_s6 + $0xfc0] sm:$0xff] }
 0x499   : > { %5824 = vmatprep.subr.bf16.mxu0 %v5823_v46  ;;  %v5835_v48 = vpack.c.bf16 %v4508_v3, %v4502_v30  ;;  %v5839_v5 = vpack.c.bf16 %v4520_v40, %v4514_v36  ;;  %v5847_v47 = vpack.c.bf16 %v4544_v39, %v4538_v23  ;;  %v4567_v42 = vld [vmem:[%s11237_s6 + $0xff0] sm:$0xff]  ;;  %v4609_v36 = vld [vmem:[%s11237_s6 + $0x1140] sm:$0xff]  ;;  %v4262_v26 = vld [vmem:[%s11237_s6 + $0x668] sm:$0xff] }
 0x49a   : > { %v4037_v27 = vsel %vm11718_vm1, %v6416_v29, %v6410_v54  ;;  %v4039_v43 = vsel %vm11719_vm8, %v6411_v41, %v6415_v17  ;;  %v4483_v41 = vld [vmem:[%s11237_s6 + $0xd50] sm:$0xff]  ;;  %5826 = vmatpush1.bf16.msra.mxu0 %v5825_v7  ;;  %v5857_v46 = vpack.c.bf16 %v4567_v42, %v4561_v24  ;;  %v4573_v7 = vld [vmem:[%s11237_s6 + $0x1020] sm:$0xff] }
 0x49b   : > { %v4050_v1 = vmax.f32 %v4016_v61, %v4037_v27  ;;  %v4052_v53 = vmax.f32 %v4018_v60, %v4039_v43  ;;  %v5829_v54 = vpack.c.bf16 %v4483_v41, %v4477_v19  ;;  %5828 = vmatprep.subr.bf16.mxu0 %v5827_v44  ;;  %v4531_v29 = vld [vmem:[%s11237_s6 + $0xed0] sm:$0xff]  ;;  %v4537_v61 = vld [vmem:[%s11237_s6 + $0xf00] sm:$0xff]  ;;  %v4550_v27 = vld [vmem:[%s11237_s6 + $0xf68] sm:$0xff]  ;;  %v5861_v32 = vpack.c.bf16 %v4579_v4, %v4573_v7 }
 0x49c   : > { %v5845_v8 = vpack.c.bf16 %v4531_v29, %v4525_v50  ;;  %v4543_v60 = vld [vmem:[%s11237_s6 + $0xf30] sm:$0xff]  ;;  %v4556_v43 = vld [vmem:[%s11237_s6 + $0xf98] sm:$0xff]  ;;  %v4586_v44 = vld [vmem:[%s11237_s6 + $0x1088] sm:$0xff] }
 0x49d   : > { %4652 = vrot.lane.b32.xlu0 %v4050_v1, %s6508_s13  ;;  %v6432_v45 = vpack.i.bf16 %v4052_v53, %v4051_v13  ;;  %v5849_v12 = vpack.c.bf16 %v4543_v60, %v4537_v61  ;;  %v5851_v14 = vpack.c.bf16 %v4556_v43, %v4550_v27  ;;  %v5853_v13 = vpack.c.bf16 %v4555_v25, %v4549_v34  ;;  %v4562_v1 = vld [vmem:[%s11237_s6 + $0xfc8] sm:$0xff]  ;;  %v4568_v53 = vld [vmem:[%s11237_s6 + $0xff8] sm:$0xff]  ;;  %v4591_v35 = vld [vmem:[%s11237_s6 + $0x10b0] sm:$0xff] }
 0x49e   : > { %5830 = vmatpush1.bf16.msra.mxu0 %v5829_v54  ;;  %v5855_v62 = vpack.c.bf16 %v4568_v53, %v4562_v1  ;;  %v4592_v19 = vld [vmem:[%s11237_s6 + $0x10b8] sm:$0xff]  ;;  %v4585_v54 = vld [vmem:[%s11237_s6 + $0x1080] sm:$0xff]  ;;  %v4603_v30 = vld [vmem:[%s11237_s6 + $0x1110] sm:$0xff] }
 0x49f   : > { %6433 = vrot.lane.b32.xlu1 %v6432_v45, %s6508_s13  ;;  %5832 = vmatprep.subr.bf16.mxu0 %v5831_v15  ;;  %v4580_v45 = vld [vmem:[%s11237_s6 + $0x1058] sm:$0xff]  ;;  %v5863_v41 = vpack.c.bf16 %v4592_v19, %v4586_v44  ;;  %v5865_v9 = vpack.c.bf16 %v4591_v35, %v4585_v54  ;;  %v4598_v15 = vld [vmem:[%s11237_s6 + $0x10e8] sm:$0xff]  ;;  %v4615_v40 = vld [vmem:[%s11237_s6 + $0x1170] sm:$0xff] }
 0x4a0   : > { %v5859_v38 = vpack.c.bf16 %v4580_v45, %v4574_v56  ;;  %v5867_v49 = vpack.c.bf16 %v4604_v28, %v4598_v15  ;;  %v4628_v50 = vld [vmem:[%s11237_s6 + $0x11d8] sm:$0xff]  ;;  %v4634_v25 = vld [vmem:[%s11237_s6 + $0x1208] sm:$0xff]  ;;  %v4249_v31 = vld [vmem:[%s11237_s6 + $0x600] sm:$0xff] }
 0x4a1   : > { %v11725_v4 = vld [vmem:[#allocation45_spill] sm:$0xff] }
 0x4a2   : > { %5834 = vmatpush1.bf16.msra.mxu0 %v5833_v20  ;;  %v4597_v20 = vld [vmem:[%s11237_s6 + $0x10e0] sm:$0xff] }
 0x4a3   : > { %5836 = vmatprep.subr.bf16.mxu0 %v5835_v48  ;;  %v5869_v3 = vpack.c.bf16 %v4603_v30, %v4597_v20  ;;  %v4610_v48 = vld [vmem:[%s11237_s6 + $0x1148] sm:$0xff] }
 0x4a6   : > { %5838 = vmatpush1.bf16.msra.mxu0 %v5837_v51  ;;  %v5871_v51 = vpack.c.bf16 %v4616_v11, %v4610_v48  ;;  %v4267_v48 = vld [vmem:[%s11237_s6 + $0x690] sm:$0xff]  ;;  %v4274_v11 = vld [vmem:[%s11237_s6 + $0x6c8] sm:$0xff] }
 0x4a7   : > { %5840 = vmatprep.subr.bf16.mxu0 %v5839_v5  ;;  %v5873_v5 = vpack.c.bf16 %v4615_v40, %v4609_v36  ;;  %v4273_v40 = vld [vmem:[%s11237_s6 + $0x6c0] sm:$0xff] }
 0x4aa   : > { %5842 = vmatpush1.bf16.msra.mxu0 %v5841_v57 }
 0x4ab   : > { %5844 = vmatprep.subr.bf16.mxu0 %v5843_v10  ;;  %v4622_v10 = vld [vmem:[%s11237_s6 + $0x11a8] sm:$0xff] }
 0x4ac   : > { %v5875_v39 = vpack.c.bf16 %v4628_v50, %v4622_v10  ;;  %v4291_v10 = vld [vmem:[%s11237_s6 + $0x750] sm:$0xff]  ;;  %v4298_v50 = vld [vmem:[%s11237_s6 + $0x788] sm:$0xff] }
 0x4ae   : > { %5846 = vmatpush1.bf16.msra.mxu0 %v5845_v8 }
 0x4af   : > { %5848 = vmatprep.subr.bf16.mxu0 %v5847_v47 }
 0x4b2   : > { %5850 = vmatpush1.bf16.msra.mxu0 %v5849_v12 }
 0x4b3   : > { %5852 = vmatprep.subr.bf16.mxu0 %v5851_v14 }
 0x4b6   : > { %5854 = vmatpush1.bf16.msra.mxu0 %v5853_v13  ;;  %v4640_v13 = vld [vmem:[%s11237_s6 + $0x1238] sm:$0xff] }
 0x4b7   : > { %5856 = vmatprep.subr.bf16.mxu0 %v5855_v62  ;;  %v5879_v24 = vpack.c.bf16 %v4640_v13, %v4634_v25  ;;  %v4321_v13 = vld [vmem:[%s11237_s6 + $0x840] sm:$0xff] }
 0x4ba   : > { %5858 = vmatpush1.bf16.msra.mxu0 %v5857_v46 }
 0x4bb   : > { %5860 = vmatprep.subr.bf16.mxu0 %v5859_v38 }
 0x4be   : > { %5862 = vmatpush1.bf16.msra.mxu0 %v5861_v32  ;;  %v11726_v32 = vmax.f32 %v11725_v4, 0.0  ;;  %v4364_v4 = vld [vmem:[%s11237_s6 + $0x998] sm:$0xff] }
 0x4bf   : > { %5864 = vmatprep.subr.bf16.mxu0 %v5863_v41 }
 0x4c2   : > { %5866 = vmatpush1.bf16.msra.mxu0 %v5865_v9 }
 0x4c3   : > { %5868 = vmatprep.subr.bf16.mxu0 %v5867_v49 }
 0x4c6   : > { %5870 = vmatpush1.bf16.msra.mxu0 %v5869_v3  ;;  %v4261_v3 = vld [vmem:[%s11237_s6 + $0x660] sm:$0xff] }
 0x4c7   : > { %5872 = vmatprep.subr.bf16.mxu0 %v5871_v51  ;;  %v5757_v51 = vpack.c.bf16 %v4267_v48, %v4261_v3  ;;  %v4381_v3 = vld [vmem:[%s11237_s6 + $0xa20] sm:$0xff]  ;;  %v4387_v48 = vld [vmem:[%s11237_s6 + $0xa50] sm:$0xff] }
 0x4ca   : > { %5874 = vmatpush1.bf16.msra.mxu0 %v5873_v5  ;;  %v4279_v5 = vld [vmem:[%s11237_s6 + $0x6f0] sm:$0xff] }
 0x4cb   : > { %5876 = vmatprep.subr.bf16.mxu0 %v5875_v39  ;;  %v4297_v39 = vld [vmem:[%s11237_s6 + $0x780] sm:$0xff] }
 0x4ed   : > { %v3968_v21 = vpop.permute.xlu0 %3967 }
 0x4ee   : > { %v3988_v58 = vmax.f32 %v3897_v33, %v3968_v21  ;;  %v4627_v33 = vld [vmem:[%s11237_s6 + $0x11d0] sm:$0xff] }
 0x4ef   : > { %v6419_v59 = vpop.permute.xlu1 %6418  ;;  %v5877_v12 = vpack.c.bf16 %v4627_v33, %v4621_v2  ;;  %v4303_v2 = vld [vmem:[%s11237_s6 + $0x7b0] sm:$0xff]  ;;  %v4310_v33 = vld [vmem:[%s11237_s6 + $0x7e8] sm:$0xff] }
 0x4f0   : > { %v6421_v63 = vunpack.i.h.bf16 %v6419_v59  ;;  %v6420_v57 = vunpack.i.l.bf16 %v6419_v59  ;;  %v4286_v59 = vld [vmem:[%s11237_s6 + $0x728] sm:$0xff] }
 0x4f1   : > { %v4002_v18 = vpop.permute.xlu0 %4001  ;;  %5878 = vmatpush1.bf16.msra.mxu0 %v5877_v12  ;;  %v4309_v12 = vld [vmem:[%s11237_s6 + $0x7e0] sm:$0xff] }
 0x4f2   : > { %v3973_v29 = vsel %vm921_vm2, %v6421_v63, %v6420_v57  ;;  %v3974_v8 = vsel %vm921_vm2, %v6420_v57, %v3968_v21  ;;  %v4022_v47 = vmax.f32 %v3988_v58, %v4002_v18  ;;  %5880 = vmatprep.subr.bf16.mxu0 %v5879_v24  ;;  %v3972_v38 = vsel %vm921_vm2, %v6395_v37, %v6421_v63  ;;  %v4280_v21 = vld [vmem:[%s11237_s6 + $0x6f8] sm:$0xff]  ;;  %v4285_v58 = vld [vmem:[%s11237_s6 + $0x720] sm:$0xff] }
 0x4f3   : > { %v6424_v23 = vpop.permute.xlu1 %6423  ;;  %v3986_v1 = vmax.f32 %v3895_v0, %v3973_v29  ;;  %v3987_v53 = vmax.f32 %v3896_v22, %v3974_v8  ;;  %v3985_v44 = vmax.f32 %v11726_v32, %v3972_v38  ;;  %vm4666_vm2 = vcmask 1022976   ;;  %v4292_v63 = vld [vmem:[%s11237_s6 + $0x758] sm:$0xff] }
 0x4f4   : > { %v6426_v61 = vunpack.i.h.bf16 %v6424_v23  ;;  %v6425_v60 = vunpack.i.l.bf16 %v6424_v23  ;;  %v5759_v36 = vpack.c.bf16 %v4280_v21, %v4274_v11  ;;  %v5761_v57 = vpack.c.bf16 %v4279_v5, %v4273_v40  ;;  %v4304_v29 = vld [vmem:[%s11237_s6 + $0x7b8] sm:$0xff]  ;;  %v4394_v11 = vld [vmem:[%s11237_s6 + $0xa88] sm:$0xff]  ;;  %v4393_v40 = vld [vmem:[%s11237_s6 + $0xa80] sm:$0xff] }
 0x4f5   : > { %v4036_v27 = vpop.permute.xlu0 %4035  ;;  %v5765_v8 = vpack.c.bf16 %v4291_v10, %v4285_v58  ;;  %v5767_v23 = vpack.c.bf16 %v4304_v29, %v4298_v50  ;;  %v4352_v38 = vld [vmem:[%s11237_s6 + $0x938] sm:$0xff]  ;;  %v4399_v5 = vld [vmem:[%s11237_s6 + $0xab0] sm:$0xff]  ;;  %v4405_v58 = vld [vmem:[%s11237_s6 + $0xae0] sm:$0xff] }
 0x4f6   : > { %v4007_v43 = vsel %vm11720_vm9, %v6426_v61, %v6425_v60  ;;  %v4008_v14 = vsel %vm11721_vm10, %v6425_v60, %v4002_v18  ;;  %v4056_v34 = vmax.f32 %v4022_v47, %v4036_v27  ;;  %v4006_v22 = vsel %vm11724_vm12, %v6405_v6, %v6426_v61  ;;  %v4255_v6 = vld [vmem:[%s11237_s6 + $0x630] sm:$0xff]  ;;  %v4316_v47 = vld [vmem:[%s11237_s6 + $0x818] sm:$0xff]  ;;  %v4418_v50 = vld [vmem:[%s11237_s6 + $0xb48] sm:$0xff] }
 0x4f7   : > { %v6429_v62 = vpop.permute.xlu1 %6428  ;;  %v4020_v56 = vmax.f32 %v3986_v1, %v4007_v43  ;;  %v4021_v45 = vmax.f32 %v3987_v53, %v4008_v14  ;;  %v4019_v41 = vmax.f32 %v3985_v44, %v4006_v22  ;;  %v5753_v28 = vpack.c.bf16 %v4255_v6, %v4249_v31  ;;  %v4322_v43 = vld [vmem:[%s11237_s6 + $0x848] sm:$0xff]  ;;  %v4328_v14 = vld [vmem:[%s11237_s6 + $0x878] sm:$0xff]  ;;  %v4327_v1 = vld [vmem:[%s11237_s6 + $0x870] sm:$0xff] }
 0x4f8   : > { %v6431_v42 = vunpack.i.h.bf16 %v6429_v62  ;;  %v6430_v46 = vunpack.i.l.bf16 %v6429_v62  ;;  %4664 = vrot.lane.b32.xlu0 %v4056_v34, %s6508_s13  ;;  %v5763_v18 = vpack.c.bf16 %v4292_v63, %v4286_v59  ;;  %v5769_v61 = vpack.c.bf16 %v4303_v2, %v4297_v39  ;;  %v4334_v53 = vld [vmem:[%s11237_s6 + $0x8a8] sm:$0xff]  ;;  %v4340_v62 = vld [vmem:[%s11237_s6 + $0x8d8] sm:$0xff]  ;;  %v4411_v10 = vld [vmem:[%s11237_s6 + $0xb10] sm:$0xff] }
 0x4f9   : > { %v5771_v60 = vpack.c.bf16 %v4316_v47, %v4310_v33  ;;  %v5775_v25 = vpack.c.bf16 %v4328_v14, %v4322_v43  ;;  %v5777_v24 = vpack.c.bf16 %v4327_v1, %v4321_v13  ;;  %v4358_v22 = vld [vmem:[%s11237_s6 + $0x968] sm:$0xff]  ;;  %v4400_v21 = vld [vmem:[%s11237_s6 + $0xab8] sm:$0xff]  ;;  %v4417_v39 = vld [vmem:[%s11237_s6 + $0xb40] sm:$0xff] }
 0x4fa   : > { %v4041_v7 = vsel %vm11722_vm11, %v6431_v42, %v6430_v46  ;;  %v4042_v55 = vsel %vm11723_vm3, %v6430_v46, %v4036_v27  ;;  %v4040_v16 = vsel %vm11727_vm5, %v6415_v17, %v6431_v42  ;;  %v4268_v17 = vld [vmem:[%s11237_s6 + $0x698] sm:$0xff]  ;;  %v4315_v27 = vld [vmem:[%s11237_s6 + $0x810] sm:$0xff]  ;;  %v5779_v42 = vpack.c.bf16 %v4340_v62, %v4334_v53  ;;  %v4333_v46 = vld [vmem:[%s11237_s6 + $0x8a0] sm:$0xff] }
 0x4fb   : > { %v4054_v0 = vmax.f32 %v4020_v56, %v4041_v7  ;;  %v4055_v52 = vmax.f32 %v4021_v45, %v4042_v55  ;;  %v4053_v37 = vmax.f32 %v4019_v41, %v4040_v16  ;;  %v5755_v30 = vpack.c.bf16 %v4268_v17, %v4262_v26  ;;  %v4339_v56 = vld [vmem:[%s11237_s6 + $0x8d0] sm:$0xff]  ;;  %v4346_v45 = vld [vmem:[%s11237_s6 + $0x908] sm:$0xff]  ;;  %v4369_v26 = vld [vmem:[%s11237_s6 + $0x9c0] sm:$0xff] }
 0x4fc   : > { %v5773_v34 = vpack.c.bf16 %v4315_v27, %v4309_v12  ;;  %v5781_v7 = vpack.c.bf16 %v4339_v56, %v4333_v46  ;;  %v5783_v55 = vpack.c.bf16 %v4352_v38, %v4346_v45  ;;  %v5787_v44 = vpack.c.bf16 %v4364_v4, %v4358_v22  ;;  %v4363_v16 = vld [vmem:[%s11237_s6 + $0x990] sm:$0xff]  ;;  %v4370_v41 = vld [vmem:[%s11237_s6 + $0x9c8] sm:$0xff]  ;;  %v4412_v63 = vld [vmem:[%s11237_s6 + $0xb18] sm:$0xff] }
 0x4fd   : > { %v6437_v19 = vpack.i.bf16 %v4054_v0, %v4055_v52  ;;  %v4345_v0 = vld [vmem:[%s11237_s6 + $0x900] sm:$0xff]  ;;  %v4351_v52 = vld [vmem:[%s11237_s6 + $0x930] sm:$0xff]  ;;  %v4406_v59 = vld [vmem:[%s11237_s6 + $0xae8] sm:$0xff] }
 0x4fe   : > { %v5785_v32 = vpack.c.bf16 %v4351_v52, %v4345_v0  ;;  %v4375_v17 = vld [vmem:[%s11237_s6 + $0x9f0] sm:$0xff]  ;;  %v4424_v29 = vld [vmem:[%s11237_s6 + $0xb78] sm:$0xff]  ;;  %v4430_v33 = vld [vmem:[%s11237_s6 + $0xba8] sm:$0xff] }
 0x4ff   : > { %6438 = vrot.lane.b32.xlu1 %v6437_v19, %s6508_s13  ;;  %v4357_v19 = vld [vmem:[%s11237_s6 + $0x960] sm:$0xff]  ;;  %v4423_v2 = vld [vmem:[%s11237_s6 + $0xb70] sm:$0xff]  ;;  %v4436_v47 = vld [vmem:[%s11237_s6 + $0xbd8] sm:$0xff] }
 0x500   : > { %v5789_v31 = vpack.c.bf16 %v4363_v16, %v4357_v19  ;;  %v4429_v12 = vld [vmem:[%s11237_s6 + $0xba0] sm:$0xff]  ;;  %v4435_v27 = vld [vmem:[%s11237_s6 + $0xbd0] sm:$0xff]  ;;  %v4060_v43 = vld [vmem:[%s11237_s6 + $0x18] sm:$0xff] }
 0x501   : > { %v4066_v14 = vld [vmem:[%s11237_s6 + $0x48] sm:$0xff]  ;;  %v4633_v13 = vld [vmem:[%s11237_s6 + $0x1200] sm:$0xff]  ;;  %v4639_v1 = vld [vmem:[%s11237_s6 + $0x1230] sm:$0xff] }
 0x502   : > { %v4065_v46 = vld [vmem:[%s11237_s6 + $0x40] sm:$0xff]  ;;  %v4072_v56 = vld [vmem:[%s11237_s6 + $0x78] sm:$0xff]  ;;  %v5881_v38 = vpack.c.bf16 %v4639_v1, %v4633_v13  ;;  %v4642_v0 = vld [vmem:[%s11237_s6 + $0x1248] sm:$0xff] }
 0x503   : > { %4658 = vrot.lane.b32.xlu1 %v4053_v37, %s6508_s13  ;;  %v4376_v37 = vld [vmem:[%s11237_s6 + $0x9f8] sm:$0xff]  ;;  %v4085_v13 = vld [vmem:[%s11237_s6 + $0xe0] sm:$0xff]  ;;  %v4091_v1 = vld [vmem:[%s11237_s6 + $0x110] sm:$0xff] }
 0x504   : > { %v5791_v6 = vpack.c.bf16 %v4376_v37, %v4370_v41  ;;  %v4071_v41 = vld [vmem:[%s11237_s6 + $0x70] sm:$0xff]  ;;  %v4077_v37 = vld [vmem:[%s11237_s6 + $0xa0] sm:$0xff] }
 0x50f   : > { %v4653_v15 = vpop.permute.xlu0 %4652 }
 0x511   : > { %v9793_v54 = vpop.permute.xlu1 %6433 }
 0x512   : > { %v6436_v35 = vunpack.i.h.bf16 %v9793_v54  ;;  %v6435_v9 = vunpack.i.l.bf16 %v9793_v54  ;;  %v4084_v54 = vld [vmem:[%s11237_s6 + $0xd8] sm:$0xff] }
 0x514   : > { %v9806_v49 = vsel %vm4666_vm2, %v6435_v9, %v6436_v35  ;;  %v9809_v20 = vsel %vm4666_vm2, %v4653_v15, %v6435_v9  ;;  %v4382_v9 = vld [vmem:[%s11237_s6 + $0xa28] sm:$0xff]  ;;  %v4388_v15 = vld [vmem:[%s11237_s6 + $0xa58] sm:$0xff] }
 0x515   : > { %4746 = vmatprep.mubr.f32.mxu1 %v9806_v49 }
 0x516   : > { %4747 = vmatmul.mubr.f32.vlgmr.msra.gmra.mrb[0].mxu1 %v9809_v20 }
 0x517   : > { %5754 = vmatpush1.bf16.msra.mxu1 %v5753_v28  ;;  %v5793_v28 = vpack.c.bf16 %v4375_v17, %v4369_v26  ;;  %v4635_v26 = vld [vmem:[%s11237_s6 + $0x1210] sm:$0xff]  ;;  %v4641_v17 = vld [vmem:[%s11237_s6 + $0x1240] sm:$0xff] }
 0x518   : > { %5756 = vmatprep.subr.bf16.mxu1 %v5755_v30  ;;  %v5795_v30 = vpack.c.bf16 %v4388_v15, %v4382_v9  ;;  %v5889_v9 = vpack.c.bf16 %v4077_v37, %v4071_v41  ;;  %v4062_v15 = vld [vmem:[%s11237_s6 + $0x28] sm:$0xff]  ;;  %v4116_v41 = vld [vmem:[%s11237_s6 + $0x1d8] sm:$0xff] }
 0x51b   : > { %5758 = vmatpush1.bf16.msra.mxu1 %v5757_v51  ;;  %v5797_v51 = vpack.c.bf16 %v4387_v48, %v4381_v3  ;;  %v4083_v3 = vld [vmem:[%s11237_s6 + $0xd0] sm:$0xff]  ;;  %v4089_v48 = vld [vmem:[%s11237_s6 + $0x100] sm:$0xff] }
 0x51c   : > { %5760 = vmatprep.subr.bf16.mxu1 %v5759_v36  ;;  %v5799_v36 = vpack.c.bf16 %v4400_v21, %v4394_v11  ;;  %v6077_v11 = vpack.c.bf16 %v4641_v17, %v4635_v26  ;;  %v4096_v21 = vld [vmem:[%s11237_s6 + $0x138] sm:$0xff]  ;;  %v4150_v17 = vld [vmem:[%s11237_s6 + $0x2e8] sm:$0xff] }
 0x51d   : > { %v4144_v26 = vld [vmem:[%s11237_s6 + $0x2b8] sm:$0xff] }
 0x51f   : > { %5762 = vmatpush1.bf16.msra.mxu1 %v5761_v57  ;;  %v5801_v57 = vpack.c.bf16 %v4399_v5, %v4393_v40  ;;  %v4061_v40 = vld [vmem:[%s11237_s6 + $0x20] sm:$0xff]  ;;  %v4067_v5 = vld [vmem:[%s11237_s6 + $0x50] sm:$0xff] }
 0x520   : > { %5764 = vmatprep.subr.bf16.mxu1 %v5763_v18  ;;  %v5803_v18 = vpack.c.bf16 %v4412_v63, %v4406_v59  ;;  %v5893_v59 = vpack.c.bf16 %v4089_v48, %v4083_v3  ;;  %v4074_v63 = vld [vmem:[%s11237_s6 + $0x88] sm:$0xff]  ;;  %v4128_v48 = vld [vmem:[%s11237_s6 + $0x238] sm:$0xff] }
 0x521   : > { %v4122_v3 = vld [vmem:[%s11237_s6 + $0x208] sm:$0xff] }
 0x523   : > { %5766 = vmatpush1.bf16.msra.mxu1 %v5765_v8  ;;  %v5805_v8 = vpack.c.bf16 %v4411_v10, %v4405_v58  ;;  %v4095_v58 = vld [vmem:[%s11237_s6 + $0x130] sm:$0xff]  ;;  %v4101_v10 = vld [vmem:[%s11237_s6 + $0x160] sm:$0xff] }
 0x524   : > { %5768 = vmatprep.subr.bf16.mxu1 %v5767_v23  ;;  %v5807_v23 = vpack.c.bf16 %v4424_v29, %v4418_v50  ;;  %v6081_v50 = vpack.c.bf16 %v4067_v5, %v4061_v40  ;;  %v4108_v29 = vld [vmem:[%s11237_s6 + $0x198] sm:$0xff]  ;;  %v4162_v5 = vld [vmem:[%s11237_s6 + $0x348] sm:$0xff] }
 0x525   : > { %v4156_v40 = vld [vmem:[%s11237_s6 + $0x318] sm:$0xff] }
 0x527   : > { %5770 = vmatpush1.bf16.msra.mxu1 %v5769_v61  ;;  %v5809_v61 = vpack.c.bf16 %v4423_v2, %v4417_v39  ;;  %v4073_v39 = vld [vmem:[%s11237_s6 + $0x80] sm:$0xff]  ;;  %v4079_v2 = vld [vmem:[%s11237_s6 + $0xb0] sm:$0xff] }
 0x528   : > { %5772 = vmatprep.subr.bf16.mxu1 %v5771_v60  ;;  %v5811_v60 = vpack.c.bf16 %v4436_v47, %v4430_v33  ;;  %v5897_v33 = vpack.c.bf16 %v4101_v10, %v4095_v58  ;;  %v4086_v47 = vld [vmem:[%s11237_s6 + $0xe8] sm:$0xff]  ;;  %v4140_v10 = vld [vmem:[%s11237_s6 + $0x298] sm:$0xff] }
 0x529   : > { %v4134_v58 = vld [vmem:[%s11237_s6 + $0x268] sm:$0xff] }
 0x52b   : > { %5774 = vmatpush1.bf16.msra.mxu1 %v5773_v34  ;;  %v5813_v34 = vpack.c.bf16 %v4435_v27, %v4429_v12  ;;  %v4107_v12 = vld [vmem:[%s11237_s6 + $0x190] sm:$0xff]  ;;  %v4113_v27 = vld [vmem:[%s11237_s6 + $0x1c0] sm:$0xff] }
 0x52c   : > { %5776 = vmatprep.subr.bf16.mxu1 %v5775_v25  ;;  %v5883_v25 = vpack.c.bf16 %v4066_v14, %v4060_v43  ;;  %v6085_v43 = vpack.c.bf16 %v4079_v2, %v4073_v39  ;;  %v4120_v14 = vld [vmem:[%s11237_s6 + $0x1f8] sm:$0xff]  ;;  %v4174_v2 = vld [vmem:[%s11237_s6 + $0x3a8] sm:$0xff] }
 0x52d   : > { %v4168_v39 = vld [vmem:[%s11237_s6 + $0x378] sm:$0xff] }
 0x52f   : > { %5778 = vmatpush1.bf16.msra.mxu1 %v5777_v24 }
 0x530   : > { %5780 = vmatprep.subr.bf16.mxu1 %v5779_v42  ;;  %v4059_v42 = vld [vmem:[%s11237_s6 + $0x10] sm:$0xff] }
 0x533   : > { %5782 = vmatpush1.bf16.msra.mxu1 %v5781_v7  ;;  %v4078_v7 = vld [vmem:[%s11237_s6 + $0xa8] sm:$0xff] }
 0x534   : > { %5784 = vmatprep.subr.bf16.mxu1 %v5783_v55  ;;  %v4636_v55 = vld [vmem:[%s11237_s6 + $0x1218] sm:$0xff]  ;;  %v5887_v16 = vpack.c.bf16 %v4078_v7, %v4072_v56  ;;  %v6089_v56 = vpack.c.bf16 %v4091_v1, %v4085_v13  ;;  %v4138_v7 = vld [vmem:[%s11237_s6 + $0x288] sm:$0xff] }
 0x535   : > { %v4180_v13 = vld [vmem:[%s11237_s6 + $0x3d8] sm:$0xff]  ;;  %v4186_v1 = vld [vmem:[%s11237_s6 + $0x408] sm:$0xff] }
 0x537   : > { %5786 = vmatpush1.bf16.msra.mxu1 %v5785_v32  ;;  %v5885_v32 = vpack.c.bf16 %v4065_v46, %v4059_v42  ;;  %v4119_v42 = vld [vmem:[%s11237_s6 + $0x1f0] sm:$0xff]  ;;  %v4125_v46 = vld [vmem:[%s11237_s6 + $0x220] sm:$0xff] }
 0x538   : > { %5788 = vmatprep.subr.bf16.mxu1 %v5787_v44 }
 0x53b   : > { %5790 = vmatpush1.bf16.msra.mxu1 %v5789_v31  ;;  %v6075_v31 = vpack.c.bf16 %v4642_v0, %v4636_v55  ;;  %v4097_v0 = vld [vmem:[%s11237_s6 + $0x140] sm:$0xff] }
 0x53c   : > { %5792 = vmatprep.subr.bf16.mxu1 %v5791_v6  ;;  %v11728_v6 = vmov 0.0  }
 0x53f   : > { %5794 = vmatpush1.bf16.msra.mxu1 %v5793_v28  ;;  %v4068_v28 = vld [vmem:[%s11237_s6 + $0x58] sm:$0xff] }
 0x540   : > { %5796 = vmatprep.subr.bf16.mxu1 %v5795_v30 }
 0x543   : > { %5798 = vmatpush1.bf16.msra.mxu1 %v5797_v51  ;;  %v4102_v51 = vld [vmem:[%s11237_s6 + $0x168] sm:$0xff] }
 0x544   : > { %5800 = vmatprep.subr.bf16.mxu1 %v5799_v36  ;;  %v6079_v36 = vpack.c.bf16 %v4068_v28, %v4062_v15  ;;  %v4109_v15 = vld [vmem:[%s11237_s6 + $0x1a0] sm:$0xff]  ;;  %v4115_v28 = vld [vmem:[%s11237_s6 + $0x1d0] sm:$0xff] }
 0x547   : > { %5802 = vmatpush1.bf16.msra.mxu1 %v5801_v57  ;;  %v4080_v57 = vld [vmem:[%s11237_s6 + $0xb8] sm:$0xff] }
 0x548   : > { %5804 = vmatprep.subr.bf16.mxu1 %v5803_v18  ;;  %v5895_v18 = vpack.c.bf16 %v4102_v51, %v4096_v21  ;;  %v4143_v21 = vld [vmem:[%s11237_s6 + $0x2b0] sm:$0xff]  ;;  %v4149_v51 = vld [vmem:[%s11237_s6 + $0x2e0] sm:$0xff] }
 0x54b   : > { %5806 = vmatpush1.bf16.msra.mxu1 %v5805_v8  ;;  %v4114_v8 = vld [vmem:[%s11237_s6 + $0x1c8] sm:$0xff] }
 0x54c   : > { %5808 = vmatprep.subr.bf16.mxu1 %v5807_v23  ;;  %v6083_v23 = vpack.c.bf16 %v4080_v57, %v4074_v63  ;;  %v4121_v63 = vld [vmem:[%s11237_s6 + $0x200] sm:$0xff]  ;;  %v4127_v57 = vld [vmem:[%s11237_s6 + $0x230] sm:$0xff] }
 0x54f   : > { %5810 = vmatpush1.bf16.msra.mxu1 %v5809_v61  ;;  %v4092_v61 = vld [vmem:[%s11237_s6 + $0x118] sm:$0xff] }
 0x550   : > { %5812 = vmatprep.subr.bf16.mxu1 %v5811_v60  ;;  %v5899_v60 = vpack.c.bf16 %v4114_v8, %v4108_v29  ;;  %v4155_v29 = vld [vmem:[%s11237_s6 + $0x310] sm:$0xff]  ;;  %v4161_v8 = vld [vmem:[%s11237_s6 + $0x340] sm:$0xff] }
 0x553   : > { %5814 = vmatpush1.bf16.msra.mxu1 %v5813_v34  ;;  %v4126_v34 = vld [vmem:[%s11237_s6 + $0x228] sm:$0xff] }
 0x554   : > { %5884 = vmatprep.subr.bf16.mxu1 %v5883_v25  ;;  %v6087_v25 = vpack.c.bf16 %v4092_v61, %v4086_v47  ;;  %v4133_v47 = vld [vmem:[%s11237_s6 + $0x260] sm:$0xff]  ;;  %v4139_v61 = vld [vmem:[%s11237_s6 + $0x290] sm:$0xff] }
 0x56a   : > { %v10008_v45 = vpop.permute.xlu0 %4664 }
 0x571   : > { %v6439_v53 = vpop.permute.xlu1 %6438 }
 0x572   : > { %v6441_v62 = vunpack.i.h.bf16 %v6439_v53  ;;  %v6440_v24 = vunpack.i.l.bf16 %v6439_v53  ;;  %v4098_v53 = vld [vmem:[%s11237_s6 + $0x148] sm:$0xff] }
 0x574   : > { %v10021_v52 = vsel %vm4666_vm2, %v6440_v24, %v10008_v45  ;;  %v10024_v22 = vsel %vm4666_vm2, %v6441_v62, %v6440_v24  ;;  %v5903_v24 = vpack.c.bf16 %v4126_v34, %v4120_v14  ;;  %v4167_v14 = vld [vmem:[%s11237_s6 + $0x370] sm:$0xff]  ;;  %v4173_v34 = vld [vmem:[%s11237_s6 + $0x3a0] sm:$0xff] }
 0x575   : > { %v4659_v4 = vpop.permute.xlu1 %4658  ;;  %4888 = vmatprep.mubr.f32.mxu0 %v10021_v52 }
 0x576   : > { %v10030_v44 = vsel %vm4666_vm2, %v6436_v35, %v4659_v4  ;;  %4889 = vmatmul.mubr.f32.vlgmr.msra.gmra.mrb[0].mxu0 %v10024_v22  ;;  %v10034_v19 = vsel %vm4666_vm2, %v4659_v4, %v6441_v62  ;;  %v4090_v35 = vld [vmem:[%s11237_s6 + $0x108] sm:$0xff]  ;;  %v4104_v62 = vld [vmem:[%s11237_s6 + $0x178] sm:$0xff]  ;;  %v4103_v4 = vld [vmem:[%s11237_s6 + $0x170] sm:$0xff] }
 0x577   : > { %4817 = vmatprep.mubr.f32.mxu1 %v10034_v19  ;;  %5882 = vmatpush1.bf16.msra.mxu0 %v5881_v38  ;;  %v5891_v30 = vpack.c.bf16 %v4090_v35, %v4084_v54  ;;  %v4132_v38 = vld [vmem:[%s11237_s6 + $0x258] sm:$0xff]  ;;  %v6091_v55 = vpack.c.bf16 %v4104_v62, %v4098_v53  ;;  %v4137_v54 = vld [vmem:[%s11237_s6 + $0x280] sm:$0xff]  ;;  %v6093_v35 = vpack.c.bf16 %v4103_v4, %v4097_v0  ;;  %v4151_v62 = vld [vmem:[%s11237_s6 + $0x2f0] sm:$0xff] }
 0x578   : > { %4818 = vmatmul.mubr.f32.vlgmr.msra.gmra.mrb[0].mxu1 %v10030_v44  ;;  %4959 = vmatprep.mubr.f32.mxu0 %v11728_v6  ;;  %v5907_v37 = vpack.c.bf16 %v4138_v7, %v4132_v38  ;;  %v4145_v53 = vld [vmem:[%s11237_s6 + $0x2c0] sm:$0xff]  ;;  %v4179_v38 = vld [vmem:[%s11237_s6 + $0x3d0] sm:$0xff]  ;;  %v4192_v0 = vld [vmem:[%s11237_s6 + $0x438] sm:$0xff] }
 0x579   : > { %5886 = vmatpush1.bf16.msra.mxu1 %v5885_v32  ;;  %5030 = vmatprep.mubr.f32.mxu1 %v9806_v49  ;;  %v5905_v32 = vpack.c.bf16 %v4125_v46, %v4119_v42  ;;  %v4158_v42 = vld [vmem:[%s11237_s6 + $0x328] sm:$0xff]  ;;  %v4164_v46 = vld [vmem:[%s11237_s6 + $0x358] sm:$0xff]  ;;  %v4185_v7 = vld [vmem:[%s11237_s6 + $0x400] sm:$0xff] }
 0x57a   : > { %5888 = vmatprep.subr.bf16.mxu1 %v5887_v16  ;;  %6076 = vmatprep.subr.bf16.mxu0 %v6075_v31  ;;  %v4110_v16 = vld [vmem:[%s11237_s6 + $0x1a8] sm:$0xff]  ;;  %v4131_v31 = vld [vmem:[%s11237_s6 + $0x250] sm:$0xff] }
 0x57b   : > { %v4198_v4 = vld [vmem:[%s11237_s6 + $0x468] sm:$0xff] }
 0x57d   : > { %5890 = vmatpush1.bf16.msra.mxu1 %v5889_v9  ;;  %v6095_v9 = vpack.c.bf16 %v4116_v41, %v4110_v16  ;;  %v4157_v16 = vld [vmem:[%s11237_s6 + $0x320] sm:$0xff]  ;;  %v4163_v41 = vld [vmem:[%s11237_s6 + $0x350] sm:$0xff] }
 0x57e   : > { %5682 = vmatmul.mubr.msk.f32.vlgmr.msra.gmra.mrb[0].mxu0 %vm4679_vm4, %v10008_v45  ;;  %5892 = vmatprep.subr.bf16.mxu1 %v5891_v30  ;;  %v5909_v30 = vpack.c.bf16 %v4137_v54, %v4131_v31  ;;  %v4170_v31 = vld [vmem:[%s11237_s6 + $0x388] sm:$0xff]  ;;  %v4176_v54 = vld [vmem:[%s11237_s6 + $0x3b8] sm:$0xff] }
 0x57f   : > { %6078 = vmatpush1.bf16.msra.mxu0 %v6077_v11  ;;  %5243 = vmatprep.mubr.f32.mxu0 %v11728_v6  ;;  %v5911_v11 = vpack.c.bf16 %v4150_v17, %v4144_v26  ;;  %v4191_v26 = vld [vmem:[%s11237_s6 + $0x430] sm:$0xff]  ;;  %v4197_v17 = vld [vmem:[%s11237_s6 + $0x460] sm:$0xff] }
 0x580   : > { %6080 = vmatprep.subr.bf16.mxu0 %v6079_v36  ;;  %v6097_v36 = vpack.c.bf16 %v4115_v28, %v4109_v15  ;;  %v4204_v15 = vld [vmem:[%s11237_s6 + $0x498] sm:$0xff]  ;;  %v4210_v28 = vld [vmem:[%s11237_s6 + $0x4c8] sm:$0xff] }
 0x581   : > { %5894 = vmatpush1.bf16.msra.mxu1 %v5893_v59  ;;  %v6099_v59 = vpack.c.bf16 %v4128_v48, %v4122_v3  ;;  %v4169_v3 = vld [vmem:[%s11237_s6 + $0x380] sm:$0xff]  ;;  %v4175_v48 = vld [vmem:[%s11237_s6 + $0x3b0] sm:$0xff] }
 0x582   : > { %5683 = vmatmul.mubr.msk.f32.vlgmr.msra.gmra.mrb[2].mxu0 %vm4679_vm4, %v10008_v45  ;;  %5896 = vmatprep.subr.bf16.mxu1 %v5895_v18  ;;  %v5913_v18 = vpack.c.bf16 %v4149_v51, %v4143_v21  ;;  %v4182_v21 = vld [vmem:[%s11237_s6 + $0x3e8] sm:$0xff]  ;;  %v4188_v51 = vld [vmem:[%s11237_s6 + $0x418] sm:$0xff] }
 0x583   : > { %6082 = vmatpush1.bf16.msra.mxu0 %v6081_v50  ;;  %5314 = vmatprep.mubr.f32.mxu0 %v9806_v49  ;;  %v5901_v49 = vpack.c.bf16 %v4113_v27, %v4107_v12  ;;  %v5915_v50 = vpack.c.bf16 %v4162_v5, %v4156_v40  ;;  %v4146_v12 = vld [vmem:[%s11237_s6 + $0x2c8] sm:$0xff]  ;;  %v4152_v27 = vld [vmem:[%s11237_s6 + $0x2f8] sm:$0xff]  ;;  %v4203_v40 = vld [vmem:[%s11237_s6 + $0x490] sm:$0xff] }
 0x584   : > { %6084 = vmatprep.subr.bf16.mxu0 %v6083_v23  ;;  %v6101_v23 = vpack.c.bf16 %v4127_v57, %v4121_v63  ;;  %v4209_v5 = vld [vmem:[%s11237_s6 + $0x4c0] sm:$0xff]  ;;  %v4216_v63 = vld [vmem:[%s11237_s6 + $0x4f8] sm:$0xff]  ;;  %v4222_v57 = vld [vmem:[%s11237_s6 + $0x528] sm:$0xff] }
 0x585   : > { %5898 = vmatpush1.bf16.msra.mxu1 %v5897_v33  ;;  %v6103_v33 = vpack.c.bf16 %v4140_v10, %v4134_v58  ;;  %v4181_v58 = vld [vmem:[%s11237_s6 + $0x3e0] sm:$0xff]  ;;  %v4187_v10 = vld [vmem:[%s11237_s6 + $0x410] sm:$0xff] }
 0x586   : > { %5900 = vmatprep.subr.bf16.mxu1 %v5899_v60  ;;  %v5917_v60 = vpack.c.bf16 %v4161_v8, %v4155_v29  ;;  %v4194_v29 = vld [vmem:[%s11237_s6 + $0x448] sm:$0xff]  ;;  %v4200_v8 = vld [vmem:[%s11237_s6 + $0x478] sm:$0xff] }
 0x587   : > { %6086 = vmatpush1.bf16.msra.mxu0 %v6085_v43  ;;  %v5919_v43 = vpack.c.bf16 %v4174_v2, %v4168_v39  ;;  %v4215_v39 = vld [vmem:[%s11237_s6 + $0x4f0] sm:$0xff]  ;;  %v4221_v2 = vld [vmem:[%s11237_s6 + $0x520] sm:$0xff] }
 0x588   : > { %6088 = vmatprep.subr.bf16.mxu0 %v6087_v25  ;;  %v6105_v25 = vpack.c.bf16 %v4139_v61, %v4133_v47  ;;  %v4228_v47 = vld [vmem:[%s11237_s6 + $0x558] sm:$0xff]  ;;  %v4234_v61 = vld [vmem:[%s11237_s6 + $0x588] sm:$0xff] }
 0x589   : > { %5902 = vmatpush1.bf16.msra.mxu1 %v5901_v49  ;;  %v6107_v49 = vpack.c.bf16 %v4152_v27, %v4146_v12  ;;  %v4193_v12 = vld [vmem:[%s11237_s6 + $0x440] sm:$0xff]  ;;  %v4199_v27 = vld [vmem:[%s11237_s6 + $0x470] sm:$0xff] }
 0x58a   : > { %5904 = vmatprep.subr.bf16.mxu1 %v5903_v24  ;;  %v5921_v24 = vpack.c.bf16 %v4173_v34, %v4167_v14  ;;  %v4206_v14 = vld [vmem:[%s11237_s6 + $0x4a8] sm:$0xff]  ;;  %v4212_v34 = vld [vmem:[%s11237_s6 + $0x4d8] sm:$0xff] }
 0x58b   : > { %6090 = vmatpush1.bf16.msra.mxu0 %v6089_v56  ;;  %v5923_v56 = vpack.c.bf16 %v4186_v1, %v4180_v13  ;;  %v4227_v13 = vld [vmem:[%s11237_s6 + $0x550] sm:$0xff]  ;;  %v4233_v1 = vld [vmem:[%s11237_s6 + $0x580] sm:$0xff] }
 0x58c   : > { %6092 = vmatprep.subr.bf16.mxu0 %v6091_v55  ;;  %v6109_v55 = vpack.c.bf16 %v4151_v62, %v4145_v53  ;;  %v4240_v53 = vld [vmem:[%s11237_s6 + $0x5b8] sm:$0xff]  ;;  %v4246_v62 = vld [vmem:[%s11237_s6 + $0x5e8] sm:$0xff] }
 0x58d   : > { %5906 = vmatpush1.bf16.msra.mxu1 %v5905_v32  ;;  %v6111_v32 = vpack.c.bf16 %v4164_v46, %v4158_v42  ;;  %v4205_v42 = vld [vmem:[%s11237_s6 + $0x4a0] sm:$0xff]  ;;  %v4211_v46 = vld [vmem:[%s11237_s6 + $0x4d0] sm:$0xff] }
 0x58e   : > { %5908 = vmatprep.subr.bf16.mxu1 %v5907_v37  ;;  %v5925_v37 = vpack.c.bf16 %v4185_v7, %v4179_v38  ;;  %v4218_v38 = vld [vmem:[%s11237_s6 + $0x508] sm:$0xff]  ;;  %v4224_v7 = vld [vmem:[%s11237_s6 + $0x538] sm:$0xff] }
 0x58f   : > { %6094 = vmatpush1.bf16.msra.mxu0 %v6093_v35  ;;  %v5927_v35 = vpack.c.bf16 %v4198_v4, %v4192_v0  ;;  %v4239_v0 = vld [vmem:[%s11237_s6 + $0x5b0] sm:$0xff]  ;;  %v4245_v4 = vld [vmem:[%s11237_s6 + $0x5e0] sm:$0xff] }
 0x590   : > { %6096 = vmatprep.subr.bf16.mxu0 %v6095_v9  ;;  %v6113_v9 = vpack.c.bf16 %v4163_v41, %v4157_v16  ;;  %v4252_v16 = vld [vmem:[%s11237_s6 + $0x618] sm:$0xff]  ;;  %v4258_v41 = vld [vmem:[%s11237_s6 + $0x648] sm:$0xff] }
 0x591   : > { %5910 = vmatpush1.bf16.msra.mxu1 %v5909_v30  ;;  %v6115_v30 = vpack.c.bf16 %v4176_v54, %v4170_v31  ;;  %v4217_v31 = vld [vmem:[%s11237_s6 + $0x500] sm:$0xff]  ;;  %v4223_v54 = vld [vmem:[%s11237_s6 + $0x530] sm:$0xff] }
 0x592   : > { %5912 = vmatprep.subr.bf16.mxu1 %v5911_v11  ;;  %v5929_v11 = vpack.c.bf16 %v4197_v17, %v4191_v26  ;;  %v4230_v26 = vld [vmem:[%s11237_s6 + $0x568] sm:$0xff]  ;;  %v4236_v17 = vld [vmem:[%s11237_s6 + $0x598] sm:$0xff] }
 0x593   : > { %6098 = vmatpush1.bf16.msra.mxu0 %v6097_v36  ;;  %v5931_v36 = vpack.c.bf16 %v4210_v28, %v4204_v15  ;;  %v4251_v15 = vld [vmem:[%s11237_s6 + $0x610] sm:$0xff]  ;;  %v4257_v28 = vld [vmem:[%s11237_s6 + $0x640] sm:$0xff] }
 0x594   : > { %6100 = vmatprep.subr.bf16.mxu0 %v6099_v59  ;;  %v6117_v59 = vpack.c.bf16 %v4175_v48, %v4169_v3  ;;  %v4264_v3 = vld [vmem:[%s11237_s6 + $0x678] sm:$0xff]  ;;  %v4270_v48 = vld [vmem:[%s11237_s6 + $0x6a8] sm:$0xff] }
 0x595   : > { %5914 = vmatpush1.bf16.msra.mxu1 %v5913_v18  ;;  %v6119_v18 = vpack.c.bf16 %v4188_v51, %v4182_v21  ;;  %v4229_v21 = vld [vmem:[%s11237_s6 + $0x560] sm:$0xff]  ;;  %v4235_v51 = vld [vmem:[%s11237_s6 + $0x590] sm:$0xff] }
 0x596   : > { %5916 = vmatprep.subr.bf16.mxu1 %v5915_v50  ;;  %v5933_v50 = vpack.c.bf16 %v4209_v5, %v4203_v40  ;;  %v4242_v40 = vld [vmem:[%s11237_s6 + $0x5c8] sm:$0xff]  ;;  %v4248_v5 = vld [vmem:[%s11237_s6 + $0x5f8] sm:$0xff] }
 0x597   : > { %6102 = vmatpush1.bf16.msra.mxu0 %v6101_v23  ;;  %v5935_v23 = vpack.c.bf16 %v4222_v57, %v4216_v63  ;;  %v4263_v63 = vld [vmem:[%s11237_s6 + $0x670] sm:$0xff]  ;;  %v4269_v57 = vld [vmem:[%s11237_s6 + $0x6a0] sm:$0xff] }
 0x598   : > { %6104 = vmatprep.subr.bf16.mxu0 %v6103_v33  ;;  %v6121_v33 = vpack.c.bf16 %v4187_v10, %v4181_v58  ;;  %v4276_v58 = vld [vmem:[%s11237_s6 + $0x6d8] sm:$0xff]  ;;  %v4282_v10 = vld [vmem:[%s11237_s6 + $0x708] sm:$0xff] }
 0x599   : > { %5918 = vmatpush1.bf16.msra.mxu1 %v5917_v60  ;;  %v6123_v60 = vpack.c.bf16 %v4200_v8, %v4194_v29  ;;  %v4241_v29 = vld [vmem:[%s11237_s6 + $0x5c0] sm:$0xff]  ;;  %v4247_v8 = vld [vmem:[%s11237_s6 + $0x5f0] sm:$0xff] }
 0x59a   : > { %5920 = vmatprep.subr.bf16.mxu1 %v5919_v43  ;;  %v5937_v43 = vpack.c.bf16 %v4221_v2, %v4215_v39  ;;  %v4254_v39 = vld [vmem:[%s11237_s6 + $0x628] sm:$0xff]  ;;  %v4260_v2 = vld [vmem:[%s11237_s6 + $0x658] sm:$0xff] }
 0x59b   : > { %6106 = vmatpush1.bf16.msra.mxu0 %v6105_v25  ;;  %v5939_v25 = vpack.c.bf16 %v4234_v61, %v4228_v47  ;;  %v4275_v47 = vld [vmem:[%s11237_s6 + $0x6d0] sm:$0xff]  ;;  %v4281_v61 = vld [vmem:[%s11237_s6 + $0x700] sm:$0xff] }
 0x59c   : > { %6108 = vmatprep.subr.bf16.mxu0 %v6107_v49  ;;  %v6125_v49 = vpack.c.bf16 %v4199_v27, %v4193_v12  ;;  %v4288_v12 = vld [vmem:[%s11237_s6 + $0x738] sm:$0xff]  ;;  %v4294_v27 = vld [vmem:[%s11237_s6 + $0x768] sm:$0xff] }
 0x59d   : > { %5922 = vmatpush1.bf16.msra.mxu1 %v5921_v24  ;;  %v6127_v24 = vpack.c.bf16 %v4212_v34, %v4206_v14  ;;  %v4253_v14 = vld [vmem:[%s11237_s6 + $0x620] sm:$0xff]  ;;  %v4259_v34 = vld [vmem:[%s11237_s6 + $0x650] sm:$0xff] }
 0x59e   : > { %5924 = vmatprep.subr.bf16.mxu1 %v5923_v56  ;;  %v5941_v56 = vpack.c.bf16 %v4233_v1, %v4227_v13  ;;  %v4266_v13 = vld [vmem:[%s11237_s6 + $0x688] sm:$0xff]  ;;  %v4272_v1 = vld [vmem:[%s11237_s6 + $0x6b8] sm:$0xff] }
 0x59f   : > { %6110 = vmatpush1.bf16.msra.mxu0 %v6109_v55  ;;  %v5943_v55 = vpack.c.bf16 %v4246_v62, %v4240_v53  ;;  %v4287_v53 = vld [vmem:[%s11237_s6 + $0x730] sm:$0xff]  ;;  %v4293_v62 = vld [vmem:[%s11237_s6 + $0x760] sm:$0xff] }
 0x5a0   : > { %6112 = vmatprep.subr.bf16.mxu0 %v6111_v32  ;;  %v6129_v32 = vpack.c.bf16 %v4211_v46, %v4205_v42  ;;  %v4300_v42 = vld [vmem:[%s11237_s6 + $0x798] sm:$0xff]  ;;  %v4306_v46 = vld [vmem:[%s11237_s6 + $0x7c8] sm:$0xff] }
 0x5a1   : > { %5926 = vmatpush1.bf16.msra.mxu1 %v5925_v37  ;;  %v6131_v37 = vpack.c.bf16 %v4224_v7, %v4218_v38  ;;  %v4265_v38 = vld [vmem:[%s11237_s6 + $0x680] sm:$0xff]  ;;  %v4271_v7 = vld [vmem:[%s11237_s6 + $0x6b0] sm:$0xff] }
 0x5a2   : > { %5928 = vmatprep.subr.bf16.mxu1 %v5927_v35  ;;  %v5945_v35 = vpack.c.bf16 %v4245_v4, %v4239_v0  ;;  %v4278_v0 = vld [vmem:[%s11237_s6 + $0x6e8] sm:$0xff]  ;;  %v4284_v4 = vld [vmem:[%s11237_s6 + $0x718] sm:$0xff] }
 0x5a3   : > { %6114 = vmatpush1.bf16.msra.mxu0 %v6113_v9  ;;  %v5947_v9 = vpack.c.bf16 %v4258_v41, %v4252_v16  ;;  %v4299_v16 = vld [vmem:[%s11237_s6 + $0x790] sm:$0xff]  ;;  %v4305_v41 = vld [vmem:[%s11237_s6 + $0x7c0] sm:$0xff] }
 0x5a4   : > { %6116 = vmatprep.subr.bf16.mxu0 %v6115_v30  ;;  %v6133_v30 = vpack.c.bf16 %v4223_v54, %v4217_v31  ;;  %v4312_v31 = vld [vmem:[%s11237_s6 + $0x7f8] sm:$0xff]  ;;  %v6151_v54 = vpack.c.bf16 %v4284_v4, %v4278_v0  ;;  %v4338_v4 = vld [vmem:[%s11237_s6 + $0x8c8] sm:$0xff] }
 0x5a5   : > { %5930 = vmatpush1.bf16.msra.mxu1 %v5929_v11  ;;  %v6135_v11 = vpack.c.bf16 %v4236_v17, %v4230_v26  ;;  %v4283_v26 = vld [vmem:[%s11237_s6 + $0x710] sm:$0xff]  ;;  %v4290_v17 = vld [vmem:[%s11237_s6 + $0x748] sm:$0xff] }
 0x5a6   : > { %5932 = vmatprep.subr.bf16.mxu1 %v5931_v36  ;;  %v5949_v36 = vpack.c.bf16 %v4257_v28, %v4251_v15  ;;  %v4311_v28 = vld [vmem:[%s11237_s6 + $0x7f0] sm:$0xff] }
 0x5a7   : > { %6118 = vmatpush1.bf16.msra.mxu0 %v6117_v59  ;;  %v5951_v59 = vpack.c.bf16 %v4270_v48, %v4264_v3  ;;  %v4324_v48 = vld [vmem:[%s11237_s6 + $0x858] sm:$0xff] }
 0x5a8   : > { %6120 = vmatprep.subr.bf16.mxu0 %v6119_v18  ;;  %v6137_v18 = vpack.c.bf16 %v4235_v51, %v4229_v21  ;;  %v4289_v51 = vld [vmem:[%s11237_s6 + $0x740] sm:$0xff] }
 0x5a9   : > { %5934 = vmatpush1.bf16.msra.mxu1 %v5933_v50  ;;  %v6139_v50 = vpack.c.bf16 %v4248_v5, %v4242_v40  ;;  %v4302_v5 = vld [vmem:[%s11237_s6 + $0x7a8] sm:$0xff] }
 0x5aa   : > { %5936 = vmatprep.subr.bf16.mxu1 %v5935_v23  ;;  %v5953_v23 = vpack.c.bf16 %v4269_v57, %v4263_v63  ;;  %v4323_v57 = vld [vmem:[%s11237_s6 + $0x850] sm:$0xff] }
 0x5ab   : > { %6122 = vmatpush1.bf16.msra.mxu0 %v6121_v33  ;;  %v5955_v33 = vpack.c.bf16 %v4282_v10, %v4276_v58  ;;  %v4336_v10 = vld [vmem:[%s11237_s6 + $0x8b8] sm:$0xff] }
 0x5ac   : > { %6124 = vmatprep.subr.bf16.mxu0 %v6123_v60  ;;  %v6141_v60 = vpack.c.bf16 %v4247_v8, %v4241_v29  ;;  %v4301_v8 = vld [vmem:[%s11237_s6 + $0x7a0] sm:$0xff] }
 0x5ad   : > { %5938 = vmatpush1.bf16.msra.mxu1 %v5937_v43  ;;  %v6143_v43 = vpack.c.bf16 %v4260_v2, %v4254_v39  ;;  %v4314_v2 = vld [vmem:[%s11237_s6 + $0x808] sm:$0xff] }
 0x5ae   : > { %5940 = vmatprep.subr.bf16.mxu1 %v5939_v25  ;;  %v5957_v25 = vpack.c.bf16 %v4281_v61, %v4275_v47  ;;  %v4335_v61 = vld [vmem:[%s11237_s6 + $0x8b0] sm:$0xff] }
 0x5af   : > { %6126 = vmatpush1.bf16.msra.mxu0 %v6125_v49  ;;  %v5959_v49 = vpack.c.bf16 %v4294_v27, %v4288_v12  ;;  %v4348_v27 = vld [vmem:[%s11237_s6 + $0x918] sm:$0xff] }
 0x5b0   : > { %6128 = vmatprep.subr.bf16.mxu0 %v6127_v24  ;;  %v6145_v24 = vpack.c.bf16 %v4259_v34, %v4253_v14  ;;  %v4313_v34 = vld [vmem:[%s11237_s6 + $0x800] sm:$0xff] }
 0x5b1   : > { %5942 = vmatpush1.bf16.msra.mxu1 %v5941_v56  ;;  %v6147_v56 = vpack.c.bf16 %v4272_v1, %v4266_v13  ;;  %v4326_v1 = vld [vmem:[%s11237_s6 + $0x868] sm:$0xff] }
 0x5b2   : > { %5944 = vmatprep.subr.bf16.mxu1 %v5943_v55  ;;  %v5961_v55 = vpack.c.bf16 %v4293_v62, %v4287_v53  ;;  %v4347_v62 = vld [vmem:[%s11237_s6 + $0x910] sm:$0xff] }
 0x5b3   : > { %6130 = vmatpush1.bf16.msra.mxu0 %v6129_v32  ;;  %v5963_v32 = vpack.c.bf16 %v4306_v46, %v4300_v42  ;;  %v4360_v46 = vld [vmem:[%s11237_s6 + $0x978] sm:$0xff] }
 0x5b4   : > { %6132 = vmatprep.subr.bf16.mxu0 %v6131_v37  ;;  %v6149_v37 = vpack.c.bf16 %v4271_v7, %v4265_v38  ;;  %v4325_v7 = vld [vmem:[%s11237_s6 + $0x860] sm:$0xff] }
 0x5b5   : > { %5946 = vmatpush1.bf16.msra.mxu1 %v5945_v35  ;;  %v4277_v35 = vld [vmem:[%s11237_s6 + $0x6e0] sm:$0xff] }
 0x5b6   : > { %5948 = vmatprep.subr.bf16.mxu1 %v5947_v9  ;;  %v4296_v9 = vld [vmem:[%s11237_s6 + $0x778] sm:$0xff]  ;;  %v6153_v3 = vpack.c.bf16 %v4283_v26, %v4277_v35  ;;  %v4337_v26 = vld [vmem:[%s11237_s6 + $0x8c0] sm:$0xff] }
 0x5b7   : > { %6134 = vmatpush1.bf16.msra.mxu0 %v6133_v30  ;;  %v4317_v30 = vld [vmem:[%s11237_s6 + $0x820] sm:$0xff]  ;;  %v6155_v21 = vpack.c.bf16 %v4296_v9, %v4290_v17  ;;  %v4350_v9 = vld [vmem:[%s11237_s6 + $0x928] sm:$0xff] }
 0x5b8   : > { %5031 = vmatmul.mubr.f32.vlgmr.msra.gmra.mrb[2].mxu1 %v9809_v20  ;;  %6136 = vmatprep.subr.bf16.mxu0 %v6135_v11  ;;  %v4330_v11 = vld [vmem:[%s11237_s6 + $0x888] sm:$0xff]  ;;  %v5969_v40 = vpack.c.bf16 %v4317_v30, %v4311_v28  ;;  %v4371_v30 = vld [vmem:[%s11237_s6 + $0x9d0] sm:$0xff] }
 0x5b9   : > { %5950 = vmatpush1.bf16.msra.mxu1 %v5949_v36  ;;  %5101 = vmatprep.mubr.f32.mxu1 %v10034_v19  ;;  %v4295_v36 = vld [vmem:[%s11237_s6 + $0x770] sm:$0xff]  ;;  %v5971_v63 = vpack.c.bf16 %v4330_v11, %v4324_v48  ;;  %v4384_v11 = vld [vmem:[%s11237_s6 + $0xa38] sm:$0xff] }
 0x5ba   : > { %5952 = vmatprep.subr.bf16.mxu1 %v5951_v59  ;;  %v4308_v59 = vld [vmem:[%s11237_s6 + $0x7d8] sm:$0xff]  ;;  %v6157_v58 = vpack.c.bf16 %v4295_v36, %v4289_v51  ;;  %v4349_v36 = vld [vmem:[%s11237_s6 + $0x920] sm:$0xff] }
 0x5bb   : > { %6138 = vmatpush1.bf16.msra.mxu0 %v6137_v18  ;;  %v4329_v18 = vld [vmem:[%s11237_s6 + $0x880] sm:$0xff]  ;;  %v6159_v29 = vpack.c.bf16 %v4308_v59, %v4302_v5  ;;  %v4362_v59 = vld [vmem:[%s11237_s6 + $0x988] sm:$0xff] }
 0x5bc   : > { %6140 = vmatprep.subr.bf16.mxu0 %v6139_v50  ;;  %v4342_v50 = vld [vmem:[%s11237_s6 + $0x8e8] sm:$0xff]  ;;  %v5973_v39 = vpack.c.bf16 %v4329_v18, %v4323_v57  ;;  %v4383_v18 = vld [vmem:[%s11237_s6 + $0xa30] sm:$0xff] }
 0x5bd   : > { %5954 = vmatpush1.bf16.msra.mxu1 %v5953_v23  ;;  %v4307_v23 = vld [vmem:[%s11237_s6 + $0x7d0] sm:$0xff]  ;;  %v5975_v47 = vpack.c.bf16 %v4342_v50, %v4336_v10  ;;  %v4396_v50 = vld [vmem:[%s11237_s6 + $0xa98] sm:$0xff] }
 0x5be   : > { %5956 = vmatprep.subr.bf16.mxu1 %v5955_v33  ;;  %v4320_v33 = vld [vmem:[%s11237_s6 + $0x838] sm:$0xff]  ;;  %v6161_v12 = vpack.c.bf16 %v4307_v23, %v4301_v8  ;;  %v4361_v23 = vld [vmem:[%s11237_s6 + $0x980] sm:$0xff] }
 0x5bf   : > { %6142 = vmatpush1.bf16.msra.mxu0 %v6141_v60  ;;  %v4341_v60 = vld [vmem:[%s11237_s6 + $0x8e0] sm:$0xff]  ;;  %v6163_v14 = vpack.c.bf16 %v4320_v33, %v4314_v2  ;;  %v4374_v33 = vld [vmem:[%s11237_s6 + $0x9e8] sm:$0xff] }
 0x5c0   : > { %6144 = vmatprep.subr.bf16.mxu0 %v6143_v43  ;;  %v4354_v43 = vld [vmem:[%s11237_s6 + $0x948] sm:$0xff]  ;;  %v5977_v13 = vpack.c.bf16 %v4341_v60, %v4335_v61  ;;  %v4395_v60 = vld [vmem:[%s11237_s6 + $0xa90] sm:$0xff] }
 0x5c1   : > { %5958 = vmatpush1.bf16.msra.mxu1 %v5957_v25  ;;  %v4319_v25 = vld [vmem:[%s11237_s6 + $0x830] sm:$0xff]  ;;  %v5979_v53 = vpack.c.bf16 %v4354_v43, %v4348_v27  ;;  %v4408_v43 = vld [vmem:[%s11237_s6 + $0xaf8] sm:$0xff] }
 0x5c2   : > { %5315 = vmatmul.mubr.f32.vlgmr.msra.gmra.mrb[4].mxu0 %v9809_v20  ;;  %5960 = vmatprep.subr.bf16.mxu1 %v5959_v49  ;;  %v4318_v20 = vld [vmem:[%s11237_s6 + $0x828] sm:$0xff]  ;;  %v4332_v49 = vld [vmem:[%s11237_s6 + $0x898] sm:$0xff]  ;;  %v6165_v42 = vpack.c.bf16 %v4319_v25, %v4313_v34  ;;  %v4373_v25 = vld [vmem:[%s11237_s6 + $0x9e0] sm:$0xff] }
 0x5c3   : > { %6146 = vmatpush1.bf16.msra.mxu0 %v6145_v24  ;;  %5385 = vmatprep.mubr.f32.mxu0 %v10034_v19  ;;  %v5965_v19 = vpack.c.bf16 %v4305_v41, %v4299_v16  ;;  %v5967_v15 = vpack.c.bf16 %v4318_v20, %v4312_v31  ;;  %v4353_v24 = vld [vmem:[%s11237_s6 + $0x940] sm:$0xff]  ;;  %v6167_v38 = vpack.c.bf16 %v4332_v49, %v4326_v1  ;;  %v4359_v41 = vld [vmem:[%s11237_s6 + $0x970] sm:$0xff]  ;;  %v4372_v20 = vld [vmem:[%s11237_s6 + $0x9d8] sm:$0xff] }
 0x5c4   : > { %6148 = vmatprep.subr.bf16.mxu0 %v6147_v56  ;;  %v4366_v56 = vld [vmem:[%s11237_s6 + $0x9a8] sm:$0xff]  ;;  %v5981_v0 = vpack.c.bf16 %v4353_v24, %v4347_v62  ;;  %v4407_v24 = vld [vmem:[%s11237_s6 + $0xaf0] sm:$0xff] }
 0x5c5   : > { %5962 = vmatpush1.bf16.msra.mxu1 %v5961_v55  ;;  %v4331_v55 = vld [vmem:[%s11237_s6 + $0x890] sm:$0xff]  ;;  %v5983_v16 = vpack.c.bf16 %v4366_v56, %v4360_v46  ;;  %v4386_v49 = vld [vmem:[%s11237_s6 + $0xa48] sm:$0xff]  ;;  %v4420_v56 = vld [vmem:[%s11237_s6 + $0xb58] sm:$0xff] }
 0x5c6   : > { %5964 = vmatprep.subr.bf16.mxu1 %v5963_v32  ;;  %v4344_v32 = vld [vmem:[%s11237_s6 + $0x8f8] sm:$0xff]  ;;  %v6169_v31 = vpack.c.bf16 %v4331_v55, %v4325_v7  ;;  %v4385_v55 = vld [vmem:[%s11237_s6 + $0xa40] sm:$0xff] }
 0x5c7   : > { %6150 = vmatpush1.bf16.msra.mxu0 %v6149_v37  ;;  %v4365_v37 = vld [vmem:[%s11237_s6 + $0x9a0] sm:$0xff]  ;;  %v6171_v35 = vpack.c.bf16 %v4344_v32, %v4338_v4  ;;  %v4398_v32 = vld [vmem:[%s11237_s6 + $0xaa8] sm:$0xff] }
 0x5c8   : > { %6152 = vmatprep.subr.bf16.mxu0 %v6151_v54  ;;  %v4378_v54 = vld [vmem:[%s11237_s6 + $0xa08] sm:$0xff]  ;;  %v5985_v17 = vpack.c.bf16 %v4365_v37, %v4359_v41  ;;  %v4419_v37 = vld [vmem:[%s11237_s6 + $0xb50] sm:$0xff] }
 0x5c9   : > { %5966 = vmatpush1.bf16.msra.mxu1 %v5965_v19  ;;  %v4343_v19 = vld [vmem:[%s11237_s6 + $0x8f0] sm:$0xff]  ;;  %v5987_v28 = vpack.c.bf16 %v4378_v54, %v4372_v20  ;;  %v4432_v54 = vld [vmem:[%s11237_s6 + $0xbb8] sm:$0xff] }
 0x5ca   : > { %5968 = vmatprep.subr.bf16.mxu1 %v5967_v15  ;;  %v4356_v15 = vld [vmem:[%s11237_s6 + $0x958] sm:$0xff]  ;;  %v6173_v48 = vpack.c.bf16 %v4343_v19, %v4337_v26  ;;  %v4397_v19 = vld [vmem:[%s11237_s6 + $0xaa0] sm:$0xff] }
 0x5cb   : > { %6154 = vmatpush1.bf16.msra.mxu0 %v6153_v3  ;;  %v4377_v3 = vld [vmem:[%s11237_s6 + $0xa00] sm:$0xff]  ;;  %v6175_v51 = vpack.c.bf16 %v4356_v15, %v4350_v9  ;;  %v4410_v15 = vld [vmem:[%s11237_s6 + $0xb08] sm:$0xff] }
 0x5cc   : > { %6156 = vmatprep.subr.bf16.mxu0 %v6155_v21  ;;  %v4390_v21 = vld [vmem:[%s11237_s6 + $0xa68] sm:$0xff]  ;;  %v5989_v5 = vpack.c.bf16 %v4377_v3, %v4371_v30  ;;  %v4431_v3 = vld [vmem:[%s11237_s6 + $0xbb0] sm:$0xff] }
 0x5cd   : > { %5970 = vmatpush1.bf16.msra.mxu1 %v5969_v40  ;;  %v4355_v40 = vld [vmem:[%s11237_s6 + $0x950] sm:$0xff]  ;;  %v5991_v57 = vpack.c.bf16 %v4390_v21, %v4384_v11  ;;  %v4444_v21 = vld [vmem:[%s11237_s6 + $0xc18] sm:$0xff] }
 0x5ce   : > { %5972 = vmatprep.subr.bf16.mxu1 %v5971_v63  ;;  %v4368_v63 = vld [vmem:[%s11237_s6 + $0x9b8] sm:$0xff]  ;;  %v6177_v10 = vpack.c.bf16 %v4355_v40, %v4349_v36  ;;  %v4409_v40 = vld [vmem:[%s11237_s6 + $0xb00] sm:$0xff] }
 0x5cf   : > { %6158 = vmatpush1.bf16.msra.mxu0 %v6157_v58  ;;  %v4389_v58 = vld [vmem:[%s11237_s6 + $0xa60] sm:$0xff]  ;;  %v6179_v8 = vpack.c.bf16 %v4368_v63, %v4362_v59  ;;  %v4422_v63 = vld [vmem:[%s11237_s6 + $0xb68] sm:$0xff] }
 0x5d0   : > { %6160 = vmatprep.subr.bf16.mxu0 %v6159_v29  ;;  %v4402_v29 = vld [vmem:[%s11237_s6 + $0xac8] sm:$0xff]  ;;  %v5993_v2 = vpack.c.bf16 %v4389_v58, %v4383_v18  ;;  %v4443_v58 = vld [vmem:[%s11237_s6 + $0xc10] sm:$0xff] }
 0x5d1   : > { %5974 = vmatpush1.bf16.msra.mxu1 %v5973_v39  ;;  %v4367_v39 = vld [vmem:[%s11237_s6 + $0x9b0] sm:$0xff]  ;;  %v5995_v61 = vpack.c.bf16 %v4402_v29, %v4396_v50  ;;  %v4456_v29 = vld [vmem:[%s11237_s6 + $0xc78] sm:$0xff] }
 0x5d2   : > { %5976 = vmatprep.subr.bf16.mxu1 %v5975_v47  ;;  %v4380_v47 = vld [vmem:[%s11237_s6 + $0xa18] sm:$0xff]  ;;  %v6181_v27 = vpack.c.bf16 %v4367_v39, %v4361_v23  ;;  %v4421_v39 = vld [vmem:[%s11237_s6 + $0xb60] sm:$0xff] }
 0x5d3   : > { %6162 = vmatpush1.bf16.msra.mxu0 %v6161_v12  ;;  %v4401_v12 = vld [vmem:[%s11237_s6 + $0xac0] sm:$0xff]  ;;  %v6183_v34 = vpack.c.bf16 %v4380_v47, %v4374_v33  ;;  %v4434_v47 = vld [vmem:[%s11237_s6 + $0xbc8] sm:$0xff] }
 0x5d4   : > { %6164 = vmatprep.subr.bf16.mxu0 %v6163_v14  ;;  %v4414_v14 = vld [vmem:[%s11237_s6 + $0xb28] sm:$0xff]  ;;  %v5997_v1 = vpack.c.bf16 %v4401_v12, %v4395_v60  ;;  %v4455_v12 = vld [vmem:[%s11237_s6 + $0xc70] sm:$0xff] }
 0x5d5   : > { %5978 = vmatpush1.bf16.msra.mxu1 %v5977_v13  ;;  %v4379_v13 = vld [vmem:[%s11237_s6 + $0xa10] sm:$0xff]  ;;  %v5999_v62 = vpack.c.bf16 %v4414_v14, %v4408_v43  ;;  %v4468_v14 = vld [vmem:[%s11237_s6 + $0xcd8] sm:$0xff] }
 0x5d6   : > { %5980 = vmatprep.subr.bf16.mxu1 %v5979_v53  ;;  %v4392_v53 = vld [vmem:[%s11237_s6 + $0xa78] sm:$0xff]  ;;  %v6185_v46 = vpack.c.bf16 %v4379_v13, %v4373_v25  ;;  %v4433_v13 = vld [vmem:[%s11237_s6 + $0xbc0] sm:$0xff] }
 0x5d7   : > { %6166 = vmatpush1.bf16.msra.mxu0 %v6165_v42  ;;  %v4413_v42 = vld [vmem:[%s11237_s6 + $0xb20] sm:$0xff]  ;;  %v6187_v7 = vpack.c.bf16 %v4392_v53, %v4386_v49  ;;  %v4446_v53 = vld [vmem:[%s11237_s6 + $0xc28] sm:$0xff] }
 0x5d8   : > { %6168 = vmatprep.subr.bf16.mxu0 %v6167_v38  ;;  %v4426_v38 = vld [vmem:[%s11237_s6 + $0xb88] sm:$0xff]  ;;  %v6001_v4 = vpack.c.bf16 %v4413_v42, %v4407_v24  ;;  %v4467_v42 = vld [vmem:[%s11237_s6 + $0xcd0] sm:$0xff] }
 0x5d9   : > { %5982 = vmatpush1.bf16.msra.mxu1 %v5981_v0  ;;  %v4391_v0 = vld [vmem:[%s11237_s6 + $0xa70] sm:$0xff]  ;;  %v6003_v41 = vpack.c.bf16 %v4426_v38, %v4420_v56  ;;  %v4480_v38 = vld [vmem:[%s11237_s6 + $0xd38] sm:$0xff] }
 0x5da   : > { %5984 = vmatprep.subr.bf16.mxu1 %v5983_v16  ;;  %v4404_v16 = vld [vmem:[%s11237_s6 + $0xad8] sm:$0xff]  ;;  %v6189_v20 = vpack.c.bf16 %v4391_v0, %v4385_v55  ;;  %v4445_v0 = vld [vmem:[%s11237_s6 + $0xc20] sm:$0xff] }
 0x5db   : > { %6170 = vmatpush1.bf16.msra.mxu0 %v6169_v31  ;;  %v4425_v31 = vld [vmem:[%s11237_s6 + $0xb80] sm:$0xff]  ;;  %v6191_v26 = vpack.c.bf16 %v4404_v16, %v4398_v32  ;;  %v4458_v16 = vld [vmem:[%s11237_s6 + $0xc88] sm:$0xff] }
 0x5dc   : > { %6172 = vmatprep.subr.bf16.mxu0 %v6171_v35  ;;  %v4438_v35 = vld [vmem:[%s11237_s6 + $0xbe8] sm:$0xff]  ;;  %v6005_v9 = vpack.c.bf16 %v4425_v31, %v4419_v37  ;;  %v4479_v31 = vld [vmem:[%s11237_s6 + $0xd30] sm:$0xff] }
 0x5dd   : > { %5986 = vmatpush1.bf16.msra.mxu1 %v5985_v17  ;;  %v4403_v17 = vld [vmem:[%s11237_s6 + $0xad0] sm:$0xff]  ;;  %v6007_v30 = vpack.c.bf16 %v4438_v35, %v4432_v54  ;;  %v4492_v35 = vld [vmem:[%s11237_s6 + $0xd98] sm:$0xff] }
 0x5de   : > { %5988 = vmatprep.subr.bf16.mxu1 %v5987_v28  ;;  %v4416_v28 = vld [vmem:[%s11237_s6 + $0xb38] sm:$0xff]  ;;  %v6193_v11 = vpack.c.bf16 %v4403_v17, %v4397_v19  ;;  %v4457_v17 = vld [vmem:[%s11237_s6 + $0xc80] sm:$0xff] }
 0x5df   : > { %6174 = vmatpush1.bf16.msra.mxu0 %v6173_v48  ;;  %v4437_v48 = vld [vmem:[%s11237_s6 + $0xbe0] sm:$0xff]  ;;  %v6195_v36 = vpack.c.bf16 %v4416_v28, %v4410_v15  ;;  %v4470_v28 = vld [vmem:[%s11237_s6 + $0xce8] sm:$0xff] }
 0x5e0   : > { %6176 = vmatprep.subr.bf16.mxu0 %v6175_v51  ;;  %v4450_v51 = vld [vmem:[%s11237_s6 + $0xc48] sm:$0xff]  ;;  %v6009_v59 = vpack.c.bf16 %v4437_v48, %v4431_v3  ;;  %v4491_v48 = vld [vmem:[%s11237_s6 + $0xd90] sm:$0xff] }
 0x5e1   : > { %5990 = vmatpush1.bf16.msra.mxu1 %v5989_v5  ;;  %v4415_v5 = vld [vmem:[%s11237_s6 + $0xb30] sm:$0xff]  ;;  %v6011_v18 = vpack.c.bf16 %v4450_v51, %v4444_v21  ;;  %v4504_v51 = vld [vmem:[%s11237_s6 + $0xdf8] sm:$0xff] }
 0x5e2   : > { %5992 = vmatprep.subr.bf16.mxu1 %v5991_v57  ;;  %v4428_v57 = vld [vmem:[%s11237_s6 + $0xb98] sm:$0xff]  ;;  %v6197_v50 = vpack.c.bf16 %v4415_v5, %v4409_v40  ;;  %v4469_v40 = vld [vmem:[%s11237_s6 + $0xce0] sm:$0xff]  ;;  %v4475_v5 = vld [vmem:[%s11237_s6 + $0xd10] sm:$0xff] }
 0x5e3   : > { %6178 = vmatpush1.bf16.msra.mxu0 %v6177_v10  ;;  %v4449_v10 = vld [vmem:[%s11237_s6 + $0xc40] sm:$0xff]  ;;  %v6199_v23 = vpack.c.bf16 %v4428_v57, %v4422_v63  ;;  %v4488_v63 = vld [vmem:[%s11237_s6 + $0xd78] sm:$0xff] }
 0x5e4   : > { %6180 = vmatprep.subr.bf16.mxu0 %v6179_v8  ;;  %v4462_v8 = vld [vmem:[%s11237_s6 + $0xca8] sm:$0xff]  ;;  %v6013_v33 = vpack.c.bf16 %v4449_v10, %v4443_v58  ;;  %v4509_v58 = vld [vmem:[%s11237_s6 + $0xe20] sm:$0xff]  ;;  %v6217_v10 = vpack.c.bf16 %v4475_v5, %v4469_v40  ;;  %v4535_v40 = vld [vmem:[%s11237_s6 + $0xef0] sm:$0xff] }
 0x5e5   : > { %5994 = vmatpush1.bf16.msra.mxu1 %v5993_v2  ;;  %v4427_v2 = vld [vmem:[%s11237_s6 + $0xb90] sm:$0xff]  ;;  %v6015_v60 = vpack.c.bf16 %v4462_v8, %v4456_v29  ;;  %v4522_v29 = vld [vmem:[%s11237_s6 + $0xe88] sm:$0xff] }
 0x5e6   : > { %5996 = vmatprep.subr.bf16.mxu1 %v5995_v61  ;;  %v4440_v61 = vld [vmem:[%s11237_s6 + $0xbf8] sm:$0xff]  ;;  %v6201_v43 = vpack.c.bf16 %v4427_v2, %v4421_v39  ;;  %v4487_v39 = vld [vmem:[%s11237_s6 + $0xd70] sm:$0xff] }
 0x5e7   : > { %6182 = vmatpush1.bf16.msra.mxu0 %v6181_v27  ;;  %v4461_v27 = vld [vmem:[%s11237_s6 + $0xca0] sm:$0xff]  ;;  %v6203_v25 = vpack.c.bf16 %v4440_v61, %v4434_v47  ;;  %v4500_v47 = vld [vmem:[%s11237_s6 + $0xdd8] sm:$0xff] }
 0x5e8   : > { %6184 = vmatprep.subr.bf16.mxu0 %v6183_v34  ;;  %v4474_v34 = vld [vmem:[%s11237_s6 + $0xd08] sm:$0xff]  ;;  %v6017_v49 = vpack.c.bf16 %v4461_v27, %v4455_v12  ;;  %v4521_v12 = vld [vmem:[%s11237_s6 + $0xe80] sm:$0xff] }
 0x5e9   : > { %5998 = vmatpush1.bf16.msra.mxu1 %v5997_v1  ;;  %v4439_v1 = vld [vmem:[%s11237_s6 + $0xbf0] sm:$0xff]  ;;  %v6019_v24 = vpack.c.bf16 %v4474_v34, %v4468_v14  ;;  %v4534_v14 = vld [vmem:[%s11237_s6 + $0xee8] sm:$0xff] }
 0x5ea   : > { %6000 = vmatprep.subr.bf16.mxu1 %v5999_v62  ;;  %v4452_v62 = vld [vmem:[%s11237_s6 + $0xc58] sm:$0xff]  ;;  %v6205_v56 = vpack.c.bf16 %v4439_v1, %v4433_v13  ;;  %v4499_v13 = vld [vmem:[%s11237_s6 + $0xdd0] sm:$0xff] }
 0x5eb   : > { %6186 = vmatpush1.bf16.msra.mxu0 %v6185_v46  ;;  %v4473_v46 = vld [vmem:[%s11237_s6 + $0xd00] sm:$0xff]  ;;  %v6207_v55 = vpack.c.bf16 %v4452_v62, %v4446_v53  ;;  %v4512_v53 = vld [vmem:[%s11237_s6 + $0xe38] sm:$0xff] }
 0x5ec   : > { %6188 = vmatprep.subr.bf16.mxu0 %v6187_v7  ;;  %v4486_v7 = vld [vmem:[%s11237_s6 + $0xd68] sm:$0xff]  ;;  %v6021_v32 = vpack.c.bf16 %v4473_v46, %v4467_v42  ;;  %v4533_v42 = vld [vmem:[%s11237_s6 + $0xee0] sm:$0xff] }
 0x5ed   : > { %6002 = vmatpush1.bf16.msra.mxu1 %v6001_v4  ;;  %v4451_v4 = vld [vmem:[%s11237_s6 + $0xc50] sm:$0xff]  ;;  %v6023_v37 = vpack.c.bf16 %v4486_v7, %v4480_v38  ;;  %v4546_v38 = vld [vmem:[%s11237_s6 + $0xf48] sm:$0xff] }
 0x5ee   : > { %6004 = vmatprep.subr.bf16.mxu1 %v6003_v41  ;;  %v4464_v41 = vld [vmem:[%s11237_s6 + $0xcb8] sm:$0xff]  ;;  %v6209_v54 = vpack.c.bf16 %v4451_v4, %v4445_v0  ;;  %v4511_v0 = vld [vmem:[%s11237_s6 + $0xe30] sm:$0xff] }
 0x5ef   : > { %6190 = vmatpush1.bf16.msra.mxu0 %v6189_v20  ;;  %v4485_v20 = vld [vmem:[%s11237_s6 + $0xd60] sm:$0xff]  ;;  %v6211_v19 = vpack.c.bf16 %v4464_v41, %v4458_v16  ;;  %v4524_v16 = vld [vmem:[%s11237_s6 + $0xe98] sm:$0xff] }
 0x5f0   : > { %6192 = vmatprep.subr.bf16.mxu0 %v6191_v26  ;;  %v4498_v26 = vld [vmem:[%s11237_s6 + $0xdc8] sm:$0xff]  ;;  %v6025_v15 = vpack.c.bf16 %v4485_v20, %v4479_v31  ;;  %v4545_v31 = vld [vmem:[%s11237_s6 + $0xf40] sm:$0xff] }
 0x5f1   : > { %6006 = vmatpush1.bf16.msra.mxu1 %v6005_v9  ;;  %v4463_v9 = vld [vmem:[%s11237_s6 + $0xcb0] sm:$0xff]  ;;  %v6027_v3 = vpack.c.bf16 %v4498_v26, %v4492_v35  ;;  %v4558_v35 = vld [vmem:[%s11237_s6 + $0xfa8] sm:$0xff] }
 0x5f2   : > { %6008 = vmatprep.subr.bf16.mxu1 %v6007_v30  ;;  %v4476_v30 = vld [vmem:[%s11237_s6 + $0xd18] sm:$0xff]  ;;  %v6213_v21 = vpack.c.bf16 %v4463_v9, %v4457_v17  ;;  %v4523_v17 = vld [vmem:[%s11237_s6 + $0xe90] sm:$0xff] }
 0x5f3   : > { %6194 = vmatpush1.bf16.msra.mxu0 %v6193_v11  ;;  %v4497_v11 = vld [vmem:[%s11237_s6 + $0xdc0] sm:$0xff] }
 0x5f4   : > { %6196 = vmatprep.subr.bf16.mxu0 %v6195_v36  ;;  %v6215_v36 = vpack.c.bf16 %v4476_v30, %v4470_v28  ;;  %v4536_v28 = vld [vmem:[%s11237_s6 + $0xef8] sm:$0xff] }
 0x5f5   : > { %6010 = vmatpush1.bf16.msra.mxu1 %v6009_v59  ;;  %v4482_v59 = vld [vmem:[%s11237_s6 + $0xd48] sm:$0xff] }
 0x5f6   : > { %6012 = vmatprep.subr.bf16.mxu1 %v6011_v18  ;;  %v4503_v18 = vld [vmem:[%s11237_s6 + $0xdf0] sm:$0xff]  ;;  %v6219_v8 = vpack.c.bf16 %v4488_v63, %v4482_v59  ;;  %v4548_v59 = vld [vmem:[%s11237_s6 + $0xf58] sm:$0xff] }
 0x5f7   : > { %6198 = vmatpush1.bf16.msra.mxu0 %v6197_v50  ;;  %v4516_v50 = vld [vmem:[%s11237_s6 + $0xe58] sm:$0xff]  ;;  %v6033_v2 = vpack.c.bf16 %v4509_v58, %v4503_v18  ;;  %v4569_v18 = vld [vmem:[%s11237_s6 + $0x1000] sm:$0xff] }
 0x5f8   : > { %5102 = vmatmul.mubr.f32.vlgmr.msra.gmra.mrb[2].mxu1 %v10030_v44  ;;  %6200 = vmatprep.subr.bf16.mxu0 %v6199_v23  ;;  %v4481_v23 = vld [vmem:[%s11237_s6 + $0xd40] sm:$0xff]  ;;  %v6035_v61 = vpack.c.bf16 %v4522_v29, %v4516_v50  ;;  %v4582_v50 = vld [vmem:[%s11237_s6 + $0x1068] sm:$0xff] }
 0x5f9   : > { %6014 = vmatpush1.bf16.msra.mxu1 %v6013_v33  ;;  %5172 = vmatprep.mubr.f32.mxu1 %v10021_v52  ;;  %v4494_v33 = vld [vmem:[%s11237_s6 + $0xda8] sm:$0xff]  ;;  %v6221_v27 = vpack.c.bf16 %v4487_v39, %v4481_v23  ;;  %v4547_v23 = vld [vmem:[%s11237_s6 + $0xf50] sm:$0xff] }
 0x5fa   : > { %6016 = vmatprep.subr.bf16.mxu1 %v6015_v60  ;;  %v4515_v60 = vld [vmem:[%s11237_s6 + $0xe50] sm:$0xff]  ;;  %v6223_v34 = vpack.c.bf16 %v4500_v47, %v4494_v33  ;;  %v4560_v33 = vld [vmem:[%s11237_s6 + $0xfb8] sm:$0xff] }
 0x5fb   : > { %6202 = vmatpush1.bf16.msra.mxu0 %v6201_v43  ;;  %v4528_v43 = vld [vmem:[%s11237_s6 + $0xeb8] sm:$0xff]  ;;  %v6037_v1 = vpack.c.bf16 %v4521_v12, %v4515_v60  ;;  %v4581_v60 = vld [vmem:[%s11237_s6 + $0x1060] sm:$0xff] }
 0x5fc   : > { %6204 = vmatprep.subr.bf16.mxu0 %v6203_v25  ;;  %v4493_v25 = vld [vmem:[%s11237_s6 + $0xda0] sm:$0xff]  ;;  %v6039_v62 = vpack.c.bf16 %v4534_v14, %v4528_v43  ;;  %v4594_v43 = vld [vmem:[%s11237_s6 + $0x10c8] sm:$0xff] }
 0x5fd   : > { %6018 = vmatpush1.bf16.msra.mxu1 %v6017_v49  ;;  %v4506_v49 = vld [vmem:[%s11237_s6 + $0xe08] sm:$0xff]  ;;  %v6225_v46 = vpack.c.bf16 %v4499_v13, %v4493_v25  ;;  %v4559_v25 = vld [vmem:[%s11237_s6 + $0xfb0] sm:$0xff] }
 0x5fe   : > { %6020 = vmatprep.subr.bf16.mxu1 %v6019_v24  ;;  %v4527_v24 = vld [vmem:[%s11237_s6 + $0xeb0] sm:$0xff]  ;;  %v6227_v7 = vpack.c.bf16 %v4512_v53, %v4506_v49  ;;  %v4572_v49 = vld [vmem:[%s11237_s6 + $0x1018] sm:$0xff] }
 0x5ff   : > { %6206 = vmatpush1.bf16.msra.mxu0 %v6205_v56  ;;  %v4540_v56 = vld [vmem:[%s11237_s6 + $0xf18] sm:$0xff]  ;;  %v6041_v4 = vpack.c.bf16 %v4533_v42, %v4527_v24  ;;  %v4593_v24 = vld [vmem:[%s11237_s6 + $0x10c0] sm:$0xff] }
 0x600   : > { %6208 = vmatprep.subr.bf16.mxu0 %v6207_v55  ;;  %v4505_v55 = vld [vmem:[%s11237_s6 + $0xe00] sm:$0xff]  ;;  %v6043_v41 = vpack.c.bf16 %v4546_v38, %v4540_v56  ;;  %v4606_v56 = vld [vmem:[%s11237_s6 + $0x1128] sm:$0xff] }
 0x601   : > { %6022 = vmatpush1.bf16.msra.mxu1 %v6021_v32  ;;  %v4518_v32 = vld [vmem:[%s11237_s6 + $0xe68] sm:$0xff]  ;;  %v6229_v20 = vpack.c.bf16 %v4511_v0, %v4505_v55  ;;  %v4571_v55 = vld [vmem:[%s11237_s6 + $0x1010] sm:$0xff] }
 0x602   : > { %5386 = vmatmul.mubr.f32.vlgmr.msra.gmra.mrb[4].mxu0 %v10030_v44  ;;  %6024 = vmatprep.subr.bf16.mxu1 %v6023_v37  ;;  %v4510_v44 = vld [vmem:[%s11237_s6 + $0xe28] sm:$0xff]  ;;  %v4539_v37 = vld [vmem:[%s11237_s6 + $0xf10] sm:$0xff]  ;;  %v6231_v26 = vpack.c.bf16 %v4524_v16, %v4518_v32  ;;  %v4584_v32 = vld [vmem:[%s11237_s6 + $0x1078] sm:$0xff] }
 0x603   : > { %6210 = vmatpush1.bf16.msra.mxu0 %v6209_v54  ;;  %5456 = vmatprep.mubr.f32.mxu0 %v10021_v52  ;;  %v6029_v52 = vpack.c.bf16 %v4497_v11, %v4491_v48  ;;  %v6031_v57 = vpack.c.bf16 %v4510_v44, %v4504_v51  ;;  %v4552_v54 = vld [vmem:[%s11237_s6 + $0xf78] sm:$0xff]  ;;  %v6045_v9 = vpack.c.bf16 %v4545_v31, %v4539_v37  ;;  %v4557_v48 = vld [vmem:[%s11237_s6 + $0xfa0] sm:$0xff]  ;;  %v4570_v51 = vld [vmem:[%s11237_s6 + $0x1008] sm:$0xff] }
 0x604   : > { %6212 = vmatprep.subr.bf16.mxu0 %v6211_v19  ;;  %v4517_v19 = vld [vmem:[%s11237_s6 + $0xe60] sm:$0xff]  ;;  %v6047_v30 = vpack.c.bf16 %v4558_v35, %v4552_v54  ;;  %v4618_v54 = vld [vmem:[%s11237_s6 + $0x1188] sm:$0xff] }
 0x605   : > { %6026 = vmatpush1.bf16.msra.mxu1 %v6025_v15  ;;  %v4530_v15 = vld [vmem:[%s11237_s6 + $0xec8] sm:$0xff]  ;;  %v6233_v11 = vpack.c.bf16 %v4523_v17, %v4517_v19  ;;  %v4605_v37 = vld [vmem:[%s11237_s6 + $0x1120] sm:$0xff]  ;;  %v4583_v19 = vld [vmem:[%s11237_s6 + $0x1070] sm:$0xff] }
 0x606   : > { %6028 = vmatprep.subr.bf16.mxu1 %v6027_v3  ;;  %v4551_v3 = vld [vmem:[%s11237_s6 + $0xf70] sm:$0xff]  ;;  %v6235_v44 = vpack.c.bf16 %v4536_v28, %v4530_v15  ;;  %v4596_v15 = vld [vmem:[%s11237_s6 + $0x10d8] sm:$0xff] }
 0x607   : > { %6214 = vmatpush1.bf16.msra.mxu0 %v6213_v21  ;;  %v4564_v21 = vld [vmem:[%s11237_s6 + $0xfd8] sm:$0xff]  ;;  %v6049_v5 = vpack.c.bf16 %v4557_v48, %v4551_v3  ;;  %v4617_v3 = vld [vmem:[%s11237_s6 + $0x1180] sm:$0xff] }
 0x608   : > { %6216 = vmatprep.subr.bf16.mxu0 %v6215_v36  ;;  %v4529_v36 = vld [vmem:[%s11237_s6 + $0xec0] sm:$0xff]  ;;  %v6051_v63 = vpack.c.bf16 %v4570_v51, %v4564_v21  ;;  %v4630_v21 = vld [vmem:[%s11237_s6 + $0x11e8] sm:$0xff] }
 0x609   : > { %6030 = vmatpush1.bf16.msra.mxu1 %v6029_v52  ;;  %v4542_v52 = vld [vmem:[%s11237_s6 + $0xf28] sm:$0xff]  ;;  %v6237_v58 = vpack.c.bf16 %v4535_v40, %v4529_v36  ;;  %v4595_v36 = vld [vmem:[%s11237_s6 + $0x10d0] sm:$0xff] }
 0x60a   : > { %6032 = vmatprep.subr.bf16.mxu1 %v6031_v57  ;;  %v4563_v57 = vld [vmem:[%s11237_s6 + $0xfd0] sm:$0xff]  ;;  %v6239_v29 = vpack.c.bf16 %v4548_v59, %v4542_v52  ;;  %v4608_v52 = vld [vmem:[%s11237_s6 + $0x1138] sm:$0xff] }
 0x60b   : > { %6218 = vmatpush1.bf16.msra.mxu0 %v6217_v10  ;;  %v4576_v10 = vld [vmem:[%s11237_s6 + $0x1038] sm:$0xff]  ;;  %v6053_v39 = vpack.c.bf16 %v4569_v18, %v4563_v57  ;;  %v4629_v57 = vld [vmem:[%s11237_s6 + $0x11e0] sm:$0xff] }
 0x60c   : > { %6220 = vmatprep.subr.bf16.mxu0 %v6219_v8  ;;  %v4541_v8 = vld [vmem:[%s11237_s6 + $0xf20] sm:$0xff]  ;;  %v6055_v47 = vpack.c.bf16 %v4582_v50, %v4576_v10  ;;  %v4607_v50 = vld [vmem:[%s11237_s6 + $0x1130] sm:$0xff] }
 0x60d   : > { %6034 = vmatpush1.bf16.msra.mxu1 %v6033_v2  ;;  %v4554_v2 = vld [vmem:[%s11237_s6 + $0xf88] sm:$0xff]  ;;  %v6241_v12 = vpack.c.bf16 %v4547_v23, %v4541_v8  ;;  %v4601_v10 = vld [vmem:[%s11237_s6 + $0x1100] sm:$0xff]  ;;  %v4620_v23 = vld [vmem:[%s11237_s6 + $0x1198] sm:$0xff] }
 0x60e   : > { %6036 = vmatprep.subr.bf16.mxu1 %v6035_v61  ;;  %v4575_v61 = vld [vmem:[%s11237_s6 + $0x1030] sm:$0xff]  ;;  %v6243_v14 = vpack.c.bf16 %v4560_v33, %v4554_v2  ;;  %v4614_v8 = vld [vmem:[%s11237_s6 + $0x1168] sm:$0xff]  ;;  %v4613_v33 = vld [vmem:[%s11237_s6 + $0x1160] sm:$0xff] }
 0x60f   : > { %6222 = vmatpush1.bf16.msra.mxu0 %v6221_v27  ;;  %v4588_v27 = vld [vmem:[%s11237_s6 + $0x1098] sm:$0xff]  ;;  %v6057_v13 = vpack.c.bf16 %v4581_v60, %v4575_v61  ;;  %v6263_v2 = vpack.c.bf16 %v4620_v23, %v4614_v8  ;;  %v4626_v61 = vld [vmem:[%s11237_s6 + $0x11c8] sm:$0xff] }
 0x610   : > { %6224 = vmatprep.subr.bf16.mxu0 %v6223_v34  ;;  %v4553_v34 = vld [vmem:[%s11237_s6 + $0xf80] sm:$0xff]  ;;  %v6059_v53 = vpack.c.bf16 %v4594_v43, %v4588_v27  ;;  %v4632_v60 = vld [vmem:[%s11237_s6 + $0x11f8] sm:$0xff] }
 0x611   : > { %6038 = vmatpush1.bf16.msra.mxu1 %v6037_v1  ;;  %v4566_v1 = vld [vmem:[%s11237_s6 + $0xfe8] sm:$0xff]  ;;  %v6245_v42 = vpack.c.bf16 %v4559_v25, %v4553_v34  ;;  %v6267_v27 = vpack.c.bf16 %v4632_v60, %v4626_v61  ;;  %v4625_v43 = vld [vmem:[%s11237_s6 + $0x11c0] sm:$0xff]  ;;  %v4644_v25 = vld [vmem:[%s11237_s6 + $0x1258] sm:$0xff] }
 0x612   : > { %6040 = vmatprep.subr.bf16.mxu1 %v6039_v62  ;;  %v4587_v62 = vld [vmem:[%s11237_s6 + $0x1090] sm:$0xff]  ;;  %v6247_v38 = vpack.c.bf16 %v4572_v49, %v4566_v1  ;;  %v4638_v34 = vld [vmem:[%s11237_s6 + $0x1228] sm:$0xff]  ;;  %v4637_v49 = vld [vmem:[%s11237_s6 + $0x1220] sm:$0xff] }
 0x613   : > { %6226 = vmatpush1.bf16.msra.mxu0 %v6225_v46  ;;  %v4600_v46 = vld [vmem:[%s11237_s6 + $0x10f8] sm:$0xff]  ;;  %v6061_v0 = vpack.c.bf16 %v4593_v24, %v4587_v62  ;;  %v6271_v1 = vpack.c.bf16 %v4644_v25, %v4638_v34 }
 0x614   : > { %6228 = vmatprep.subr.bf16.mxu0 %v6227_v7  ;;  %v4565_v7 = vld [vmem:[%s11237_s6 + $0xfe0] sm:$0xff]  ;;  %v6063_v16 = vpack.c.bf16 %v4606_v56, %v4600_v46 }
 0x615   : > { %6042 = vmatpush1.bf16.msra.mxu1 %v6041_v4  ;;  %v4578_v4 = vld [vmem:[%s11237_s6 + $0x1048] sm:$0xff]  ;;  %v6249_v31 = vpack.c.bf16 %v4571_v55, %v4565_v7  ;;  %v11729_v55 = vld [vmem:[#allocation3_spill] sm:$0xff] }
 0x616   : > { %6044 = vmatprep.subr.bf16.mxu1 %v6043_v41  ;;  %v4599_v41 = vld [vmem:[%s11237_s6 + $0x10f0] sm:$0xff]  ;;  %v6251_v35 = vpack.c.bf16 %v4584_v32, %v4578_v4  ;;  %v5534_v32 = vld [vmem:[%s11238_s7] sm:$0x1] }
 0x617   : > { %6230 = vmatpush1.bf16.msra.mxu0 %v6229_v20  ;;  %v4612_v20 = vld [vmem:[%s11237_s6 + $0x1158] sm:$0xff]  ;;  %v6065_v17 = vpack.c.bf16 %v4605_v37, %v4599_v41 }
 0x618   : > { %6232 = vmatprep.subr.bf16.mxu0 %v6231_v26  ;;  %v4577_v26 = vld [vmem:[%s11237_s6 + $0x1040] sm:$0xff]  ;;  %v6067_v28 = vpack.c.bf16 %v4618_v54, %v4612_v20 }
 0x619   : > { %6046 = vmatpush1.bf16.msra.mxu1 %v6045_v9  ;;  %v4590_v9 = vld [vmem:[%s11237_s6 + $0x10a8] sm:$0xff]  ;;  %v6253_v48 = vpack.c.bf16 %v4583_v19, %v4577_v26 }
 0x61a   : > { %6048 = vmatprep.subr.bf16.mxu1 %v6047_v30  ;;  %v4611_v30 = vld [vmem:[%s11237_s6 + $0x1150] sm:$0xff]  ;;  %v6255_v51 = vpack.c.bf16 %v4596_v15, %v4590_v9 }
 0x61b   : > { %6234 = vmatpush1.bf16.msra.mxu0 %v6233_v11  ;;  %v4624_v11 = vld [vmem:[%s11237_s6 + $0x11b8] sm:$0xff]  ;;  %v6069_v40 = vpack.c.bf16 %v4617_v3, %v4611_v30 }
 0x61c   : > { %6236 = vmatprep.subr.bf16.mxu0 %v6235_v44  ;;  %v4589_v44 = vld [vmem:[%s11237_s6 + $0x10a0] sm:$0xff]  ;;  %v6071_v59 = vpack.c.bf16 %v4630_v21, %v4624_v11 }
 0x61d   : > { %6050 = vmatpush1.bf16.msra.mxu1 %v6049_v5  ;;  %v4602_v5 = vld [vmem:[%s11237_s6 + $0x1108] sm:$0xff]  ;;  %v6257_v18 = vpack.c.bf16 %v4595_v36, %v4589_v44 }
 0x61e   : > { %6052 = vmatprep.subr.bf16.mxu1 %v6051_v63  ;;  %v4623_v63 = vld [vmem:[%s11237_s6 + $0x11b0] sm:$0xff] }
 0x61f   : > { %6238 = vmatpush1.bf16.msra.mxu0 %v6237_v58  ;;  %v6259_v58 = vpack.c.bf16 %v4608_v52, %v4602_v5 }
 0x620   : > { %6240 = vmatprep.subr.bf16.mxu0 %v6239_v29  ;;  %v6073_v29 = vpack.c.bf16 %v4629_v57, %v4623_v63 }
 0x621   : > { %6054 = vmatpush1.bf16.msra.mxu1 %v6053_v39  ;;  %v6261_v39 = vpack.c.bf16 %v4607_v50, %v4601_v10 }
 0x622   : > { %6056 = vmatprep.subr.bf16.mxu1 %v6055_v47  ;;  %v4619_v47 = vld [vmem:[%s11237_s6 + $0x1190] sm:$0xff] }
 0x623   : > { %6242 = vmatpush1.bf16.msra.mxu0 %v6241_v12  ;;  %v6265_v12 = vpack.c.bf16 %v4619_v47, %v4613_v33 }
 0x624   : > { %6244 = vmatprep.subr.bf16.mxu0 %v6243_v14  ;;  %v4631_v14 = vld [vmem:[%s11237_s6 + $0x11f0] sm:$0xff] }
 0x625   : > { %6058 = vmatpush1.bf16.msra.mxu1 %v6057_v13  ;;  %v6269_v13 = vpack.c.bf16 %v4631_v14, %v4625_v43 }
 0x626   : > { %6060 = vmatprep.subr.bf16.mxu1 %v6059_v53  ;;  %v4643_v53 = vld [vmem:[%s11237_s6 + $0x1250] sm:$0xff] }
 0x627   : > { %6246 = vmatpush1.bf16.msra.mxu0 %v6245_v42  ;;  %v6273_v62 = vpack.c.bf16 %v4643_v53, %v4637_v49 }
 0x628   : > { %6248 = vmatprep.subr.bf16.mxu0 %v6247_v38 }
 0x629   : > { %6062 = vmatpush1.bf16.msra.mxu1 %v6061_v0 }
 0x62a   : > { %6064 = vmatprep.subr.bf16.mxu1 %v6063_v16 }
 0x62b   : > { %6250 = vmatpush1.bf16.msra.mxu0 %v6249_v31 }
 0x62c   : > { %6252 = vmatprep.subr.bf16.mxu0 %v6251_v35 }
 0x62d   : > { %6066 = vmatpush1.bf16.msra.mxu1 %v6065_v17 }
 0x62e   : > { %6068 = vmatprep.subr.bf16.mxu1 %v6067_v28 }
 0x62f   : > { %6254 = vmatpush1.bf16.msra.mxu0 %v6253_v48 }
 0x630   : > { %6256 = vmatprep.subr.bf16.mxu0 %v6255_v51 }
 0x631   : > { %6070 = vmatpush1.bf16.msra.mxu1 %v6069_v40 }
 0x632   : > { %6072 = vmatprep.subr.bf16.mxu1 %v6071_v59 }
 0x633   : > { %6258 = vmatpush1.bf16.msra.mxu0 %v6257_v18 }
 0x634   : > { %6260 = vmatprep.subr.bf16.mxu0 %v6259_v58 }
 0x635   : > { %6074 = vmatpush1.bf16.msra.mxu1 %v6073_v29 }
 0x637   : > { %6262 = vmatpush1.bf16.msra.mxu0 %v6261_v39 }
 0x638   : > { %5173 = vmatmul.mubr.f32.vlgmr.msra.gmra.mrb[2].mxu1 %v10024_v22  ;;  %6264 = vmatprep.subr.bf16.mxu0 %v6263_v2 }
 0x63b   : > { %6266 = vmatpush1.bf16.msra.mxu0 %v6265_v12 }
 0x63c   : > { %6268 = vmatprep.subr.bf16.mxu0 %v6267_v27 }
 0x63f   : > { %6270 = vmatpush1.bf16.msra.mxu0 %v6269_v13 }
 0x640   : > { %6272 = vmatprep.subr.bf16.mxu0 %v6271_v1 }
 0x642   : > { %5457 = vmatmul.mubr.f32.vlgmr.msra.gmra.mrb[4].mxu0 %v10024_v22 }
 0x643   : > { %6274 = vmatpush1.bf16.msra.mxu0 %v6273_v62  ;;  %5527 = vmatprep.mubr.f32.mxu0 %v11728_v6 }
 0x64a   : > { %5684 = vmatmul.mubr.msk.f32.vlgmr.msra.gmra.mrb[4].mxu0 %vm4679_vm4, %v10008_v45 }
 0x64b   : > { %v4819_v24 = vpop.f32.mrb[0].mxu1 }
 0x64c   : > { %v4821_v42 = vpop.f32.mrb[1].mxu1 }
 0x651   : > { %v4961_v46 = vpop.f32.mrb[0].mxu0 }
 0x652   : > { %v6275_v56 = vadd.f32 %v4961_v46, %v4819_v24  ;;  %v4963_v38 = vpop.f32.mrb[1].mxu0 }
 0x653   : > { %v6276_v7 = vadd.f32 %v4963_v38, %v4821_v42 }
 0x654   : > { %v5535_v41 = vadd.f32 %v6275_v56, %v5534_v32 }
 0x655   : > { %v5543_v0 = vrot.slane %v6276_v7, %v11729_v55  ;;  %v5245_v4 = vpop.f32.mrb[2].mxu0 }
 0x656   : > { %v5247_v22 = vpop.f32.mrb[3].mxu0 }
 0x657   : > { %v5544_v16 = vcombine.high %v5543_v0, %v5543_v0 }
 0x659   : > { %v5551_v6 = vrot.slane %v5544_v16, %v11729_v55 }
 0x65b   : > { %v5553_v37 = vadd.f32 %v5551_v6, %v5535_v41 }
 0x70b   : > { %v5174_v45 = vpop.f32.mrb[2].mxu1 }
 0x70c   : > { %v6277_v31 = vadd.f32 %v5245_v4, %v5174_v45  ;;  %v5176_v20 = vpop.f32.mrb[3].mxu1 }
 0x70d   : > { %v6278_v54 = vadd.f32 %v5247_v22, %v5176_v20 }
 0x70e   : > { %v5561_v35 = vrot.slane %v6277_v31, %v11729_v55 }
 0x70f   : > { %v5579_v26 = vrot.slane %v6278_v54, %v11729_v55 }
 0x710   : > { %v5568_v19 = vrot.slane %v5561_v35, %v11729_v55 }
 0x711   : > { %v5580_v17 = vcombine.high %v5579_v26, %v5579_v26 }
 0x712   : > { %v5569_v9 = vcombine.high %v5568_v19, %v5568_v19 }
 0x713   : > { %v5587_v15 = vrot.slane %v5580_v17, %v11729_v55 }
 0x714   : > { %v5571_v28 = vadd.f32 %v5569_v9, %v5553_v37 }
 0x715   : > { %v5588_v30 = vcombine.high %v5587_v15, %v5587_v15 }
 0x717   : > { %v5590_v3 = vadd.f32 %v5588_v30, %v5571_v28 }
 0x71d   : > { %v5529_v48 = vpop.f32.mrb[4].mxu0 }
 0x71e   : > { %v5592_v11 = vcombine.high %v5529_v48, %v5529_v48  ;;  %v5531_v21 = vpop.f32.mrb[5].mxu0 }
 0x71f   : > { %v5610_v51 = vcombine.high %v5531_v21, %v5531_v21 }
 0x720   : > { %v5599_v44 = vrot.slane %v5592_v11, %v11729_v55 }
 0x721   : > { %v5617_v36 = vrot.slane %v5610_v51, %v11729_v55 }
 0x722   : > { %v5606_v40 = vrot.slane %v5599_v44, %v11729_v55 }
 0x723   : > { %v5618_v5 = vcombine.high %v5617_v36, %v5617_v36 }
 0x724   : > { %v5608_v52 = vadd.f32 %v5606_v40, %v5590_v3 }
 0x725   : > { %v5625_v59 = vrot.slane %v5618_v5, %v11729_v55 }
 0x727   : > { %v5627_v63 = vadd.f32 %v5625_v59, %v5608_v52 }
 0x729   : > { %v5628_v57 = vmax.f32 %v5627_v63, 0.0 }
 0x72b   : > { %5629 = vst [vmem:[%s298_s25] sm:$0x1] %v5628_v57 }
 0x72c PF: > { %s18_s27 = sadd.s32 1, %s6459_s27  }
 0x72d   : > { %p15_p4 = scmp.ge.s32.totalorder %s18_s27, 4  }
 0x72f   :  { %17 = sbr.rel (!%p15_p4) target bundleno = 1 (0x1), region = 82 }

</bundles_post_ra>
